<compile_context>
chip_gen: v7x
topology: tpu7x:2x2x1
jax: 0.10.0
libtpu: 0.0.40
codegen_flags: <defaults>
</compile_context>

<pallas_src>
import functools
import numpy as np

import jax
import jax.numpy as jnp
from jax.experimental import pallas as pl
from jax.experimental.pallas import tpu as pltpu


# ----------------------------------------------------------------------------
# Config (small stand-ins for ResNet50 / DistilBERT widths)
# ----------------------------------------------------------------------------
VOCAB, SEQ, HIDDEN, HEADS, FFN, LAYERS = 100, 8, 64, 4, 128, 2
C_STEM, C_MID, C_OUT = 16, 16, 32
EMBED = HIDDEN                         # image fc projects C_OUT -> EMBED (real: 2048 -> 768)
IMG = 16
LN_EPS = 1e-12
NEG_INF = -1e9
# NOTE: toy widths (64/192/128) are below one 128-lane vreg; tune/benchmark only
# at real widths (768/2304/3072/2048), which are 128-multiples.


def _default_vmem_limit():
    # ~3/4 of physical VMEM, capped at 100 MiB: ~96 MiB on v5e/v6e (128 MiB),
    # ~48 MiB on v7x (64 MiB).  Falls back to a conservative value if the query
    # is unavailable.
    try:
        phys = int(pltpu.get_tpu_info().vmem_capacity_bytes)
        return min((phys * 3) // 4, 100 * 1024 * 1024)
    except Exception:
        return 48 * 1024 * 1024


VMEM_LIMIT = _default_vmem_limit()


def _cparams(*sem):
    return pltpu.CompilerParams(dimension_semantics=sem, vmem_limit_bytes=VMEM_LIMIT)


# ----------------------------------------------------------------------------
# Generic M/N-tiled linear (bias + optional ReLU fused), bf16 operands, f32 acc
# ----------------------------------------------------------------------------
def _linear_kernel(act, a_ref, w_ref, b_ref, o_ref):
    acc = jnp.dot(a_ref[...].astype(jnp.bfloat16), w_ref[...],
                  preferred_element_type=jnp.float32) + b_ref[...]
    if act == "relu":
        acc = jnp.maximum(acc, 0.0)
    o_ref[...] = acc.astype(o_ref.dtype)


def linear(a, w_bf16, b, act="none", tm=512, tn=256, out_dtype=jnp.bfloat16):
    M, K = a.shape
    N = w_bf16.shape[1]
    tm = min(tm, M)
    tn = min(tn, N)
    return pl.pallas_call(
        functools.partial(_linear_kernel, act),
        grid=(pl.cdiv(M, tm), pl.cdiv(N, tn)),
        in_specs=[pl.BlockSpec((tm, K), lambda i, j: (i, 0)),
                  pl.BlockSpec((K, tn), lambda i, j: (0, j)),
                  pl.BlockSpec((1, tn), lambda i, j: (0, j))],
        out_specs=pl.BlockSpec((tm, tn), lambda i, j: (i, j)),
        out_shape=jax.ShapeDtypeStruct((M, N), out_dtype),
        compiler_params=_cparams("parallel", "parallel"),
    )(a, w_bf16, b.reshape(1, N))


# ----------------------------------------------------------------------------
# 3x3 conv: in-VMEM im2col (concat 9 shifted windows) + ONE big matmul per image
# ----------------------------------------------------------------------------
def _conv3x3_kernel(Ho, Wo, relu, xp_ref, w_ref, b_ref, o_ref):
    # xp_ref: (Hp, Wp, Cin) padded bf16 image (batch handled by the grid)
    # w_ref : (9*Cin, Cout) bf16, taps in (ki, kj) row-major order
    cin = xp_ref.shape[-1]
    cols = []
    for ki in range(3):
        for kj in range(3):
            cols.append(xp_ref[ki:ki + Ho, kj:kj + Wo, :].reshape(Ho * Wo, cin))
    patches = jnp.concatenate(cols, axis=-1)                      # (Ho*Wo, 9*Cin) bf16
    acc = jnp.dot(patches, w_ref[...],
                  preferred_element_type=jnp.float32) + b_ref[...]
    if relu:
        acc = jnp.maximum(acc, 0.0)
    o_ref[...] = acc.reshape(Ho, Wo, -1).astype(o_ref.dtype)


def conv3x3(x_nhwc, w, b, relu=True):
    # TODO(synk): at real ResNet stage sizes, additionally tile over output rows
    # (halo'd H blocks) so the padded image is not fully resident per grid step.
    B, H, W, Cin = x_nhwc.shape
    Cout = w.shape[-1]
    xp = jnp.pad(x_nhwc.astype(jnp.bfloat16), ((0, 0), (1, 1), (1, 1), (0, 0)))
    Hp, Wp = H + 2, W + 2
    return pl.pallas_call(
        functools.partial(_conv3x3_kernel, H, W, relu),
        grid=(B,),
        in_specs=[pl.BlockSpec((None, Hp, Wp, Cin), lambda bi: (bi, 0, 0, 0)),
                  pl.BlockSpec((9 * Cin, Cout), lambda bi: (0, 0)),
                  pl.BlockSpec((1, Cout), lambda bi: (0, 0))],
        out_specs=pl.BlockSpec((None, H, W, Cout), lambda bi: (bi, 0, 0, 0)),
        out_shape=jax.ShapeDtypeStruct((B, H, W, Cout), jnp.bfloat16),
        compiler_params=_cparams("parallel"),
    )(xp, w, b.reshape(1, Cout))


# ----------------------------------------------------------------------------
# Fused bottleneck output: 1x1 conv + shortcut projection + add + ReLU
# ----------------------------------------------------------------------------
def _res_out_kernel(a_ref, s_ref, wa_ref, ba_ref, ws_ref, bs_ref, o_ref):
    main = jnp.dot(a_ref[...].astype(jnp.bfloat16), wa_ref[...],
                   preferred_element_type=jnp.float32) + ba_ref[...]
    short = jnp.dot(s_ref[...].astype(jnp.bfloat16), ws_ref[...],
                    preferred_element_type=jnp.float32) + bs_ref[...]
    o_ref[...] = jnp.maximum(main + short, 0.0).astype(o_ref.dtype)


def residual_out(a, s, wa, ba, ws, bs, tm=512):
    M, Ka = a.shape
    Ks = s.shape[1]
    N = wa.shape[1]
    tm = min(tm, M)
    return pl.pallas_call(
        _res_out_kernel,
        grid=(pl.cdiv(M, tm),),
        in_specs=[pl.BlockSpec((tm, Ka), lambda i: (i, 0)),
                  pl.BlockSpec((tm, Ks), lambda i: (i, 0)),
                  pl.BlockSpec((Ka, N), lambda i: (0, 0)),
                  pl.BlockSpec((1, N), lambda i: (0, 0)),
                  pl.BlockSpec((Ks, N), lambda i: (0, 0)),
                  pl.BlockSpec((1, N), lambda i: (0, 0))],
        out_specs=pl.BlockSpec((tm, N), lambda i: (i, 0)),
        out_shape=jax.ShapeDtypeStruct((M, N), jnp.bfloat16),
        compiler_params=_cparams("parallel"),
    )(a, s, wa, ba.reshape(1, N), ws, bs.reshape(1, N))


# ----------------------------------------------------------------------------
# Fused global-average-pool + final Linear (2048 -> 768 stand-in)
# ----------------------------------------------------------------------------
def _gap_fc_kernel(x_ref, w_ref, b_ref, o_ref):
    feat = jnp.mean(x_ref[...].astype(jnp.float32), axis=1)          # (B, C) f32
    o_ref[...] = jnp.dot(feat.astype(jnp.bfloat16), w_ref[...],
                         preferred_element_type=jnp.float32) + b_ref[...]


def gap_fc(x, w, b):  # x: (B, HW, C) bf16
    B, HW, C = x.shape
    N = w.shape[1]
    return pl.pallas_call(
        _gap_fc_kernel,
        grid=(1,),
        in_specs=[pl.BlockSpec((B, HW, C), lambda i: (0, 0, 0)),
                  pl.BlockSpec((C, N), lambda i: (0, 0)),
                  pl.BlockSpec((1, N), lambda i: (0, 0))],
        out_specs=pl.BlockSpec((B, N), lambda i: (0, 0)),
        out_shape=jax.ShapeDtypeStruct((B, N), jnp.float32),
        compiler_params=_cparams("arbitrary"),
    )(x, w, b.reshape(1, N))


# ----------------------------------------------------------------------------
# Fused DistilBERT-style transformer stack: one pallas_call, grid=(B, LAYERS)
# (batch = parallel axis -> megacore sharding on v7x; layers = sequential axis
#  with a VMEM-resident per-batch activation scratch)
# ----------------------------------------------------------------------------
def _ln2d(y, g, b, eps):
    mu = jnp.mean(y, axis=-1, keepdims=True)
    var = jnp.mean(jnp.square(y - mu), axis=-1, keepdims=True)
    return (y - mu) * jax.lax.rsqrt(var + eps) * g + b


def _text_stack_kernel(S, H, nh, eps,
                       x_ref, mask_ref, embg_ref, embb_ref,
                       wqkv_ref, bqkv_ref, wo_ref, bo_ref,
                       ln1g_ref, ln1b_ref,
                       ff1w_ref, ff1b_ref, ff2w_ref, ff2b_ref,
                       ln2g_ref, ln2b_ref,
                       out_ref, x_sc):
    dh = H // nh
    scale = 1.0 / float(np.sqrt(dh))
    layer = pl.program_id(1)

    # Embedding LayerNorm on the first layer step of this batch block.
    @pl.when(layer == 0)
    def _():
        x_sc[...] = _ln2d(x_ref[...], embg_ref[...], embb_ref[...], eps)

    x = x_sc[...]                                                    # (S, H) f32

    # Fused Q/K/V projection: single (H, 3H) matmul, bf16 operands, f32 acc.
    # wqkv output columns are ordered [Q | K | V], each H wide.
    qkv = jnp.dot(x.astype(jnp.bfloat16), wqkv_ref[...],
                  preferred_element_type=jnp.float32) + bqkv_ref[...]  # (S, 3H)

    # Head-major relayout once (no per-head strided lane slicing, no Python
    # unroll over batch/heads): (S, nh, dh) -> (nh, S, dh).
    q = pltpu.einshape("shd->hsd", qkv[:, 0 * H:1 * H].reshape(S, nh, dh))
    k = pltpu.einshape("shd->hsd", qkv[:, 1 * H:2 * H].reshape(S, nh, dh))
    v = pltpu.einshape("shd->hsd", qkv[:, 2 * H:3 * H].reshape(S, nh, dh))

    # Mask bias computed once per block, broadcast over heads / query rows.
    key_bias = jnp.where(mask_ref[...] > 0.0, 0.0, NEG_INF).reshape(1, 1, S)

    s = jnp.einsum("hqd,hkd->hqk", q.astype(jnp.bfloat16), k.astype(jnp.bfloat16),
                   preferred_element_type=jnp.float32) * scale + key_bias  # (nh,S,S)
    m = jnp.max(s, axis=-1, keepdims=True)
    e = jnp.exp(s - m)
    p_attn = e * pl.reciprocal(jnp.sum(e, axis=-1, keepdims=True), approx=True)

    ctx = jnp.einsum("hqk,hkd->hqd", p_attn.astype(jnp.bfloat16),
                     v.astype(jnp.bfloat16),
                     preferred_element_type=jnp.float32)                  # (nh,S,dh)
    ctx = pltpu.einshape("hsd->shd", ctx).reshape(S, H)

    attn = jnp.dot(ctx.astype(jnp.bfloat16), wo_ref[...],
                   preferred_element_type=jnp.float32) + bo_ref[...]
    x1 = _ln2d(attn + x, ln1g_ref[...], ln1b_ref[...], eps)

    # TODO(synk): HF DistilBERT uses exact (erf) GELU; tanh approximation used here.
    ff = jax.nn.gelu(jnp.dot(x1.astype(jnp.bfloat16), ff1w_ref[...],
                             preferred_element_type=jnp.float32) + ff1b_ref[...],
                     approximate=True)
    ff2 = jnp.dot(ff.astype(jnp.bfloat16), ff2w_ref[...],
                  preferred_element_type=jnp.float32) + ff2b_ref[...]
    x2 = _ln2d(ff2 + x1, ln2g_ref[...], ln2b_ref[...], eps)
    x_sc[...] = x2

    # avg_word_embs=True path: masked mean pooling fused into the last layer,
    # done as mask-multiply + sublane reduce (no M=1 MXU matmuls).
    # TODO(synk): avg_word_embs=False uses transformer output[1] (pooled output),
    # which DistilBertModel does not provide; not reproduced here.
    @pl.when(layer == pl.num_programs(1) - 1)
    def _():
        mcol = mask_ref[...].reshape(S, 1)                                # (S, 1)
        num = jnp.sum(x2 * mcol, axis=0, keepdims=True)                   # (1, H)
        den = jnp.maximum(jnp.sum(mask_ref[...], axis=-1, keepdims=True), 1e-9)
        out_ref[...] = num / den


def encode_text(p, input_ids, attention_mask):
    B, S = input_ids.shape
    H = HIDDEN
    mask3 = attention_mask.astype(jnp.float32).reshape(B, 1, S)
    x0 = (p["word_emb"][input_ids] + p["pos_emb"][None, :S]).astype(jnp.float32)  # (B,S,H)

    def per_batch(shape):
        return pl.BlockSpec((None,) + shape, lambda b, l: (b, 0, 0))

    def shared2(shape):
        return pl.BlockSpec(shape, lambda b, l: (0, 0))

    def per_layer(shape):
        return pl.BlockSpec((None,) + shape, lambda b, l: (l, 0, 0))

    kern = functools.partial(_text_stack_kernel, S, H, HEADS, LN_EPS)
    out = pl.pallas_call(
        kern,
        grid=(B, LAYERS),
        in_specs=[
            per_batch((S, H)),                           # embeddings
            per_batch((1, S)),                           # attention mask (float)
            shared2((1, H)), shared2((1, H)),            # embedding LN gamma / beta
            per_layer((H, 3 * H)), per_layer((1, 3 * H)),  # fused QKV weight / bias
            per_layer((H, H)), per_layer((1, H)),        # attention out proj
            per_layer((1, H)), per_layer((1, H)),        # LN1
            per_layer((H, FFN)), per_layer((1, FFN)),    # FFN in
            per_layer((FFN, H)), per_layer((1, H)),      # FFN out
            per_layer((1, H)), per_layer((1, H)),        # LN2
        ],
        out_specs=pl.BlockSpec((None, 1, H), lambda b, l: (b, 0, 0)),
        out_shape=jax.ShapeDtypeStruct((B, 1, H), jnp.float32),
        scratch_shapes=[pltpu.VMEM((S, H), jnp.float32)],
        compiler_params=_cparams("parallel", "arbitrary"),
    )(x0, mask3,
      p["emb_ln_g"].reshape(1, H), p["emb_ln_b"].reshape(1, H),
      p["wqkv"], p["bqkv"], p["wo"], p["bo"],
      p["ln1_g"], p["ln1_b"],
      p["ff1_w"], p["ff1_b"], p["ff2_w"], p["ff2_b"],
      p["ln2_g"], p["ln2_b"])
    return out.reshape(B, H)


# ----------------------------------------------------------------------------
# Image encoder (ResNet50 stand-in) and full forward
# ----------------------------------------------------------------------------
def encode_image(p, image_nchw):
    # TODO(synk): full ResNet50 backbone (7x7/2 stem, maxpool, 4 stages of
    # BatchNorm'd bottlenecks, pretrained weights) is stood in by one stem conv +
    # one bottleneck block with BatchNorm folded to identity.
    x = jnp.transpose(image_nchw, (0, 2, 3, 1))                          # NCHW -> NHWC
    B, Hh, Ww, _ = x.shape
    h4 = conv3x3(x, p["stem_w"], p["stem_b"], relu=True)                 # (B,H,W,C_STEM) bf16
    h = h4.reshape(B * Hh * Ww, C_STEM)
    c1 = linear(h, p["b1_w"], p["b1_b"], act="relu")                     # 1x1 conv, bf16
    c2 = conv3x3(c1.reshape(B, Hh, Ww, C_MID), p["b2_w"], p["b2_b"],
                 relu=True).reshape(B * Hh * Ww, C_MID)                  # 3x3 conv, bf16
    blk = residual_out(c2, h, p["b3_w"], p["b3_b"],
                       p["sc_w"], p["sc_b"])                             # 1x1 + shortcut + ReLU
    return gap_fc(blk.reshape(B, Hh * Ww, C_OUT), p["fc_w"], p["fc_b"])  # GAP + fc -> (B, EMBED) f32


def exifnet_forward(p, image, attention_mask, input_ids):
    image_embeds = encode_image(p, image)
    text_embeds = encode_text(p, input_ids, attention_mask)
    return image_embeds, text_embeds


# ----------------------------------------------------------------------------
# Parameters (deterministic synthetic init; matmul weights stored in bf16)
# ----------------------------------------------------------------------------
def init_params(key):
    std = 0.02
    keys = iter(jax.random.split(key, 64))

    def w(shape, dtype=jnp.bfloat16):
        return (jax.random.normal(next(keys), shape, jnp.float32) * std).astype(dtype)

    def z(shape):
        return jnp.zeros(shape, jnp.float32)

    def ones(shape):
        return jnp.ones(shape, jnp.float32)

    L, H = LAYERS, HIDDEN
    return {
        # image encoder (3x3 conv weights stored pre-flattened as (9*Cin, Cout))
        "stem_w": w((9 * 3, C_STEM)), "stem_b": z((C_STEM,)),
        "b1_w": w((C_STEM, C_MID)), "b1_b": z((C_MID,)),
        "b2_w": w((9 * C_MID, C_MID)), "b2_b": z((C_MID,)),
        "b3_w": w((C_MID, C_OUT)), "b3_b": z((C_OUT,)),
        "sc_w": w((C_STEM, C_OUT)), "sc_b": z((C_OUT,)),
        "fc_w": w((C_OUT, EMBED)), "fc_b": z((EMBED,)),       # mirrors Linear(2048, 768)
        # text encoder (stacked per-layer weights; QKV columns ordered [Q|K|V])
        "word_emb": w((VOCAB, H), jnp.float32),
        "pos_emb": w((SEQ, H), jnp.float32),
        "emb_ln_g": ones((H,)), "emb_ln_b": z((H,)),
        "wqkv": w((L, H, 3 * H)), "bqkv": z((L, 1, 3 * H)),
        "wo": w((L, H, H)), "bo": z((L, 1, H)),
        "ln1_g": ones((L, 1, H)), "ln1_b": z((L, 1, H)),
        "ff1_w": w((L, H, FFN)), "ff1_b": z((L, 1, FFN)),
        "ff2_w": w((L, FFN, H)), "ff2_b": z((L, 1, H)),
        "ln2_g": ones((L, 1, H)), "ln2_b": z((L, 1, H)),
        # kept for parity with nn.Parameter sink_temp (unused in forward)
        "sink_temp": jnp.array(np.log(1.0 / 0.07), jnp.float32),
    }


# ----------------------------------------------------------------------------
# Demo
# ----------------------------------------------------------------------------
if __name__ == "__main__":
    key = jax.random.PRNGKey(0)
    pkey, ikey, tkey = jax.random.split(key, 3)

    params = init_params(pkey)
    image = jax.random.normal(ikey, (2, 3, IMG, IMG), jnp.float32)       # NCHW
    input_ids = jax.random.randint(tkey, (2, SEQ), 0, VOCAB, jnp.int32)
    attention_mask = jnp.array([[1, 1, 1, 1, 1, 1, 0, 0],
                                [1, 1, 1, 1, 1, 1, 1, 1]], jnp.int32)

    fwd = jax.jit(exifnet_forward)
    img_e, txt_e = fwd(params, image, attention_mask, input_ids)
    jax.block_until_ready((img_e, txt_e))

    assert img_e.shape == (2, EMBED) and img_e.dtype == jnp.float32
    assert txt_e.shape == (2, HIDDEN) and txt_e.dtype == jnp.float32
    assert bool(jnp.all(jnp.isfinite(img_e))) and bool(jnp.all(jnp.isfinite(txt_e)))
    print("KERNEL_OK")
</pallas_src>

<mosaic_0001>
module attributes {stable_mosaic.version = 11 : i64} {
  func.func @_linear_kernel(%arg0: i32, %arg1: i32, %arg2: memref<512x16xbf16, #tpu.memory_space<vmem>>, %arg3: memref<16x16xbf16, #tpu.memory_space<vmem>>, %arg4: memref<1x16xf32, #tpu.memory_space<vmem>>, %arg5: memref<512x16xbf16, #tpu.memory_space<vmem>>) attributes {dimension_semantics = [#tpu.dimension_semantics<parallel>, #tpu.dimension_semantics<parallel>], iteration_bounds = array<i64: 1, 1>, scalar_prefetch = 0 : i64, scratch_operands = 0 : i64, tpu.core_type = #tpu.core_type<tc>, window_params = [{transform_indices = @transform_0, window_bounds = array<i64: 512, 16>}, {transform_indices = @transform_1, window_bounds = array<i64: 16, 16>}, {transform_indices = @transform_2, window_bounds = array<i64: 1, 16>}, {transform_indices = @transform_3, window_bounds = array<i64: 512, 16>}]} {
    %c0 = arith.constant 0 : index
    %c0_0 = arith.constant 0 : index
    %0 = vector.load %arg2[%c0, %c0_0] : memref<512x16xbf16, #tpu.memory_space<vmem>>, vector<512x16xbf16>
    %c0_1 = arith.constant 0 : index
    %c0_2 = arith.constant 0 : index
    %1 = vector.load %arg3[%c0_1, %c0_2] : memref<16x16xbf16, #tpu.memory_space<vmem>>, vector<16x16xbf16>
    %cst = arith.constant dense<0.000000e+00> : vector<512x16xf32>
    %2 = tpu.matmul %0, %1, %cst {dimension_numbers = #tpu.dot_dimension_numbers<[1], [0], [0], [1], [0, 0, 1, 1], [], []>} : vector<512x16xbf16>, vector<16x16xbf16>, vector<512x16xf32> -> vector<512x16xf32>
    %c0_3 = arith.constant 0 : index
    %c0_4 = arith.constant 0 : index
    %3 = vector.load %arg4[%c0_3, %c0_4] : memref<1x16xf32, #tpu.memory_space<vmem>>, vector<1x16xf32>
    %4 = vector.broadcast %3 : vector<1x16xf32> to vector<512x16xf32>
    %5 = arith.addf %2, %4 : vector<512x16xf32>
    %cst_5 = arith.constant 0.000000e+00 : f32
    %6 = vector.broadcast %cst_5 : f32 to vector<512x16xf32>
    %7 = arith.maximumf %5, %6 : vector<512x16xf32>
    %8 = arith.truncf %7 : vector<512x16xf32> to vector<512x16xbf16>
    %c0_6 = arith.constant 0 : index
    %c0_7 = arith.constant 0 : index
    %9 = vector.load %arg5[%c0_6, %c0_7] : memref<512x16xbf16, #tpu.memory_space<vmem>>, vector<512x16xbf16>
    tpu.vector_store %arg5[%c0_6, %c0_7], %8 {strides = array<i32>} : memref<512x16xbf16, #tpu.memory_space<vmem>>, vector<512x16xbf16>,
    return
  }
  func.func @transform_0(%arg0: i32, %arg1: i32) -> (i32, i32) {
    %c0_i32 = arith.constant 0 : i32
    %c0_i32_0 = arith.constant 0 : i32
    return %arg0, %c0_i32 : i32, i32
  }
  func.func @transform_1(%arg0: i32, %arg1: i32) -> (i32, i32) {
    %c0_i32 = arith.constant 0 : i32
    %c0_i32_0 = arith.constant 0 : i32
    return %c0_i32, %arg1 : i32, i32
  }
  func.func @transform_2(%arg0: i32, %arg1: i32) -> (i32, i32) {
    %c0_i32 = arith.constant 0 : i32
    %c0_i32_0 = arith.constant 0 : i32
    return %c0_i32, %arg1 : i32, i32
  }
  func.func @transform_3(%arg0: i32, %arg1: i32) -> (i32, i32) {
    %c0_i32 = arith.constant 0 : i32
    return %arg0, %arg1 : i32, i32
  }
}

module attributes {stable_mosaic.version = 11 : i64} {
  func.func @_conv3x3_kernel(%arg0: i32, %arg1: memref<1x18x18x3xbf16, #tpu.memory_space<vmem>>, %arg2: memref<27x16xbf16, #tpu.memory_space<vmem>>, %arg3: memref<1x16xf32, #tpu.memory_space<vmem>>, %arg4: memref<1x16x16x16xbf16, #tpu.memory_space<vmem>>) attributes {dimension_semantics = [#tpu.dimension_semantics<parallel>], iteration_bounds = array<i64: 2>, scalar_prefetch = 0 : i64, scratch_operands = 0 : i64, tpu.core_type = #tpu.core_type<tc>, window_params = [{transform_indices = @transform_0, window_bounds = array<i64: 1, 18, 18, 3>}, {pipeline_mode = #tpu.pipeline_mode<synchronous>, transform_indices = @transform_1, window_bounds = array<i64: 27, 16>}, {pipeline_mode = #tpu.pipeline_mode<synchronous>, transform_indices = @transform_2, window_bounds = array<i64: 1, 16>}, {transform_indices = @transform_3, window_bounds = array<i64: 1, 16, 16, 16>}]} {
    %c0 = arith.constant 0 : index
    %c0_0 = arith.constant 0 : index
    %c0_1 = arith.constant 0 : index
    %c0_2 = arith.constant 0 : index
    %0 = vector.load %arg1[%c0, %c0_0, %c0_1, %c0_2] : memref<1x18x18x3xbf16, #tpu.memory_space<vmem>>, vector<1x16x16x3xbf16>
    %1 = vector.shape_cast %0 : vector<1x16x16x3xbf16> to vector<16x16x3xbf16>
    %2 = vector.shape_cast %1 : vector<16x16x3xbf16> to vector<256x3xbf16>
    %c0_3 = arith.constant 0 : index
    %c0_4 = arith.constant 0 : index
    %c1 = arith.constant 1 : index
    %c0_5 = arith.constant 0 : index
    %3 = vector.load %arg1[%c0_3, %c0_4, %c1, %c0_5] : memref<1x18x18x3xbf16, #tpu.memory_space<vmem>>, vector<1x16x16x3xbf16>
    %4 = vector.shape_cast %3 : vector<1x16x16x3xbf16> to vector<16x16x3xbf16>
    %5 = vector.shape_cast %4 : vector<16x16x3xbf16> to vector<256x3xbf16>
    %c0_6 = arith.constant 0 : index
    %c0_7 = arith.constant 0 : index
    %c2 = arith.constant 2 : index
    %c0_8 = arith.constant 0 : index
    %6 = vector.load %arg1[%c0_6, %c0_7, %c2, %c0_8] : memref<1x18x18x3xbf16, #tpu.memory_space<vmem>>, vector<1x16x16x3xbf16>
    %7 = vector.shape_cast %6 : vector<1x16x16x3xbf16> to vector<16x16x3xbf16>
    %8 = vector.shape_cast %7 : vector<16x16x3xbf16> to vector<256x3xbf16>
    %c0_9 = arith.constant 0 : index
    %c1_10 = arith.constant 1 : index
    %c0_11 = arith.constant 0 : index
    %c0_12 = arith.constant 0 : index
    %9 = vector.load %arg1[%c0_9, %c1_10, %c0_11, %c0_12] : memref<1x18x18x3xbf16, #tpu.memory_space<vmem>>, vector<1x16x16x3xbf16>
    %10 = vector.shape_cast %9 : vector<1x16x16x3xbf16> to vector<16x16x3xbf16>
    %11 = vector.shape_cast %10 : vector<16x16x3xbf16> to vector<256x3xbf16>
    %c0_13 = arith.constant 0 : index
    %c1_14 = arith.constant 1 : index
    %c1_15 = arith.constant 1 : index
    %c0_16 = arith.constant 0 : index
    %12 = vector.load %arg1[%c0_13, %c1_14, %c1_15, %c0_16] : memref<1x18x18x3xbf16, #tpu.memory_space<vmem>>, vector<1x16x16x3xbf16>
    %13 = vector.shape_cast %12 : vector<1x16x16x3xbf16> to vector<16x16x3xbf16>
    %14 = vector.shape_cast %13 : vector<16x16x3xbf16> to vector<256x3xbf16>
    %c0_17 = arith.constant 0 : index
    %c1_18 = arith.constant 1 : index
    %c2_19 = arith.constant 2 : index
    %c0_20 = arith.constant 0 : index
    %15 = vector.load %arg1[%c0_17, %c1_18, %c2_19, %c0_20] : memref<1x18x18x3xbf16, #tpu.memory_space<vmem>>, vector<1x16x16x3xbf16>
    %16 = vector.shape_cast %15 : vector<1x16x16x3xbf16> to vector<16x16x3xbf16>
    %17 = vector.shape_cast %16 : vector<16x16x3xbf16> to vector<256x3xbf16>
    %c0_21 = arith.constant 0 : index
    %c2_22 = arith.constant 2 : index
    %c0_23 = arith.constant 0 : index
    %c0_24 = arith.constant 0 : index
    %18 = vector.load %arg1[%c0_21, %c2_22, %c0_23, %c0_24] : memref<1x18x18x3xbf16, #tpu.memory_space<vmem>>, vector<1x16x16x3xbf16>
    %19 = vector.shape_cast %18 : vector<1x16x16x3xbf16> to vector<16x16x3xbf16>
    %20 = vector.shape_cast %19 : vector<16x16x3xbf16> to vector<256x3xbf16>
    %c0_25 = arith.constant 0 : index
    %c2_26 = arith.constant 2 : index
    %c1_27 = arith.constant 1 : index
    %c0_28 = arith.constant 0 : index
    %21 = vector.load %arg1[%c0_25, %c2_26, %c1_27, %c0_28] : memref<1x18x18x3xbf16, #tpu.memory_space<vmem>>, vector<1x16x16x3xbf16>
    %22 = vector.shape_cast %21 : vector<1x16x16x3xbf16> to vector<16x16x3xbf16>
    %23 = vector.shape_cast %22 : vector<16x16x3xbf16> to vector<256x3xbf16>
    %c0_29 = arith.constant 0 : index
    %c2_30 = arith.constant 2 : index
    %c2_31 = arith.constant 2 : index
    %c0_32 = arith.constant 0 : index
    %24 = vector.load %arg1[%c0_29, %c2_30, %c2_31, %c0_32] : memref<1x18x18x3xbf16, #tpu.memory_space<vmem>>, vector<1x16x16x3xbf16>
    %25 = vector.shape_cast %24 : vector<1x16x16x3xbf16> to vector<16x16x3xbf16>
    %26 = vector.shape_cast %25 : vector<16x16x3xbf16> to vector<256x3xbf16>
    %27 = tpu.concatenate %2, %5, %8, %11, %14, %17, %20, %23, %26 in 1 : vector<256x3xbf16>, vector<256x3xbf16>, vector<256x3xbf16>, vector<256x3xbf16>, vector<256x3xbf16>, vector<256x3xbf16>, vector<256x3xbf16>, vector<256x3xbf16>, vector<256x3xbf16> -> vector<256x27xbf16>
    %c0_33 = arith.constant 0 : index
    %c0_34 = arith.constant 0 : index
    %28 = vector.load %arg2[%c0_33, %c0_34] : memref<27x16xbf16, #tpu.memory_space<vmem>>, vector<27x16xbf16>
    %cst = arith.constant dense<0.000000e+00> : vector<256x16xf32>
    %29 = tpu.matmul %27, %28, %cst {dimension_numbers = #tpu.dot_dimension_numbers<[1], [0], [0], [1], [0, 0, 1, 1], [], []>} : vector<256x27xbf16>, vector<27x16xbf16>, vector<256x16xf32> -> vector<256x16xf32>
    %c0_35 = arith.constant 0 : index
    %c0_36 = arith.constant 0 : index
    %30 = vector.load %arg3[%c0_35, %c0_36] : memref<1x16xf32, #tpu.memory_space<vmem>>, vector<1x16xf32>
    %31 = vector.broadcast %30 : vector<1x16xf32> to vector<256x16xf32>
    %32 = arith.addf %29, %31 : vector<256x16xf32>
    %cst_37 = arith.constant 0.000000e+00 : f32
    %33 = vector.broadcast %cst_37 : f32 to vector<256x16xf32>
    %34 = arith.maximumf %32, %33 : vector<256x16xf32>
    %35 = vector.shape_cast %34 : vector<256x16xf32> to vector<16x16x16xf32>
    %36 = arith.truncf %35 : vector<16x16x16xf32> to vector<16x16x16xbf16>
    %c0_38 = arith.constant 0 : index
    %c0_39 = arith.constant 0 : index
    %c0_40 = arith.constant 0 : index
    %c0_41 = arith.constant 0 : index
    %37 = vector.load %arg4[%c0_38, %c0_39, %c0_40, %c0_41] : memref<1x16x16x16xbf16, #tpu.memory_space<vmem>>, vector<1x16x16x16xbf16>
    %38 = vector.shape_cast %37 : vector<1x16x16x16xbf16> to vector<16x16x16xbf16>
    %39 = vector.shape_cast %36 : vector<16x16x16xbf16> to vector<1x16x16x16xbf16>
    tpu.vector_store %arg4[%c0_38, %c0_39, %c0_40, %c0_41], %39 {strides = array<i32>} : memref<1x16x16x16xbf16, #tpu.memory_space<vmem>>, vector<1x16x16x16xbf16>,
    return
  }
  func.func @transform_0(%arg0: i32) -> (i32, i32, i32, i32) {
    %c0_i32 = arith.constant 0 : i32
    %c0_i32_0 = arith.constant 0 : i32
    %c0_i32_1 = arith.constant 0 : i32
    %c0_i32_2 = arith.constant 0 : i32
    return %arg0, %c0_i32, %c0_i32_0, %c0_i32_1 : i32, i32, i32, i32
  }
  func.func @transform_1(%arg0: i32) -> (i32, i32) {
    %c0_i32 = arith.constant 0 : i32
    %c0_i32_0 = arith.constant 0 : i32
    %c0_i32_1 = arith.constant 0 : i32
    return %c0_i32, %c0_i32_0 : i32, i32
  }
  func.func @transform_2(%arg0: i32) -> (i32, i32) {
    %c0_i32 = arith.constant 0 : i32
    %c0_i32_0 = arith.constant 0 : i32
    %c0_i32_1 = arith.constant 0 : i32
    return %c0_i32, %c0_i32_0 : i32, i32
  }
  func.func @transform_3(%arg0: i32) -> (i32, i32, i32, i32) {
    %c0_i32 = arith.constant 0 : i32
    %c0_i32_0 = arith.constant 0 : i32
    %c0_i32_1 = arith.constant 0 : i32
    %c0_i32_2 = arith.constant 0 : i32
    return %arg0, %c0_i32, %c0_i32_0, %c0_i32_1 : i32, i32, i32, i32
  }
}

module attributes {stable_mosaic.version = 11 : i64} {
  func.func @_res_out_kernel(%arg0: i32, %arg1: memref<512x16xbf16, #tpu.memory_space<vmem>>, %arg2: memref<512x16xbf16, #tpu.memory_space<vmem>>, %arg3: memref<16x32xbf16, #tpu.memory_space<vmem>>, %arg4: memref<1x32xf32, #tpu.memory_space<vmem>>, %arg5: memref<16x32xbf16, #tpu.memory_space<vmem>>, %arg6: memref<1x32xf32, #tpu.memory_space<vmem>>, %arg7: memref<512x32xbf16, #tpu.memory_space<vmem>>) attributes {dimension_semantics = [#tpu.dimension_semantics<parallel>], iteration_bounds = array<i64: 1>, scalar_prefetch = 0 : i64, scratch_operands = 0 : i64, tpu.core_type = #tpu.core_type<tc>, window_params = [{transform_indices = @transform_0, window_bounds = array<i64: 512, 16>}, {transform_indices = @transform_1, window_bounds = array<i64: 512, 16>}, {pipeline_mode = #tpu.pipeline_mode<synchronous>, transform_indices = @transform_2, window_bounds = array<i64: 16, 32>}, {pipeline_mode = #tpu.pipeline_mode<synchronous>, transform_indices = @transform_3, window_bounds = array<i64: 1, 32>}, {pipeline_mode = #tpu.pipeline_mode<synchronous>, transform_indices = @transform_4, window_bounds = array<i64: 16, 32>}, {pipeline_mode = #tpu.pipeline_mode<synchronous>, transform_indices = @transform_5, window_bounds = array<i64: 1, 32>}, {transform_indices = @transform_6, window_bounds = array<i64: 512, 32>}]} {
    %c0 = arith.constant 0 : index
    %c0_0 = arith.constant 0 : index
    %0 = vector.load %arg1[%c0, %c0_0] : memref<512x16xbf16, #tpu.memory_space<vmem>>, vector<512x16xbf16>
    %c0_1 = arith.constant 0 : index
    %c0_2 = arith.constant 0 : index
    %1 = vector.load %arg3[%c0_1, %c0_2] : memref<16x32xbf16, #tpu.memory_space<vmem>>, vector<16x32xbf16>
    %cst = arith.constant dense<0.000000e+00> : vector<512x32xf32>
    %2 = tpu.matmul %0, %1, %cst {dimension_numbers = #tpu.dot_dimension_numbers<[1], [0], [0], [1], [0, 0, 1, 1], [], []>} : vector<512x16xbf16>, vector<16x32xbf16>, vector<512x32xf32> -> vector<512x32xf32>
    %c0_3 = arith.constant 0 : index
    %c0_4 = arith.constant 0 : index
    %3 = vector.load %arg4[%c0_3, %c0_4] : memref<1x32xf32, #tpu.memory_space<vmem>>, vector<1x32xf32>
    %4 = vector.broadcast %3 : vector<1x32xf32> to vector<512x32xf32>
    %5 = arith.addf %2, %4 : vector<512x32xf32>
    %c0_5 = arith.constant 0 : index
    %c0_6 = arith.constant 0 : index
    %6 = vector.load %arg2[%c0_5, %c0_6] : memref<512x16xbf16, #tpu.memory_space<vmem>>, vector<512x16xbf16>
    %c0_7 = arith.constant 0 : index
    %c0_8 = arith.constant 0 : index
    %7 = vector.load %arg5[%c0_7, %c0_8] : memref<16x32xbf16, #tpu.memory_space<vmem>>, vector<16x32xbf16>
    %cst_9 = arith.constant dense<0.000000e+00> : vector<512x32xf32>
    %8 = tpu.matmul %6, %7, %cst_9 {dimension_numbers = #tpu.dot_dimension_numbers<[1], [0], [0], [1], [0, 0, 1, 1], [], []>} : vector<512x16xbf16>, vector<16x32xbf16>, vector<512x32xf32> -> vector<512x32xf32>
    %c0_10 = arith.constant 0 : index
    %c0_11 = arith.constant 0 : index
    %9 = vector.load %arg6[%c0_10, %c0_11] : memref<1x32xf32, #tpu.memory_space<vmem>>, vector<1x32xf32>
    %10 = vector.broadcast %9 : vector<1x32xf32> to vector<512x32xf32>
    %11 = arith.addf %8, %10 : vector<512x32xf32>
    %12 = arith.addf %5, %11 : vector<512x32xf32>
    %cst_12 = arith.constant 0.000000e+00 : f32
    %13 = vector.broadcast %cst_12 : f32 to vector<512x32xf32>
    %14 = arith.maximumf %12, %13 : vector<512x32xf32>
    %15 = arith.truncf %14 : vector<512x32xf32> to vector<512x32xbf16>
    %c0_13 = arith.constant 0 : index
    %c0_14 = arith.constant 0 : index
    %16 = vector.load %arg7[%c0_13, %c0_14] : memref<512x32xbf16, #tpu.memory_space<vmem>>, vector<512x32xbf16>
    tpu.vector_store %arg7[%c0_13, %c0_14], %15 {strides = array<i32>} : memref<512x32xbf16, #tpu.memory_space<vmem>>, vector<512x32xbf16>,
    return
  }
  func.func @transform_0(%arg0: i32) -> (i32, i32) {
    %c0_i32 = arith.constant 0 : i32
    %c0_i32_0 = arith.constant 0 : i32
    return %arg0, %c0_i32 : i32, i32
  }
  func.func @transform_1(%arg0: i32) -> (i32, i32) {
    %c0_i32 = arith.constant 0 : i32
    %c0_i32_0 = arith.constant 0 : i32
    return %arg0, %c0_i32 : i32, i32
  }
  func.func @transform_2(%arg0: i32) -> (i32, i32) {
    %c0_i32 = arith.constant 0 : i32
    %c0_i32_0 = arith.constant 0 : i32
    %c0_i32_1 = arith.constant 0 : i32
    return %c0_i32, %c0_i32_0 : i32, i32
  }
  func.func @transform_3(%arg0: i32) -> (i32, i32) {
    %c0_i32 = arith.constant 0 : i32
    %c0_i32_0 = arith.constant 0 : i32
    %c0_i32_1 = arith.constant 0 : i32
    return %c0_i32, %c0_i32_0 : i32, i32
  }
  func.func @transform_4(%arg0: i32) -> (i32, i32) {
    %c0_i32 = arith.constant 0 : i32
    %c0_i32_0 = arith.constant 0 : i32
    %c0_i32_1 = arith.constant 0 : i32
    return %c0_i32, %c0_i32_0 : i32, i32
  }
  func.func @transform_5(%arg0: i32) -> (i32, i32) {
    %c0_i32 = arith.constant 0 : i32
    %c0_i32_0 = arith.constant 0 : i32
    %c0_i32_1 = arith.constant 0 : i32
    return %c0_i32, %c0_i32_0 : i32, i32
  }
  func.func @transform_6(%arg0: i32) -> (i32, i32) {
    %c0_i32 = arith.constant 0 : i32
    %c0_i32_0 = arith.constant 0 : i32
    return %arg0, %c0_i32 : i32, i32
  }
}

module attributes {stable_mosaic.version = 11 : i64} {
  func.func @_conv3x3_kernel(%arg0: i32, %arg1: memref<1x18x18x16xbf16, #tpu.memory_space<vmem>>, %arg2: memref<144x16xbf16, #tpu.memory_space<vmem>>, %arg3: memref<1x16xf32, #tpu.memory_space<vmem>>, %arg4: memref<1x16x16x16xbf16, #tpu.memory_space<vmem>>) attributes {dimension_semantics = [#tpu.dimension_semantics<parallel>], iteration_bounds = array<i64: 2>, scalar_prefetch = 0 : i64, scratch_operands = 0 : i64, tpu.core_type = #tpu.core_type<tc>, window_params = [{transform_indices = @transform_0, window_bounds = array<i64: 1, 18, 18, 16>}, {pipeline_mode = #tpu.pipeline_mode<synchronous>, transform_indices = @transform_1, window_bounds = array<i64: 144, 16>}, {pipeline_mode = #tpu.pipeline_mode<synchronous>, transform_indices = @transform_2, window_bounds = array<i64: 1, 16>}, {transform_indices = @transform_3, window_bounds = array<i64: 1, 16, 16, 16>}]} {
    %c0 = arith.constant 0 : index
    %c0_0 = arith.constant 0 : index
    %c0_1 = arith.constant 0 : index
    %c0_2 = arith.constant 0 : index
    %0 = vector.load %arg1[%c0, %c0_0, %c0_1, %c0_2] : memref<1x18x18x16xbf16, #tpu.memory_space<vmem>>, vector<1x16x16x16xbf16>
    %1 = vector.shape_cast %0 : vector<1x16x16x16xbf16> to vector<16x16x16xbf16>
    %2 = vector.shape_cast %1 : vector<16x16x16xbf16> to vector<256x16xbf16>
    %c0_3 = arith.constant 0 : index
    %c0_4 = arith.constant 0 : index
    %c1 = arith.constant 1 : index
    %c0_5 = arith.constant 0 : index
    %3 = vector.load %arg1[%c0_3, %c0_4, %c1, %c0_5] : memref<1x18x18x16xbf16, #tpu.memory_space<vmem>>, vector<1x16x16x16xbf16>
    %4 = vector.shape_cast %3 : vector<1x16x16x16xbf16> to vector<16x16x16xbf16>
    %5 = vector.shape_cast %4 : vector<16x16x16xbf16> to vector<256x16xbf16>
    %c0_6 = arith.constant 0 : index
    %c0_7 = arith.constant 0 : index
    %c2 = arith.constant 2 : index
    %c0_8 = arith.constant 0 : index
    %6 = vector.load %arg1[%c0_6, %c0_7, %c2, %c0_8] : memref<1x18x18x16xbf16, #tpu.memory_space<vmem>>, vector<1x16x16x16xbf16>
    %7 = vector.shape_cast %6 : vector<1x16x16x16xbf16> to vector<16x16x16xbf16>
    %8 = vector.shape_cast %7 : vector<16x16x16xbf16> to vector<256x16xbf16>
    %c0_9 = arith.constant 0 : index
    %c1_10 = arith.constant 1 : index
    %c0_11 = arith.constant 0 : index
    %c0_12 = arith.constant 0 : index
    %9 = vector.load %arg1[%c0_9, %c1_10, %c0_11, %c0_12] : memref<1x18x18x16xbf16, #tpu.memory_space<vmem>>, vector<1x16x16x16xbf16>
    %10 = vector.shape_cast %9 : vector<1x16x16x16xbf16> to vector<16x16x16xbf16>
    %11 = vector.shape_cast %10 : vector<16x16x16xbf16> to vector<256x16xbf16>
    %c0_13 = arith.constant 0 : index
    %c1_14 = arith.constant 1 : index
    %c1_15 = arith.constant 1 : index
    %c0_16 = arith.constant 0 : index
    %12 = vector.load %arg1[%c0_13, %c1_14, %c1_15, %c0_16] : memref<1x18x18x16xbf16, #tpu.memory_space<vmem>>, vector<1x16x16x16xbf16>
    %13 = vector.shape_cast %12 : vector<1x16x16x16xbf16> to vector<16x16x16xbf16>
    %14 = vector.shape_cast %13 : vector<16x16x16xbf16> to vector<256x16xbf16>
    %c0_17 = arith.constant 0 : index
    %c1_18 = arith.constant 1 : index
    %c2_19 = arith.constant 2 : index
    %c0_20 = arith.constant 0 : index
    %15 = vector.load %arg1[%c0_17, %c1_18, %c2_19, %c0_20] : memref<1x18x18x16xbf16, #tpu.memory_space<vmem>>, vector<1x16x16x16xbf16>
    %16 = vector.shape_cast %15 : vector<1x16x16x16xbf16> to vector<16x16x16xbf16>
    %17 = vector.shape_cast %16 : vector<16x16x16xbf16> to vector<256x16xbf16>
    %c0_21 = arith.constant 0 : index
    %c2_22 = arith.constant 2 : index
    %c0_23 = arith.constant 0 : index
    %c0_24 = arith.constant 0 : index
    %18 = vector.load %arg1[%c0_21, %c2_22, %c0_23, %c0_24] : memref<1x18x18x16xbf16, #tpu.memory_space<vmem>>, vector<1x16x16x16xbf16>
    %19 = vector.shape_cast %18 : vector<1x16x16x16xbf16> to vector<16x16x16xbf16>
    %20 = vector.shape_cast %19 : vector<16x16x16xbf16> to vector<256x16xbf16>
    %c0_25 = arith.constant 0 : index
    %c2_26 = arith.constant 2 : index
    %c1_27 = arith.constant 1 : index
    %c0_28 = arith.constant 0 : index
    %21 = vector.load %arg1[%c0_25, %c2_26, %c1_27, %c0_28] : memref<1x18x18x16xbf16, #tpu.memory_space<vmem>>, vector<1x16x16x16xbf16>
    %22 = vector.shape_cast %21 : vector<1x16x16x16xbf16> to vector<16x16x16xbf16>
    %23 = vector.shape_cast %22 : vector<16x16x16xbf16> to vector<256x16xbf16>
    %c0_29 = arith.constant 0 : index
    %c2_30 = arith.constant 2 : index
    %c2_31 = arith.constant 2 : index
    %c0_32 = arith.constant 0 : index
    %24 = vector.load %arg1[%c0_29, %c2_30, %c2_31, %c0_32] : memref<1x18x18x16xbf16, #tpu.memory_space<vmem>>, vector<1x16x16x16xbf16>
    %25 = vector.shape_cast %24 : vector<1x16x16x16xbf16> to vector<16x16x16xbf16>
    %26 = vector.shape_cast %25 : vector<16x16x16xbf16> to vector<256x16xbf16>
    %27 = tpu.concatenate %2, %5, %8, %11, %14, %17, %20, %23, %26 in 1 : vector<256x16xbf16>, vector<256x16xbf16>, vector<256x16xbf16>, vector<256x16xbf16>, vector<256x16xbf16>, vector<256x16xbf16>, vector<256x16xbf16>, vector<256x16xbf16>, vector<256x16xbf16> -> vector<256x144xbf16>
    %c0_33 = arith.constant 0 : index
    %c0_34 = arith.constant 0 : index
    %28 = vector.load %arg2[%c0_33, %c0_34] : memref<144x16xbf16, #tpu.memory_space<vmem>>, vector<144x16xbf16>
    %cst = arith.constant dense<0.000000e+00> : vector<256x16xf32>
    %29 = tpu.matmul %27, %28, %cst {dimension_numbers = #tpu.dot_dimension_numbers<[1], [0], [0], [1], [0, 0, 1, 1], [], []>} : vector<256x144xbf16>, vector<144x16xbf16>, vector<256x16xf32> -> vector<256x16xf32>
    %c0_35 = arith.constant 0 : index
    %c0_36 = arith.constant 0 : index
    %30 = vector.load %arg3[%c0_35, %c0_36] : memref<1x16xf32, #tpu.memory_space<vmem>>, vector<1x16xf32>
    %31 = vector.broadcast %30 : vector<1x16xf32> to vector<256x16xf32>
    %32 = arith.addf %29, %31 : vector<256x16xf32>
    %cst_37 = arith.constant 0.000000e+00 : f32
    %33 = vector.broadcast %cst_37 : f32 to vector<256x16xf32>
    %34 = arith.maximumf %32, %33 : vector<256x16xf32>
    %35 = vector.shape_cast %34 : vector<256x16xf32> to vector<16x16x16xf32>
    %36 = arith.truncf %35 : vector<16x16x16xf32> to vector<16x16x16xbf16>
    %c0_38 = arith.constant 0 : index
    %c0_39 = arith.constant 0 : index
    %c0_40 = arith.constant 0 : index
    %c0_41 = arith.constant 0 : index
    %37 = vector.load %arg4[%c0_38, %c0_39, %c0_40, %c0_41] : memref<1x16x16x16xbf16, #tpu.memory_space<vmem>>, vector<1x16x16x16xbf16>
    %38 = vector.shape_cast %37 : vector<1x16x16x16xbf16> to vector<16x16x16xbf16>
    %39 = vector.shape_cast %36 : vector<16x16x16xbf16> to vector<1x16x16x16xbf16>
    tpu.vector_store %arg4[%c0_38, %c0_39, %c0_40, %c0_41], %39 {strides = array<i32>} : memref<1x16x16x16xbf16, #tpu.memory_space<vmem>>, vector<1x16x16x16xbf16>,
    return
  }
  func.func @transform_0(%arg0: i32) -> (i32, i32, i32, i32) {
    %c0_i32 = arith.constant 0 : i32
    %c0_i32_0 = arith.constant 0 : i32
    %c0_i32_1 = arith.constant 0 : i32
    %c0_i32_2 = arith.constant 0 : i32
    return %arg0, %c0_i32, %c0_i32_0, %c0_i32_1 : i32, i32, i32, i32
  }
  func.func @transform_1(%arg0: i32) -> (i32, i32) {
    %c0_i32 = arith.constant 0 : i32
    %c0_i32_0 = arith.constant 0 : i32
    %c0_i32_1 = arith.constant 0 : i32
    return %c0_i32, %c0_i32_0 : i32, i32
  }
  func.func @transform_2(%arg0: i32) -> (i32, i32) {
    %c0_i32 = arith.constant 0 : i32
    %c0_i32_0 = arith.constant 0 : i32
    %c0_i32_1 = arith.constant 0 : i32
    return %c0_i32, %c0_i32_0 : i32, i32
  }
  func.func @transform_3(%arg0: i32) -> (i32, i32, i32, i32) {
    %c0_i32 = arith.constant 0 : i32
    %c0_i32_0 = arith.constant 0 : i32
    %c0_i32_1 = arith.constant 0 : i32
    %c0_i32_2 = arith.constant 0 : i32
    return %arg0, %c0_i32, %c0_i32_0, %c0_i32_1 : i32, i32, i32, i32
  }
}

module attributes {stable_mosaic.version = 11 : i64} {
  func.func @_gap_fc_kernel(%arg0: i32, %arg1: memref<2x256x32xbf16, #tpu.memory_space<vmem>>, %arg2: memref<32x64xbf16, #tpu.memory_space<vmem>>, %arg3: memref<1x64xf32, #tpu.memory_space<vmem>>, %arg4: memref<2x64xf32, #tpu.memory_space<vmem>>) attributes {dimension_semantics = [#tpu.dimension_semantics<arbitrary>], iteration_bounds = array<i64: 1>, scalar_prefetch = 0 : i64, scratch_operands = 0 : i64, tpu.core_type = #tpu.core_type<tc>, window_params = [{pipeline_mode = #tpu.pipeline_mode<synchronous>, transform_indices = @transform_0, window_bounds = array<i64: 2, 256, 32>}, {pipeline_mode = #tpu.pipeline_mode<synchronous>, transform_indices = @transform_1, window_bounds = array<i64: 32, 64>}, {pipeline_mode = #tpu.pipeline_mode<synchronous>, transform_indices = @transform_2, window_bounds = array<i64: 1, 64>}, {pipeline_mode = #tpu.pipeline_mode<synchronous>, transform_indices = @transform_3, window_bounds = array<i64: 2, 64>}]} {
    %c0 = arith.constant 0 : index
    %c0_0 = arith.constant 0 : index
    %c0_1 = arith.constant 0 : index
    %0 = vector.load %arg1[%c0, %c0_0, %c0_1] : memref<2x256x32xbf16, #tpu.memory_space<vmem>>, vector<2x256x32xbf16>
    %1 = arith.extf %0 : vector<2x256x32xbf16> to vector<2x256x32xf32>
    %cst = arith.constant dense<0.000000e+00> : vector<2x32xf32>
    %2 = vector.multi_reduction <add>, %1, %cst [1] : vector<2x256x32xf32> to vector<2x32xf32>
    %cst_2 = arith.constant 2.560000e+02 : f32
    %3 = vector.broadcast %cst_2 : f32 to vector<2x32xf32>
    %4 = arith.divf %2, %3 : vector<2x32xf32>
    %5 = arith.truncf %4 : vector<2x32xf32> to vector<2x32xbf16>
    %c0_3 = arith.constant 0 : index
    %c0_4 = arith.constant 0 : index
    %6 = vector.load %arg2[%c0_3, %c0_4] : memref<32x64xbf16, #tpu.memory_space<vmem>>, vector<32x64xbf16>
    %cst_5 = arith.constant dense<0.000000e+00> : vector<2x64xf32>
    %7 = tpu.matmul %5, %6, %cst_5 {dimension_numbers = #tpu.dot_dimension_numbers<[1], [0], [0], [1], [0, 0, 1, 1], [], []>} : vector<2x32xbf16>, vector<32x64xbf16>, vector<2x64xf32> -> vector<2x64xf32>
    %c0_6 = arith.constant 0 : index
    %c0_7 = arith.constant 0 : index
    %8 = vector.load %arg3[%c0_6, %c0_7] : memref<1x64xf32, #tpu.memory_space<vmem>>, vector<1x64xf32>
    %9 = vector.broadcast %8 : vector<1x64xf32> to vector<2x64xf32>
    %10 = arith.addf %7, %9 : vector<2x64xf32>
    %c0_8 = arith.constant 0 : index
    %c0_9 = arith.constant 0 : index
    %11 = vector.load %arg4[%c0_8, %c0_9] : memref<2x64xf32, #tpu.memory_space<vmem>>, vector<2x64xf32>
    tpu.vector_store %arg4[%c0_8, %c0_9], %10 {strides = array<i32>} : memref<2x64xf32, #tpu.memory_space<vmem>>, vector<2x64xf32>,
    return
  }
  func.func @transform_0(%arg0: i32) -> (i32, i32, i32) {
    %c0_i32 = arith.constant 0 : i32
    %c0_i32_0 = arith.constant 0 : i32
    %c0_i32_1 = arith.constant 0 : i32
    %c0_i32_2 = arith.constant 0 : i32
    return %c0_i32, %c0_i32_0, %c0_i32_1 : i32, i32, i32
  }
  func.func @transform_1(%arg0: i32) -> (i32, i32) {
    %c0_i32 = arith.constant 0 : i32
    %c0_i32_0 = arith.constant 0 : i32
    %c0_i32_1 = arith.constant 0 : i32
    return %c0_i32, %c0_i32_0 : i32, i32
  }
  func.func @transform_2(%arg0: i32) -> (i32, i32) {
    %c0_i32 = arith.constant 0 : i32
    %c0_i32_0 = arith.constant 0 : i32
    %c0_i32_1 = arith.constant 0 : i32
    return %c0_i32, %c0_i32_0 : i32, i32
  }
  func.func @transform_3(%arg0: i32) -> (i32, i32) {
    %c0_i32 = arith.constant 0 : i32
    %c0_i32_0 = arith.constant 0 : i32
    %c0_i32_1 = arith.constant 0 : i32
    return %c0_i32, %c0_i32_0 : i32, i32
  }
}

module attributes {stable_mosaic.version = 11 : i64} {
  func.func @_text_stack_kernel(%arg0: i32, %arg1: i32, %arg2: memref<1x8x64xf32, #tpu.memory_space<vmem>>, %arg3: memref<1x1x8xf32, #tpu.memory_space<vmem>>, %arg4: memref<1x64xf32, #tpu.memory_space<vmem>>, %arg5: memref<1x64xf32, #tpu.memory_space<vmem>>, %arg6: memref<1x64x192xbf16, #tpu.memory_space<vmem>>, %arg7: memref<1x1x192xf32, #tpu.memory_space<vmem>>, %arg8: memref<1x64x64xbf16, #tpu.memory_space<vmem>>, %arg9: memref<1x1x64xf32, #tpu.memory_space<vmem>>, %arg10: memref<1x1x64xf32, #tpu.memory_space<vmem>>, %arg11: memref<1x1x64xf32, #tpu.memory_space<vmem>>, %arg12: memref<1x64x128xbf16, #tpu.memory_space<vmem>>, %arg13: memref<1x1x128xf32, #tpu.memory_space<vmem>>, %arg14: memref<1x128x64xbf16, #tpu.memory_space<vmem>>, %arg15: memref<1x1x64xf32, #tpu.memory_space<vmem>>, %arg16: memref<1x1x64xf32, #tpu.memory_space<vmem>>, %arg17: memref<1x1x64xf32, #tpu.memory_space<vmem>>, %arg18: memref<1x1x64xf32, #tpu.memory_space<vmem>>, %arg19: memref<8x64xf32, #tpu.memory_space<vmem>>) attributes {dimension_semantics = [#tpu.dimension_semantics<parallel>, #tpu.dimension_semantics<arbitrary>], iteration_bounds = array<i64: 2, 2>, scalar_prefetch = 0 : i64, scratch_operands = 1 : i64, tpu.core_type = #tpu.core_type<tc>, window_params = [{transform_indices = @transform_0, window_bounds = array<i64: 1, 8, 64>}, {transform_indices = @transform_1, window_bounds = array<i64: 1, 1, 8>}, {pipeline_mode = #tpu.pipeline_mode<synchronous>, transform_indices = @transform_2, window_bounds = array<i64: 1, 64>}, {pipeline_mode = #tpu.pipeline_mode<synchronous>, transform_indices = @transform_3, window_bounds = array<i64: 1, 64>}, {transform_indices = @transform_4, window_bounds = array<i64: 1, 64, 192>}, {transform_indices = @transform_5, window_bounds = array<i64: 1, 1, 192>}, {transform_indices = @transform_6, window_bounds = array<i64: 1, 64, 64>}, {transform_indices = @transform_7, window_bounds = array<i64: 1, 1, 64>}, {transform_indices = @transform_8, window_bounds = array<i64: 1, 1, 64>}, {transform_indices = @transform_9, window_bounds = array<i64: 1, 1, 64>}, {transform_indices = @transform_10, window_bounds = array<i64: 1, 64, 128>}, {transform_indices = @transform_11, window_bounds = array<i64: 1, 1, 128>}, {transform_indices = @transform_12, window_bounds = array<i64: 1, 128, 64>}, {transform_indices = @transform_13, window_bounds = array<i64: 1, 1, 64>}, {transform_indices = @transform_14, window_bounds = array<i64: 1, 1, 64>}, {transform_indices = @transform_15, window_bounds = array<i64: 1, 1, 64>}, {transform_indices = @transform_16, window_bounds = array<i64: 1, 1, 64>}]} {
    %c0_i32 = arith.constant 0 : i32
    %0 = arith.cmpi eq, %arg1, %c0_i32 : i32
    %1 = arith.extui %0 : i1 to i32
    %c0_i32_0 = arith.constant 0 : i32
    %2 = arith.cmpi ne, %1, %c0_i32_0 : i32
    scf.if %2 {
      %c0_69 = arith.constant 0 : index
      %c0_70 = arith.constant 0 : index
      %c0_71 = arith.constant 0 : index
      %146 = vector.load %arg2[%c0_69, %c0_70, %c0_71] : memref<1x8x64xf32, #tpu.memory_space<vmem>>, vector<1x8x64xf32>
      %147 = vector.shape_cast %146 : vector<1x8x64xf32> to vector<8x64xf32>
      %c0_72 = arith.constant 0 : index
      %c0_73 = arith.constant 0 : index
      %148 = vector.load %arg4[%c0_72, %c0_73] : memref<1x64xf32, #tpu.memory_space<vmem>>, vector<1x64xf32>
      %c0_74 = arith.constant 0 : index
      %c0_75 = arith.constant 0 : index
      %149 = vector.load %arg5[%c0_74, %c0_75] : memref<1x64xf32, #tpu.memory_space<vmem>>, vector<1x64xf32>
      %cst_76 = arith.constant dense<0.000000e+00> : vector<8xf32>
      %150 = vector.multi_reduction <add>, %147, %cst_76 [1] : vector<8x64xf32> to vector<8xf32>
      %151 = vector.shape_cast %150 : vector<8xf32> to vector<8x1xf32>
      %cst_77 = arith.constant 6.400000e+01 : f32
      %152 = vector.broadcast %cst_77 : f32 to vector<8x1xf32>
      %153 = arith.divf %151, %152 : vector<8x1xf32>
      %154 = vector.broadcast %153 : vector<8x1xf32> to vector<8x64xf32>
      %155 = arith.subf %147, %154 : vector<8x64xf32>
      %156 = arith.mulf %155, %155 : vector<8x64xf32>
      %cst_78 = arith.constant dense<0.000000e+00> : vector<8xf32>
      %157 = vector.multi_reduction <add>, %156, %cst_78 [1] : vector<8x64xf32> to vector<8xf32>
      %158 = vector.shape_cast %157 : vector<8xf32> to vector<8x1xf32>
      %cst_79 = arith.constant 6.400000e+01 : f32
      %159 = vector.broadcast %cst_79 : f32 to vector<8x1xf32>
      %160 = arith.divf %158, %159 : vector<8x1xf32>
      %161 = vector.broadcast %153 : vector<8x1xf32> to vector<8x64xf32>
      %162 = arith.subf %147, %161 : vector<8x64xf32>
      %cst_80 = arith.constant 9.99999996E-13 : f32
      %163 = vector.broadcast %cst_80 : f32 to vector<8x1xf32>
      %164 = arith.addf %160, %163 : vector<8x1xf32>
      %165 = math.rsqrt %164 : vector<8x1xf32>
      %166 = vector.broadcast %165 : vector<8x1xf32> to vector<8x64xf32>
      %167 = arith.mulf %162, %166 : vector<8x64xf32>
      %168 = vector.broadcast %148 : vector<1x64xf32> to vector<8x64xf32>
      %169 = arith.mulf %167, %168 : vector<8x64xf32>
      %170 = vector.broadcast %149 : vector<1x64xf32> to vector<8x64xf32>
      %171 = arith.addf %169, %170 : vector<8x64xf32>
      %c0_81 = arith.constant 0 : index
      %c0_82 = arith.constant 0 : index
      %172 = vector.load %arg19[%c0_81, %c0_82] : memref<8x64xf32, #tpu.memory_space<vmem>>, vector<8x64xf32>
      tpu.vector_store %arg19[%c0_81, %c0_82], %171 {strides = array<i32>} : memref<8x64xf32, #tpu.memory_space<vmem>>, vector<8x64xf32>,
    } else {
    }
    %c0 = arith.constant 0 : index
    %c0_1 = arith.constant 0 : index
    %3 = vector.load %arg19[%c0, %c0_1] : memref<8x64xf32, #tpu.memory_space<vmem>>, vector<8x64xf32>
    %4 = arith.truncf %3 : vector<8x64xf32> to vector<8x64xbf16>
    %c0_2 = arith.constant 0 : index
    %c0_3 = arith.constant 0 : index
    %c0_4 = arith.constant 0 : index
    %5 = vector.load %arg6[%c0_2, %c0_3, %c0_4] : memref<1x64x192xbf16, #tpu.memory_space<vmem>>, vector<1x64x192xbf16>
    %6 = vector.shape_cast %5 : vector<1x64x192xbf16> to vector<64x192xbf16>
    %cst = arith.constant dense<0.000000e+00> : vector<8x192xf32>
    %7 = tpu.matmul %4, %6, %cst {dimension_numbers = #tpu.dot_dimension_numbers<[1], [0], [0], [1], [0, 0, 1, 1], [], []>} : vector<8x64xbf16>, vector<64x192xbf16>, vector<8x192xf32> -> vector<8x192xf32>
    %c0_5 = arith.constant 0 : index
    %c0_6 = arith.constant 0 : index
    %c0_7 = arith.constant 0 : index
    %8 = vector.load %arg7[%c0_5, %c0_6, %c0_7] : memref<1x1x192xf32, #tpu.memory_space<vmem>>, vector<1x1x192xf32>
    %9 = vector.shape_cast %8 : vector<1x1x192xf32> to vector<1x192xf32>
    %10 = vector.broadcast %9 : vector<1x192xf32> to vector<8x192xf32>
    %11 = arith.addf %7, %10 : vector<8x192xf32>
    %12 = vector.extract_strided_slice %11 {offsets = [0, 0], sizes = [8, 64], strides = [1, 1]} : vector<8x192xf32> to vector<8x64xf32>
    %13 = vector.shape_cast %12 : vector<8x64xf32> to vector<8x4x16xf32>
    %14 = tpu.transpose %13, [1, 0, 2] : vector<8x4x16xf32> -> vector<4x8x16xf32>
    %15 = vector.extract_strided_slice %11 {offsets = [0, 64], sizes = [8, 64], strides = [1, 1]} : vector<8x192xf32> to vector<8x64xf32>
    %16 = vector.shape_cast %15 : vector<8x64xf32> to vector<8x4x16xf32>
    %17 = tpu.transpose %16, [1, 0, 2] : vector<8x4x16xf32> -> vector<4x8x16xf32>
    %18 = vector.extract_strided_slice %11 {offsets = [0, 128], sizes = [8, 64], strides = [1, 1]} : vector<8x192xf32> to vector<8x64xf32>
    %19 = vector.shape_cast %18 : vector<8x64xf32> to vector<8x4x16xf32>
    %20 = tpu.transpose %19, [1, 0, 2] : vector<8x4x16xf32> -> vector<4x8x16xf32>
    %c0_8 = arith.constant 0 : index
    %c0_9 = arith.constant 0 : index
    %c0_10 = arith.constant 0 : index
    %21 = vector.load %arg3[%c0_8, %c0_9, %c0_10] : memref<1x1x8xf32, #tpu.memory_space<vmem>>, vector<1x1x8xf32>
    %22 = vector.shape_cast %21 : vector<1x1x8xf32> to vector<1x8xf32>
    %cst_11 = arith.constant 0.000000e+00 : f32
    %23 = vector.broadcast %cst_11 : f32 to vector<1x8xf32>
    %24 = arith.cmpf ogt, %22, %23 : vector<1x8xf32>
    %cst_12 = arith.constant 0.000000e+00 : f32
    %cst_13 = arith.constant -1.000000e+09 : f32
    %25 = vector.broadcast %cst_12 : f32 to vector<1x8xf32>
    %26 = vector.broadcast %cst_13 : f32 to vector<1x8xf32>
    %27 = arith.select %24, %25, %26 : vector<1x8xi1>, vector<1x8xf32>
    %28 = vector.shape_cast %27 : vector<1x8xf32> to vector<1x1x8xf32>
    %29 = arith.truncf %14 : vector<4x8x16xf32> to vector<4x8x16xbf16>
    %30 = arith.truncf %17 : vector<4x8x16xf32> to vector<4x8x16xbf16>
    "tpu.trace_start"() <{level = 10 : i32, message = "hqd,hkd->hqk"}> : () -> ()
    %cst_14 = arith.constant dense<0.000000e+00> : vector<4x8x8xf32>
    %31 = tpu.matmul %29, %30, %cst_14 {dimension_numbers = #tpu.dot_dimension_numbers<[2], [2], [1], [1], [0, 0, 0, 1, 1, 1], [0], [0]>} : vector<4x8x16xbf16>, vector<4x8x16xbf16>, vector<4x8x8xf32> -> vector<4x8x8xf32>
    "tpu.trace_stop"() : () -> ()
    %cst_15 = arith.constant 2.500000e-01 : f32
    %32 = vector.broadcast %cst_15 : f32 to vector<4x8x8xf32>
    %33 = arith.mulf %31, %32 : vector<4x8x8xf32>
    %34 = vector.broadcast %28 : vector<1x1x8xf32> to vector<4x8x8xf32>
    %35 = arith.addf %33, %34 : vector<4x8x8xf32>
    %cst_16 = arith.constant dense<0xFF800000> : vector<4x8xf32>
    %36 = vector.multi_reduction <maximumf>, %35, %cst_16 [2] : vector<4x8x8xf32> to vector<4x8xf32>
    %37 = vector.shape_cast %36 : vector<4x8xf32> to vector<4x8x1xf32>
    %38 = vector.broadcast %37 : vector<4x8x1xf32> to vector<4x8x8xf32>
    %39 = arith.subf %35, %38 : vector<4x8x8xf32>
    %40 = math.exp %39 : vector<4x8x8xf32>
    %cst_17 = arith.constant dense<0.000000e+00> : vector<4x8xf32>
    %41 = vector.multi_reduction <add>, %40, %cst_17 [2] : vector<4x8x8xf32> to vector<4x8xf32>
    %42 = vector.shape_cast %41 : vector<4x8xf32> to vector<4x8x1xf32>
    %43 = tpu.reciprocal %42 {approx = true} : vector<4x8x1xf32> -> vector<4x8x1xf32>
    %44 = vector.broadcast %43 : vector<4x8x1xf32> to vector<4x8x8xf32>
    %45 = arith.mulf %40, %44 : vector<4x8x8xf32>
    %46 = arith.truncf %45 : vector<4x8x8xf32> to vector<4x8x8xbf16>
    %47 = arith.truncf %20 : vector<4x8x16xf32> to vector<4x8x16xbf16>
    "tpu.trace_start"() <{level = 10 : i32, message = "hqk,hkd->hqd"}> : () -> ()
    %cst_18 = arith.constant dense<0.000000e+00> : vector<4x8x16xf32>
    %48 = tpu.matmul %46, %47, %cst_18 {dimension_numbers = #tpu.dot_dimension_numbers<[2], [1], [1], [2], [0, 0, 0, 1, 1, 2], [0], [0]>} : vector<4x8x8xbf16>, vector<4x8x16xbf16>, vector<4x8x16xf32> -> vector<4x8x16xf32>
    "tpu.trace_stop"() : () -> ()
    %49 = tpu.transpose %48, [1, 0, 2] : vector<4x8x16xf32> -> vector<8x4x16xf32>
    %50 = vector.shape_cast %49 : vector<8x4x16xf32> to vector<8x64xf32>
    %51 = arith.truncf %50 : vector<8x64xf32> to vector<8x64xbf16>
    %c0_19 = arith.constant 0 : index
    %c0_20 = arith.constant 0 : index
    %c0_21 = arith.constant 0 : index
    %52 = vector.load %arg8[%c0_19, %c0_20, %c0_21] : memref<1x64x64xbf16, #tpu.memory_space<vmem>>, vector<1x64x64xbf16>
    %53 = vector.shape_cast %52 : vector<1x64x64xbf16> to vector<64x64xbf16>
    %cst_22 = arith.constant dense<0.000000e+00> : vector<8x64xf32>
    %54 = tpu.matmul %51, %53, %cst_22 {dimension_numbers = #tpu.dot_dimension_numbers<[1], [0], [0], [1], [0, 0, 1, 1], [], []>} : vector<8x64xbf16>, vector<64x64xbf16>, vector<8x64xf32> -> vector<8x64xf32>
    %c0_23 = arith.constant 0 : index
    %c0_24 = arith.constant 0 : index
    %c0_25 = arith.constant 0 : index
    %55 = vector.load %arg9[%c0_23, %c0_24, %c0_25] : memref<1x1x64xf32, #tpu.memory_space<vmem>>, vector<1x1x64xf32>
    %56 = vector.shape_cast %55 : vector<1x1x64xf32> to vector<1x64xf32>
    %57 = vector.broadcast %56 : vector<1x64xf32> to vector<8x64xf32>
    %58 = arith.addf %54, %57 : vector<8x64xf32>
    %59 = arith.addf %58, %3 : vector<8x64xf32>
    %c0_26 = arith.constant 0 : index
    %c0_27 = arith.constant 0 : index
    %c0_28 = arith.constant 0 : index
    %60 = vector.load %arg10[%c0_26, %c0_27, %c0_28] : memref<1x1x64xf32, #tpu.memory_space<vmem>>, vector<1x1x64xf32>
    %61 = vector.shape_cast %60 : vector<1x1x64xf32> to vector<1x64xf32>
    %c0_29 = arith.constant 0 : index
    %c0_30 = arith.constant 0 : index
    %c0_31 = arith.constant 0 : index
    %62 = vector.load %arg11[%c0_29, %c0_30, %c0_31] : memref<1x1x64xf32, #tpu.memory_space<vmem>>, vector<1x1x64xf32>
    %63 = vector.shape_cast %62 : vector<1x1x64xf32> to vector<1x64xf32>
    %cst_32 = arith.constant dense<0.000000e+00> : vector<8xf32>
    %64 = vector.multi_reduction <add>, %59, %cst_32 [1] : vector<8x64xf32> to vector<8xf32>
    %65 = vector.shape_cast %64 : vector<8xf32> to vector<8x1xf32>
    %cst_33 = arith.constant 6.400000e+01 : f32
    %66 = vector.broadcast %cst_33 : f32 to vector<8x1xf32>
    %67 = arith.divf %65, %66 : vector<8x1xf32>
    %68 = vector.broadcast %67 : vector<8x1xf32> to vector<8x64xf32>
    %69 = arith.subf %59, %68 : vector<8x64xf32>
    %70 = arith.mulf %69, %69 : vector<8x64xf32>
    %cst_34 = arith.constant dense<0.000000e+00> : vector<8xf32>
    %71 = vector.multi_reduction <add>, %70, %cst_34 [1] : vector<8x64xf32> to vector<8xf32>
    %72 = vector.shape_cast %71 : vector<8xf32> to vector<8x1xf32>
    %cst_35 = arith.constant 6.400000e+01 : f32
    %73 = vector.broadcast %cst_35 : f32 to vector<8x1xf32>
    %74 = arith.divf %72, %73 : vector<8x1xf32>
    %75 = vector.broadcast %67 : vector<8x1xf32> to vector<8x64xf32>
    %76 = arith.subf %59, %75 : vector<8x64xf32>
    %cst_36 = arith.constant 9.99999996E-13 : f32
    %77 = vector.broadcast %cst_36 : f32 to vector<8x1xf32>
    %78 = arith.addf %74, %77 : vector<8x1xf32>
    %79 = math.rsqrt %78 : vector<8x1xf32>
    %80 = vector.broadcast %79 : vector<8x1xf32> to vector<8x64xf32>
    %81 = arith.mulf %76, %80 : vector<8x64xf32>
    %82 = vector.broadcast %61 : vector<1x64xf32> to vector<8x64xf32>
    %83 = arith.mulf %81, %82 : vector<8x64xf32>
    %84 = vector.broadcast %63 : vector<1x64xf32> to vector<8x64xf32>
    %85 = arith.addf %83, %84 : vector<8x64xf32>
    %86 = arith.truncf %85 : vector<8x64xf32> to vector<8x64xbf16>
    %c0_37 = arith.constant 0 : index
    %c0_38 = arith.constant 0 : index
    %c0_39 = arith.constant 0 : index
    %87 = vector.load %arg12[%c0_37, %c0_38, %c0_39] : memref<1x64x128xbf16, #tpu.memory_space<vmem>>, vector<1x64x128xbf16>
    %88 = vector.shape_cast %87 : vector<1x64x128xbf16> to vector<64x128xbf16>
    %cst_40 = arith.constant dense<0.000000e+00> : vector<8x128xf32>
    %89 = tpu.matmul %86, %88, %cst_40 {dimension_numbers = #tpu.dot_dimension_numbers<[1], [0], [0], [1], [0, 0, 1, 1], [], []>} : vector<8x64xbf16>, vector<64x128xbf16>, vector<8x128xf32> -> vector<8x128xf32>
    %c0_41 = arith.constant 0 : index
    %c0_42 = arith.constant 0 : index
    %c0_43 = arith.constant 0 : index
    %90 = vector.load %arg13[%c0_41, %c0_42, %c0_43] : memref<1x1x128xf32, #tpu.memory_space<vmem>>, vector<1x1x128xf32>
    %91 = vector.shape_cast %90 : vector<1x1x128xf32> to vector<1x128xf32>
    %92 = vector.broadcast %91 : vector<1x128xf32> to vector<8x128xf32>
    %93 = arith.addf %89, %92 : vector<8x128xf32>
    %94 = arith.mulf %93, %93 : vector<8x128xf32>
    %95 = arith.mulf %93, %94 : vector<8x128xf32>
    %cst_44 = arith.constant 4.471500e-02 : f32
    %96 = vector.broadcast %cst_44 : f32 to vector<8x128xf32>
    %97 = arith.mulf %96, %95 : vector<8x128xf32>
    %98 = arith.addf %93, %97 : vector<8x128xf32>
    %cst_45 = arith.constant 0.797884583 : f32
    %99 = vector.broadcast %cst_45 : f32 to vector<8x128xf32>
    %100 = arith.mulf %99, %98 : vector<8x128xf32>
    %101 = math.tanh %100 : vector<8x128xf32>
    %cst_46 = arith.constant 1.000000e+00 : f32
    %102 = vector.broadcast %cst_46 : f32 to vector<8x128xf32>
    %103 = arith.addf %102, %101 : vector<8x128xf32>
    %cst_47 = arith.constant 5.000000e-01 : f32
    %104 = vector.broadcast %cst_47 : f32 to vector<8x128xf32>
    %105 = arith.mulf %104, %103 : vector<8x128xf32>
    %106 = arith.mulf %93, %105 : vector<8x128xf32>
    %107 = arith.truncf %106 : vector<8x128xf32> to vector<8x128xbf16>
    %c0_48 = arith.constant 0 : index
    %c0_49 = arith.constant 0 : index
    %c0_50 = arith.constant 0 : index
    %108 = vector.load %arg14[%c0_48, %c0_49, %c0_50] : memref<1x128x64xbf16, #tpu.memory_space<vmem>>, vector<1x128x64xbf16>
    %109 = vector.shape_cast %108 : vector<1x128x64xbf16> to vector<128x64xbf16>
    %cst_51 = arith.constant dense<0.000000e+00> : vector<8x64xf32>
    %110 = tpu.matmul %107, %109, %cst_51 {dimension_numbers = #tpu.dot_dimension_numbers<[1], [0], [0], [1], [0, 0, 1, 1], [], []>} : vector<8x128xbf16>, vector<128x64xbf16>, vector<8x64xf32> -> vector<8x64xf32>
    %c0_52 = arith.constant 0 : index
    %c0_53 = arith.constant 0 : index
    %c0_54 = arith.constant 0 : index
    %111 = vector.load %arg15[%c0_52, %c0_53, %c0_54] : memref<1x1x64xf32, #tpu.memory_space<vmem>>, vector<1x1x64xf32>
    %112 = vector.shape_cast %111 : vector<1x1x64xf32> to vector<1x64xf32>
    %113 = vector.broadcast %112 : vector<1x64xf32> to vector<8x64xf32>
    %114 = arith.addf %110, %113 : vector<8x64xf32>
    %115 = arith.addf %114, %85 : vector<8x64xf32>
    %c0_55 = arith.constant 0 : index
    %c0_56 = arith.constant 0 : index
    %c0_57 = arith.constant 0 : index
    %116 = vector.load %arg16[%c0_55, %c0_56, %c0_57] : memref<1x1x64xf32, #tpu.memory_space<vmem>>, vector<1x1x64xf32>
    %117 = vector.shape_cast %116 : vector<1x1x64xf32> to vector<1x64xf32>
    %c0_58 = arith.constant 0 : index
    %c0_59 = arith.constant 0 : index
    %c0_60 = arith.constant 0 : index
    %118 = vector.load %arg17[%c0_58, %c0_59, %c0_60] : memref<1x1x64xf32, #tpu.memory_space<vmem>>, vector<1x1x64xf32>
    %119 = vector.shape_cast %118 : vector<1x1x64xf32> to vector<1x64xf32>
    %cst_61 = arith.constant dense<0.000000e+00> : vector<8xf32>
    %120 = vector.multi_reduction <add>, %115, %cst_61 [1] : vector<8x64xf32> to vector<8xf32>
    %121 = vector.shape_cast %120 : vector<8xf32> to vector<8x1xf32>
    %cst_62 = arith.constant 6.400000e+01 : f32
    %122 = vector.broadcast %cst_62 : f32 to vector<8x1xf32>
    %123 = arith.divf %121, %122 : vector<8x1xf32>
    %124 = vector.broadcast %123 : vector<8x1xf32> to vector<8x64xf32>
    %125 = arith.subf %115, %124 : vector<8x64xf32>
    %126 = arith.mulf %125, %125 : vector<8x64xf32>
    %cst_63 = arith.constant dense<0.000000e+00> : vector<8xf32>
    %127 = vector.multi_reduction <add>, %126, %cst_63 [1] : vector<8x64xf32> to vector<8xf32>
    %128 = vector.shape_cast %127 : vector<8xf32> to vector<8x1xf32>
    %cst_64 = arith.constant 6.400000e+01 : f32
    %129 = vector.broadcast %cst_64 : f32 to vector<8x1xf32>
    %130 = arith.divf %128, %129 : vector<8x1xf32>
    %131 = vector.broadcast %123 : vector<8x1xf32> to vector<8x64xf32>
    %132 = arith.subf %115, %131 : vector<8x64xf32>
    %cst_65 = arith.constant 9.99999996E-13 : f32
    %133 = vector.broadcast %cst_65 : f32 to vector<8x1xf32>
    %134 = arith.addf %130, %133 : vector<8x1xf32>
    %135 = math.rsqrt %134 : vector<8x1xf32>
    %136 = vector.broadcast %135 : vector<8x1xf32> to vector<8x64xf32>
    %137 = arith.mulf %132, %136 : vector<8x64xf32>
    %138 = vector.broadcast %117 : vector<1x64xf32> to vector<8x64xf32>
    %139 = arith.mulf %137, %138 : vector<8x64xf32>
    %140 = vector.broadcast %119 : vector<1x64xf32> to vector<8x64xf32>
    %141 = arith.addf %139, %140 : vector<8x64xf32>
    %c0_66 = arith.constant 0 : index
    %c0_67 = arith.constant 0 : index
    %142 = vector.load %arg19[%c0_66, %c0_67] : memref<8x64xf32, #tpu.memory_space<vmem>>, vector<8x64xf32>
    tpu.vector_store %arg19[%c0_66, %c0_67], %141 {strides = array<i32>} : memref<8x64xf32, #tpu.memory_space<vmem>>, vector<8x64xf32>,
    %c1_i32 = arith.constant 1 : i32
    %143 = arith.cmpi eq, %arg1, %c1_i32 : i32
    %144 = arith.extui %143 : i1 to i32
    %c0_i32_68 = arith.constant 0 : i32
    %145 = arith.cmpi ne, %144, %c0_i32_68 : i32
    scf.if %145 {
      %c0_69 = arith.constant 0 : index
      %c0_70 = arith.constant 0 : index
      %c0_71 = arith.constant 0 : index
      %146 = vector.load %arg3[%c0_69, %c0_70, %c0_71] : memref<1x1x8xf32, #tpu.memory_space<vmem>>, vector<1x1x8xf32>
      %147 = vector.shape_cast %146 : vector<1x1x8xf32> to vector<1x8xf32>
      %148 = vector.shape_cast %147 : vector<1x8xf32> to vector<8x1xf32>
      %149 = vector.broadcast %148 : vector<8x1xf32> to vector<8x64xf32>
      %150 = arith.mulf %141, %149 : vector<8x64xf32>
      %cst_72 = arith.constant dense<0.000000e+00> : vector<64xf32>
      %151 = vector.multi_reduction <add>, %150, %cst_72 [0] : vector<8x64xf32> to vector<64xf32>
      %152 = vector.shape_cast %151 : vector<64xf32> to vector<1x64xf32>
      %c0_73 = arith.constant 0 : index
      %c0_74 = arith.constant 0 : index
      %c0_75 = arith.constant 0 : index
      %153 = vector.load %arg3[%c0_73, %c0_74, %c0_75] : memref<1x1x8xf32, #tpu.memory_space<vmem>>, vector<1x1x8xf32>
      %154 = vector.shape_cast %153 : vector<1x1x8xf32> to vector<1x8xf32>
      %cst_76 = arith.constant dense<0.000000e+00> : vector<1xf32>
      %155 = vector.multi_reduction <add>, %154, %cst_76 [1] : vector<1x8xf32> to vector<1xf32>
      %156 = vector.shape_cast %155 : vector<1xf32> to vector<1x1xf32>
      %cst_77 = arith.constant 9.99999971E-10 : f32
      %157 = vector.broadcast %cst_77 : f32 to vector<1x1xf32>
      %158 = arith.maximumf %156, %157 : vector<1x1xf32>
      %159 = vector.broadcast %158 : vector<1x1xf32> to vector<1x64xf32>
      %160 = arith.divf %152, %159 : vector<1x64xf32>
      %c0_78 = arith.constant 0 : index
      %c0_79 = arith.constant 0 : index
      %c0_80 = arith.constant 0 : index
      %161 = vector.load %arg18[%c0_78, %c0_79, %c0_80] : memref<1x1x64xf32, #tpu.memory_space<vmem>>, vector<1x1x64xf32>
      %162 = vector.shape_cast %161 : vector<1x1x64xf32> to vector<1x64xf32>
      %163 = vector.shape_cast %160 : vector<1x64xf32> to vector<1x1x64xf32>
      tpu.vector_store %arg18[%c0_78, %c0_79, %c0_80], %163 {strides = array<i32>} : memref<1x1x64xf32, #tpu.memory_space<vmem>>, vector<1x1x64xf32>,
    } else {
    }
    return
  }
  func.func @transform_0(%arg0: i32, %arg1: i32) -> (i32, i32, i32) {
    %c0_i32 = arith.constant 0 : i32
    %c0_i32_0 = arith.constant 0 : i32
    %c0_i32_1 = arith.constant 0 : i32
    return %arg0, %c0_i32, %c0_i32_0 : i32, i32, i32
  }
  func.func @transform_1(%arg0: i32, %arg1: i32) -> (i32, i32, i32) {
    %c0_i32 = arith.constant 0 : i32
    %c0_i32_0 = arith.constant 0 : i32
    %c0_i32_1 = arith.constant 0 : i32
    return %arg0, %c0_i32, %c0_i32_0 : i32, i32, i32
  }
  func.func @transform_2(%arg0: i32, %arg1: i32) -> (i32, i32) {
    %c0_i32 = arith.constant 0 : i32
    %c0_i32_0 = arith.constant 0 : i32
    %c0_i32_1 = arith.constant 0 : i32
    return %c0_i32, %c0_i32_0 : i32, i32
  }
  func.func @transform_3(%arg0: i32, %arg1: i32) -> (i32, i32) {
    %c0_i32 = arith.constant 0 : i32
    %c0_i32_0 = arith.constant 0 : i32
    %c0_i32_1 = arith.constant 0 : i32
    return %c0_i32, %c0_i32_0 : i32, i32
  }
  func.func @transform_4(%arg0: i32, %arg1: i32) -> (i32, i32, i32) {
    %c0_i32 = arith.constant 0 : i32
    %c0_i32_0 = arith.constant 0 : i32
    %c0_i32_1 = arith.constant 0 : i32
    return %arg1, %c0_i32, %c0_i32_0 : i32, i32, i32
  }
  func.func @transform_5(%arg0: i32, %arg1: i32) -> (i32, i32, i32) {
    %c0_i32 = arith.constant 0 : i32
    %c0_i32_0 = arith.constant 0 : i32
    %c0_i32_1 = arith.constant 0 : i32
    return %arg1, %c0_i32, %c0_i32_0 : i32, i32, i32
  }
  func.func @transform_6(%arg0: i32, %arg1: i32) -> (i32, i32, i32) {
    %c0_i32 = arith.constant 0 : i32
    %c0_i32_0 = arith.constant 0 : i32
    %c0_i32_1 = arith.constant 0 : i32
    return %arg1, %c0_i32, %c0_i32_0 : i32, i32, i32
  }
  func.func @transform_7(%arg0: i32, %arg1: i32) -> (i32, i32, i32) {
    %c0_i32 = arith.constant 0 : i32
    %c0_i32_0 = arith.constant 0 : i32
    %c0_i32_1 = arith.constant 0 : i32
    return %arg1, %c0_i32, %c0_i32_0 : i32, i32, i32
  }
  func.func @transform_8(%arg0: i32, %arg1: i32) -> (i32, i32, i32) {
    %c0_i32 = arith.constant 0 : i32
    %c0_i32_0 = arith.constant 0 : i32
    %c0_i32_1 = arith.constant 0 : i32
    return %arg1, %c0_i32, %c0_i32_0 : i32, i32, i32
  }
  func.func @transform_9(%arg0: i32, %arg1: i32) -> (i32, i32, i32) {
    %c0_i32 = arith.constant 0 : i32
    %c0_i32_0 = arith.constant 0 : i32
    %c0_i32_1 = arith.constant 0 : i32
    return %arg1, %c0_i32, %c0_i32_0 : i32, i32, i32
  }
  func.func @transform_10(%arg0: i32, %arg1: i32) -> (i32, i32, i32) {
    %c0_i32 = arith.constant 0 : i32
    %c0_i32_0 = arith.constant 0 : i32
    %c0_i32_1 = arith.constant 0 : i32
    return %arg1, %c0_i32, %c0_i32_0 : i32, i32, i32
  }
  func.func @transform_11(%arg0: i32, %arg1: i32) -> (i32, i32, i32) {
    %c0_i32 = arith.constant 0 : i32
    %c0_i32_0 = arith.constant 0 : i32
    %c0_i32_1 = arith.constant 0 : i32
    return %arg1, %c0_i32, %c0_i32_0 : i32, i32, i32
  }
  func.func @transform_12(%arg0: i32, %arg1: i32) -> (i32, i32, i32) {
    %c0_i32 = arith.constant 0 : i32
    %c0_i32_0 = arith.constant 0 : i32
    %c0_i32_1 = arith.constant 0 : i32
    return %arg1, %c0_i32, %c0_i32_0 : i32, i32, i32
  }
  func.func @transform_13(%arg0: i32, %arg1: i32) -> (i32, i32, i32) {
    %c0_i32 = arith.constant 0 : i32
    %c0_i32_0 = arith.constant 0 : i32
    %c0_i32_1 = arith.constant 0 : i32
    return %arg1, %c0_i32, %c0_i32_0 : i32, i32, i32
  }
  func.func @transform_14(%arg0: i32, %arg1: i32) -> (i32, i32, i32) {
    %c0_i32 = arith.constant 0 : i32
    %c0_i32_0 = arith.constant 0 : i32
    %c0_i32_1 = arith.constant 0 : i32
    return %arg1, %c0_i32, %c0_i32_0 : i32, i32, i32
  }
  func.func @transform_15(%arg0: i32, %arg1: i32) -> (i32, i32, i32) {
    %c0_i32 = arith.constant 0 : i32
    %c0_i32_0 = arith.constant 0 : i32
    %c0_i32_1 = arith.constant 0 : i32
    return %arg1, %c0_i32, %c0_i32_0 : i32, i32, i32
  }
  func.func @transform_16(%arg0: i32, %arg1: i32) -> (i32, i32, i32) {
    %c0_i32 = arith.constant 0 : i32
    %c0_i32_0 = arith.constant 0 : i32
    %c0_i32_1 = arith.constant 0 : i32
    return %arg0, %c0_i32, %c0_i32_0 : i32, i32, i32
  }
}

</mosaic_0001>

<bundles_post_ra>
// kernel: exifnet_forward.7
= control target key start
LH: loop header
LB: loop body
LE: loop exit
PB: predicated region body
PF: predicated region fallthrough
CT: control target
= control target key end

     0   :  { %vm254_vm0 = vcmask 130048   ;;  %vm960_vm1 = vcmask 125952   ;;  %s1833_s1 = inlined_call_operand.vmem [shape: bf16[16,16], index: 1, kind: input, shape index: {}]   ;;  %s1834_s0 = inlined_call_operand.vmem [shape: bf16[512,16], index: 0, kind: input, shape index: {}]   ;;  %s1835_s2 = inlined_call_operand.vmem [shape: f32[1,16], index: 2, kind: input, shape index: {}]   ;;  %s1836_s3 = inlined_call_operand.vmem [shape: bf16[512,16], index: 3, kind: output, shape index: {}]  }
   0x1   :  { %v1324_v0 = vld [vmem:[%s1833_s1] sm:$0xff]   ;;  %v1327_v3 = vld [vmem:[%s1834_s0 + $0x8] sm:$0xff]   ;;  %v1329_v5 = vld [vmem:[%s1834_s0 + $0x10] sm:$0xff]  }
   0x2   :  { %v1325_v1 = vld [vmem:[%s1834_s0] sm:$0xff]   ;;  %1256 = vmatprep.subr.bf16.mxu0 %v1324_v0  ;;  %1322 = vmatprep.subr.bf16.mxu1 %v1324_v0  ;;  %v1328_v4 = vld [vmem:[%s1834_s0 + $0x88] sm:$0xff]   ;;  %v1330_v6 = vld [vmem:[%s1834_s0 + $0x90] sm:$0xff]  }
   0x3   :  { %v1326_v2 = vld [vmem:[%s1834_s0 + $0x80] sm:$0xff]   ;;  %1257 = vmatpush3.bf16.msra.mxu0 %v1324_v0  ;;  %1323 = vmatpush3.bf16.msra.mxu1 %v1324_v0  ;;  %v1331_v7 = vld [vmem:[%s1834_s0 + $0x18] sm:$0xff]   ;;  %v1335_v11 = vld [vmem:[%s1834_s0 + $0x28] sm:$0xff]  }
   0x4   :  { %1258 = vmatprep.mubr.msk.bf16.mxu0 %vm254_vm0, %v1325_v1  ;;  %1290 = vmatprep.mubr.msk.bf16.mxu1 %vm254_vm0, %v1326_v2  ;;  %v1332_v8 = vld [vmem:[%s1834_s0 + $0x98] sm:$0xff]   ;;  %v1333_v9 = vld [vmem:[%s1834_s0 + $0x20] sm:$0xff]   ;;  %v1336_v12 = vld [vmem:[%s1834_s0 + $0xa8] sm:$0xff]  }
   0x5   :  { %v1334_v10 = vld [vmem:[%s1834_s0 + $0xa0] sm:$0xff]   ;;  %v1337_v13 = vld [vmem:[%s1834_s0 + $0x30] sm:$0xff]   ;;  %v1339_v15 = vld [vmem:[%s1834_s0 + $0x38] sm:$0xff]  }
   0x6   :  { %1259 = vmatmul.mubr.msk.bf16.vlgmr.msra.gmra.mrb[0].mxu0 %vm254_vm0, %v1327_v3  ;;  %1291 = vmatmul.mubr.msk.bf16.vlgmr.msra.gmra.mrb[0].mxu1 %vm254_vm0, %v1328_v4  ;;  %v1338_v14 = vld [vmem:[%s1834_s0 + $0xb0] sm:$0xff]   ;;  %v1340_v16 = vld [vmem:[%s1834_s0 + $0xb8] sm:$0xff]   ;;  %v1341_v17 = vld [vmem:[%s1834_s0 + $0x40] sm:$0xff]  }
   0x7   :  { %1262 = vmatprep.mubr.msk.bf16.mxu0 %vm254_vm0, %v1329_v5  ;;  %1294 = vmatprep.mubr.msk.bf16.mxu1 %vm254_vm0, %v1330_v6  ;;  %v1342_v18 = vld [vmem:[%s1834_s0 + $0xc0] sm:$0xff]   ;;  %v1343_v19 = vld [vmem:[%s1834_s0 + $0x48] sm:$0xff]   ;;  %v1345_v21 = vld [vmem:[%s1834_s0 + $0x50] sm:$0xff]  }
   0x8   :  { %v1344_v20 = vld [vmem:[%s1834_s0 + $0xc8] sm:$0xff]   ;;  %v1346_v22 = vld [vmem:[%s1834_s0 + $0xd0] sm:$0xff]   ;;  %v1347_v23 = vld [vmem:[%s1834_s0 + $0x58] sm:$0xff]  }
   0x9   :  { %v1348_v24 = vld [vmem:[%s1834_s0 + $0xd8] sm:$0xff]   ;;  %v1349_v25 = vld [vmem:[%s1834_s0 + $0x60] sm:$0xff]   ;;  %v1351_v27 = vld [vmem:[%s1834_s0 + $0x68] sm:$0xff]  }
   0xa   :  { %v1350_v26 = vld [vmem:[%s1834_s0 + $0xe0] sm:$0xff]   ;;  %v1352_v28 = vld [vmem:[%s1834_s0 + $0xe8] sm:$0xff]   ;;  %v1353_v29 = vld [vmem:[%s1834_s0 + $0x70] sm:$0xff]  }
   0xb   :  { %v1354_v30 = vld [vmem:[%s1834_s0 + $0xf0] sm:$0xff]   ;;  %v1355_v31 = vld [vmem:[%s1834_s0 + $0x78] sm:$0xff]   ;;  %v1511_v33 = vld [vmem:[%s1835_s2] ss:$0 sm:$0xff] }
   0xc   :  { %v1356_v32 = vld [vmem:[%s1834_s0 + $0xf8] sm:$0xff]  }
   0xe   :  { %1263 = vmatmul.mubr.msk.bf16.gmra.mrb[4].mxu0 %vm254_vm0, %v1331_v7  ;;  %1295 = vmatmul.mubr.msk.bf16.gmra.mrb[4].mxu1 %vm254_vm0, %v1332_v8 }
   0xf   :  { %1266 = vmatprep.mubr.msk.bf16.mxu0 %vm254_vm0, %v1333_v9  ;;  %1298 = vmatprep.mubr.msk.bf16.mxu1 %vm254_vm0, %v1334_v10 }
  0x16   :  { %1267 = vmatmul.mubr.msk.bf16.gmra.mrb[8].mxu0 %vm254_vm0, %v1335_v11  ;;  %1299 = vmatmul.mubr.msk.bf16.gmra.mrb[8].mxu1 %vm254_vm0, %v1336_v12 }
  0x17   :  { %1270 = vmatprep.mubr.msk.bf16.mxu0 %vm254_vm0, %v1337_v13  ;;  %1302 = vmatprep.mubr.msk.bf16.mxu1 %vm254_vm0, %v1338_v14 }
  0x1e   :  { %1271 = vmatmul.mubr.msk.bf16.gmra.mrb[12].mxu0 %vm254_vm0, %v1339_v15  ;;  %1303 = vmatmul.mubr.msk.bf16.gmra.mrb[12].mxu1 %vm254_vm0, %v1340_v16 }
  0x1f   :  { %1274 = vmatprep.mubr.msk.bf16.mxu0 %vm254_vm0, %v1341_v17  ;;  %1306 = vmatprep.mubr.msk.bf16.mxu1 %vm254_vm0, %v1342_v18 }
  0x26   :  { %1275 = vmatmul.mubr.msk.bf16.gmra.mrb[16].mxu0 %vm254_vm0, %v1343_v19  ;;  %1307 = vmatmul.mubr.msk.bf16.gmra.mrb[16].mxu1 %vm254_vm0, %v1344_v20 }
  0x27   :  { %1278 = vmatprep.mubr.msk.bf16.mxu0 %vm254_vm0, %v1345_v21  ;;  %1310 = vmatprep.mubr.msk.bf16.mxu1 %vm254_vm0, %v1346_v22 }
  0x2e   :  { %1279 = vmatmul.mubr.msk.bf16.gmra.mrb[20].mxu0 %vm254_vm0, %v1347_v23  ;;  %1311 = vmatmul.mubr.msk.bf16.gmra.mrb[20].mxu1 %vm254_vm0, %v1348_v24 }
  0x2f   :  { %1282 = vmatprep.mubr.msk.bf16.mxu0 %vm254_vm0, %v1349_v25  ;;  %1314 = vmatprep.mubr.msk.bf16.mxu1 %vm254_vm0, %v1350_v26 }
  0x36   :  { %1283 = vmatmul.mubr.msk.bf16.gmra.mrb[24].mxu0 %vm254_vm0, %v1351_v27  ;;  %1315 = vmatmul.mubr.msk.bf16.gmra.mrb[24].mxu1 %vm254_vm0, %v1352_v28 }
  0x37   :  { %1286 = vmatprep.mubr.msk.bf16.mxu0 %vm254_vm0, %v1353_v29  ;;  %1318 = vmatprep.mubr.msk.bf16.mxu1 %vm254_vm0, %v1354_v30 }
  0x3e   :  { %1287 = vmatmul.mubr.msk.bf16.gmra.mrb[28].mxu0 %vm254_vm0, %v1355_v31  ;;  %1319 = vmatmul.mubr.msk.bf16.gmra.mrb[28].mxu1 %vm254_vm0, %v1356_v32 }
  0xd9   :  { %v1260_v34 = vpop.f32.mrb[0].mxu0  ;;  %v1292_v35 = vpop.f32.mrb[0].mxu1 }
  0xda   :  { %v394_v36 = vadd.f32 %v1260_v34, %v1511_v33  ;;  %v522_v37 = vadd.f32 %v1292_v35, %v1511_v33  ;;  %v385_v38 = vpop.f32.mrb[1].mxu0  ;;  %v513_v39 = vpop.f32.mrb[1].mxu1 }
  0xdb   :  { %v386_v40 = vadd.f32 %v1511_v33, %v385_v38  ;;  %v514_v41 = vadd.f32 %v1511_v33, %v513_v39  ;;  %v1261_v42 = vpop.f32.mrb[2].mxu0  ;;  %v1293_v43 = vpop.f32.mrb[2].mxu1 }
  0xdc   :  { %v642_v44 = vmax.f32 %v394_v36, 0.0  ;;  %v674_v45 = vmax.f32 %v522_v37, 0.0  ;;  %v397_v46 = vadd.f32 %v1261_v42, %v1511_v33  ;;  %v525_v47 = vadd.f32 %v1293_v43, %v1511_v33  ;;  %v388_v48 = vpop.f32.mrb[3].mxu0  ;;  %v516_v49 = vpop.f32.mrb[3].mxu1 }
  0xdd   :  { %v640_v50 = vmax.f32 %v386_v40, 0.0  ;;  %v672_v51 = vmax.f32 %v514_v41, 0.0  ;;  %v389_v52 = vadd.f32 %v1511_v33, %v388_v48  ;;  %v517_v53 = vadd.f32 %v1511_v33, %v516_v49 }
  0xde   :  { %v1161_v54 = vpack.c.bf16 %v642_v44, %v642_v44  ;;  %v1193_v55 = vpack.c.bf16 %v674_v45, %v674_v45  ;;  %v643_v56 = vmax.f32 %v397_v46, 0.0  ;;  %v675_v57 = vmax.f32 %v525_v47, 0.0 }
  0xdf   :  { %v1159_v58 = vpack.c.bf16 %v640_v50, %v640_v50  ;;  %v1191_v59 = vpack.c.bf16 %v672_v51, %v672_v51  ;;  %v641_v60 = vmax.f32 %v389_v52, 0.0  ;;  %v673_v61 = vmax.f32 %v517_v53, 0.0 }
  0xe0   :  { %963 = vst.msk [vmem:[%s1836_s3 + $0x8] sm:$0xf] %vm960_vm1, %v1161_v54  ;;  %995 = vst.msk [vmem:[%s1836_s3 + $0x88] sm:$0xf] %vm960_vm1, %v1193_v55  ;;  %v1162_v62 = vpack.c.bf16 %v643_v56, %v643_v56  ;;  %v1194_v63 = vpack.c.bf16 %v675_v57, %v675_v57 }
  0xe1   :  { %961 = vst.msk [vmem:[%s1836_s3] sm:$0xf] %vm960_vm1, %v1159_v58  ;;  %993 = vst.msk [vmem:[%s1836_s3 + $0x80] sm:$0xf] %vm960_vm1, %v1191_v59  ;;  %v1160_v0 = vpack.c.bf16 %v641_v60, %v641_v60  ;;  %v1192_v1 = vpack.c.bf16 %v673_v61, %v673_v61  ;;  %v1264_v2 = vpop.f32.mrb[4].mxu0  ;;  %v1296_v3 = vpop.f32.mrb[4].mxu1 }
  0xe2   :  { %964 = vst.msk [vmem:[%s1836_s3 + $0xc] sm:$0xf] %vm960_vm1, %v1162_v62  ;;  %996 = vst.msk [vmem:[%s1836_s3 + $0x8c] sm:$0xf] %vm960_vm1, %v1194_v63  ;;  %v410_v4 = vadd.f32 %v1264_v2, %v1511_v33  ;;  %v538_v5 = vadd.f32 %v1296_v3, %v1511_v33  ;;  %v401_v6 = vpop.f32.mrb[5].mxu0  ;;  %v529_v7 = vpop.f32.mrb[5].mxu1 }
  0xe3   :  { %962 = vst.msk [vmem:[%s1836_s3 + $0x4] sm:$0xf] %vm960_vm1, %v1160_v0  ;;  %994 = vst.msk [vmem:[%s1836_s3 + $0x84] sm:$0xf] %vm960_vm1, %v1192_v1  ;;  %v402_v8 = vadd.f32 %v1511_v33, %v401_v6  ;;  %v530_v9 = vadd.f32 %v1511_v33, %v529_v7  ;;  %v1265_v10 = vpop.f32.mrb[6].mxu0  ;;  %v1297_v11 = vpop.f32.mrb[6].mxu1 }
  0xe4   :  { %v646_v12 = vmax.f32 %v410_v4, 0.0  ;;  %v678_v13 = vmax.f32 %v538_v5, 0.0  ;;  %v413_v14 = vadd.f32 %v1265_v10, %v1511_v33  ;;  %v541_v15 = vadd.f32 %v1297_v11, %v1511_v33  ;;  %v404_v16 = vpop.f32.mrb[7].mxu0  ;;  %v532_v17 = vpop.f32.mrb[7].mxu1 }
  0xe5   :  { %v644_v18 = vmax.f32 %v402_v8, 0.0  ;;  %v676_v19 = vmax.f32 %v530_v9, 0.0  ;;  %v405_v20 = vadd.f32 %v1511_v33, %v404_v16  ;;  %v533_v21 = vadd.f32 %v1511_v33, %v532_v17 }
  0xe6   :  { %v1165_v22 = vpack.c.bf16 %v646_v12, %v646_v12  ;;  %v1197_v23 = vpack.c.bf16 %v678_v13, %v678_v13  ;;  %v647_v24 = vmax.f32 %v413_v14, 0.0  ;;  %v679_v25 = vmax.f32 %v541_v15, 0.0 }
  0xe7   :  { %v1163_v26 = vpack.c.bf16 %v644_v18, %v644_v18  ;;  %v1195_v27 = vpack.c.bf16 %v676_v19, %v676_v19  ;;  %v645_v28 = vmax.f32 %v405_v20, 0.0  ;;  %v677_v29 = vmax.f32 %v533_v21, 0.0 }
  0xe8   :  { %967 = vst.msk [vmem:[%s1836_s3 + $0x18] sm:$0xf] %vm960_vm1, %v1165_v22  ;;  %999 = vst.msk [vmem:[%s1836_s3 + $0x98] sm:$0xf] %vm960_vm1, %v1197_v23  ;;  %v1166_v30 = vpack.c.bf16 %v647_v24, %v647_v24  ;;  %v1198_v31 = vpack.c.bf16 %v679_v25, %v679_v25 }
  0xe9   :  { %965 = vst.msk [vmem:[%s1836_s3 + $0x10] sm:$0xf] %vm960_vm1, %v1163_v26  ;;  %997 = vst.msk [vmem:[%s1836_s3 + $0x90] sm:$0xf] %vm960_vm1, %v1195_v27  ;;  %v1164_v32 = vpack.c.bf16 %v645_v28, %v645_v28  ;;  %v1196_v34 = vpack.c.bf16 %v677_v29, %v677_v29  ;;  %v1268_v35 = vpop.f32.mrb[8].mxu0  ;;  %v1300_v36 = vpop.f32.mrb[8].mxu1 }
  0xea   :  { %968 = vst.msk [vmem:[%s1836_s3 + $0x1c] sm:$0xf] %vm960_vm1, %v1166_v30  ;;  %1000 = vst.msk [vmem:[%s1836_s3 + $0x9c] sm:$0xf] %vm960_vm1, %v1198_v31  ;;  %v426_v37 = vadd.f32 %v1268_v35, %v1511_v33  ;;  %v554_v38 = vadd.f32 %v1300_v36, %v1511_v33  ;;  %v417_v39 = vpop.f32.mrb[9].mxu0  ;;  %v545_v40 = vpop.f32.mrb[9].mxu1 }
  0xeb   :  { %966 = vst.msk [vmem:[%s1836_s3 + $0x14] sm:$0xf] %vm960_vm1, %v1164_v32  ;;  %998 = vst.msk [vmem:[%s1836_s3 + $0x94] sm:$0xf] %vm960_vm1, %v1196_v34  ;;  %v418_v41 = vadd.f32 %v1511_v33, %v417_v39  ;;  %v546_v42 = vadd.f32 %v1511_v33, %v545_v40  ;;  %v1269_v43 = vpop.f32.mrb[10].mxu0  ;;  %v1301_v44 = vpop.f32.mrb[10].mxu1 }
  0xec   :  { %v650_v45 = vmax.f32 %v426_v37, 0.0  ;;  %v682_v46 = vmax.f32 %v554_v38, 0.0  ;;  %v429_v47 = vadd.f32 %v1269_v43, %v1511_v33  ;;  %v557_v48 = vadd.f32 %v1301_v44, %v1511_v33  ;;  %v420_v49 = vpop.f32.mrb[11].mxu0  ;;  %v548_v50 = vpop.f32.mrb[11].mxu1 }
  0xed   :  { %v648_v51 = vmax.f32 %v418_v41, 0.0  ;;  %v680_v52 = vmax.f32 %v546_v42, 0.0  ;;  %v421_v53 = vadd.f32 %v1511_v33, %v420_v49  ;;  %v549_v54 = vadd.f32 %v1511_v33, %v548_v50 }
  0xee   :  { %v1169_v55 = vpack.c.bf16 %v650_v45, %v650_v45  ;;  %v1201_v56 = vpack.c.bf16 %v682_v46, %v682_v46  ;;  %v651_v57 = vmax.f32 %v429_v47, 0.0  ;;  %v683_v58 = vmax.f32 %v557_v48, 0.0 }
  0xef   :  { %v1167_v59 = vpack.c.bf16 %v648_v51, %v648_v51  ;;  %v1199_v60 = vpack.c.bf16 %v680_v52, %v680_v52  ;;  %v649_v61 = vmax.f32 %v421_v53, 0.0  ;;  %v681_v62 = vmax.f32 %v549_v54, 0.0 }
  0xf0   :  { %971 = vst.msk [vmem:[%s1836_s3 + $0x28] sm:$0xf] %vm960_vm1, %v1169_v55  ;;  %1003 = vst.msk [vmem:[%s1836_s3 + $0xa8] sm:$0xf] %vm960_vm1, %v1201_v56  ;;  %v1170_v63 = vpack.c.bf16 %v651_v57, %v651_v57  ;;  %v1202_v0 = vpack.c.bf16 %v683_v58, %v683_v58 }
  0xf1   :  { %969 = vst.msk [vmem:[%s1836_s3 + $0x20] sm:$0xf] %vm960_vm1, %v1167_v59  ;;  %1001 = vst.msk [vmem:[%s1836_s3 + $0xa0] sm:$0xf] %vm960_vm1, %v1199_v60  ;;  %v1168_v1 = vpack.c.bf16 %v649_v61, %v649_v61  ;;  %v1200_v2 = vpack.c.bf16 %v681_v62, %v681_v62  ;;  %v1272_v3 = vpop.f32.mrb[12].mxu0  ;;  %v1304_v4 = vpop.f32.mrb[12].mxu1 }
  0xf2   :  { %972 = vst.msk [vmem:[%s1836_s3 + $0x2c] sm:$0xf] %vm960_vm1, %v1170_v63  ;;  %1004 = vst.msk [vmem:[%s1836_s3 + $0xac] sm:$0xf] %vm960_vm1, %v1202_v0  ;;  %v442_v5 = vadd.f32 %v1272_v3, %v1511_v33  ;;  %v570_v6 = vadd.f32 %v1304_v4, %v1511_v33  ;;  %v433_v7 = vpop.f32.mrb[13].mxu0  ;;  %v561_v8 = vpop.f32.mrb[13].mxu1 }
  0xf3   :  { %970 = vst.msk [vmem:[%s1836_s3 + $0x24] sm:$0xf] %vm960_vm1, %v1168_v1  ;;  %1002 = vst.msk [vmem:[%s1836_s3 + $0xa4] sm:$0xf] %vm960_vm1, %v1200_v2  ;;  %v434_v9 = vadd.f32 %v1511_v33, %v433_v7  ;;  %v562_v10 = vadd.f32 %v1511_v33, %v561_v8  ;;  %v1273_v11 = vpop.f32.mrb[14].mxu0  ;;  %v1305_v12 = vpop.f32.mrb[14].mxu1 }
  0xf4   :  { %v654_v13 = vmax.f32 %v442_v5, 0.0  ;;  %v686_v14 = vmax.f32 %v570_v6, 0.0  ;;  %v445_v15 = vadd.f32 %v1273_v11, %v1511_v33  ;;  %v573_v16 = vadd.f32 %v1305_v12, %v1511_v33  ;;  %v436_v17 = vpop.f32.mrb[15].mxu0  ;;  %v564_v18 = vpop.f32.mrb[15].mxu1 }
  0xf5   :  { %v652_v19 = vmax.f32 %v434_v9, 0.0  ;;  %v684_v20 = vmax.f32 %v562_v10, 0.0  ;;  %v437_v21 = vadd.f32 %v1511_v33, %v436_v17  ;;  %v565_v22 = vadd.f32 %v1511_v33, %v564_v18 }
  0xf6   :  { %v1173_v23 = vpack.c.bf16 %v654_v13, %v654_v13  ;;  %v1205_v24 = vpack.c.bf16 %v686_v14, %v686_v14  ;;  %v655_v25 = vmax.f32 %v445_v15, 0.0  ;;  %v687_v26 = vmax.f32 %v573_v16, 0.0 }
  0xf7   :  { %v1171_v27 = vpack.c.bf16 %v652_v19, %v652_v19  ;;  %v1203_v28 = vpack.c.bf16 %v684_v20, %v684_v20  ;;  %v653_v29 = vmax.f32 %v437_v21, 0.0  ;;  %v685_v30 = vmax.f32 %v565_v22, 0.0 }
  0xf8   :  { %975 = vst.msk [vmem:[%s1836_s3 + $0x38] sm:$0xf] %vm960_vm1, %v1173_v23  ;;  %1007 = vst.msk [vmem:[%s1836_s3 + $0xb8] sm:$0xf] %vm960_vm1, %v1205_v24  ;;  %v1174_v31 = vpack.c.bf16 %v655_v25, %v655_v25  ;;  %v1206_v32 = vpack.c.bf16 %v687_v26, %v687_v26 }
  0xf9   :  { %973 = vst.msk [vmem:[%s1836_s3 + $0x30] sm:$0xf] %vm960_vm1, %v1171_v27  ;;  %1005 = vst.msk [vmem:[%s1836_s3 + $0xb0] sm:$0xf] %vm960_vm1, %v1203_v28  ;;  %v1172_v34 = vpack.c.bf16 %v653_v29, %v653_v29  ;;  %v1204_v35 = vpack.c.bf16 %v685_v30, %v685_v30  ;;  %v1276_v36 = vpop.f32.mrb[16].mxu0  ;;  %v1308_v37 = vpop.f32.mrb[16].mxu1 }
  0xfa   :  { %976 = vst.msk [vmem:[%s1836_s3 + $0x3c] sm:$0xf] %vm960_vm1, %v1174_v31  ;;  %1008 = vst.msk [vmem:[%s1836_s3 + $0xbc] sm:$0xf] %vm960_vm1, %v1206_v32  ;;  %v458_v38 = vadd.f32 %v1276_v36, %v1511_v33  ;;  %v586_v39 = vadd.f32 %v1308_v37, %v1511_v33  ;;  %v449_v40 = vpop.f32.mrb[17].mxu0  ;;  %v577_v41 = vpop.f32.mrb[17].mxu1 }
  0xfb   :  { %974 = vst.msk [vmem:[%s1836_s3 + $0x34] sm:$0xf] %vm960_vm1, %v1172_v34  ;;  %1006 = vst.msk [vmem:[%s1836_s3 + $0xb4] sm:$0xf] %vm960_vm1, %v1204_v35  ;;  %v450_v42 = vadd.f32 %v1511_v33, %v449_v40  ;;  %v578_v43 = vadd.f32 %v1511_v33, %v577_v41  ;;  %v1277_v44 = vpop.f32.mrb[18].mxu0  ;;  %v1309_v45 = vpop.f32.mrb[18].mxu1 }
  0xfc   :  { %v658_v46 = vmax.f32 %v458_v38, 0.0  ;;  %v690_v47 = vmax.f32 %v586_v39, 0.0  ;;  %v461_v48 = vadd.f32 %v1277_v44, %v1511_v33  ;;  %v589_v49 = vadd.f32 %v1309_v45, %v1511_v33  ;;  %v452_v50 = vpop.f32.mrb[19].mxu0  ;;  %v580_v51 = vpop.f32.mrb[19].mxu1 }
  0xfd   :  { %v656_v52 = vmax.f32 %v450_v42, 0.0  ;;  %v688_v53 = vmax.f32 %v578_v43, 0.0  ;;  %v453_v54 = vadd.f32 %v1511_v33, %v452_v50  ;;  %v581_v55 = vadd.f32 %v1511_v33, %v580_v51 }
  0xfe   :  { %v1177_v56 = vpack.c.bf16 %v658_v46, %v658_v46  ;;  %v1209_v57 = vpack.c.bf16 %v690_v47, %v690_v47  ;;  %v659_v58 = vmax.f32 %v461_v48, 0.0  ;;  %v691_v59 = vmax.f32 %v589_v49, 0.0 }
  0xff   :  { %v1175_v60 = vpack.c.bf16 %v656_v52, %v656_v52  ;;  %v1207_v61 = vpack.c.bf16 %v688_v53, %v688_v53  ;;  %v657_v62 = vmax.f32 %v453_v54, 0.0  ;;  %v689_v63 = vmax.f32 %v581_v55, 0.0 }
 0x100   :  { %979 = vst.msk [vmem:[%s1836_s3 + $0x48] sm:$0xf] %vm960_vm1, %v1177_v56  ;;  %1011 = vst.msk [vmem:[%s1836_s3 + $0xc8] sm:$0xf] %vm960_vm1, %v1209_v57  ;;  %v1178_v0 = vpack.c.bf16 %v659_v58, %v659_v58  ;;  %v1210_v1 = vpack.c.bf16 %v691_v59, %v691_v59 }
 0x101   :  { %977 = vst.msk [vmem:[%s1836_s3 + $0x40] sm:$0xf] %vm960_vm1, %v1175_v60  ;;  %1009 = vst.msk [vmem:[%s1836_s3 + $0xc0] sm:$0xf] %vm960_vm1, %v1207_v61  ;;  %v1176_v2 = vpack.c.bf16 %v657_v62, %v657_v62  ;;  %v1208_v3 = vpack.c.bf16 %v689_v63, %v689_v63  ;;  %v1280_v4 = vpop.f32.mrb[20].mxu0  ;;  %v1312_v5 = vpop.f32.mrb[20].mxu1 }
 0x102   :  { %980 = vst.msk [vmem:[%s1836_s3 + $0x4c] sm:$0xf] %vm960_vm1, %v1178_v0  ;;  %1012 = vst.msk [vmem:[%s1836_s3 + $0xcc] sm:$0xf] %vm960_vm1, %v1210_v1  ;;  %v474_v6 = vadd.f32 %v1280_v4, %v1511_v33  ;;  %v602_v7 = vadd.f32 %v1312_v5, %v1511_v33  ;;  %v465_v8 = vpop.f32.mrb[21].mxu0  ;;  %v593_v9 = vpop.f32.mrb[21].mxu1 }
 0x103   :  { %978 = vst.msk [vmem:[%s1836_s3 + $0x44] sm:$0xf] %vm960_vm1, %v1176_v2  ;;  %1010 = vst.msk [vmem:[%s1836_s3 + $0xc4] sm:$0xf] %vm960_vm1, %v1208_v3  ;;  %v466_v10 = vadd.f32 %v1511_v33, %v465_v8  ;;  %v594_v11 = vadd.f32 %v1511_v33, %v593_v9  ;;  %v1281_v12 = vpop.f32.mrb[22].mxu0  ;;  %v1313_v13 = vpop.f32.mrb[22].mxu1 }
 0x104   :  { %v662_v14 = vmax.f32 %v474_v6, 0.0  ;;  %v694_v15 = vmax.f32 %v602_v7, 0.0  ;;  %v477_v16 = vadd.f32 %v1281_v12, %v1511_v33  ;;  %v605_v17 = vadd.f32 %v1313_v13, %v1511_v33  ;;  %v468_v18 = vpop.f32.mrb[23].mxu0  ;;  %v596_v19 = vpop.f32.mrb[23].mxu1 }
 0x105   :  { %v660_v20 = vmax.f32 %v466_v10, 0.0  ;;  %v692_v21 = vmax.f32 %v594_v11, 0.0  ;;  %v469_v22 = vadd.f32 %v1511_v33, %v468_v18  ;;  %v597_v23 = vadd.f32 %v1511_v33, %v596_v19 }
 0x106   :  { %v1181_v24 = vpack.c.bf16 %v662_v14, %v662_v14  ;;  %v1213_v25 = vpack.c.bf16 %v694_v15, %v694_v15  ;;  %v663_v26 = vmax.f32 %v477_v16, 0.0  ;;  %v695_v27 = vmax.f32 %v605_v17, 0.0 }
 0x107   :  { %v1179_v28 = vpack.c.bf16 %v660_v20, %v660_v20  ;;  %v1211_v29 = vpack.c.bf16 %v692_v21, %v692_v21  ;;  %v661_v30 = vmax.f32 %v469_v22, 0.0  ;;  %v693_v31 = vmax.f32 %v597_v23, 0.0 }
 0x108   :  { %983 = vst.msk [vmem:[%s1836_s3 + $0x58] sm:$0xf] %vm960_vm1, %v1181_v24  ;;  %1015 = vst.msk [vmem:[%s1836_s3 + $0xd8] sm:$0xf] %vm960_vm1, %v1213_v25  ;;  %v1182_v32 = vpack.c.bf16 %v663_v26, %v663_v26  ;;  %v1214_v34 = vpack.c.bf16 %v695_v27, %v695_v27 }
 0x109   :  { %981 = vst.msk [vmem:[%s1836_s3 + $0x50] sm:$0xf] %vm960_vm1, %v1179_v28  ;;  %1013 = vst.msk [vmem:[%s1836_s3 + $0xd0] sm:$0xf] %vm960_vm1, %v1211_v29  ;;  %v1180_v35 = vpack.c.bf16 %v661_v30, %v661_v30  ;;  %v1212_v36 = vpack.c.bf16 %v693_v31, %v693_v31  ;;  %v1284_v37 = vpop.f32.mrb[24].mxu0  ;;  %v1316_v38 = vpop.f32.mrb[24].mxu1 }
 0x10a   :  { %984 = vst.msk [vmem:[%s1836_s3 + $0x5c] sm:$0xf] %vm960_vm1, %v1182_v32  ;;  %1016 = vst.msk [vmem:[%s1836_s3 + $0xdc] sm:$0xf] %vm960_vm1, %v1214_v34  ;;  %v490_v39 = vadd.f32 %v1284_v37, %v1511_v33  ;;  %v618_v40 = vadd.f32 %v1316_v38, %v1511_v33  ;;  %v481_v41 = vpop.f32.mrb[25].mxu0  ;;  %v609_v42 = vpop.f32.mrb[25].mxu1 }
 0x10b   :  { %982 = vst.msk [vmem:[%s1836_s3 + $0x54] sm:$0xf] %vm960_vm1, %v1180_v35  ;;  %1014 = vst.msk [vmem:[%s1836_s3 + $0xd4] sm:$0xf] %vm960_vm1, %v1212_v36  ;;  %v482_v43 = vadd.f32 %v1511_v33, %v481_v41  ;;  %v610_v44 = vadd.f32 %v1511_v33, %v609_v42  ;;  %v1285_v45 = vpop.f32.mrb[26].mxu0  ;;  %v1317_v46 = vpop.f32.mrb[26].mxu1 }
 0x10c   :  { %v666_v47 = vmax.f32 %v490_v39, 0.0  ;;  %v698_v48 = vmax.f32 %v618_v40, 0.0  ;;  %v493_v49 = vadd.f32 %v1285_v45, %v1511_v33  ;;  %v621_v50 = vadd.f32 %v1317_v46, %v1511_v33  ;;  %v484_v51 = vpop.f32.mrb[27].mxu0  ;;  %v612_v52 = vpop.f32.mrb[27].mxu1 }
 0x10d   :  { %v664_v53 = vmax.f32 %v482_v43, 0.0  ;;  %v696_v54 = vmax.f32 %v610_v44, 0.0  ;;  %v485_v55 = vadd.f32 %v1511_v33, %v484_v51  ;;  %v613_v56 = vadd.f32 %v1511_v33, %v612_v52 }
 0x10e   :  { %v1185_v57 = vpack.c.bf16 %v666_v47, %v666_v47  ;;  %v1217_v58 = vpack.c.bf16 %v698_v48, %v698_v48  ;;  %v667_v59 = vmax.f32 %v493_v49, 0.0  ;;  %v699_v60 = vmax.f32 %v621_v50, 0.0 }
 0x10f   :  { %v1183_v61 = vpack.c.bf16 %v664_v53, %v664_v53  ;;  %v1215_v62 = vpack.c.bf16 %v696_v54, %v696_v54  ;;  %v665_v63 = vmax.f32 %v485_v55, 0.0  ;;  %v697_v0 = vmax.f32 %v613_v56, 0.0 }
 0x110   :  { %987 = vst.msk [vmem:[%s1836_s3 + $0x68] sm:$0xf] %vm960_vm1, %v1185_v57  ;;  %1019 = vst.msk [vmem:[%s1836_s3 + $0xe8] sm:$0xf] %vm960_vm1, %v1217_v58  ;;  %v1186_v1 = vpack.c.bf16 %v667_v59, %v667_v59  ;;  %v1218_v2 = vpack.c.bf16 %v699_v60, %v699_v60 }
 0x111   :  { %985 = vst.msk [vmem:[%s1836_s3 + $0x60] sm:$0xf] %vm960_vm1, %v1183_v61  ;;  %1017 = vst.msk [vmem:[%s1836_s3 + $0xe0] sm:$0xf] %vm960_vm1, %v1215_v62  ;;  %v1184_v3 = vpack.c.bf16 %v665_v63, %v665_v63  ;;  %v1216_v4 = vpack.c.bf16 %v697_v0, %v697_v0  ;;  %v1288_v5 = vpop.f32.mrb[28].mxu0  ;;  %v1320_v6 = vpop.f32.mrb[28].mxu1 }
 0x112   :  { %988 = vst.msk [vmem:[%s1836_s3 + $0x6c] sm:$0xf] %vm960_vm1, %v1186_v1  ;;  %1020 = vst.msk [vmem:[%s1836_s3 + $0xec] sm:$0xf] %vm960_vm1, %v1218_v2  ;;  %v506_v7 = vadd.f32 %v1288_v5, %v1511_v33  ;;  %v634_v8 = vadd.f32 %v1320_v6, %v1511_v33  ;;  %v497_v9 = vpop.f32.mrb[29].mxu0  ;;  %v625_v10 = vpop.f32.mrb[29].mxu1 }
 0x113   :  { %986 = vst.msk [vmem:[%s1836_s3 + $0x64] sm:$0xf] %vm960_vm1, %v1184_v3  ;;  %1018 = vst.msk [vmem:[%s1836_s3 + $0xe4] sm:$0xf] %vm960_vm1, %v1216_v4  ;;  %v498_v11 = vadd.f32 %v1511_v33, %v497_v9  ;;  %v626_v12 = vadd.f32 %v1511_v33, %v625_v10  ;;  %v1289_v13 = vpop.f32.mrb[30].mxu0  ;;  %v1321_v14 = vpop.f32.mrb[30].mxu1 }
 0x114   :  { %v670_v15 = vmax.f32 %v506_v7, 0.0  ;;  %v702_v16 = vmax.f32 %v634_v8, 0.0  ;;  %v509_v17 = vadd.f32 %v1289_v13, %v1511_v33  ;;  %v637_v18 = vadd.f32 %v1321_v14, %v1511_v33  ;;  %v500_v19 = vpop.f32.mrb[31].mxu0  ;;  %v628_v20 = vpop.f32.mrb[31].mxu1 }
 0x115   :  { %v668_v21 = vmax.f32 %v498_v11, 0.0  ;;  %v700_v22 = vmax.f32 %v626_v12, 0.0  ;;  %v501_v23 = vadd.f32 %v1511_v33, %v500_v19  ;;  %v629_v24 = vadd.f32 %v1511_v33, %v628_v20 }
 0x116   :  { %v1189_v25 = vpack.c.bf16 %v670_v15, %v670_v15  ;;  %v1221_v26 = vpack.c.bf16 %v702_v16, %v702_v16  ;;  %v671_v27 = vmax.f32 %v509_v17, 0.0  ;;  %v703_v28 = vmax.f32 %v637_v18, 0.0 }
 0x117   :  { %v1187_v29 = vpack.c.bf16 %v668_v21, %v668_v21  ;;  %v1219_v30 = vpack.c.bf16 %v700_v22, %v700_v22  ;;  %v669_v31 = vmax.f32 %v501_v23, 0.0  ;;  %v701_v32 = vmax.f32 %v629_v24, 0.0 }
 0x118   :  { %991 = vst.msk [vmem:[%s1836_s3 + $0x78] sm:$0xf] %vm960_vm1, %v1189_v25  ;;  %1023 = vst.msk [vmem:[%s1836_s3 + $0xf8] sm:$0xf] %vm960_vm1, %v1221_v26  ;;  %v1190_v34 = vpack.c.bf16 %v671_v27, %v671_v27  ;;  %v1222_v33 = vpack.c.bf16 %v703_v28, %v703_v28 }
 0x119   :  { %989 = vst.msk [vmem:[%s1836_s3 + $0x70] sm:$0xf] %vm960_vm1, %v1187_v29  ;;  %1021 = vst.msk [vmem:[%s1836_s3 + $0xf0] sm:$0xf] %vm960_vm1, %v1219_v30  ;;  %v1188_v35 = vpack.c.bf16 %v669_v31, %v669_v31  ;;  %v1220_v36 = vpack.c.bf16 %v701_v32, %v701_v32 }
 0x11a   :  { %992 = vst.msk [vmem:[%s1836_s3 + $0x7c] sm:$0xf] %vm960_vm1, %v1190_v34  ;;  %1024 = vst.msk [vmem:[%s1836_s3 + $0xfc] sm:$0xf] %vm960_vm1, %v1222_v33 }
 0x11b   :  { %990 = vst.msk [vmem:[%s1836_s3 + $0x74] sm:$0xf] %vm960_vm1, %v1188_v35  ;;  %1022 = vst.msk [vmem:[%s1836_s3 + $0xf4] sm:$0xf] %vm960_vm1, %v1220_v36 }

// kernel: exifnet_forward.9
= control target key start
LH: loop header
LB: loop body
LE: loop exit
PB: predicated region body
PF: predicated region fallthrough
CT: control target
= control target key end

     0   :  { %vm263_vm0 = vcmask 130048   ;;  %vm1657_vm1 = vcmask 257024   ;;  %s3133_s2 = inlined_call_operand.vmem [shape: bf16[16,32], index: 2, kind: input, shape index: {}]   ;;  %s3134_s4 = inlined_call_operand.vmem [shape: bf16[16,32], index: 4, kind: input, shape index: {}]   ;;  %s3135_s0 = inlined_call_operand.vmem [shape: bf16[512,16], index: 0, kind: input, shape index: {}]   ;;  %s3136_s1 = inlined_call_operand.vmem [shape: bf16[512,16], index: 1, kind: input, shape index: {}]   ;;  %s3137_s3 = inlined_call_operand.vmem [shape: f32[1,32], index: 3, kind: input, shape index: {}]   ;;  %s3138_s5 = inlined_call_operand.vmem [shape: f32[1,32], index: 5, kind: input, shape index: {}]   ;;  %s3139_s6 = inlined_call_operand.vmem [shape: bf16[512,32], index: 6, kind: output, shape index: {}]  }
   0x1   :  { %v2376_v0 = vld [vmem:[%s3133_s2] sm:$0xff]   ;;  %v2379_v3 = vld [vmem:[%s3135_s0 + $0x8] sm:$0xff]   ;;  %v2382_v6 = vld [vmem:[%s3135_s0 + $0x10] sm:$0xff]  }
   0x2   :  { %v2377_v1 = vld [vmem:[%s3134_s4] sm:$0xff]   ;;  %2052 = vmatprep.subr.bf16.mxu1 %v2376_v0  ;;  %v2381_v5 = vld [vmem:[%s3136_s1 + $0x8] sm:$0xff]   ;;  %v2384_v7 = vld [vmem:[%s3136_s1 + $0x10] sm:$0xff]  }
   0x3   :  { %v2378_v2 = vld [vmem:[%s3135_s0] sm:$0xff]   ;;  %2053 = vmatpush3.bf16.msra.mxu1 %v2376_v0  ;;  %2118 = vmatprep.subr.bf16.mxu0 %v2377_v1  ;;  %v2383_v8 = vld [vmem:[%s3135_s0 + $0x18] sm:$0xff]   ;;  %v2387_v12 = vld [vmem:[%s3135_s0 + $0x28] sm:$0xff]  }
   0x4   :  { %2119 = vmatpush3.bf16.msra.mxu0 %v2377_v1  ;;  %2054 = vmatprep.mubr.msk.bf16.mxu1 %vm263_vm0, %v2378_v2  ;;  %v2380_v4 = vld [vmem:[%s3136_s1] sm:$0xff]   ;;  %v2385_v9 = vld [vmem:[%s3136_s1 + $0x18] sm:$0xff]   ;;  %v2389_v13 = vld [vmem:[%s3136_s1 + $0x28] sm:$0xff]  }
   0x5   :  { %2120 = vmatprep.mubr.msk.bf16.mxu0 %vm263_vm0, %v2380_v4  ;;  %v2386_v10 = vld [vmem:[%s3135_s0 + $0x20] sm:$0xff]   ;;  %v2390_v14 = vld [vmem:[%s3135_s0 + $0x30] sm:$0xff]   ;;  %v2391_v16 = vld [vmem:[%s3135_s0 + $0x38] sm:$0xff]  }
   0x6   :  { %2055 = vmatmul.mubr.msk.bf16.vlgmr.msra.gmra.mrb[0].mxu1 %vm263_vm0, %v2379_v3  ;;  %v2388_v11 = vld [vmem:[%s3136_s1 + $0x20] sm:$0xff]   ;;  %v2392_v15 = vld [vmem:[%s3136_s1 + $0x30] sm:$0xff]   ;;  %v2393_v17 = vld [vmem:[%s3136_s1 + $0x38] sm:$0xff]  }
   0x7   :  { %2121 = vmatmul.mubr.msk.bf16.vlgmr.msra.gmra.mrb[0].mxu0 %vm263_vm0, %v2381_v5  ;;  %2058 = vmatprep.mubr.msk.bf16.mxu1 %vm263_vm0, %v2382_v6  ;;  %v2394_v18 = vld [vmem:[%s3135_s0 + $0x40] sm:$0xff]   ;;  %v2395_v20 = vld [vmem:[%s3135_s0 + $0x48] sm:$0xff]   ;;  %v2398_v22 = vld [vmem:[%s3135_s0 + $0x50] sm:$0xff]  }
   0x8   :  { %2124 = vmatprep.mubr.msk.bf16.mxu0 %vm263_vm0, %v2384_v7  ;;  %v2396_v19 = vld [vmem:[%s3136_s1 + $0x40] sm:$0xff]   ;;  %v2397_v21 = vld [vmem:[%s3136_s1 + $0x48] sm:$0xff]   ;;  %v2400_v23 = vld [vmem:[%s3136_s1 + $0x50] sm:$0xff]  }
   0x9   :  { %v2399_v24 = vld [vmem:[%s3135_s0 + $0x58] sm:$0xff]   ;;  %v2402_v26 = vld [vmem:[%s3135_s0 + $0x60] sm:$0xff]   ;;  %v2403_v28 = vld [vmem:[%s3135_s0 + $0x68] sm:$0xff]  }
   0xa   :  { %v2401_v25 = vld [vmem:[%s3136_s1 + $0x58] sm:$0xff]   ;;  %v2404_v27 = vld [vmem:[%s3136_s1 + $0x60] sm:$0xff]   ;;  %v2405_v29 = vld [vmem:[%s3136_s1 + $0x68] sm:$0xff]  }
   0xb   :  { %v2406_v30 = vld [vmem:[%s3135_s0 + $0x70] sm:$0xff]   ;;  %v2407_v32 = vld [vmem:[%s3135_s0 + $0x78] sm:$0xff]   ;;  %v2410_v34 = vld [vmem:[%s3135_s0 + $0x80] sm:$0xff]  }
   0xc   :  { %v2408_v31 = vld [vmem:[%s3136_s1 + $0x70] sm:$0xff]   ;;  %v2409_v33 = vld [vmem:[%s3136_s1 + $0x78] sm:$0xff]   ;;  %v2412_v35 = vld [vmem:[%s3136_s1 + $0x80] sm:$0xff]  }
   0xd   :  { %v2411_v36 = vld [vmem:[%s3135_s0 + $0x88] sm:$0xff]   ;;  %v2414_v38 = vld [vmem:[%s3135_s0 + $0x90] sm:$0xff]   ;;  %v2415_v40 = vld [vmem:[%s3135_s0 + $0x98] sm:$0xff]  }
   0xe   :  { %2059 = vmatmul.mubr.msk.bf16.gmra.mrb[4].mxu1 %vm263_vm0, %v2383_v8  ;;  %v2413_v37 = vld [vmem:[%s3136_s1 + $0x88] sm:$0xff]   ;;  %v2416_v39 = vld [vmem:[%s3136_s1 + $0x90] sm:$0xff]   ;;  %v2417_v41 = vld [vmem:[%s3136_s1 + $0x98] sm:$0xff]  }
   0xf   :  { %2125 = vmatmul.mubr.msk.bf16.gmra.mrb[4].mxu0 %vm263_vm0, %v2385_v9  ;;  %2062 = vmatprep.mubr.msk.bf16.mxu1 %vm263_vm0, %v2386_v10  ;;  %v2418_v42 = vld [vmem:[%s3135_s0 + $0xa0] sm:$0xff]   ;;  %v2419_v44 = vld [vmem:[%s3135_s0 + $0xa8] sm:$0xff]   ;;  %v2422_v46 = vld [vmem:[%s3135_s0 + $0xb0] sm:$0xff]  }
  0x10   :  { %2128 = vmatprep.mubr.msk.bf16.mxu0 %vm263_vm0, %v2388_v11  ;;  %v2420_v43 = vld [vmem:[%s3136_s1 + $0xa0] sm:$0xff]   ;;  %v2421_v45 = vld [vmem:[%s3136_s1 + $0xa8] sm:$0xff]   ;;  %v2424_v47 = vld [vmem:[%s3136_s1 + $0xb0] sm:$0xff]  }
  0x11   :  { %v2423_v48 = vld [vmem:[%s3135_s0 + $0xb8] sm:$0xff]   ;;  %v2426_v50 = vld [vmem:[%s3135_s0 + $0xc0] sm:$0xff]   ;;  %v2427_v52 = vld [vmem:[%s3135_s0 + $0xc8] sm:$0xff]  }
  0x12   :  { %v2425_v49 = vld [vmem:[%s3136_s1 + $0xb8] sm:$0xff]   ;;  %v2428_v51 = vld [vmem:[%s3136_s1 + $0xc0] sm:$0xff]   ;;  %v2429_v53 = vld [vmem:[%s3136_s1 + $0xc8] sm:$0xff]  }
  0x13   :  { %v2430_v54 = vld [vmem:[%s3135_s0 + $0xd0] sm:$0xff]   ;;  %v2431_v56 = vld [vmem:[%s3135_s0 + $0xd8] sm:$0xff]   ;;  %v2434_v58 = vld [vmem:[%s3135_s0 + $0xe0] sm:$0xff]  }
  0x14   :  { %v2432_v55 = vld [vmem:[%s3136_s1 + $0xd0] sm:$0xff]   ;;  %v2433_v57 = vld [vmem:[%s3136_s1 + $0xd8] sm:$0xff]   ;;  %v2436_v59 = vld [vmem:[%s3136_s1 + $0xe0] sm:$0xff]  }
  0x15   :  { %v2435_v60 = vld [vmem:[%s3135_s0 + $0xe8] sm:$0xff]   ;;  %v2438_v62 = vld [vmem:[%s3135_s0 + $0xf0] sm:$0xff]   ;;  %v2439_v0 = vld [vmem:[%s3135_s0 + $0xf8] sm:$0xff]  }
  0x16   :  { %2063 = vmatmul.mubr.msk.bf16.gmra.mrb[8].mxu1 %vm263_vm0, %v2387_v12  ;;  %v2437_v61 = vld [vmem:[%s3136_s1 + $0xe8] sm:$0xff]   ;;  %v2440_v63 = vld [vmem:[%s3136_s1 + $0xf0] sm:$0xff]   ;;  %v2441_v1 = vld [vmem:[%s3136_s1 + $0xf8] sm:$0xff]  }
  0x17   :  { %2129 = vmatmul.mubr.msk.bf16.gmra.mrb[8].mxu0 %vm263_vm0, %v2389_v13  ;;  %2066 = vmatprep.mubr.msk.bf16.mxu1 %vm263_vm0, %v2390_v14  ;;  %v2742_v2 = vld [vmem:[%s3137_s3] ss:$0 sm:$0xff] }
  0x18   :  { %2132 = vmatprep.mubr.msk.bf16.mxu0 %vm263_vm0, %v2392_v15  ;;  %v2749_v8 = vld [vmem:[%s3138_s5] ss:$0 sm:$0xff] }
  0x1e   :  { %2067 = vmatmul.mubr.msk.bf16.gmra.mrb[12].mxu1 %vm263_vm0, %v2391_v16 }
  0x1f   :  { %2133 = vmatmul.mubr.msk.bf16.gmra.mrb[12].mxu0 %vm263_vm0, %v2393_v17  ;;  %2070 = vmatprep.mubr.msk.bf16.mxu1 %vm263_vm0, %v2394_v18 }
  0x20   :  { %2136 = vmatprep.mubr.msk.bf16.mxu0 %vm263_vm0, %v2396_v19 }
  0x26   :  { %2071 = vmatmul.mubr.msk.bf16.gmra.mrb[16].mxu1 %vm263_vm0, %v2395_v20 }
  0x27   :  { %2137 = vmatmul.mubr.msk.bf16.gmra.mrb[16].mxu0 %vm263_vm0, %v2397_v21  ;;  %2074 = vmatprep.mubr.msk.bf16.mxu1 %vm263_vm0, %v2398_v22 }
  0x28   :  { %2140 = vmatprep.mubr.msk.bf16.mxu0 %vm263_vm0, %v2400_v23 }
  0x2e   :  { %2075 = vmatmul.mubr.msk.bf16.gmra.mrb[20].mxu1 %vm263_vm0, %v2399_v24 }
  0x2f   :  { %2141 = vmatmul.mubr.msk.bf16.gmra.mrb[20].mxu0 %vm263_vm0, %v2401_v25  ;;  %2078 = vmatprep.mubr.msk.bf16.mxu1 %vm263_vm0, %v2402_v26 }
  0x30   :  { %2144 = vmatprep.mubr.msk.bf16.mxu0 %vm263_vm0, %v2404_v27 }
  0x36   :  { %2079 = vmatmul.mubr.msk.bf16.gmra.mrb[24].mxu1 %vm263_vm0, %v2403_v28 }
  0x37   :  { %2145 = vmatmul.mubr.msk.bf16.gmra.mrb[24].mxu0 %vm263_vm0, %v2405_v29  ;;  %2082 = vmatprep.mubr.msk.bf16.mxu1 %vm263_vm0, %v2406_v30 }
  0x38   :  { %2148 = vmatprep.mubr.msk.bf16.mxu0 %vm263_vm0, %v2408_v31 }
  0x3e   :  { %2083 = vmatmul.mubr.msk.bf16.gmra.mrb[28].mxu1 %vm263_vm0, %v2407_v32 }
  0x3f   :  { %2149 = vmatmul.mubr.msk.bf16.gmra.mrb[28].mxu0 %vm263_vm0, %v2409_v33  ;;  %2086 = vmatprep.mubr.msk.bf16.mxu1 %vm263_vm0, %v2410_v34 }
  0x40   :  { %2152 = vmatprep.mubr.msk.bf16.mxu0 %vm263_vm0, %v2412_v35 }
  0x46   :  { %2087 = vmatmul.mubr.msk.bf16.gmra.mrb[32].mxu1 %vm263_vm0, %v2411_v36 }
  0x47   :  { %2153 = vmatmul.mubr.msk.bf16.gmra.mrb[32].mxu0 %vm263_vm0, %v2413_v37  ;;  %2090 = vmatprep.mubr.msk.bf16.mxu1 %vm263_vm0, %v2414_v38 }
  0x48   :  { %2156 = vmatprep.mubr.msk.bf16.mxu0 %vm263_vm0, %v2416_v39 }
  0x4e   :  { %2091 = vmatmul.mubr.msk.bf16.gmra.mrb[36].mxu1 %vm263_vm0, %v2415_v40 }
  0x4f   :  { %2157 = vmatmul.mubr.msk.bf16.gmra.mrb[36].mxu0 %vm263_vm0, %v2417_v41  ;;  %2094 = vmatprep.mubr.msk.bf16.mxu1 %vm263_vm0, %v2418_v42 }
  0x50   :  { %2160 = vmatprep.mubr.msk.bf16.mxu0 %vm263_vm0, %v2420_v43 }
  0x56   :  { %2095 = vmatmul.mubr.msk.bf16.gmra.mrb[40].mxu1 %vm263_vm0, %v2419_v44 }
  0x57   :  { %2161 = vmatmul.mubr.msk.bf16.gmra.mrb[40].mxu0 %vm263_vm0, %v2421_v45  ;;  %2098 = vmatprep.mubr.msk.bf16.mxu1 %vm263_vm0, %v2422_v46 }
  0x58   :  { %2164 = vmatprep.mubr.msk.bf16.mxu0 %vm263_vm0, %v2424_v47 }
  0x5e   :  { %2099 = vmatmul.mubr.msk.bf16.gmra.mrb[44].mxu1 %vm263_vm0, %v2423_v48 }
  0x5f   :  { %2165 = vmatmul.mubr.msk.bf16.gmra.mrb[44].mxu0 %vm263_vm0, %v2425_v49  ;;  %2102 = vmatprep.mubr.msk.bf16.mxu1 %vm263_vm0, %v2426_v50 }
  0x60   :  { %2168 = vmatprep.mubr.msk.bf16.mxu0 %vm263_vm0, %v2428_v51 }
  0x66   :  { %2103 = vmatmul.mubr.msk.bf16.gmra.mrb[48].mxu1 %vm263_vm0, %v2427_v52 }
  0x67   :  { %2169 = vmatmul.mubr.msk.bf16.gmra.mrb[48].mxu0 %vm263_vm0, %v2429_v53  ;;  %2106 = vmatprep.mubr.msk.bf16.mxu1 %vm263_vm0, %v2430_v54 }
  0x68   :  { %2172 = vmatprep.mubr.msk.bf16.mxu0 %vm263_vm0, %v2432_v55 }
  0x6e   :  { %2107 = vmatmul.mubr.msk.bf16.gmra.mrb[52].mxu1 %vm263_vm0, %v2431_v56 }
  0x6f   :  { %2173 = vmatmul.mubr.msk.bf16.gmra.mrb[52].mxu0 %vm263_vm0, %v2433_v57  ;;  %2110 = vmatprep.mubr.msk.bf16.mxu1 %vm263_vm0, %v2434_v58 }
  0x70   :  { %2176 = vmatprep.mubr.msk.bf16.mxu0 %vm263_vm0, %v2436_v59 }
  0x76   :  { %2111 = vmatmul.mubr.msk.bf16.gmra.mrb[56].mxu1 %vm263_vm0, %v2435_v60 }
  0x77   :  { %2177 = vmatmul.mubr.msk.bf16.gmra.mrb[56].mxu0 %vm263_vm0, %v2437_v61  ;;  %2114 = vmatprep.mubr.msk.bf16.mxu1 %vm263_vm0, %v2438_v62 }
  0x78   :  { %2180 = vmatprep.mubr.msk.bf16.mxu0 %vm263_vm0, %v2440_v63 }
  0x7e   :  { %2115 = vmatmul.mubr.msk.bf16.gmra.mrb[60].mxu1 %vm263_vm0, %v2439_v0 }
  0x7f   :  { %2181 = vmatmul.mubr.msk.bf16.gmra.mrb[60].mxu0 %vm263_vm0, %v2441_v1 }
  0xd9   :  { %v2056_v3 = vpop.f32.mrb[0].mxu1 }
  0xda   :  { %v403_v4 = vadd.f32 %v2056_v3, %v2742_v2  ;;  %v394_v5 = vpop.f32.mrb[1].mxu1  ;;  %v2122_v6 = vpop.f32.mrb[0].mxu0 }
  0xdb   :  { %v395_v7 = vadd.f32 %v2742_v2, %v394_v5  ;;  %v2057_v9 = vpop.f32.mrb[2].mxu1  ;;  %v1018_v10 = vpop.f32.mrb[1].mxu0 }
  0xdc   :  { %v2185_v11 = vadd.f32 %v2122_v6, %v403_v4  ;;  %v406_v12 = vadd.f32 %v2057_v9, %v2742_v2  ;;  %v397_v13 = vpop.f32.mrb[3].mxu1  ;;  %v2123_v14 = vpop.f32.mrb[2].mxu0 }
  0xdd   :  { %v2188_v15 = vadd.f32 %v1018_v10, %v395_v7  ;;  %v398_v16 = vadd.f32 %v2742_v2, %v397_v13  ;;  %v1021_v17 = vpop.f32.mrb[3].mxu0 }
  0xde   :  { %v2186_v18 = vadd.f32 %v2185_v11, %v2749_v8  ;;  %v2191_v19 = vadd.f32 %v2749_v8, %v406_v12 }
  0xdf   :  { %v2189_v20 = vadd.f32 %v2188_v15, %v2749_v8  ;;  %v2194_v21 = vadd.f32 %v2749_v8, %v398_v16 }
  0xe0   :  { %v1339_v22 = vmax.f32 %v2186_v18, 0.0  ;;  %v2192_v23 = vadd.f32 %v2191_v19, %v2123_v14 }
  0xe1   :  { %v1337_v24 = vmax.f32 %v2189_v20, 0.0  ;;  %v2195_v25 = vadd.f32 %v2194_v21, %v1021_v17  ;;  %v2060_v26 = vpop.f32.mrb[4].mxu1 }
  0xe2   :  { %v1924_v27 = vpack.c.bf16 %v1339_v22, %v1339_v22  ;;  %v1340_v28 = vmax.f32 %v2192_v23, 0.0  ;;  %v419_v29 = vadd.f32 %v2060_v26, %v2742_v2  ;;  %v410_v30 = vpop.f32.mrb[5].mxu1  ;;  %v2126_v31 = vpop.f32.mrb[4].mxu0 }
  0xe3   :  { %v1922_v32 = vpack.c.bf16 %v1337_v24, %v1337_v24  ;;  %v1338_v33 = vmax.f32 %v2195_v25, 0.0  ;;  %v411_v34 = vadd.f32 %v2742_v2, %v410_v30  ;;  %v2061_v35 = vpop.f32.mrb[6].mxu1  ;;  %v1034_v36 = vpop.f32.mrb[5].mxu0 }
  0xe4   :  { %1660 = vst.msk [vmem:[%s3139_s6 + $0x8] sm:$0xf] %vm1657_vm1, %v1924_v27  ;;  %v1925_v37 = vpack.c.bf16 %v1340_v28, %v1340_v28  ;;  %v2197_v38 = vadd.f32 %v2749_v8, %v419_v29  ;;  %v422_v39 = vadd.f32 %v2061_v35, %v2742_v2  ;;  %v413_v40 = vpop.f32.mrb[7].mxu1  ;;  %v2127_v41 = vpop.f32.mrb[6].mxu0 }
  0xe5   :  { %1658 = vst.msk [vmem:[%s3139_s6] sm:$0xf] %vm1657_vm1, %v1922_v32  ;;  %v1923_v42 = vpack.c.bf16 %v1338_v33, %v1338_v33  ;;  %v2200_v43 = vadd.f32 %v2749_v8, %v411_v34  ;;  %v414_v44 = vadd.f32 %v2742_v2, %v413_v40  ;;  %v1037_v45 = vpop.f32.mrb[7].mxu0 }
  0xe6   :  { %1661 = vst.msk [vmem:[%s3139_s6 + $0xc] sm:$0xf] %vm1657_vm1, %v1925_v37  ;;  %v2198_v46 = vadd.f32 %v2197_v38, %v2126_v31  ;;  %v2203_v47 = vadd.f32 %v2749_v8, %v422_v39 }
  0xe7   :  { %1659 = vst.msk [vmem:[%s3139_s6 + $0x4] sm:$0xf] %vm1657_vm1, %v1923_v42  ;;  %v2201_v48 = vadd.f32 %v2200_v43, %v1034_v36  ;;  %v2206_v49 = vadd.f32 %v2749_v8, %v414_v44 }
  0xe8   :  { %v1343_v50 = vmax.f32 %v2198_v46, 0.0  ;;  %v2204_v51 = vadd.f32 %v2203_v47, %v2127_v41 }
  0xe9   :  { %v1341_v52 = vmax.f32 %v2201_v48, 0.0  ;;  %v2207_v53 = vadd.f32 %v2206_v49, %v1037_v45  ;;  %v2064_v54 = vpop.f32.mrb[8].mxu1 }
  0xea   :  { %v1928_v55 = vpack.c.bf16 %v1343_v50, %v1343_v50  ;;  %v1344_v56 = vmax.f32 %v2204_v51, 0.0  ;;  %v435_v57 = vadd.f32 %v2064_v54, %v2742_v2  ;;  %v426_v58 = vpop.f32.mrb[9].mxu1  ;;  %v2130_v59 = vpop.f32.mrb[8].mxu0 }
  0xeb   :  { %v1926_v60 = vpack.c.bf16 %v1341_v52, %v1341_v52  ;;  %v1342_v61 = vmax.f32 %v2207_v53, 0.0  ;;  %v427_v62 = vadd.f32 %v2742_v2, %v426_v58  ;;  %v2065_v63 = vpop.f32.mrb[10].mxu1  ;;  %v1050_v0 = vpop.f32.mrb[9].mxu0 }
  0xec   :  { %1664 = vst.msk [vmem:[%s3139_s6 + $0x18] sm:$0xf] %vm1657_vm1, %v1928_v55  ;;  %v1929_v1 = vpack.c.bf16 %v1344_v56, %v1344_v56  ;;  %v2209_v3 = vadd.f32 %v2749_v8, %v435_v57  ;;  %v438_v4 = vadd.f32 %v2065_v63, %v2742_v2  ;;  %v429_v5 = vpop.f32.mrb[11].mxu1  ;;  %v2131_v6 = vpop.f32.mrb[10].mxu0 }
  0xed   :  { %1662 = vst.msk [vmem:[%s3139_s6 + $0x10] sm:$0xf] %vm1657_vm1, %v1926_v60  ;;  %v1927_v7 = vpack.c.bf16 %v1342_v61, %v1342_v61  ;;  %v2212_v9 = vadd.f32 %v2749_v8, %v427_v62  ;;  %v430_v10 = vadd.f32 %v2742_v2, %v429_v5  ;;  %v1053_v11 = vpop.f32.mrb[11].mxu0 }
  0xee   :  { %1665 = vst.msk [vmem:[%s3139_s6 + $0x1c] sm:$0xf] %vm1657_vm1, %v1929_v1  ;;  %v2210_v12 = vadd.f32 %v2209_v3, %v2130_v59  ;;  %v2215_v13 = vadd.f32 %v2749_v8, %v438_v4 }
  0xef   :  { %1663 = vst.msk [vmem:[%s3139_s6 + $0x14] sm:$0xf] %vm1657_vm1, %v1927_v7  ;;  %v2213_v14 = vadd.f32 %v2212_v9, %v1050_v0  ;;  %v2218_v15 = vadd.f32 %v2749_v8, %v430_v10 }
  0xf0   :  { %v1347_v16 = vmax.f32 %v2210_v12, 0.0  ;;  %v2216_v17 = vadd.f32 %v2215_v13, %v2131_v6 }
  0xf1   :  { %v1345_v18 = vmax.f32 %v2213_v14, 0.0  ;;  %v2219_v19 = vadd.f32 %v2218_v15, %v1053_v11  ;;  %v2068_v20 = vpop.f32.mrb[12].mxu1 }
  0xf2   :  { %v1932_v21 = vpack.c.bf16 %v1347_v16, %v1347_v16  ;;  %v1348_v22 = vmax.f32 %v2216_v17, 0.0  ;;  %v451_v23 = vadd.f32 %v2068_v20, %v2742_v2  ;;  %v442_v24 = vpop.f32.mrb[13].mxu1  ;;  %v2134_v25 = vpop.f32.mrb[12].mxu0 }
  0xf3   :  { %v1930_v26 = vpack.c.bf16 %v1345_v18, %v1345_v18  ;;  %v1346_v27 = vmax.f32 %v2219_v19, 0.0  ;;  %v443_v28 = vadd.f32 %v2742_v2, %v442_v24  ;;  %v2069_v29 = vpop.f32.mrb[14].mxu1  ;;  %v1066_v30 = vpop.f32.mrb[13].mxu0 }
  0xf4   :  { %1668 = vst.msk [vmem:[%s3139_s6 + $0x28] sm:$0xf] %vm1657_vm1, %v1932_v21  ;;  %v1933_v31 = vpack.c.bf16 %v1348_v22, %v1348_v22  ;;  %v2221_v32 = vadd.f32 %v2749_v8, %v451_v23  ;;  %v454_v33 = vadd.f32 %v2069_v29, %v2742_v2  ;;  %v445_v34 = vpop.f32.mrb[15].mxu1  ;;  %v2135_v35 = vpop.f32.mrb[14].mxu0 }
  0xf5   :  { %1666 = vst.msk [vmem:[%s3139_s6 + $0x20] sm:$0xf] %vm1657_vm1, %v1930_v26  ;;  %v1931_v36 = vpack.c.bf16 %v1346_v27, %v1346_v27  ;;  %v2224_v37 = vadd.f32 %v2749_v8, %v443_v28  ;;  %v446_v38 = vadd.f32 %v2742_v2, %v445_v34  ;;  %v1069_v39 = vpop.f32.mrb[15].mxu0 }
  0xf6   :  { %1669 = vst.msk [vmem:[%s3139_s6 + $0x2c] sm:$0xf] %vm1657_vm1, %v1933_v31  ;;  %v2222_v40 = vadd.f32 %v2221_v32, %v2134_v25  ;;  %v2227_v41 = vadd.f32 %v2749_v8, %v454_v33 }
  0xf7   :  { %1667 = vst.msk [vmem:[%s3139_s6 + $0x24] sm:$0xf] %vm1657_vm1, %v1931_v36  ;;  %v2225_v42 = vadd.f32 %v2224_v37, %v1066_v30  ;;  %v2230_v43 = vadd.f32 %v2749_v8, %v446_v38 }
  0xf8   :  { %v1351_v44 = vmax.f32 %v2222_v40, 0.0  ;;  %v2228_v45 = vadd.f32 %v2227_v41, %v2135_v35 }
  0xf9   :  { %v1349_v46 = vmax.f32 %v2225_v42, 0.0  ;;  %v2231_v47 = vadd.f32 %v2230_v43, %v1069_v39  ;;  %v2072_v48 = vpop.f32.mrb[16].mxu1 }
  0xfa   :  { %v1936_v49 = vpack.c.bf16 %v1351_v44, %v1351_v44  ;;  %v1352_v50 = vmax.f32 %v2228_v45, 0.0  ;;  %v467_v51 = vadd.f32 %v2072_v48, %v2742_v2  ;;  %v458_v52 = vpop.f32.mrb[17].mxu1  ;;  %v2138_v53 = vpop.f32.mrb[16].mxu0 }
  0xfb   :  { %v1934_v54 = vpack.c.bf16 %v1349_v46, %v1349_v46  ;;  %v1350_v55 = vmax.f32 %v2231_v47, 0.0  ;;  %v459_v56 = vadd.f32 %v2742_v2, %v458_v52  ;;  %v2073_v57 = vpop.f32.mrb[18].mxu1  ;;  %v1082_v58 = vpop.f32.mrb[17].mxu0 }
  0xfc   :  { %1672 = vst.msk [vmem:[%s3139_s6 + $0x38] sm:$0xf] %vm1657_vm1, %v1936_v49  ;;  %v1937_v59 = vpack.c.bf16 %v1352_v50, %v1352_v50  ;;  %v2233_v60 = vadd.f32 %v2749_v8, %v467_v51  ;;  %v470_v61 = vadd.f32 %v2073_v57, %v2742_v2  ;;  %v461_v62 = vpop.f32.mrb[19].mxu1  ;;  %v2139_v63 = vpop.f32.mrb[18].mxu0 }
  0xfd   :  { %1670 = vst.msk [vmem:[%s3139_s6 + $0x30] sm:$0xf] %vm1657_vm1, %v1934_v54  ;;  %v1935_v0 = vpack.c.bf16 %v1350_v55, %v1350_v55  ;;  %v2236_v1 = vadd.f32 %v2749_v8, %v459_v56  ;;  %v462_v3 = vadd.f32 %v2742_v2, %v461_v62  ;;  %v1085_v4 = vpop.f32.mrb[19].mxu0 }
  0xfe   :  { %1673 = vst.msk [vmem:[%s3139_s6 + $0x3c] sm:$0xf] %vm1657_vm1, %v1937_v59  ;;  %v2234_v5 = vadd.f32 %v2233_v60, %v2138_v53  ;;  %v2239_v6 = vadd.f32 %v2749_v8, %v470_v61 }
  0xff   :  { %1671 = vst.msk [vmem:[%s3139_s6 + $0x34] sm:$0xf] %vm1657_vm1, %v1935_v0  ;;  %v2237_v7 = vadd.f32 %v2236_v1, %v1082_v58  ;;  %v2242_v9 = vadd.f32 %v2749_v8, %v462_v3 }
 0x100   :  { %v1355_v10 = vmax.f32 %v2234_v5, 0.0  ;;  %v2240_v11 = vadd.f32 %v2239_v6, %v2139_v63 }
 0x101   :  { %v1353_v12 = vmax.f32 %v2237_v7, 0.0  ;;  %v2243_v13 = vadd.f32 %v2242_v9, %v1085_v4  ;;  %v2076_v14 = vpop.f32.mrb[20].mxu1 }
 0x102   :  { %v1940_v15 = vpack.c.bf16 %v1355_v10, %v1355_v10  ;;  %v1356_v16 = vmax.f32 %v2240_v11, 0.0  ;;  %v483_v17 = vadd.f32 %v2076_v14, %v2742_v2  ;;  %v474_v18 = vpop.f32.mrb[21].mxu1  ;;  %v2142_v19 = vpop.f32.mrb[20].mxu0 }
 0x103   :  { %v1938_v20 = vpack.c.bf16 %v1353_v12, %v1353_v12  ;;  %v1354_v21 = vmax.f32 %v2243_v13, 0.0  ;;  %v475_v22 = vadd.f32 %v2742_v2, %v474_v18  ;;  %v2077_v23 = vpop.f32.mrb[22].mxu1  ;;  %v1098_v24 = vpop.f32.mrb[21].mxu0 }
 0x104   :  { %1676 = vst.msk [vmem:[%s3139_s6 + $0x48] sm:$0xf] %vm1657_vm1, %v1940_v15  ;;  %v1941_v25 = vpack.c.bf16 %v1356_v16, %v1356_v16  ;;  %v2245_v26 = vadd.f32 %v2749_v8, %v483_v17  ;;  %v486_v27 = vadd.f32 %v2077_v23, %v2742_v2  ;;  %v477_v28 = vpop.f32.mrb[23].mxu1  ;;  %v2143_v29 = vpop.f32.mrb[22].mxu0 }
 0x105   :  { %1674 = vst.msk [vmem:[%s3139_s6 + $0x40] sm:$0xf] %vm1657_vm1, %v1938_v20  ;;  %v1939_v30 = vpack.c.bf16 %v1354_v21, %v1354_v21  ;;  %v2248_v31 = vadd.f32 %v2749_v8, %v475_v22  ;;  %v478_v32 = vadd.f32 %v2742_v2, %v477_v28  ;;  %v1101_v33 = vpop.f32.mrb[23].mxu0 }
 0x106   :  { %1677 = vst.msk [vmem:[%s3139_s6 + $0x4c] sm:$0xf] %vm1657_vm1, %v1941_v25  ;;  %v2246_v34 = vadd.f32 %v2245_v26, %v2142_v19  ;;  %v2251_v35 = vadd.f32 %v2749_v8, %v486_v27 }
 0x107   :  { %1675 = vst.msk [vmem:[%s3139_s6 + $0x44] sm:$0xf] %vm1657_vm1, %v1939_v30  ;;  %v2249_v36 = vadd.f32 %v2248_v31, %v1098_v24  ;;  %v2254_v37 = vadd.f32 %v2749_v8, %v478_v32 }
 0x108   :  { %v1359_v38 = vmax.f32 %v2246_v34, 0.0  ;;  %v2252_v39 = vadd.f32 %v2251_v35, %v2143_v29 }
 0x109   :  { %v1357_v40 = vmax.f32 %v2249_v36, 0.0  ;;  %v2255_v41 = vadd.f32 %v2254_v37, %v1101_v33  ;;  %v2080_v42 = vpop.f32.mrb[24].mxu1 }
 0x10a   :  { %v1944_v43 = vpack.c.bf16 %v1359_v38, %v1359_v38  ;;  %v1360_v44 = vmax.f32 %v2252_v39, 0.0  ;;  %v499_v45 = vadd.f32 %v2080_v42, %v2742_v2  ;;  %v490_v46 = vpop.f32.mrb[25].mxu1  ;;  %v2146_v47 = vpop.f32.mrb[24].mxu0 }
 0x10b   :  { %v1942_v48 = vpack.c.bf16 %v1357_v40, %v1357_v40  ;;  %v1358_v49 = vmax.f32 %v2255_v41, 0.0  ;;  %v491_v50 = vadd.f32 %v2742_v2, %v490_v46  ;;  %v2081_v51 = vpop.f32.mrb[26].mxu1  ;;  %v1114_v52 = vpop.f32.mrb[25].mxu0 }
 0x10c   :  { %1680 = vst.msk [vmem:[%s3139_s6 + $0x58] sm:$0xf] %vm1657_vm1, %v1944_v43  ;;  %v1945_v53 = vpack.c.bf16 %v1360_v44, %v1360_v44  ;;  %v2257_v54 = vadd.f32 %v2749_v8, %v499_v45  ;;  %v502_v55 = vadd.f32 %v2081_v51, %v2742_v2  ;;  %v493_v56 = vpop.f32.mrb[27].mxu1  ;;  %v2147_v57 = vpop.f32.mrb[26].mxu0 }
 0x10d   :  { %1678 = vst.msk [vmem:[%s3139_s6 + $0x50] sm:$0xf] %vm1657_vm1, %v1942_v48  ;;  %v1943_v58 = vpack.c.bf16 %v1358_v49, %v1358_v49  ;;  %v2260_v59 = vadd.f32 %v2749_v8, %v491_v50  ;;  %v494_v60 = vadd.f32 %v2742_v2, %v493_v56  ;;  %v1117_v61 = vpop.f32.mrb[27].mxu0 }
 0x10e   :  { %1681 = vst.msk [vmem:[%s3139_s6 + $0x5c] sm:$0xf] %vm1657_vm1, %v1945_v53  ;;  %v2258_v62 = vadd.f32 %v2257_v54, %v2146_v47  ;;  %v2263_v63 = vadd.f32 %v2749_v8, %v502_v55 }
 0x10f   :  { %1679 = vst.msk [vmem:[%s3139_s6 + $0x54] sm:$0xf] %vm1657_vm1, %v1943_v58  ;;  %v2261_v0 = vadd.f32 %v2260_v59, %v1114_v52  ;;  %v2266_v1 = vadd.f32 %v2749_v8, %v494_v60 }
 0x110   :  { %v1363_v3 = vmax.f32 %v2258_v62, 0.0  ;;  %v2264_v4 = vadd.f32 %v2263_v63, %v2147_v57 }
 0x111   :  { %v1361_v5 = vmax.f32 %v2261_v0, 0.0  ;;  %v2267_v6 = vadd.f32 %v2266_v1, %v1117_v61  ;;  %v2084_v7 = vpop.f32.mrb[28].mxu1 }
 0x112   :  { %v1948_v9 = vpack.c.bf16 %v1363_v3, %v1363_v3  ;;  %v1364_v10 = vmax.f32 %v2264_v4, 0.0  ;;  %v515_v11 = vadd.f32 %v2084_v7, %v2742_v2  ;;  %v506_v12 = vpop.f32.mrb[29].mxu1  ;;  %v2150_v13 = vpop.f32.mrb[28].mxu0 }
 0x113   :  { %v1946_v14 = vpack.c.bf16 %v1361_v5, %v1361_v5  ;;  %v1362_v15 = vmax.f32 %v2267_v6, 0.0  ;;  %v507_v16 = vadd.f32 %v2742_v2, %v506_v12  ;;  %v2085_v17 = vpop.f32.mrb[30].mxu1  ;;  %v1130_v18 = vpop.f32.mrb[29].mxu0 }
 0x114   :  { %1684 = vst.msk [vmem:[%s3139_s6 + $0x68] sm:$0xf] %vm1657_vm1, %v1948_v9  ;;  %v1949_v19 = vpack.c.bf16 %v1364_v10, %v1364_v10  ;;  %v2269_v20 = vadd.f32 %v2749_v8, %v515_v11  ;;  %v518_v21 = vadd.f32 %v2085_v17, %v2742_v2  ;;  %v509_v22 = vpop.f32.mrb[31].mxu1  ;;  %v2151_v23 = vpop.f32.mrb[30].mxu0 }
 0x115   :  { %1682 = vst.msk [vmem:[%s3139_s6 + $0x60] sm:$0xf] %vm1657_vm1, %v1946_v14  ;;  %v1947_v24 = vpack.c.bf16 %v1362_v15, %v1362_v15  ;;  %v2272_v25 = vadd.f32 %v2749_v8, %v507_v16  ;;  %v510_v26 = vadd.f32 %v2742_v2, %v509_v22  ;;  %v1133_v27 = vpop.f32.mrb[31].mxu0 }
 0x116   :  { %1685 = vst.msk [vmem:[%s3139_s6 + $0x6c] sm:$0xf] %vm1657_vm1, %v1949_v19  ;;  %v2270_v28 = vadd.f32 %v2269_v20, %v2150_v13  ;;  %v2275_v29 = vadd.f32 %v2749_v8, %v518_v21 }
 0x117   :  { %1683 = vst.msk [vmem:[%s3139_s6 + $0x64] sm:$0xf] %vm1657_vm1, %v1947_v24  ;;  %v2273_v30 = vadd.f32 %v2272_v25, %v1130_v18  ;;  %v2278_v31 = vadd.f32 %v2749_v8, %v510_v26 }
 0x118   :  { %v1367_v32 = vmax.f32 %v2270_v28, 0.0  ;;  %v2276_v33 = vadd.f32 %v2275_v29, %v2151_v23 }
 0x119   :  { %v1365_v34 = vmax.f32 %v2273_v30, 0.0  ;;  %v2279_v35 = vadd.f32 %v2278_v31, %v1133_v27  ;;  %v2088_v36 = vpop.f32.mrb[32].mxu1 }
 0x11a   :  { %v1952_v37 = vpack.c.bf16 %v1367_v32, %v1367_v32  ;;  %v1368_v38 = vmax.f32 %v2276_v33, 0.0  ;;  %v531_v39 = vadd.f32 %v2088_v36, %v2742_v2  ;;  %v522_v40 = vpop.f32.mrb[33].mxu1  ;;  %v2154_v41 = vpop.f32.mrb[32].mxu0 }
 0x11b   :  { %v1950_v42 = vpack.c.bf16 %v1365_v34, %v1365_v34  ;;  %v1366_v43 = vmax.f32 %v2279_v35, 0.0  ;;  %v523_v44 = vadd.f32 %v2742_v2, %v522_v40  ;;  %v2089_v45 = vpop.f32.mrb[34].mxu1  ;;  %v1146_v46 = vpop.f32.mrb[33].mxu0 }
 0x11c   :  { %1688 = vst.msk [vmem:[%s3139_s6 + $0x78] sm:$0xf] %vm1657_vm1, %v1952_v37  ;;  %v1953_v47 = vpack.c.bf16 %v1368_v38, %v1368_v38  ;;  %v2281_v48 = vadd.f32 %v2749_v8, %v531_v39  ;;  %v534_v49 = vadd.f32 %v2089_v45, %v2742_v2  ;;  %v525_v50 = vpop.f32.mrb[35].mxu1  ;;  %v2155_v51 = vpop.f32.mrb[34].mxu0 }
 0x11d   :  { %1686 = vst.msk [vmem:[%s3139_s6 + $0x70] sm:$0xf] %vm1657_vm1, %v1950_v42  ;;  %v1951_v52 = vpack.c.bf16 %v1366_v43, %v1366_v43  ;;  %v2284_v53 = vadd.f32 %v2749_v8, %v523_v44  ;;  %v526_v54 = vadd.f32 %v2742_v2, %v525_v50  ;;  %v1149_v55 = vpop.f32.mrb[35].mxu0 }
 0x11e   :  { %1689 = vst.msk [vmem:[%s3139_s6 + $0x7c] sm:$0xf] %vm1657_vm1, %v1953_v47  ;;  %v2282_v56 = vadd.f32 %v2281_v48, %v2154_v41  ;;  %v2287_v57 = vadd.f32 %v2749_v8, %v534_v49 }
 0x11f   :  { %1687 = vst.msk [vmem:[%s3139_s6 + $0x74] sm:$0xf] %vm1657_vm1, %v1951_v52  ;;  %v2285_v58 = vadd.f32 %v2284_v53, %v1146_v46  ;;  %v2290_v59 = vadd.f32 %v2749_v8, %v526_v54 }
 0x120   :  { %v1371_v60 = vmax.f32 %v2282_v56, 0.0  ;;  %v2288_v61 = vadd.f32 %v2287_v57, %v2155_v51 }
 0x121   :  { %v1369_v62 = vmax.f32 %v2285_v58, 0.0  ;;  %v2291_v63 = vadd.f32 %v2290_v59, %v1149_v55  ;;  %v2092_v0 = vpop.f32.mrb[36].mxu1 }
 0x122   :  { %v1956_v1 = vpack.c.bf16 %v1371_v60, %v1371_v60  ;;  %v1372_v3 = vmax.f32 %v2288_v61, 0.0  ;;  %v547_v4 = vadd.f32 %v2092_v0, %v2742_v2  ;;  %v538_v5 = vpop.f32.mrb[37].mxu1  ;;  %v2158_v6 = vpop.f32.mrb[36].mxu0 }
 0x123   :  { %v1954_v7 = vpack.c.bf16 %v1369_v62, %v1369_v62  ;;  %v1370_v9 = vmax.f32 %v2291_v63, 0.0  ;;  %v539_v10 = vadd.f32 %v2742_v2, %v538_v5  ;;  %v2093_v11 = vpop.f32.mrb[38].mxu1  ;;  %v1162_v12 = vpop.f32.mrb[37].mxu0 }
 0x124   :  { %1692 = vst.msk [vmem:[%s3139_s6 + $0x88] sm:$0xf] %vm1657_vm1, %v1956_v1  ;;  %v1957_v13 = vpack.c.bf16 %v1372_v3, %v1372_v3  ;;  %v2293_v14 = vadd.f32 %v2749_v8, %v547_v4  ;;  %v550_v15 = vadd.f32 %v2093_v11, %v2742_v2  ;;  %v541_v16 = vpop.f32.mrb[39].mxu1  ;;  %v2159_v17 = vpop.f32.mrb[38].mxu0 }
 0x125   :  { %1690 = vst.msk [vmem:[%s3139_s6 + $0x80] sm:$0xf] %vm1657_vm1, %v1954_v7  ;;  %v1955_v18 = vpack.c.bf16 %v1370_v9, %v1370_v9  ;;  %v2296_v19 = vadd.f32 %v2749_v8, %v539_v10  ;;  %v542_v20 = vadd.f32 %v2742_v2, %v541_v16  ;;  %v1165_v21 = vpop.f32.mrb[39].mxu0 }
 0x126   :  { %1693 = vst.msk [vmem:[%s3139_s6 + $0x8c] sm:$0xf] %vm1657_vm1, %v1957_v13  ;;  %v2294_v22 = vadd.f32 %v2293_v14, %v2158_v6  ;;  %v2299_v23 = vadd.f32 %v2749_v8, %v550_v15 }
 0x127   :  { %1691 = vst.msk [vmem:[%s3139_s6 + $0x84] sm:$0xf] %vm1657_vm1, %v1955_v18  ;;  %v2297_v24 = vadd.f32 %v2296_v19, %v1162_v12  ;;  %v2302_v25 = vadd.f32 %v2749_v8, %v542_v20 }
 0x128   :  { %v1375_v26 = vmax.f32 %v2294_v22, 0.0  ;;  %v2300_v27 = vadd.f32 %v2299_v23, %v2159_v17 }
 0x129   :  { %v1373_v28 = vmax.f32 %v2297_v24, 0.0  ;;  %v2303_v29 = vadd.f32 %v2302_v25, %v1165_v21  ;;  %v2096_v30 = vpop.f32.mrb[40].mxu1 }
 0x12a   :  { %v1960_v31 = vpack.c.bf16 %v1375_v26, %v1375_v26  ;;  %v1376_v32 = vmax.f32 %v2300_v27, 0.0  ;;  %v563_v33 = vadd.f32 %v2096_v30, %v2742_v2  ;;  %v554_v34 = vpop.f32.mrb[41].mxu1  ;;  %v2162_v35 = vpop.f32.mrb[40].mxu0 }
 0x12b   :  { %v1958_v36 = vpack.c.bf16 %v1373_v28, %v1373_v28  ;;  %v1374_v37 = vmax.f32 %v2303_v29, 0.0  ;;  %v555_v38 = vadd.f32 %v2742_v2, %v554_v34  ;;  %v2097_v39 = vpop.f32.mrb[42].mxu1  ;;  %v1178_v40 = vpop.f32.mrb[41].mxu0 }
 0x12c   :  { %1696 = vst.msk [vmem:[%s3139_s6 + $0x98] sm:$0xf] %vm1657_vm1, %v1960_v31  ;;  %v1961_v41 = vpack.c.bf16 %v1376_v32, %v1376_v32  ;;  %v2305_v42 = vadd.f32 %v2749_v8, %v563_v33  ;;  %v566_v43 = vadd.f32 %v2097_v39, %v2742_v2  ;;  %v557_v44 = vpop.f32.mrb[43].mxu1  ;;  %v2163_v45 = vpop.f32.mrb[42].mxu0 }
 0x12d   :  { %1694 = vst.msk [vmem:[%s3139_s6 + $0x90] sm:$0xf] %vm1657_vm1, %v1958_v36  ;;  %v1959_v46 = vpack.c.bf16 %v1374_v37, %v1374_v37  ;;  %v2308_v47 = vadd.f32 %v2749_v8, %v555_v38  ;;  %v558_v48 = vadd.f32 %v2742_v2, %v557_v44  ;;  %v1181_v49 = vpop.f32.mrb[43].mxu0 }
 0x12e   :  { %1697 = vst.msk [vmem:[%s3139_s6 + $0x9c] sm:$0xf] %vm1657_vm1, %v1961_v41  ;;  %v2306_v50 = vadd.f32 %v2305_v42, %v2162_v35  ;;  %v2311_v51 = vadd.f32 %v2749_v8, %v566_v43 }
 0x12f   :  { %1695 = vst.msk [vmem:[%s3139_s6 + $0x94] sm:$0xf] %vm1657_vm1, %v1959_v46  ;;  %v2309_v52 = vadd.f32 %v2308_v47, %v1178_v40  ;;  %v2314_v53 = vadd.f32 %v2749_v8, %v558_v48 }
 0x130   :  { %v1379_v54 = vmax.f32 %v2306_v50, 0.0  ;;  %v2312_v55 = vadd.f32 %v2311_v51, %v2163_v45 }
 0x131   :  { %v1377_v56 = vmax.f32 %v2309_v52, 0.0  ;;  %v2315_v57 = vadd.f32 %v2314_v53, %v1181_v49  ;;  %v2100_v58 = vpop.f32.mrb[44].mxu1 }
 0x132   :  { %v1964_v59 = vpack.c.bf16 %v1379_v54, %v1379_v54  ;;  %v1380_v60 = vmax.f32 %v2312_v55, 0.0  ;;  %v579_v61 = vadd.f32 %v2100_v58, %v2742_v2  ;;  %v570_v62 = vpop.f32.mrb[45].mxu1  ;;  %v2166_v63 = vpop.f32.mrb[44].mxu0 }
 0x133   :  { %v1962_v0 = vpack.c.bf16 %v1377_v56, %v1377_v56  ;;  %v1378_v1 = vmax.f32 %v2315_v57, 0.0  ;;  %v571_v3 = vadd.f32 %v2742_v2, %v570_v62  ;;  %v2101_v4 = vpop.f32.mrb[46].mxu1  ;;  %v1194_v5 = vpop.f32.mrb[45].mxu0 }
 0x134   :  { %1700 = vst.msk [vmem:[%s3139_s6 + $0xa8] sm:$0xf] %vm1657_vm1, %v1964_v59  ;;  %v1965_v6 = vpack.c.bf16 %v1380_v60, %v1380_v60  ;;  %v2317_v7 = vadd.f32 %v2749_v8, %v579_v61  ;;  %v582_v9 = vadd.f32 %v2101_v4, %v2742_v2  ;;  %v573_v10 = vpop.f32.mrb[47].mxu1  ;;  %v2167_v11 = vpop.f32.mrb[46].mxu0 }
 0x135   :  { %1698 = vst.msk [vmem:[%s3139_s6 + $0xa0] sm:$0xf] %vm1657_vm1, %v1962_v0  ;;  %v1963_v12 = vpack.c.bf16 %v1378_v1, %v1378_v1  ;;  %v2320_v13 = vadd.f32 %v2749_v8, %v571_v3  ;;  %v574_v14 = vadd.f32 %v2742_v2, %v573_v10  ;;  %v1197_v15 = vpop.f32.mrb[47].mxu0 }
 0x136   :  { %1701 = vst.msk [vmem:[%s3139_s6 + $0xac] sm:$0xf] %vm1657_vm1, %v1965_v6  ;;  %v2318_v16 = vadd.f32 %v2317_v7, %v2166_v63  ;;  %v2323_v17 = vadd.f32 %v2749_v8, %v582_v9 }
 0x137   :  { %1699 = vst.msk [vmem:[%s3139_s6 + $0xa4] sm:$0xf] %vm1657_vm1, %v1963_v12  ;;  %v2321_v18 = vadd.f32 %v2320_v13, %v1194_v5  ;;  %v2326_v19 = vadd.f32 %v2749_v8, %v574_v14 }
 0x138   :  { %v1383_v20 = vmax.f32 %v2318_v16, 0.0  ;;  %v2324_v21 = vadd.f32 %v2323_v17, %v2167_v11 }
 0x139   :  { %v1381_v22 = vmax.f32 %v2321_v18, 0.0  ;;  %v2327_v23 = vadd.f32 %v2326_v19, %v1197_v15  ;;  %v2104_v24 = vpop.f32.mrb[48].mxu1 }
 0x13a   :  { %v1968_v25 = vpack.c.bf16 %v1383_v20, %v1383_v20  ;;  %v1384_v26 = vmax.f32 %v2324_v21, 0.0  ;;  %v595_v27 = vadd.f32 %v2104_v24, %v2742_v2  ;;  %v586_v28 = vpop.f32.mrb[49].mxu1  ;;  %v2170_v29 = vpop.f32.mrb[48].mxu0 }
 0x13b   :  { %v1966_v30 = vpack.c.bf16 %v1381_v22, %v1381_v22  ;;  %v1382_v31 = vmax.f32 %v2327_v23, 0.0  ;;  %v587_v32 = vadd.f32 %v2742_v2, %v586_v28  ;;  %v2105_v33 = vpop.f32.mrb[50].mxu1  ;;  %v1210_v34 = vpop.f32.mrb[49].mxu0 }
 0x13c   :  { %1704 = vst.msk [vmem:[%s3139_s6 + $0xb8] sm:$0xf] %vm1657_vm1, %v1968_v25  ;;  %v1969_v35 = vpack.c.bf16 %v1384_v26, %v1384_v26  ;;  %v2329_v36 = vadd.f32 %v2749_v8, %v595_v27  ;;  %v598_v37 = vadd.f32 %v2105_v33, %v2742_v2  ;;  %v589_v38 = vpop.f32.mrb[51].mxu1  ;;  %v2171_v39 = vpop.f32.mrb[50].mxu0 }
 0x13d   :  { %1702 = vst.msk [vmem:[%s3139_s6 + $0xb0] sm:$0xf] %vm1657_vm1, %v1966_v30  ;;  %v1967_v40 = vpack.c.bf16 %v1382_v31, %v1382_v31  ;;  %v2332_v41 = vadd.f32 %v2749_v8, %v587_v32  ;;  %v590_v42 = vadd.f32 %v2742_v2, %v589_v38  ;;  %v1213_v43 = vpop.f32.mrb[51].mxu0 }
 0x13e   :  { %1705 = vst.msk [vmem:[%s3139_s6 + $0xbc] sm:$0xf] %vm1657_vm1, %v1969_v35  ;;  %v2330_v44 = vadd.f32 %v2329_v36, %v2170_v29  ;;  %v2335_v45 = vadd.f32 %v2749_v8, %v598_v37 }
 0x13f   :  { %1703 = vst.msk [vmem:[%s3139_s6 + $0xb4] sm:$0xf] %vm1657_vm1, %v1967_v40  ;;  %v2333_v46 = vadd.f32 %v2332_v41, %v1210_v34  ;;  %v2338_v47 = vadd.f32 %v2749_v8, %v590_v42 }
 0x140   :  { %v1387_v48 = vmax.f32 %v2330_v44, 0.0  ;;  %v2336_v49 = vadd.f32 %v2335_v45, %v2171_v39 }
 0x141   :  { %v1385_v50 = vmax.f32 %v2333_v46, 0.0  ;;  %v2339_v51 = vadd.f32 %v2338_v47, %v1213_v43  ;;  %v2108_v52 = vpop.f32.mrb[52].mxu1 }
 0x142   :  { %v1972_v53 = vpack.c.bf16 %v1387_v48, %v1387_v48  ;;  %v1388_v54 = vmax.f32 %v2336_v49, 0.0  ;;  %v611_v55 = vadd.f32 %v2108_v52, %v2742_v2  ;;  %v602_v56 = vpop.f32.mrb[53].mxu1  ;;  %v2174_v57 = vpop.f32.mrb[52].mxu0 }
 0x143   :  { %v1970_v58 = vpack.c.bf16 %v1385_v50, %v1385_v50  ;;  %v1386_v59 = vmax.f32 %v2339_v51, 0.0  ;;  %v603_v60 = vadd.f32 %v2742_v2, %v602_v56  ;;  %v2109_v61 = vpop.f32.mrb[54].mxu1  ;;  %v1226_v62 = vpop.f32.mrb[53].mxu0 }
 0x144   :  { %1708 = vst.msk [vmem:[%s3139_s6 + $0xc8] sm:$0xf] %vm1657_vm1, %v1972_v53  ;;  %v1973_v63 = vpack.c.bf16 %v1388_v54, %v1388_v54  ;;  %v2341_v0 = vadd.f32 %v2749_v8, %v611_v55  ;;  %v614_v1 = vadd.f32 %v2109_v61, %v2742_v2  ;;  %v605_v3 = vpop.f32.mrb[55].mxu1  ;;  %v2175_v4 = vpop.f32.mrb[54].mxu0 }
 0x145   :  { %1706 = vst.msk [vmem:[%s3139_s6 + $0xc0] sm:$0xf] %vm1657_vm1, %v1970_v58  ;;  %v1971_v5 = vpack.c.bf16 %v1386_v59, %v1386_v59  ;;  %v2344_v6 = vadd.f32 %v2749_v8, %v603_v60  ;;  %v606_v7 = vadd.f32 %v2742_v2, %v605_v3  ;;  %v1229_v9 = vpop.f32.mrb[55].mxu0 }
 0x146   :  { %1709 = vst.msk [vmem:[%s3139_s6 + $0xcc] sm:$0xf] %vm1657_vm1, %v1973_v63  ;;  %v2342_v10 = vadd.f32 %v2341_v0, %v2174_v57  ;;  %v2347_v11 = vadd.f32 %v2749_v8, %v614_v1 }
 0x147   :  { %1707 = vst.msk [vmem:[%s3139_s6 + $0xc4] sm:$0xf] %vm1657_vm1, %v1971_v5  ;;  %v2345_v12 = vadd.f32 %v2344_v6, %v1226_v62  ;;  %v2350_v13 = vadd.f32 %v2749_v8, %v606_v7 }
 0x148   :  { %v1391_v14 = vmax.f32 %v2342_v10, 0.0  ;;  %v2348_v15 = vadd.f32 %v2347_v11, %v2175_v4 }
 0x149   :  { %v1389_v16 = vmax.f32 %v2345_v12, 0.0  ;;  %v2351_v17 = vadd.f32 %v2350_v13, %v1229_v9  ;;  %v2112_v18 = vpop.f32.mrb[56].mxu1 }
 0x14a   :  { %v1976_v19 = vpack.c.bf16 %v1391_v14, %v1391_v14  ;;  %v1392_v20 = vmax.f32 %v2348_v15, 0.0  ;;  %v627_v21 = vadd.f32 %v2112_v18, %v2742_v2  ;;  %v618_v22 = vpop.f32.mrb[57].mxu1  ;;  %v2178_v23 = vpop.f32.mrb[56].mxu0 }
 0x14b   :  { %v1974_v24 = vpack.c.bf16 %v1389_v16, %v1389_v16  ;;  %v1390_v25 = vmax.f32 %v2351_v17, 0.0  ;;  %v619_v26 = vadd.f32 %v2742_v2, %v618_v22  ;;  %v2113_v27 = vpop.f32.mrb[58].mxu1  ;;  %v1242_v28 = vpop.f32.mrb[57].mxu0 }
 0x14c   :  { %1712 = vst.msk [vmem:[%s3139_s6 + $0xd8] sm:$0xf] %vm1657_vm1, %v1976_v19  ;;  %v1977_v29 = vpack.c.bf16 %v1392_v20, %v1392_v20  ;;  %v2353_v30 = vadd.f32 %v2749_v8, %v627_v21  ;;  %v630_v31 = vadd.f32 %v2113_v27, %v2742_v2  ;;  %v621_v32 = vpop.f32.mrb[59].mxu1  ;;  %v2179_v33 = vpop.f32.mrb[58].mxu0 }
 0x14d   :  { %1710 = vst.msk [vmem:[%s3139_s6 + $0xd0] sm:$0xf] %vm1657_vm1, %v1974_v24  ;;  %v1975_v34 = vpack.c.bf16 %v1390_v25, %v1390_v25  ;;  %v2356_v35 = vadd.f32 %v2749_v8, %v619_v26  ;;  %v622_v36 = vadd.f32 %v2742_v2, %v621_v32  ;;  %v1245_v37 = vpop.f32.mrb[59].mxu0 }
 0x14e   :  { %1713 = vst.msk [vmem:[%s3139_s6 + $0xdc] sm:$0xf] %vm1657_vm1, %v1977_v29  ;;  %v2354_v38 = vadd.f32 %v2353_v30, %v2178_v23  ;;  %v2359_v39 = vadd.f32 %v2749_v8, %v630_v31 }
 0x14f   :  { %1711 = vst.msk [vmem:[%s3139_s6 + $0xd4] sm:$0xf] %vm1657_vm1, %v1975_v34  ;;  %v2357_v40 = vadd.f32 %v2356_v35, %v1242_v28  ;;  %v2362_v41 = vadd.f32 %v2749_v8, %v622_v36 }
 0x150   :  { %v1395_v42 = vmax.f32 %v2354_v38, 0.0  ;;  %v2360_v43 = vadd.f32 %v2359_v39, %v2179_v33 }
 0x151   :  { %v1393_v44 = vmax.f32 %v2357_v40, 0.0  ;;  %v2363_v45 = vadd.f32 %v2362_v41, %v1245_v37  ;;  %v2116_v46 = vpop.f32.mrb[60].mxu1 }
 0x152   :  { %v1980_v47 = vpack.c.bf16 %v1395_v42, %v1395_v42  ;;  %v1396_v48 = vmax.f32 %v2360_v43, 0.0  ;;  %v643_v49 = vadd.f32 %v2116_v46, %v2742_v2  ;;  %v634_v50 = vpop.f32.mrb[61].mxu1  ;;  %v2182_v51 = vpop.f32.mrb[60].mxu0 }
 0x153   :  { %v1978_v52 = vpack.c.bf16 %v1393_v44, %v1393_v44  ;;  %v1394_v53 = vmax.f32 %v2363_v45, 0.0  ;;  %v635_v54 = vadd.f32 %v2742_v2, %v634_v50  ;;  %v2117_v55 = vpop.f32.mrb[62].mxu1  ;;  %v1258_v56 = vpop.f32.mrb[61].mxu0 }
 0x154   :  { %1716 = vst.msk [vmem:[%s3139_s6 + $0xe8] sm:$0xf] %vm1657_vm1, %v1980_v47  ;;  %v1981_v57 = vpack.c.bf16 %v1396_v48, %v1396_v48  ;;  %v2365_v58 = vadd.f32 %v2749_v8, %v643_v49  ;;  %v646_v59 = vadd.f32 %v2117_v55, %v2742_v2  ;;  %v637_v60 = vpop.f32.mrb[63].mxu1  ;;  %v2183_v61 = vpop.f32.mrb[62].mxu0 }
 0x155   :  { %1714 = vst.msk [vmem:[%s3139_s6 + $0xe0] sm:$0xf] %vm1657_vm1, %v1978_v52  ;;  %v1979_v62 = vpack.c.bf16 %v1394_v53, %v1394_v53  ;;  %v2368_v63 = vadd.f32 %v2749_v8, %v635_v54  ;;  %v638_v0 = vadd.f32 %v2742_v2, %v637_v60  ;;  %v1261_v1 = vpop.f32.mrb[63].mxu0 }
 0x156   :  { %1717 = vst.msk [vmem:[%s3139_s6 + $0xec] sm:$0xf] %vm1657_vm1, %v1981_v57  ;;  %v2366_v3 = vadd.f32 %v2365_v58, %v2182_v51  ;;  %v2371_v4 = vadd.f32 %v2749_v8, %v646_v59 }
 0x157   :  { %1715 = vst.msk [vmem:[%s3139_s6 + $0xe4] sm:$0xf] %vm1657_vm1, %v1979_v62  ;;  %v2369_v5 = vadd.f32 %v2368_v63, %v1258_v56  ;;  %v2374_v6 = vadd.f32 %v2749_v8, %v638_v0 }
 0x158   :  { %v1399_v7 = vmax.f32 %v2366_v3, 0.0  ;;  %v2372_v9 = vadd.f32 %v2371_v4, %v2183_v61 }
 0x159   :  { %v1397_v2 = vmax.f32 %v2369_v5, 0.0  ;;  %v2375_v10 = vadd.f32 %v2374_v6, %v1261_v1 }
 0x15a   :  { %v1984_v11 = vpack.c.bf16 %v1399_v7, %v1399_v7  ;;  %v1400_v12 = vmax.f32 %v2372_v9, 0.0 }
 0x15b   :  { %v1982_v13 = vpack.c.bf16 %v1397_v2, %v1397_v2  ;;  %v1398_v14 = vmax.f32 %v2375_v10, 0.0 }
 0x15c   :  { %1720 = vst.msk [vmem:[%s3139_s6 + $0xf8] sm:$0xf] %vm1657_vm1, %v1984_v11  ;;  %v1985_v15 = vpack.c.bf16 %v1400_v12, %v1400_v12 }
 0x15d   :  { %1718 = vst.msk [vmem:[%s3139_s6 + $0xf0] sm:$0xf] %vm1657_vm1, %v1982_v13  ;;  %v1983_v8 = vpack.c.bf16 %v1398_v14, %v1398_v14 }
 0x15e   :  { %1721 = vst.msk [vmem:[%s3139_s6 + $0xfc] sm:$0xf] %vm1657_vm1, %v1985_v15 }
 0x15f   :  { %1719 = vst.msk [vmem:[%s3139_s6 + $0xf4] sm:$0xf] %vm1657_vm1, %v1983_v8 }

// kernel: exifnet_forward.6
= control target key start
LH: loop header
LB: loop body
LE: loop exit
PB: predicated region body
PF: predicated region fallthrough
CT: control target
= control target key end

     0   :  { %s4096_s12 = smov 0   ;;  %s6003_s0 = inlined_call_operand.vmem [shape: bf16[2,18,18,3], index: 0, kind: input, shape index: {}]   ;;  %s6004_s1 = inlined_call_operand.vmem [shape: bf16[27,16], index: 1, kind: input, shape index: {}]   ;;  %s6005_s2 = inlined_call_operand.vmem [shape: f32[1,16], index: 2, kind: input, shape index: {}]   ;;  %s6006_s3 = inlined_call_operand.vmem [shape: bf16[2,16,16,16], index: 3, kind: output, shape index: {}]  }
   0x1 LB: > { %s3491_s13 = sadd.s32 4294967295, %s4065_s12   ;;  %p3495_p0 = scmp.ge.s32.totalorder %s4065_s12, 1  ;;  %s4065_s12 = sphi %s4096_s12, %s13_s12  }
   0x2   : > { %p137_p1 = scmp.lt.s32.totalorder %s4065_s12, 3 }
   0x4   : > { %p138_p2 = pnand %p3495_p0, %p137_p1 }
   0x5   : > { %p161_p3 = scmp.lt.s32.totalorder (!%p138_p2), %s3491_s13, 1  ;;  %vm671_vm0 = vcmask (!%p138_p2), 1042432   ;;  %vm672_vm1 = vcmask (!%p138_p2), 1046532   ;;  %s4067_s18 = smov (!%p138_p2), 9   ;;  %vm220_vm3 = vsmask.f32 (!%p138_p2), 3328 }
   0x6   : > { %141 = sbr.rel (%p138_p2) target bundleno = 679 (0x2a7), region = 32  ;;  %vm4141_vm2 = vmor (!%p138_p2), %vm671_vm0, %vm672_vm1  ;;  %vm221_vm4 = vsmask.f32 (!%p138_p2), 7440  ;;  %s4068_s19 = smov (!%p138_p2), 6   ;;  %vm2740_vm6 = vcmask (!%p138_p2), 23552   ;;  %vm2789_vm7 = vcmask (!%p138_p2), 48128  }
   0x7   : > { %vm4199_vm5 = vmor (!%p138_p2), %vm220_vm3, %vm221_vm4  ;;  %s4069_s20 = smov (!%p138_p2), 3   ;;  %s4070_s21 = smov (!%p138_p2), 12   ;;  %vm2822_vm8 = vcmask (!%p138_p2), 72704   ;;  %vm2855_vm9 = vcmask (!%p138_p2), 97280   ;;  %vm2888_vm10 = vcmask (!%p138_p2), 121856   ;;  %vm2921_vm11 = vcmask (!%p138_p2), 146432  }
   0x8   : > { %s4071_s22 = smov (!%p138_p2), 15   ;;  %s4072_s23 = smov (!%p138_p2), 18   ;;  %vm2954_vm12 = vcmask (!%p138_p2), 171008   ;;  %vm2987_vm13 = vcmask (!%p138_p2), 195584   ;;  %vm3042_vm14 = vcmask (!%p138_p2), 220160   ;;  %vm3075_vm15 = vcmask (!%p138_p2), 1044480  }
   0x9   : > { %s4073_s24 = smov (!%p138_p2), 21   ;;  %s4074_s25 = smov (!%p138_p2), 24   ;;  %vm3076_vm0 = vcmask (!%p138_p2), 1045504   ;;  %vm3403_vm1 = vcmask (!%p138_p2), 125952  }
   0xd   : > { %s6012_s13 = smov (!%p161_p3, %s3491_s13), 1 }
   0xe   : > { %s3963_s14 = smul.u32 216, %s6012_s13  ;;  %s3872_s5 = sshll.u32 %s6012_s13, 7 }
   0xf   : > { %s5904_s8 = scalar_lea.vmem %s6006_s3, %s3872_s5 }
  0x10   : > { %s4110_s17 = scalar_lea.vmem %s6003_s0, %s3963_s14 }
  0x11   : > { %v3531_v0 = vld [vmem:[%s4110_s17 + $0x6c] sm:$0xf]  ;;  %v4114_v1 = vld [vmem:[%s4110_s17 + $0x70] sm:$0xf]  ;;  %v4127_v12 = vld [vmem:[%s4110_s17 + $0x64] sm:$0xf] }
  0x12   : > { %v3515_v2 = vld [vmem:[%s4110_s17 + $0xc] sm:$0xf]  ;;  %v1037_v3 = vshll.u32 %v4114_v1, 16  ;;  %v1041_v4 = vshrl.u32 %v4114_v1, 16  ;;  %v3731_v5 = vcombine.low %v3531_v0, %v4114_v1  ;;  %v1028_v6 = vshrl.u32 %v3531_v0, 16 }
  0x13   : > { %v4121_v7 = vld [vmem:[%s4110_s17 + $0x10] sm:$0xf]  ;;  %v1031_v8 = vshll.u32 %v3531_v0, 16  ;;  %v836_v15 = vshrl.u32 %v3515_v2, 16  ;;  %v839_v16 = vshll.u32 %v3515_v2, 16  ;;  %v732_v22 = vrot.slane %v4127_v12, 5 }
  0x14   : > { %v845_v9 = vshll.u32 %v4121_v7, 16  ;;  %v849_v10 = vshrl.u32 %v4121_v7, 16  ;;  %v3723_v11 = vcombine.low %v3515_v2, %v4121_v7  ;;  %v4129_v13 = vrot.slane %v1041_v4, 4  ;;  %2308 = vrot.lane.b32.xlu1 %v3731_v5, %s4067_s18  ;;  %v4133_v17 = vld [vmem:[%s4110_s17 + $0x68] sm:$0x1] }
  0x15   : > { %v1030_v14 = vrot.slane %v1028_v6, 4  ;;  %v1033_v18 = vrot.slane %v1031_v8, 5  ;;  %v615_v20 = vld [vmem:[%s4110_s17 + $0x60] sm:$0xe]  ;;  %v735_v23 = vrot.slane %v4133_v17, 5  ;;  %v838_v24 = vrot.slane %v836_v15, 4 }
  0x16   : > { %v4135_v19 = vrot.slane %v849_v10, 4  ;;  %2292 = vrot.lane.b32.xlu0 %v3723_v11, %s4067_s18  ;;  %v841_v25 = vrot.slane %v839_v16, 5  ;;  %v3507_v26 = vrot.slane %v615_v20, 9  ;;  %v4148_v27 = vld [vmem:[%s4110_s17 + $0x4] sm:$0xf]  ;;  %v425_v28 = vshll.u32 %v4127_v12, 16 }
  0x17   : > { %v1034_v29 = vor.u32 %v1033_v18, %v1030_v14  ;;  %v734_v30 = vrot.slane %v732_v22, 4  ;;  %v4152_v31 = vld [vmem:[%s4110_s17 + $0x8] sm:$0x1]  ;;  %v607_v32 = vld [vmem:[%s4110_s17] sm:$0xe]  ;;  %v676_v33 = vrot.slane %v4148_v27, 5 }
  0x18   : > { %v842_v34 = vor.u32 %v841_v25, %v838_v24  ;;  %v733_v35 = vsel %vm4141_vm2, %v3507_v26, %v732_v22  ;;  %v3499_v36 = vrot.slane %v607_v32, 9  ;;  %v679_v37 = vrot.slane %v4152_v31, 5  ;;  %v4160_v38 = vld [vmem:[%s4110_s17 + $0x70] sm:$0xf]  ;;  %v4163_v39 = vld [vmem:[%s4110_s17 + $0x74] sm:$0x1] }
  0x19   : > { %v4165_v40 = vrot.slane %v1034_v29, 4  ;;  %v736_v41 = vsel %vm4141_vm2, %v734_v30, %v735_v23  ;;  %v678_v42 = vrot.slane %v676_v33, 4  ;;  %v616_v43 = vld [vmem:[%s4110_s17 + $0x6c] sm:$0xe]  ;;  %v739_v44 = vrot.slane %v4160_v38, 5 }
  0x1a   : > { %v4171_v45 = vrot.slane %v842_v34, 4  ;;  %v3715_v46 = vcombine.low %v733_v35, %v736_v41  ;;  %v677_v47 = vsel %vm4141_vm2, %v3499_v36, %v676_v33  ;;  %v3508_v48 = vrot.slane %v616_v43, 9  ;;  %v175_v49 = vld [vmem:[%s4110_s17 + $0x10] sm:$0xf]  ;;  %v205_v50 = vld [vmem:[%s4110_s17 + $0x14] sm:$0x1] }
  0x1b   : > { %v680_v51 = vsel %vm4141_vm2, %v678_v42, %v679_v37  ;;  %v741_v52 = vrot.slane %v739_v44, 4  ;;  %v742_v53 = vrot.slane %v4163_v39, 5  ;;  %v608_v54 = vld [vmem:[%s4110_s17 + $0xc] sm:$0xe]  ;;  %v683_v55 = vrot.slane %v175_v49, 5 }
  0x1c   : > { %2212 = vrot.lane.b32.xlu1 %v3715_v46, %s4068_s19  ;;  %v3707_v56 = vcombine.low %v677_v47, %v680_v51  ;;  %v740_v57 = vsel %vm4141_vm2, %v3508_v48, %v739_v44  ;;  %v3500_v58 = vrot.slane %v608_v54, 9  ;;  %v686_v59 = vrot.slane %v205_v50, 5  ;;  %v174_v60 = vld [vmem:[%s4110_s17 + $0xc] sm:$0xf]  ;;  %v172_v2 = vld [vmem:[%s4110_s17] sm:$0xf] }
  0x1d   : > { %v743_v61 = vsel %vm4141_vm2, %v741_v52, %v742_v53  ;;  %v685_v62 = vrot.slane %v683_v55, 4  ;;  %v248_v63 = vshrl.u32 %v174_v60, 16  ;;  %v251_v0 = vshll.u32 %v174_v60, 16  ;;  %v190_v23 = vld [vmem:[%s4110_s17 + $0x6c] sm:$0xf] }
  0x1e   : > { %2196 = vrot.lane.b32.xlu0 %v3707_v56, %s4068_s19  ;;  %v3716_v4 = vcombine.low %v740_v57, %v743_v61  ;;  %v684_v5 = vsel %vm4141_vm2, %v3500_v58, %v683_v55  ;;  %v257_v6 = vshll.u32 %v175_v49, 16  ;;  %v261_v8 = vshrl.u32 %v175_v49, 16  ;;  %v188_v52 = vld [vmem:[%s4110_s17 + $0x60] sm:$0xf] }
  0x1f   : > { %v687_v10 = vsel %vm4141_vm2, %v685_v62, %v686_v59  ;;  %v250_v11 = vrot.slane %v248_v63, 4  ;;  %v253_v14 = vrot.slane %v251_v0, 5  ;;  %v267_v15 = vshll.u32 %v205_v50, 16 }
  0x20   : > { %2214 = vrot.lane.b32.xlu1 %v3716_v4, %s4068_s19  ;;  %v3708_v16 = vcombine.low %v684_v5, %v687_v10  ;;  %v259_v18 = vrot.slane %v257_v6, 5  ;;  %v263_v20 = vrot.slane %v261_v8, 4  ;;  %v224_v22 = vshrl.u32 %v172_v2, 16  ;;  %v3533_v4 = vld [vmem:[%s4110_s17 + $0x78] sm:$0xf] }
  0x21   : > { %v254_v24 = vor.u32 %v253_v14, %v250_v11  ;;  %v269_v25 = vrot.slane %v267_v15, 5  ;;  %v227_v26 = vshll.u32 %v172_v2, 16  ;;  %v233_v29 = vshll.u32 %v4148_v27, 16  ;;  %v4222_v10 = vld [vmem:[%s4110_s17 + $0x7c] sm:$0xf] }
  0x22   : > { %2198 = vrot.lane.b32.xlu0 %v3708_v16, %s4068_s19  ;;  %v264_v32 = vor.u32 %v263_v20, %v259_v18  ;;  %v226_v33 = vrot.slane %v224_v22, 4  ;;  %v237_v34 = vshrl.u32 %v4148_v27, 16  ;;  %v243_v35 = vshll.u32 %v4152_v31, 16 }
  0x23   : > { %v255_v36 = vrot.slane %v254_v24, 4  ;;  %v229_v37 = vrot.slane %v227_v26, 5  ;;  %v235_v41 = vrot.slane %v233_v29, 5  ;;  %v440_v42 = vshrl.u32 %v190_v23, 16 }
  0x24   : > { %v265_v43 = vrot.slane %v264_v32, 4  ;;  %v239_v44 = vrot.slane %v237_v34, 4  ;;  %v245_v46 = vrot.slane %v243_v35, 5  ;;  %v443_v47 = vshll.u32 %v190_v23, 16  ;;  %v4229_v23 = vld [vmem:[%s4110_s17 + $0x18] sm:$0xf] }
  0x25   : > { %v260_v48 = vsel %vm4199_vm5, %v255_v36, %v259_v18  ;;  %v230_v49 = vor.u32 %v229_v37, %v226_v33  ;;  %v442_v50 = vrot.slane %v440_v42, 4  ;;  %v449_v51 = vshll.u32 %v4160_v38, 16  ;;  %v4240_v35 = vld [vmem:[%s4110_s17 + $0x74] sm:$0x1] }
  0x26   : > { %v270_v27 = vsel %vm4199_vm5, %v265_v43, %v269_v25  ;;  %v240_v31 = vor.u32 %v239_v44, %v235_v41  ;;  %v445_v53 = vrot.slane %v443_v47, 5  ;;  %v453_v54 = vshrl.u32 %v4160_v38, 16 }
  0x27   : > { %v3692_v55 = vcombine.low %v260_v48, %v270_v27  ;;  %v231_v56 = vrot.slane %v230_v49, 4  ;;  %v451_v57 = vrot.slane %v449_v51, 5  ;;  %v459_v58 = vshll.u32 %v4163_v39, 16  ;;  %v4250_v48 = vld [vmem:[%s4110_s17 + $0x14] sm:$0x1] }
  0x28   : > { %v241_v59 = vrot.slane %v240_v31, 4  ;;  %v446_v60 = vor.u32 %v445_v53, %v442_v50  ;;  %v455_v61 = vrot.slane %v453_v54, 4  ;;  %v416_v62 = vshrl.u32 %v188_v52, 16 }
  0x29   : > { %2118 = vrot.lane.b32.xlu1 %v3692_v55, %s4069_s20  ;;  %v236_v63 = vsel %vm4199_vm5, %v231_v56, %v235_v41  ;;  %v461_v0 = vrot.slane %v459_v58, 5  ;;  %v419_v2 = vshll.u32 %v188_v52, 16  ;;  %v427_v38 = vrot.slane %v425_v28, 5 }
  0x2a   : > { %v246_v39 = vsel %vm4199_vm5, %v241_v59, %v245_v46  ;;  %v447_v5 = vrot.slane %v446_v60, 4  ;;  %v456_v6 = vor.u32 %v455_v61, %v451_v57  ;;  %v418_v8 = vrot.slane %v416_v62, 4 }
  0x2b   : > { %v3691_v11 = vcombine.low %v236_v63, %v246_v39  ;;  %v421_v14 = vrot.slane %v419_v2, 5  ;;  %v429_v15 = vshrl.u32 %v4127_v12, 16  ;;  %v435_v16 = vshll.u32 %v4133_v17, 16  ;;  %v4234_v12 = vld [vmem:[%s4110_s17 + $0x1c] sm:$0xf] }
  0x2c   : > { %v452_v28 = vsel %vm4199_vm5, %v447_v5, %v451_v57  ;;  %v457_v18 = vrot.slane %v456_v6, 4  ;;  %v1052_v20 = vshrl.u32 %v3533_v4, 16  ;;  %v1055_v22 = vshll.u32 %v3533_v4, 16  ;;  %v4266_v57 = vld [vmem:[%s4110_s17 + $0x80] sm:$0x1] }
  0x2d   : > { %2116 = vrot.lane.b32.xlu0 %v3691_v11, %s4069_s20  ;;  %v422_v24 = vor.u32 %v421_v14, %v418_v8  ;;  %v431_v25 = vrot.slane %v429_v15, 4  ;;  %v437_v26 = vrot.slane %v435_v16, 5  ;;  %v1065_v29 = vshrl.u32 %v4222_v10, 16  ;;  %v3571_v8 = vld [vmem:[%s4110_s17 + $0x6c] sm:$0xe] }
  0x2e   : > { %v462_v17 = vsel %vm4199_vm5, %v457_v18, %v461_v0  ;;  %v1054_v32 = vrot.slane %v1052_v20, 4  ;;  %v1057_v33 = vrot.slane %v1055_v22, 5  ;;  %v3732_v34 = vcombine.low %v3533_v4, %v4222_v10  ;;  %v4275_v0 = vld [vmem:[%s4110_s17 + $0x20] sm:$0x1] }
  0x2f   : > { %v3700_v36 = vcombine.low %v452_v28, %v462_v17  ;;  %v423_v37 = vrot.slane %v422_v24, 4  ;;  %v432_v41 = vor.u32 %v431_v25, %v427_v38  ;;  %v860_v42 = vshrl.u32 %v4229_v23, 16  ;;  %v3563_v28 = vld [vmem:[%s4110_s17 + $0xc] sm:$0xe]  ;;  %v3572_v17 = vld [vmem:[%s4110_s17 + $0x78] sm:$0xe] }
  0x30   : > { %v863_v43 = vshll.u32 %v4229_v23, 16  ;;  %v873_v44 = vshrl.u32 %v4234_v12, 16  ;;  %v3724_v46 = vcombine.low %v4229_v23, %v4234_v12  ;;  %v1039_v47 = vrot.slane %v1037_v3, 5 }
  0x31   : > { %2134 = vrot.lane.b32.xlu1 %v3700_v36, %s4069_s20  ;;  %v428_v49 = vsel %vm4199_vm5, %v423_v37, %v427_v38  ;;  %v433_v50 = vrot.slane %v432_v41, 4  ;;  %v862_v51 = vrot.slane %v860_v42, 4  ;;  %v1047_v52 = vshll.u32 %v4240_v35, 16 }
  0x32   : > { %v865_v27 = vrot.slane %v863_v43, 5  ;;  %v1040_v31 = vsel %vm4199_vm5, %v4165_v40, %v1039_v47  ;;  %v1044_v53 = vor.u32 %v4129_v13, %v1039_v47  ;;  %v847_v3 = vrot.slane %v845_v9, 5  ;;  %v3564_v47 = vld [vmem:[%s4110_s17 + $0x18] sm:$0xe] }
  0x33   : > { %v438_v54 = vsel %vm4199_vm5, %v433_v50, %v437_v26  ;;  %v1049_v55 = vrot.slane %v1047_v52, 5  ;;  %v855_v56 = vshll.u32 %v4250_v48, 16  ;;  %v1058_v58 = vor.u32 %v1057_v33, %v1054_v32 }
  0x34   : > { %v3699_v59 = vcombine.low %v428_v49, %v438_v54  ;;  %v1045_v60 = vrot.slane %v1044_v53, 4  ;;  %v848_v40 = vsel %vm4199_vm5, %v4171_v45, %v847_v3  ;;  %v852_v13 = vor.u32 %v4135_v19, %v847_v3  ;;  %v4317_v53 = vld [vmem:[%s4110_s17 + $0x7c] sm:$0xf] }
  0x35   : > { %2310 = vrot.lane.b32.xlu1 %v3732_v34, %s4067_s18  ;;  %v857_v9 = vrot.slane %v855_v56, 5  ;;  %v1059_v61 = vrot.slane %v1058_v58, 4  ;;  %v1061_v62 = vshll.u32 %v4222_v10, 16  ;;  %v1067_v63 = vrot.slane %v1065_v29, 4  ;;  %v4324_v58 = vld [vmem:[%s4110_s17 + $0x18] sm:$0xf] }
  0x36   : > { %2132 = vrot.lane.b32.xlu0 %v3699_v59, %s4069_s20  ;;  %v1050_v2 = vsel %vm4199_vm5, %v1045_v60, %v1049_v55  ;;  %v853_v38 = vrot.slane %v852_v13, 4  ;;  %v1071_v45 = vshll.u32 %v4266_v57, 16  ;;  %v866_v19 = vor.u32 %v865_v27, %v862_v51  ;;  %v4310_v51 = vld [vmem:[%s4110_s17 + $0x78] sm:$0xf] }
  0x37   : > { %v3747_v4 = vcombine.low %v1040_v31, %v1050_v2  ;;  %v1063_v39 = vrot.slane %v1061_v62, 5  ;;  %v869_v5 = vshll.u32 %v4234_v12, 16  ;;  %v875_v6 = vrot.slane %v873_v44, 4 }
  0x38   : > { %v858_v11 = vsel %vm4199_vm5, %v853_v38, %v857_v9  ;;  %v1073_v14 = vrot.slane %v1071_v45, 5  ;;  %v867_v15 = vrot.slane %v866_v19, 4  ;;  %v879_v16 = vshll.u32 %v4275_v0, 16  ;;  %v4330_v9 = vld [vmem:[%s4110_s17 + $0x1c] sm:$0xf] }
  0x39   : > { %2388 = vrot.lane.b32.xlu1 %v3747_v4, %s4070_s21  ;;  %v3739_v18 = vcombine.low %v848_v40, %v858_v11  ;;  %v1064_v20 = vsel %vm4199_vm5, %v1059_v61, %v1063_v39  ;;  %v1068_v22 = vor.u32 %v1067_v63, %v1063_v39  ;;  %v871_v23 = vrot.slane %v869_v5, 5  ;;  %v4345_v19 = vld [vmem:[%s4110_s17 + $0x88] sm:$0xf] }
  0x3a   : > { %2294 = vrot.lane.b32.xlu0 %v3724_v46, %s4067_s18  ;;  %v881_v24 = vrot.slane %v879_v16, 5  ;;  %v3587_v25 = vrot.slane %v3571_v8, 9  ;;  %v1341_v26 = vrot.slane %v4114_v1, 5  ;;  %v1344_v29 = vrot.slane %v4240_v35, 5  ;;  %v4352_v8 = vld [vmem:[%s4110_s17 + $0x24] sm:$0xf] }
  0x3b   : > { %v1069_v32 = vrot.slane %v1068_v22, 4  ;;  %v872_v33 = vsel %vm4199_vm5, %v867_v15, %v871_v23  ;;  %v876_v34 = vor.u32 %v875_v6, %v871_v23  ;;  %v3579_v36 = vrot.slane %v3563_v28, 9  ;;  %v4361_v28 = vld [vmem:[%s4110_s17 + $0x28] sm:$0xf] }
  0x3c   : > { %v1342_v37 = vsel %vm4141_vm2, %v3587_v25, %v1341_v26  ;;  %v1343_v41 = vrot.slane %v1341_v26, 4  ;;  %v1285_v42 = vrot.slane %v4121_v7, 5  ;;  %v1288_v43 = vrot.slane %v4250_v48, 5 }
  0x3d   : > { %v1074_v1 = vsel %vm4199_vm5, %v1069_v32, %v1073_v14  ;;  %v877_v35 = vrot.slane %v876_v34, 4  ;;  %v3588_v44 = vrot.slane %v3572_v17, 9  ;;  %v1348_v46 = vrot.slane %v4222_v10, 5 }
  0x3e   : > { %2372 = vrot.lane.b32.xlu0 %v3739_v18, %s4070_s21  ;;  %v3748_v49 = vcombine.low %v1064_v20, %v1074_v1  ;;  %v1345_v50 = vsel %vm4141_vm2, %v1343_v41, %v1344_v29  ;;  %v1286_v7 = vsel %vm4141_vm2, %v3579_v36, %v1285_v42  ;;  %v1287_v48 = vrot.slane %v1285_v42, 4 }
  0x3f   : > { %v882_v52 = vsel %vm4199_vm5, %v877_v35, %v881_v24  ;;  %v3763_v27 = vcombine.low %v1342_v37, %v1345_v50  ;;  %v1349_v10 = vsel %vm4141_vm2, %v3588_v44, %v1348_v46  ;;  %v1350_v31 = vrot.slane %v1348_v46, 4  ;;  %v4366_v24 = vld [vmem:[%s4110_s17 + $0x80] sm:$0x1] }
  0x40   : > { %2390 = vrot.lane.b32.xlu1 %v3748_v49, %s4070_s21  ;;  %v3740_v3 = vcombine.low %v872_v33, %v882_v52  ;;  %v1289_v54 = vsel %vm4141_vm2, %v1287_v48, %v1288_v43  ;;  %v1351_v55 = vrot.slane %v4266_v57, 5  ;;  %v3580_v56 = vrot.slane %v3564_v47, 9  ;;  %v4377_v37 = vld [vmem:[%s4110_s17 + $0x20] sm:$0x1] }
  0x41   : > { %v3755_v59 = vcombine.low %v1286_v7, %v1289_v54  ;;  %v1292_v60 = vrot.slane %v4234_v12, 5  ;;  %v1295_v40 = vrot.slane %v4275_v0, 5  ;;  %v1637_v13 = vshrl.u32 %v4310_v51, 16  ;;  %v4340_v12 = vld [vmem:[%s4110_s17 + $0x84] sm:$0xf] }
  0x42   : > { %2374 = vrot.lane.b32.xlu0 %v3740_v3, %s4070_s21  ;;  %v1352_v61 = vsel %vm4141_vm2, %v1350_v31, %v1351_v55  ;;  %v1640_v57 = vshll.u32 %v4310_v51, 16  ;;  %v1650_v62 = vshrl.u32 %v4317_v53, 16  ;;  %v3779_v63 = vcombine.low %v4310_v51, %v4317_v53 }
  0x43   : > { %v3764_v0 = vcombine.low %v1349_v10, %v1352_v61  ;;  %v1293_v2 = vsel %vm4141_vm2, %v3580_v56, %v1292_v60  ;;  %v1294_v38 = vrot.slane %v1292_v60, 4  ;;  %v1639_v45 = vrot.slane %v1637_v13, 4 }
  0x44   : > { %2468 = vrot.lane.b32.xlu1 %v3763_v27, %s4071_s22  ;;  %v1642_v4 = vrot.slane %v1640_v57, 5  ;;  %v1445_v39 = vshrl.u32 %v4324_v58, 16  ;;  %v1448_v5 = vshll.u32 %v4324_v58, 16  ;;  %v1458_v6 = vshrl.u32 %v4330_v9, 16  ;;  %v4386_v27 = vld [vmem:[%s4110_s17 + $0x8c] sm:$0x1] }
  0x45   : > { %v1296_v11 = vsel %vm4141_vm2, %v1294_v38, %v1295_v40  ;;  %v3771_v14 = vcombine.low %v4324_v58, %v4330_v9  ;;  %v1661_v15 = vshrl.u32 %v4340_v12, 16  ;;  %v1664_v16 = vshll.u32 %v4340_v12, 16  ;;  %v4396_v57 = vld [vmem:[%s4110_s17 + $0x2c] sm:$0x1] }
  0x46   : > { %2452 = vrot.lane.b32.xlu0 %v3755_v59, %s4071_s22  ;;  %v3756_v18 = vcombine.low %v1293_v2, %v1296_v11  ;;  %v1447_v20 = vrot.slane %v1445_v39, 4  ;;  %v1450_v22 = vrot.slane %v1448_v5, 5  ;;  %v1674_v23 = vshrl.u32 %v4345_v19, 16 }
  0x47   : > { %v1663_v25 = vrot.slane %v1661_v15, 4  ;;  %v1666_v26 = vrot.slane %v1664_v16, 5  ;;  %v3780_v29 = vcombine.low %v4340_v12, %v4345_v19  ;;  %v1469_v17 = vshrl.u32 %v4352_v8, 16  ;;  %v3643_v16 = vld [vmem:[%s4110_s17 + $0x18] sm:$0xe] }
  0x48   : > { %2470 = vrot.lane.b32.xlu1 %v3764_v0, %s4071_s22  ;;  %v1472_v32 = vshll.u32 %v4352_v8, 16  ;;  %v1482_v33 = vshrl.u32 %v4361_v28, 16  ;;  %v3772_v34 = vcombine.low %v4352_v8, %v4361_v28  ;;  %v1643_v36 = vor.u32 %v1642_v4, %v1639_v45  ;;  %v3651_v45 = vld [vmem:[%s4110_s17 + $0x78] sm:$0xe] }
  0x49   : > { %v1471_v41 = vrot.slane %v1469_v17, 4  ;;  %v1646_v42 = vshll.u32 %v4317_v53, 16  ;;  %v1652_v43 = vrot.slane %v1650_v62, 4  ;;  %v1656_v1 = vshll.u32 %v4366_v24, 16 }
  0x4a   : > { %2454 = vrot.lane.b32.xlu0 %v3756_v18, %s4071_s22  ;;  %v1474_v35 = vrot.slane %v1472_v32, 5  ;;  %v1644_v44 = vrot.slane %v1643_v36, 4  ;;  %v1451_v46 = vor.u32 %v1450_v22, %v1447_v20  ;;  %v1454_v47 = vshll.u32 %v4330_v9, 16 }
  0x4b   : > { %v1648_v49 = vrot.slane %v1646_v42, 5  ;;  %v1658_v50 = vrot.slane %v1656_v1, 5  ;;  %v1460_v7 = vrot.slane %v1458_v6, 4  ;;  %v1464_v48 = vshll.u32 %v4377_v37, 16  ;;  %v4420_v42 = vld [vmem:[%s4110_s17 + $0x7c] sm:$0xf] }
  0x4c   : > { %2564 = vrot.lane.b32.xlu1 %v3779_v63, %s4072_s23  ;;  %v1452_v51 = vrot.slane %v1451_v46, 4  ;;  %v1456_v52 = vrot.slane %v1454_v47, 5  ;;  %v1667_v10 = vor.u32 %v1666_v26, %v1663_v25  ;;  %v1670_v31 = vshll.u32 %v4345_v19, 16  ;;  %v192_v25 = vld [vmem:[%s4110_s17 + $0x78] sm:$0xf] }
  0x4d   : > { %v1649_v3 = vsel %vm4199_vm5, %v1644_v44, %v1648_v49  ;;  %v1653_v54 = vor.u32 %v1652_v43, %v1648_v49  ;;  %v1466_v55 = vrot.slane %v1464_v48, 5  ;;  %v1676_v56 = vrot.slane %v1674_v23, 4  ;;  %v4431_v46 = vld [vmem:[%s4110_s17 + $0x80] sm:$0x1]  ;;  %v176_v49 = vld [vmem:[%s4110_s17 + $0x18] sm:$0xf] }
  0x4e   : > { %2548 = vrot.lane.b32.xlu0 %v3771_v14, %s4072_s23  ;;  %v1457_v58 = vsel %vm4199_vm5, %v1452_v51, %v1456_v52  ;;  %v1461_v59 = vor.u32 %v1460_v7, %v1456_v52  ;;  %v1668_v60 = vrot.slane %v1667_v10, 4  ;;  %v1672_v40 = vrot.slane %v1670_v31, 5  ;;  %v4439_v51 = vld [vmem:[%s4110_s17 + $0x1c] sm:$0xf] }
  0x4f   : > { %v1654_v13 = vrot.slane %v1653_v54, 4  ;;  %v1680_v61 = vshll.u32 %v4386_v27, 16  ;;  %v1475_v62 = vor.u32 %v1474_v35, %v1471_v41  ;;  %v1478_v63 = vshll.u32 %v4361_v28, 16  ;;  %v4445_v54 = vld [vmem:[%s4110_s17 + $0x20] sm:$0x1] }
  0x50   : > { %2566 = vrot.lane.b32.xlu1 %v3780_v29, %s4072_s23  ;;  %v1462_v12 = vrot.slane %v1461_v59, 4  ;;  %v1673_v0 = vsel %vm4199_vm5, %v1668_v60, %v1672_v40  ;;  %v1677_v2 = vor.u32 %v1676_v56, %v1672_v40  ;;  %v1484_v38 = vrot.slane %v1482_v33, 4 }
  0x51   : > { %v1659_v4 = vsel %vm4199_vm5, %v1654_v13, %v1658_v50  ;;  %v1682_v39 = vrot.slane %v1680_v61, 5  ;;  %v1476_v5 = vrot.slane %v1475_v62, 4  ;;  %v1480_v6 = vrot.slane %v1478_v63, 5  ;;  %v3652_v62 = vld [vmem:[%s4110_s17 + $0x84] sm:$0xe] }
  0x52   : > { %2550 = vrot.lane.b32.xlu0 %v3772_v34, %s4072_s23  ;;  %v3795_v8 = vcombine.low %v1649_v3, %v1659_v4  ;;  %v1467_v11 = vsel %vm4199_vm5, %v1462_v12, %v1466_v55  ;;  %v1678_v14 = vrot.slane %v1677_v2, 4  ;;  %v1488_v15 = vshll.u32 %v4396_v57, 16 }
  0x53   : > { %v3787_v18 = vcombine.low %v1457_v58, %v1467_v11  ;;  %v1481_v20 = vsel %vm4199_vm5, %v1476_v5, %v1480_v6  ;;  %v1485_v22 = vor.u32 %v1484_v38, %v1480_v6  ;;  %v3667_v23 = vrot.slane %v3651_v45, 9  ;;  %v3644_v5 = vld [vmem:[%s4110_s17 + $0x24] sm:$0xe] }
  0x54   : > { %2644 = vrot.lane.b32.xlu1 %v3795_v8, %s4073_s24  ;;  %v1683_v26 = vsel %vm4199_vm5, %v1678_v14, %v1682_v39  ;;  %v1490_v29 = vrot.slane %v1488_v15, 5  ;;  %v1950_v17 = vrot.slane %v4317_v53, 5  ;;  %v1953_v32 = vrot.slane %v4366_v24, 5 }
  0x55   : > { %v3796_v33 = vcombine.low %v1673_v0, %v1683_v26  ;;  %v1486_v34 = vrot.slane %v1485_v22, 4  ;;  %v3659_v36 = vrot.slane %v3643_v16, 9  ;;  %v1894_v41 = vrot.slane %v4330_v9, 5  ;;  %v194_v22 = vld [vmem:[%s4110_s17 + $0x84] sm:$0xf] }
  0x56   : > { %2628 = vrot.lane.b32.xlu0 %v3787_v18, %s4073_s24  ;;  %v1951_v43 = vsel %vm4141_vm2, %v3667_v23, %v1950_v17  ;;  %v1952_v1 = vrot.slane %v1950_v17, 4  ;;  %v1897_v35 = vrot.slane %v4377_v37, 5  ;;  %v464_v53 = vshrl.u32 %v192_v25, 16 }
  0x57   : > { %v1491_v24 = vsel %vm4199_vm5, %v1486_v34, %v1490_v29  ;;  %v1895_v44 = vsel %vm4141_vm2, %v3659_v36, %v1894_v41  ;;  %v1896_v9 = vrot.slane %v1894_v41, 4  ;;  %v467_v47 = vshll.u32 %v192_v25, 16  ;;  %v4468_v34 = vld [vmem:[%s4110_s17 + $0x88] sm:$0xf] }
  0x58   : > { %2646 = vrot.lane.b32.xlu1 %v3796_v33, %s4073_s24  ;;  %v3788_v50 = vcombine.low %v1481_v20, %v1491_v24  ;;  %v1954_v7 = vsel %vm4141_vm2, %v1952_v1, %v1953_v32  ;;  %v466_v37 = vrot.slane %v464_v53, 4  ;;  %v473_v48 = vshll.u32 %v4420_v42, 16  ;;  %v178_v24 = vld [vmem:[%s4110_s17 + $0x24] sm:$0xf] }
  0x59   : > { %v3811_v52 = vcombine.low %v1951_v43, %v1954_v7  ;;  %v1898_v10 = vsel %vm4141_vm2, %v1896_v9, %v1897_v35  ;;  %v469_v31 = vrot.slane %v467_v47, 5  ;;  %v477_v3 = vshrl.u32 %v4420_v42, 16  ;;  %v4473_v43 = vld [vmem:[%s4110_s17 + $0x8c] sm:$0x1] }
  0x5a   : > { %2630 = vrot.lane.b32.xlu0 %v3788_v50, %s4073_s24  ;;  %v3803_v55 = vcombine.low %v1895_v44, %v1898_v10  ;;  %v475_v56 = vrot.slane %v473_v48, 5  ;;  %v483_v58 = vshll.u32 %v4431_v46, 16  ;;  %v272_v59 = vshrl.u32 %v176_v49, 16  ;;  %v4485_v50 = vld [vmem:[%s4110_s17 + $0x28] sm:$0xf] }
  0x5b   : > { %v470_v60 = vor.u32 %v469_v31, %v466_v37  ;;  %v479_v40 = vrot.slane %v477_v3, 4  ;;  %v275_v13 = vshll.u32 %v176_v49, 16  ;;  %v281_v61 = vshll.u32 %v4439_v51, 16  ;;  %v4492_v10 = vld [vmem:[%s4110_s17 + $0x2c] sm:$0x1] }
  0x5c   : > { %2724 = vrot.lane.b32.xlu1 %v3811_v52, %s4074_s25  ;;  %v485_v63 = vrot.slane %v483_v58, 5  ;;  %v274_v12 = vrot.slane %v272_v59, 4  ;;  %v285_v0 = vshrl.u32 %v4439_v51, 16  ;;  %v291_v2 = vshll.u32 %v4445_v54, 16  ;;  %v617_v58 = vld [vmem:[%s4110_s17 + $0x78] sm:$0xe] }
  0x5d   : > { %v471_v38 = vrot.slane %v470_v60, 4  ;;  %v480_v45 = vor.u32 %v479_v40, %v475_v56  ;;  %v277_v4 = vrot.slane %v275_v13, 5  ;;  %v283_v39 = vrot.slane %v281_v61, 5 }
  0x5e   : > { %2708 = vrot.lane.b32.xlu0 %v3803_v55, %s4074_s25  ;;  %v287_v6 = vrot.slane %v285_v0, 4  ;;  %v293_v8 = vrot.slane %v291_v2, 5  ;;  %v3668_v11 = vrot.slane %v3652_v62, 9  ;;  %v1957_v14 = vrot.slane %v4345_v19, 5  ;;  %v609_v0 = vld [vmem:[%s4110_s17 + $0x18] sm:$0xe] }
  0x5f   : > { %v476_v15 = vsel %vm4199_vm5, %v471_v38, %v475_v56  ;;  %v481_v16 = vrot.slane %v480_v45, 4  ;;  %v278_v18 = vor.u32 %v277_v4, %v274_v12  ;;  %v1960_v20 = vrot.slane %v4386_v27, 5 }
  0x60   : > { %v288_v23 = vor.u32 %v287_v6, %v283_v39  ;;  %v1958_v25 = vsel %vm4141_vm2, %v3668_v11, %v1957_v14  ;;  %v1959_v26 = vrot.slane %v1957_v14, 4  ;;  %v3660_v29 = vrot.slane %v3644_v5, 9 }
  0x61   : > { %v486_v17 = vsel %vm4199_vm5, %v481_v16, %v485_v63  ;;  %v279_v19 = vrot.slane %v278_v18, 4  ;;  %v1901_v32 = vrot.slane %v4361_v28, 5  ;;  %v1904_v33 = vrot.slane %v4396_v57, 5 }
  0x62   : > { %v3701_v27 = vcombine.low %v476_v15, %v486_v17  ;;  %v289_v36 = vrot.slane %v288_v23, 4  ;;  %v1961_v41 = vsel %vm4141_vm2, %v1959_v26, %v1960_v20  ;;  %v488_v1 = vshrl.u32 %v194_v22, 16  ;;  %v618_v20 = vld [vmem:[%s4110_s17 + $0x84] sm:$0xe] }
  0x63   : > { %v284_v35 = vsel %vm4199_vm5, %v279_v19, %v283_v39  ;;  %v3812_v53 = vcombine.low %v1958_v25, %v1961_v41  ;;  %v1902_v28 = vsel %vm4141_vm2, %v3660_v29, %v1901_v32  ;;  %v1903_v57 = vrot.slane %v1901_v32, 4  ;;  %v4007_v39 = vld [vmem:[%s6004_s1] sm:$0xff]  }
  0x64   : > { %2136 = vrot.lane.b32.xlu1 %v3701_v27, %s4069_s20  ;;  %v294_v44 = vsel %vm4199_vm5, %v289_v36, %v293_v8  ;;  %v490_v9 = vrot.slane %v488_v1, 4  ;;  %v491_v47 = vshll.u32 %v194_v22, 16  ;;  %v497_v49 = vshll.u32 %v4468_v34, 16  ;;  %3923 = vmatprep.subr.bf16.mxu0 %v4007_v39  ;;  %v610_v19 = vld [vmem:[%s4110_s17 + $0x24] sm:$0xe] }
  0x65   : > { %v3693_v7 = vcombine.low %v284_v35, %v294_v44  ;;  %v1905_v37 = vsel %vm4141_vm2, %v1903_v57, %v1904_v33  ;;  %v501_v48 = vshrl.u32 %v4468_v34, 16  ;;  %v507_v52 = vshll.u32 %v4473_v43, 16  ;;  %3959 = vmatprep.subr.bf16.mxu1 %v4007_v39  ;;  %3924 = vmatpush3.bf16.msra.mxu0 %v4007_v39  ;;  %v4532_v44 = vld [vmem:[%s4110_s17 + $0x88] sm:$0xf] }
  0x66   : > { %v3804_v31 = vcombine.low %v1902_v28, %v1905_v37  ;;  %v493_v3 = vrot.slane %v491_v47, 5  ;;  %v499_v55 = vrot.slane %v497_v49, 5  ;;  %v296_v56 = vshrl.u32 %v178_v24, 16  ;;  %3961 = vmatpush3.bf16.msra.mxu1 %v4007_v39  ;;  %v4539_v37 = vld [vmem:[%s4110_s17 + $0x24] sm:$0xf] }
  0x67   : > { %2120 = vrot.lane.b32.xlu0 %v3693_v7, %s4069_s20  ;;  %v503_v59 = vrot.slane %v501_v48, 4  ;;  %v509_v60 = vrot.slane %v507_v52, 5  ;;  %v299_v40 = vshll.u32 %v178_v24, 16  ;;  %v305_v13 = vshll.u32 %v4485_v50, 16 }
  0x68   : > { %2726 = vrot.lane.b32.xlu1 %v3812_v53, %s4074_s25  ;;  %v494_v61 = vor.u32 %v493_v3, %v490_v9  ;;  %v298_v62 = vrot.slane %v296_v56, 4  ;;  %v309_v63 = vshrl.u32 %v4485_v50, 16  ;;  %v315_v12 = vshll.u32 %v4492_v10, 16  ;;  %v4524_v53 = vld [vmem:[%s4110_s17 + $0x84] sm:$0xf] }
  0x69   : > { %v504_v2 = vor.u32 %v503_v59, %v499_v55  ;;  %v301_v38 = vrot.slane %v299_v40, 5  ;;  %v307_v45 = vrot.slane %v305_v13, 5  ;;  %v3509_v4 = vrot.slane %v617_v58, 9  ;;  %v3537_v40 = vld [vmem:[%s4110_s17 + $0x90] sm:$0xf] }
  0x6a   : > { %v495_v5 = vrot.slane %v494_v61, 4  ;;  %v311_v6 = vrot.slane %v309_v63, 4  ;;  %v317_v8 = vrot.slane %v315_v12, 5  ;;  %v746_v11 = vrot.slane %v4420_v42, 5  ;;  %v4560_v13 = vld [vmem:[%s4110_s17 + $0x94] sm:$0xf] }
  0x6b   : > { %2710 = vrot.lane.b32.xlu0 %v3804_v31, %s4074_s25  ;;  %v505_v14 = vrot.slane %v504_v2, 4  ;;  %v302_v15 = vor.u32 %v301_v38, %v298_v62  ;;  %v749_v16 = vrot.slane %v4431_v46, 5  ;;  %v3501_v18 = vrot.slane %v609_v0, 9  ;;  %v4566_v0 = vld [vmem:[%s4110_s17 + $0x30] sm:$0xf] }
  0x6c   : > { %v500_v22 = vsel %vm4199_vm5, %v495_v5, %v499_v55  ;;  %v312_v23 = vor.u32 %v311_v6, %v307_v45  ;;  %v747_v25 = vsel %vm4141_vm2, %v3509_v4, %v746_v11  ;;  %v748_v26 = vrot.slane %v746_v11, 4  ;;  %v4550_v55 = vld [vmem:[%s4110_s17 + $0x28] sm:$0xf]  ;;  %v4569_v2 = vld [vmem:[%s4110_s17 + $0x34] sm:$0xf] }
  0x6d   : > { %v510_v42 = vsel %vm4199_vm5, %v505_v14, %v509_v60  ;;  %v303_v29 = vrot.slane %v302_v15, 4  ;;  %v690_v46 = vrot.slane %v4439_v51, 5  ;;  %v693_v17 = vrot.slane %v4445_v54, 5 }
  0x6e   : > { %v3702_v32 = vcombine.low %v500_v22, %v510_v42  ;;  %v313_v33 = vrot.slane %v312_v23, 4  ;;  %v750_v27 = vsel %vm4141_vm2, %v748_v26, %v749_v16  ;;  %v3510_v36 = vrot.slane %v618_v20, 9  ;;  %v4582_v20 = vld [vmem:[%s4110_s17 + $0x8c] sm:$0x1] }
  0x6f   : > { %v308_v41 = vsel %vm4199_vm5, %v303_v29, %v307_v45  ;;  %v3717_v1 = vcombine.low %v747_v25, %v750_v27  ;;  %v691_v35 = vsel %vm4141_vm2, %v3501_v18, %v690_v46  ;;  %v692_v51 = vrot.slane %v690_v46, 4  ;;  %v4587_v42 = vld [vmem:[%s4110_s17 + $0x2c] sm:$0x1] }
  0x70   : > { %2138 = vrot.lane.b32.xlu1 %v3702_v32, %s4069_s20  ;;  %v318_v54 = vsel %vm4199_vm5, %v313_v33, %v317_v8  ;;  %v753_v28 = vrot.slane %v4468_v34, 5  ;;  %v756_v57 = vrot.slane %v4473_v43, 5  ;;  %v3502_v24 = vrot.slane %v610_v19, 9 }
  0x71   : > { %v3694_v9 = vcombine.low %v308_v41, %v318_v54  ;;  %v694_v47 = vsel %vm4141_vm2, %v692_v51, %v693_v17  ;;  %v697_v49 = vrot.slane %v4485_v50, 5  ;;  %v700_v7 = vrot.slane %v4492_v10, 5 }
  0x72   : > { %v3709_v48 = vcombine.low %v691_v35, %v694_v47  ;;  %v754_v34 = vsel %vm4141_vm2, %v3510_v36, %v753_v28  ;;  %v755_v43 = vrot.slane %v753_v28, 4  ;;  %v1076_v52 = vshrl.u32 %v4524_v53, 16 }
  0x73   : > { %2122 = vrot.lane.b32.xlu0 %v3694_v9, %s4069_s20  ;;  %v698_v31 = vsel %vm4141_vm2, %v3502_v24, %v697_v49  ;;  %v699_v50 = vrot.slane %v697_v49, 4  ;;  %v1079_v10 = vshll.u32 %v4524_v53, 16  ;;  %v1089_v3 = vshrl.u32 %v4532_v44, 16 }
  0x74   : > { %2216 = vrot.lane.b32.xlu1 %v3717_v1, %s4068_s19  ;;  %v757_v56 = vsel %vm4141_vm2, %v755_v43, %v756_v57  ;;  %v1078_v58 = vrot.slane %v1076_v52, 4  ;;  %v3733_v59 = vcombine.low %v4524_v53, %v4532_v44  ;;  %v884_v60 = vshrl.u32 %v4539_v37, 16  ;;  %v4596_v57 = vld [vmem:[%s4110_s17 + $0x98] sm:$0x1] }
  0x75   : > { %v3718_v61 = vcombine.low %v754_v34, %v757_v56  ;;  %v701_v62 = vsel %vm4141_vm2, %v699_v50, %v700_v7  ;;  %v1081_v63 = vrot.slane %v1079_v10, 5  ;;  %v887_v12 = vshll.u32 %v4539_v37, 16  ;;  %v4607_v50 = vld [vmem:[%s4110_s17 + $0x38] sm:$0x1] }
  0x76   : > { %v3710_v38 = vcombine.low %v698_v31, %v701_v62  ;;  %v886_v45 = vrot.slane %v884_v60, 4  ;;  %v897_v4 = vshrl.u32 %v4550_v55, 16  ;;  %v3725_v39 = vcombine.low %v4539_v37, %v4550_v55 }
  0x77   : > { %2200 = vrot.lane.b32.xlu0 %v3709_v48, %s4068_s19  ;;  %v889_v5 = vrot.slane %v887_v12, 5  ;;  %v1100_v6 = vshrl.u32 %v3537_v40, 16  ;;  %v1103_v8 = vshll.u32 %v3537_v40, 16  ;;  %v1113_v11 = vshrl.u32 %v4560_v13, 16 }
  0x78   : > { %2218 = vrot.lane.b32.xlu1 %v3718_v61, %s4068_s19  ;;  %v3734_v14 = vcombine.low %v3537_v40, %v4560_v13  ;;  %v908_v15 = vshrl.u32 %v4566_v0, 16  ;;  %v911_v16 = vshll.u32 %v4566_v0, 16  ;;  %v921_v18 = vshrl.u32 %v4569_v2, 16  ;;  %v3573_v40 = vld [vmem:[%s4110_s17 + $0x84] sm:$0xe] }
  0x79   : > { %v1102_v22 = vrot.slane %v1100_v6, 4  ;;  %v1105_v23 = vrot.slane %v1103_v8, 5  ;;  %v3726_v25 = vcombine.low %v4566_v0, %v4569_v2  ;;  %v1082_v26 = vor.u32 %v1081_v63, %v1078_v58 }
  0x7a   : > { %v910_v29 = vrot.slane %v908_v15, 4  ;;  %v913_v46 = vrot.slane %v911_v16, 5  ;;  %v1085_v17 = vshll.u32 %v4532_v44, 16  ;;  %v1091_v19 = vrot.slane %v1089_v3, 4 }
  0x7b   : > { %2202 = vrot.lane.b32.xlu0 %v3710_v38, %s4068_s19  ;;  %v1083_v32 = vrot.slane %v1082_v26, 4  ;;  %v1095_v33 = vshll.u32 %v4582_v20, 16  ;;  %v890_v27 = vor.u32 %v889_v5, %v886_v45  ;;  %v893_v36 = vshll.u32 %v4550_v55, 16 }
  0x7c   : > { %2312 = vrot.lane.b32.xlu1 %v3733_v59, %s4067_s18  ;;  %v1087_v41 = vrot.slane %v1085_v17, 5  ;;  %v899_v1 = vrot.slane %v897_v4, 4  ;;  %v903_v35 = vshll.u32 %v4587_v42, 16  ;;  %v1106_v51 = vor.u32 %v1105_v23, %v1102_v22 }
  0x7d   : > { %v1097_v53 = vrot.slane %v1095_v33, 5  ;;  %v891_v54 = vrot.slane %v890_v27, 4  ;;  %v895_v28 = vrot.slane %v893_v36, 5  ;;  %v1109_v24 = vshll.u32 %v4560_v13, 16  ;;  %v4640_v36 = vld [vmem:[%s4110_s17 + $0x90] sm:$0xf] }
  0x7e   : > { %v1088_v9 = vsel %vm4199_vm5, %v1083_v32, %v1087_v41  ;;  %v1092_v47 = vor.u32 %v1091_v19, %v1087_v41  ;;  %v905_v49 = vrot.slane %v903_v35, 5  ;;  %v1107_v7 = vrot.slane %v1106_v51, 4  ;;  %v4647_v51 = vld [vmem:[%s4110_s17 + $0x94] sm:$0xf] }
  0x7f   : > { %2296 = vrot.lane.b32.xlu0 %v3725_v39, %s4067_s18  ;;  %v896_v37 = vsel %vm4199_vm5, %v891_v54, %v895_v28  ;;  %v900_v48 = vor.u32 %v899_v1, %v895_v28  ;;  %v1111_v34 = vrot.slane %v1109_v24, 5  ;;  %v1115_v43 = vrot.slane %v1113_v11, 4  ;;  %v3565_v39 = vld [vmem:[%s4110_s17 + $0x24] sm:$0xe]  ;;  %v4654_v24 = vld [vmem:[%s4110_s17 + $0x30] sm:$0xf] }
  0x80   : > { %2314 = vrot.lane.b32.xlu1 %v3734_v14, %s4067_s18  ;;  %v1093_v52 = vrot.slane %v1092_v47, 4  ;;  %v1119_v31 = vshll.u32 %v4596_v57, 16  ;;  %v914_v10 = vor.u32 %v913_v46, %v910_v29  ;;  %v917_v3 = vshll.u32 %v4569_v2, 16  ;;  %v3574_v14 = vld [vmem:[%s4110_s17 + $0x90] sm:$0xe] }
  0x81   : > { %v901_v56 = vrot.slane %v900_v48, 4  ;;  %v1112_v58 = vsel %vm4199_vm5, %v1107_v7, %v1111_v34  ;;  %v1116_v59 = vor.u32 %v1115_v43, %v1111_v34  ;;  %v923_v60 = vrot.slane %v921_v18, 4  ;;  %v3566_v46 = vld [vmem:[%s4110_s17 + $0x30] sm:$0xe]  ;;  %v4661_v7 = vld [vmem:[%s4110_s17 + $0x34] sm:$0xf] }
  0x82   : > { %v1098_v61 = vsel %vm4199_vm5, %v1093_v52, %v1097_v53  ;;  %v1121_v62 = vrot.slane %v1119_v31, 5  ;;  %v915_v63 = vrot.slane %v914_v10, 4  ;;  %v919_v12 = vrot.slane %v917_v3, 5 }
  0x83   : > { %2298 = vrot.lane.b32.xlu0 %v3726_v25, %s4067_s18  ;;  %v3749_v0 = vcombine.low %v1088_v9, %v1098_v61  ;;  %v906_v38 = vsel %vm4199_vm5, %v901_v56, %v905_v49  ;;  %v1117_v45 = vrot.slane %v1116_v59, 4  ;;  %v927_v4 = vshll.u32 %v4607_v50, 16  ;;  %v4678_v56 = vld [vmem:[%s4110_s17 + $0xa0] sm:$0xf]  ;;  %v4684_v61 = vld [vmem:[%s4110_s17 + $0x3c] sm:$0xf] }
  0x84   : > { %v3741_v5 = vcombine.low %v896_v37, %v906_v38  ;;  %v920_v6 = vsel %vm4199_vm5, %v915_v63, %v919_v12  ;;  %v924_v8 = vor.u32 %v923_v60, %v919_v12  ;;  %v3589_v11 = vrot.slane %v3573_v40, 9  ;;  %v4694_v38 = vld [vmem:[%s4110_s17 + $0x40] sm:$0xf] }
  0x85   : > { %2392 = vrot.lane.b32.xlu1 %v3749_v0, %s4070_s21  ;;  %v1122_v15 = vsel %vm4199_vm5, %v1117_v45, %v1121_v62  ;;  %v929_v16 = vrot.slane %v927_v4, 5  ;;  %v1355_v18 = vrot.slane %v4532_v44, 5  ;;  %v1358_v22 = vrot.slane %v4582_v20, 5 }
  0x86   : > { %v3750_v23 = vcombine.low %v1112_v58, %v1122_v15  ;;  %v925_v25 = vrot.slane %v924_v8, 4  ;;  %v3581_v26 = vrot.slane %v3565_v39, 9  ;;  %v1299_v29 = vrot.slane %v4550_v55, 5  ;;  %v4663_v37 = vpop.permute.xlu1 %2308 }
  0x87   : > { %2376 = vrot.lane.b32.xlu0 %v3741_v5, %s4070_s21  ;;  %v1356_v17 = vsel %vm4141_vm2, %v3589_v11, %v1355_v18  ;;  %v1357_v19 = vrot.slane %v1355_v18, 4  ;;  %v1302_v32 = vrot.slane %v4587_v42, 5  ;;  %v3590_v33 = vrot.slane %v3574_v14, 9 }
  0x88   : > { %v930_v44 = vsel %vm4199_vm5, %v925_v25, %v929_v16  ;;  %v1300_v20 = vsel %vm4141_vm2, %v3581_v26, %v1299_v29  ;;  %v1301_v27 = vrot.slane %v1299_v29, 4  ;;  %v1362_v55 = vrot.slane %v4560_v13, 5  ;;  %v4700_v8 = vpop.permute.xlu0 %2292  ;;  %v4713_v29 = vld [vmem:[%s4110_s17 + $0x38] sm:$0x1] }
  0x89   : > { %2394 = vrot.lane.b32.xlu1 %v3750_v23, %s4070_s21  ;;  %v3742_v41 = vcombine.low %v920_v6, %v930_v44  ;;  %v1359_v42 = vsel %vm4141_vm2, %v1357_v19, %v1358_v22  ;;  %v1365_v1 = vrot.slane %v4596_v57, 5  ;;  %v3582_v35 = vrot.slane %v3566_v46, 9  ;;  %v4698_v6 = vld [vmem:[%s4110_s17 + $0x98] sm:$0x1] }
  0x8a   : > { %v3765_v53 = vcombine.low %v1356_v17, %v1359_v42  ;;  %v1303_v54 = vsel %vm4141_vm2, %v1301_v27, %v1302_v32  ;;  %v1363_v13 = vsel %vm4141_vm2, %v3590_v33, %v1362_v55  ;;  %v1364_v28 = vrot.slane %v1362_v55, 4 }
  0x8b   : > { %2378 = vrot.lane.b32.xlu0 %v3742_v41, %s4070_s21  ;;  %v3757_v9 = vcombine.low %v1300_v20, %v1303_v54  ;;  %v1306_v57 = vrot.slane %v4569_v2, 5  ;;  %v1309_v47 = vrot.slane %v4607_v50, 5  ;;  %v1685_v49 = vshrl.u32 %v4640_v36, 16  ;;  %v4672_v2 = vld [vmem:[%s4110_s17 + $0x9c] sm:$0xf] }
  0x8c   : > { %v1366_v48 = vsel %vm4141_vm2, %v1364_v28, %v1365_v1  ;;  %v1688_v34 = vshll.u32 %v4640_v36, 16  ;;  %v1698_v43 = vshrl.u32 %v4647_v51, 16  ;;  %v3781_v52 = vcombine.low %v4640_v36, %v4647_v51 }
  0x8d   : > { %2472 = vrot.lane.b32.xlu1 %v3765_v53, %s4071_s22  ;;  %v3766_v31 = vcombine.low %v1363_v13, %v1366_v48  ;;  %v1307_v50 = vsel %vm4141_vm2, %v3582_v35, %v1306_v57  ;;  %v1308_v10 = vrot.slane %v1306_v57, 4  ;;  %v1687_v3 = vrot.slane %v1685_v49, 4  ;;  %v4722_v53 = vld [vmem:[%s4110_s17 + $0xa4] sm:$0x1] }
  0x8e   : > { %v1690_v58 = vrot.slane %v1688_v34, 5  ;;  %v1493_v59 = vshrl.u32 %v4654_v24, 16  ;;  %v1496_v60 = vshll.u32 %v4654_v24, 16  ;;  %v1506_v40 = vshrl.u32 %v4661_v7, 16  ;;  %v4706_v18 = vpop.permute.xlu1 %2212 }
  0x8f   : > { %2456 = vrot.lane.b32.xlu0 %v3757_v9, %s4071_s22  ;;  %v1310_v62 = vsel %vm4141_vm2, %v1308_v10, %v1309_v47  ;;  %v3773_v63 = vcombine.low %v4654_v24, %v4661_v7  ;;  %v1709_v12 = vshrl.u32 %v4672_v2, 16  ;;  %v1712_v0 = vshll.u32 %v4672_v2, 16 }
  0x90   : > { %v3758_v45 = vcombine.low %v1307_v50, %v1310_v62  ;;  %v1495_v4 = vrot.slane %v1493_v59, 4  ;;  %v1498_v39 = vrot.slane %v1496_v60, 5  ;;  %v1722_v5 = vshrl.u32 %v4678_v56, 16  ;;  %v4725_v28 = vpop.permute.xlu0 %2196  ;;  %v4737_v50 = vld [vmem:[%s4110_s17 + $0x44] sm:$0x1] }
  0x91   : > { %2474 = vrot.lane.b32.xlu1 %v3766_v31, %s4071_s22  ;;  %v1711_v11 = vrot.slane %v1709_v12, 4  ;;  %v1714_v14 = vrot.slane %v1712_v0, 5  ;;  %v3782_v15 = vcombine.low %v4672_v2, %v4678_v56  ;;  %v1517_v16 = vshrl.u32 %v4684_v61, 16 }
  0x92   : > { %v1520_v22 = vshll.u32 %v4684_v61, 16  ;;  %v1530_v23 = vshrl.u32 %v4694_v38, 16  ;;  %v3774_v25 = vcombine.low %v4684_v61, %v4694_v38  ;;  %v1691_v26 = vor.u32 %v1690_v58, %v1687_v3  ;;  %v4730_v49 = vpop.permute.xlu1 %2214  ;;  %v3653_v61 = vld [vmem:[%s4110_s17 + $0x90] sm:$0xe] }
  0x93   : > { %2458 = vrot.lane.b32.xlu0 %v3758_v45, %s4071_s22  ;;  %v1519_v46 = vrot.slane %v1517_v16, 4  ;;  %v1694_v17 = vshll.u32 %v4647_v51, 16  ;;  %v1700_v19 = vrot.slane %v1698_v43, 4  ;;  %v1704_v32 = vshll.u32 %v4698_v6, 16 }
  0x94   : > { %v1522_v33 = vrot.slane %v1520_v22, 5  ;;  %v1692_v44 = vrot.slane %v1691_v26, 4  ;;  %v1499_v20 = vor.u32 %v1498_v39, %v1495_v4  ;;  %v1502_v27 = vshll.u32 %v4661_v7, 16 }
  0x95   : > { %2568 = vrot.lane.b32.xlu1 %v3781_v52, %s4072_s23  ;;  %v1696_v55 = vrot.slane %v1694_v17, 5  ;;  %v1706_v36 = vrot.slane %v1704_v32, 5  ;;  %v1508_v41 = vrot.slane %v1506_v40, 4  ;;  %v1512_v42 = vshll.u32 %v4713_v29, 16 }
  0x96   : > { %v1500_v1 = vrot.slane %v1499_v20, 4  ;;  %v1504_v35 = vrot.slane %v1502_v27, 5  ;;  %v1715_v54 = vor.u32 %v1714_v14, %v1711_v11  ;;  %v1718_v13 = vshll.u32 %v4678_v56, 16  ;;  %v3645_v11 = vld [vmem:[%s4110_s17 + $0x30] sm:$0xe]  ;;  %v4750_v14 = vpop.permute.xlu0 %2198 }
  0x97   : > { %2552 = vrot.lane.b32.xlu0 %v3773_v63, %s4072_s23  ;;  %v1697_v24 = vsel %vm4199_vm5, %v1692_v44, %v1696_v55  ;;  %v1701_v9 = vor.u32 %v1700_v19, %v1696_v55  ;;  %v1514_v57 = vrot.slane %v1512_v42, 5  ;;  %v1724_v47 = vrot.slane %v1722_v5, 4  ;;  %v4765_v55 = vld [vmem:[%s4110_s17 + $0x94] sm:$0xf] }
  0x98   : > { %v1505_v48 = vsel %vm4199_vm5, %v1500_v1, %v1504_v35  ;;  %v1509_v34 = vor.u32 %v1508_v41, %v1504_v35  ;;  %v1716_v43 = vrot.slane %v1715_v54, 4  ;;  %v1720_v52 = vrot.slane %v1718_v13, 5  ;;  %v4775_v54 = vld [vmem:[%s4110_s17 + $0x98] sm:$0x1]  ;;  %v180_v13 = vld [vmem:[%s4110_s17 + $0x30] sm:$0xf] }
  0x99   : > { %2570 = vrot.lane.b32.xlu1 %v3782_v15, %s4072_s23  ;;  %v1702_v2 = vrot.slane %v1701_v9, 4  ;;  %v1728_v31 = vshll.u32 %v4722_v53, 16  ;;  %v1523_v10 = vor.u32 %v1522_v33, %v1519_v46  ;;  %v1526_v3 = vshll.u32 %v4694_v38, 16 }
  0x9a   : > { %v1510_v58 = vrot.slane %v1509_v34, 4  ;;  %v1721_v59 = vsel %vm4199_vm5, %v1716_v43, %v1720_v52  ;;  %v1725_v60 = vor.u32 %v1724_v47, %v1720_v52  ;;  %v1532_v40 = vrot.slane %v1530_v23, 4  ;;  %v4783_v47 = vld [vmem:[%s4110_s17 + $0x34] sm:$0xf] }
  0x9b   : > { %2554 = vrot.lane.b32.xlu0 %v3774_v25, %s4072_s23  ;;  %v1707_v62 = vsel %vm4199_vm5, %v1702_v2, %v1706_v36  ;;  %v1730_v63 = vrot.slane %v1728_v31, 5  ;;  %v1524_v12 = vrot.slane %v1523_v10, 4  ;;  %v1528_v0 = vrot.slane %v1526_v3, 5  ;;  %v196_v25 = vld [vmem:[%s4110_s17 + $0x90] sm:$0xf]  ;;  %v4755_v26 = vpop.permute.xlu1 %2118 }
  0x9c   : > { %v3797_v45 = vcombine.low %v1697_v24, %v1707_v62  ;;  %v1515_v4 = vsel %vm4199_vm5, %v1510_v58, %v1514_v57  ;;  %v1726_v39 = vrot.slane %v1725_v60, 4  ;;  %v1536_v5 = vshll.u32 %v4737_v50, 16  ;;  %v4791_v31 = vld [vmem:[%s4110_s17 + $0x38] sm:$0x1] }
  0x9d   : > { %v3789_v15 = vcombine.low %v1505_v48, %v1515_v4  ;;  %v1529_v16 = vsel %vm4199_vm5, %v1524_v12, %v1528_v0  ;;  %v1533_v22 = vor.u32 %v1532_v40, %v1528_v0  ;;  %v3669_v23 = vrot.slane %v3653_v61, 9 }
  0x9e   : > { %2648 = vrot.lane.b32.xlu1 %v3797_v45, %s4073_s24  ;;  %v1731_v46 = vsel %vm4199_vm5, %v1726_v39, %v1730_v63  ;;  %v1538_v17 = vrot.slane %v1536_v5, 5  ;;  %v1964_v19 = vrot.slane %v4647_v51, 5  ;;  %v1967_v32 = vrot.slane %v4698_v6, 5 }
  0x9f   : > { %2632 = vrot.lane.b32.xlu0 %v3789_v15, %s4073_s24  ;;  %v3798_v33 = vcombine.low %v1721_v59, %v1731_v46  ;;  %v1534_v44 = vrot.slane %v1533_v22, 4  ;;  %v3661_v20 = vrot.slane %v3645_v11, 9  ;;  %v1908_v27 = vrot.slane %v4661_v7, 5  ;;  %v4785_v48 = vpop.permute.xlu0 %2116  ;;  %v4032_v46 = vld [vmem:[%s4110_s17 + $0xc] sm:$0xf] }
  0xa0   : > { %v1965_v36 = vsel %vm4141_vm2, %v3669_v23, %v1964_v19  ;;  %v1966_v41 = vrot.slane %v1964_v19, 4  ;;  %v1911_v42 = vrot.slane %v4713_v29, 5  ;;  %v512_v51 = vshrl.u32 %v196_v25, 16 }
  0xa1   : > { %v1539_v6 = vsel %vm4199_vm5, %v1534_v44, %v1538_v17  ;;  %v1909_v1 = vsel %vm4141_vm2, %v3661_v20, %v1908_v27  ;;  %v1910_v35 = vrot.slane %v1908_v27, 4  ;;  %v515_v7 = vshll.u32 %v196_v25, 16  ;;  %v4031_v25 = vld [vmem:[%s4110_s17 + $0x10] sm:$0xf] }
  0xa2   : > { %2650 = vrot.lane.b32.xlu1 %v3798_v33, %s4073_s24  ;;  %v3790_v24 = vcombine.low %v1529_v16, %v1539_v6  ;;  %v1968_v9 = vsel %vm4141_vm2, %v1966_v41, %v1967_v32  ;;  %v514_v29 = vrot.slane %v512_v51, 4  ;;  %v521_v57 = vshll.u32 %v4765_v55, 16  ;;  %v3654_v16 = vld [vmem:[%s4110_s17 + $0x9c] sm:$0xe]  ;;  %v4033_v6 = vld [vmem:[%s4110_s17 + $0x4] sm:$0xf] }
  0xa3   : > { %v3813_v34 = vcombine.low %v1965_v36, %v1968_v9  ;;  %v1912_v43 = vsel %vm4141_vm2, %v1910_v35, %v1911_v42  ;;  %v517_v52 = vrot.slane %v515_v7, 5  ;;  %v525_v2 = vshrl.u32 %v4765_v55, 16  ;;  %v4793_v10 = vpop.permute.xlu1 %2134  ;;  %v3646_v41 = vld [vmem:[%s4110_s17 + $0x3c] sm:$0xe] }
  0xa4   : > { %2634 = vrot.lane.b32.xlu0 %v3790_v24, %s4073_s24  ;;  %v3805_v3 = vcombine.low %v1909_v1, %v1912_v43  ;;  %v523_v58 = vrot.slane %v521_v57, 5  ;;  %v531_v59 = vshll.u32 %v4775_v54, 16  ;;  %v320_v60 = vshrl.u32 %v180_v13, 16  ;;  %v4034_v1 = vld [vmem:[%s4110_s17] sm:$0xf] }
  0xa5   : > { %v518_v40 = vor.u32 %v517_v52, %v514_v29  ;;  %v527_v61 = vrot.slane %v525_v2, 4  ;;  %v323_v62 = vshll.u32 %v180_v13, 16  ;;  %v329_v63 = vshll.u32 %v4783_v47, 16  ;;  %v198_v57 = vld [vmem:[%s4110_s17 + $0x9c] sm:$0xf] }
  0xa6   : > { %2728 = vrot.lane.b32.xlu1 %v3813_v34, %s4074_s25  ;;  %v533_v12 = vrot.slane %v531_v59, 5  ;;  %v322_v0 = vrot.slane %v320_v60, 4  ;;  %v333_v45 = vshrl.u32 %v4783_v47, 16  ;;  %v339_v4 = vshll.u32 %v4791_v31, 16  ;;  %v4035_v59 = vld [vmem:[%s4110_s17 + $0x70] sm:$0xf] }
  0xa7   : > { %v519_v39 = vrot.slane %v518_v40, 4  ;;  %v528_v5 = vor.u32 %v527_v61, %v523_v58  ;;  %v325_v11 = vrot.slane %v323_v62, 5  ;;  %v331_v15 = vrot.slane %v329_v63, 5  ;;  %v4802_v22 = vpop.permute.xlu1 %2310  ;;  %v4036_v60 = vld [vmem:[%s4110_s17 + $0x6c] sm:$0xf] }
  0xa8   : > { %2712 = vrot.lane.b32.xlu0 %v3805_v3, %s4074_s25  ;;  %v335_v23 = vrot.slane %v333_v45, 4  ;;  %v3676_v17 = vcombine.low %v4032_v46, %v4031_v25  ;;  %v4807_v19 = vpop.permute.xlu0 %2132  ;;  %v341_v27 = vrot.slane %v339_v4, 5  ;;  %v3670_v36 = vrot.slane %v3654_v16, 9  ;;  %v4839_v61 = vld [vmem:[%s4110_s17 + $0xa0] sm:$0xf] }
  0xa9   : > { %v524_v32 = vsel %vm4199_vm5, %v519_v39, %v523_v58  ;;  %v529_v33 = vrot.slane %v528_v5, 4  ;;  %v326_v44 = vor.u32 %v325_v11, %v322_v0  ;;  %v3675_v35 = vcombine.low %v4034_v1, %v4033_v6  ;;  %v4037_v4 = vld [vmem:[%s4110_s17 + $0x64] sm:$0xf]  ;;  %v4038_v39 = vld [vmem:[%s4110_s17 + $0x60] sm:$0xf] }
  0xaa   : > { %v336_v20 = vor.u32 %v335_v23, %v331_v15  ;;  %v1971_v7 = vrot.slane %v4678_v56, 5  ;;  %v4819_v9 = vsel %vm2740_vm6, %v3676_v17, %v4755_v26  ;;  %v1974_v29 = vrot.slane %v4722_v53, 5  ;;  %v182_v11 = vld [vmem:[%s4110_s17 + $0x3c] sm:$0xf]  ;;  %v4858_v17 = vld [vmem:[%s4110_s17 + $0x40] sm:$0xf] }
  0xab   : > { %v534_v42 = vsel %vm4199_vm5, %v529_v33, %v533_v12  ;;  %v327_v51 = vrot.slane %v326_v44, 4  ;;  %v4825_v43 = vpop.permute.xlu1 %2388  ;;  %v3662_v3 = vrot.slane %v3646_v41, 9  ;;  %v1915_v26 = vrot.slane %v4694_v38, 5  ;;  %v4844_v12 = vld [vmem:[%s4110_s17 + $0xa4] sm:$0x1] }
  0xac   : > { %v3703_v13 = vcombine.low %v524_v32, %v534_v42  ;;  %v337_v24 = vrot.slane %v336_v20, 4  ;;  %v4823_v34 = vpop.permute.xlu0 %2294  ;;  %v1972_v52 = vsel %vm4141_vm2, %v3670_v36, %v1971_v7  ;;  %v1973_v2 = vrot.slane %v1971_v7, 4 }
  0xad   : > { %v332_v56 = vsel %vm4199_vm5, %v327_v51, %v331_v15  ;;  %v1918_v58 = vrot.slane %v4737_v50, 5  ;;  %v3684_v40 = vcombine.low %v4036_v60, %v4035_v59  ;;  %v536_v0 = vshrl.u32 %v198_v57, 16 }
  0xae   : > { %2140 = vrot.lane.b32.xlu1 %v3703_v13, %s4069_s20  ;;  %v342_v53 = vsel %vm4199_vm5, %v337_v24, %v341_v27  ;;  %v1975_v63 = vsel %vm4141_vm2, %v1973_v2, %v1974_v29  ;;  %v1916_v38 = vsel %vm4141_vm2, %v3662_v3, %v1915_v26  ;;  %v1917_v50 = vrot.slane %v1915_v26, 4  ;;  %v4868_v27 = vld [vmem:[%s4110_s17 + $0x44] sm:$0x1] }
  0xaf   : > { %v3695_v62 = vcombine.low %v332_v56, %v342_v53  ;;  %v3814_v45 = vcombine.low %v1972_v52, %v1975_v63  ;;  %v3683_v5 = vcombine.low %v4038_v39, %v4037_v4  ;;  %v2743_v16 = vsel %vm2740_vm6, %v3675_v35, %v4785_v48 }
  0xb0   : > { %v4851_v15 = vpop.permute.xlu0 %2372  ;;  %v538_v23 = vrot.slane %v536_v0, 4  ;;  %v539_v25 = vshll.u32 %v198_v57, 16  ;;  %v545_v46 = vshll.u32 %v4839_v61, 16  ;;  %v1919_v32 = vsel %vm4141_vm2, %v1917_v50, %v1918_v58 }
  0xb1   : > { %2124 = vrot.lane.b32.xlu0 %v3695_v62, %s4069_s20  ;;  %v2770_v33 = vsel %vm2740_vm6, %v3684_v40, %v4793_v10  ;;  %v549_v44 = vshrl.u32 %v4839_v61, 16  ;;  %v555_v20 = vshll.u32 %v4844_v12, 16  ;;  %v3806_v36 = vcombine.low %v1916_v38, %v1919_v32 }
  0xb2   : > { %2730 = vrot.lane.b32.xlu1 %v3814_v45, %s4074_s25  ;;  %v4870_v48 = vpop.permute.xlu1 %2390  ;;  %v541_v41 = vrot.slane %v539_v25, 5  ;;  %v547_v42 = vrot.slane %v545_v46, 5  ;;  %v344_v51 = vshrl.u32 %v182_v11, 16  ;;  %v2767_v6 = vsel %vm2740_vm6, %v3683_v5, %v4807_v19  ;;  %v619_v19 = vld [vmem:[%s4110_s17 + $0x90] sm:$0xe] }
  0xb3   : > { %v551_v1 = vrot.slane %v549_v44, 4  ;;  %v347_v35 = vshll.u32 %v182_v11, 16  ;;  %v353_v10 = vshll.u32 %v4858_v17, 16  ;;  %v357_v29 = vshrl.u32 %v4858_v17, 16  ;;  %v611_v45 = vld [vmem:[%s4110_s17 + $0x30] sm:$0xe] }
  0xb4   : > { %v4875_v7 = vpop.permute.xlu0 %2374  ;;  %v542_v13 = vor.u32 %v541_v41, %v538_v23  ;;  %v346_v24 = vrot.slane %v344_v51, 4  ;;  %v363_v57 = vshll.u32 %v4868_v27, 16  ;;  %v557_v52 = vrot.slane %v555_v20, 5 }
  0xb5   : > { %2714 = vrot.lane.b32.xlu0 %v3806_v36, %s4074_s25  ;;  %v552_v56 = vor.u32 %v551_v1, %v547_v42  ;;  %v349_v2 = vrot.slane %v347_v35, 5  ;;  %v355_v3 = vrot.slane %v353_v10, 5  ;;  %v2791_v26 = vsel %vm2789_vm7, %v2743_v16, %v4725_v28  ;;  %v612_v35 = vld [vmem:[%s4110_s17 + $0x3c] sm:$0xe] }
  0xb6   : > { %v4881_v53 = vpop.permute.xlu1 %2468  ;;  %v2807_v58 = vsel %vm2789_vm7, %v2767_v6, %v4706_v18  ;;  %v543_v59 = vrot.slane %v542_v13, 4  ;;  %v359_v60 = vrot.slane %v357_v29, 4  ;;  %v365_v63 = vrot.slane %v363_v57, 5 }
  0xb7   : > { %v553_v40 = vrot.slane %v552_v56, 4  ;;  %v350_v62 = vor.u32 %v349_v2, %v346_v24  ;;  %v2809_v0 = vsel %vm2789_vm7, %v2770_v33, %v4730_v49  ;;  %v3511_v28 = vrot.slane %v619_v19, 9  ;;  %v4931_v24 = vld [vmem:[%s4110_s17 + $0x9c] sm:$0xf] }
  0xb8   : > { %v4890_v38 = vpop.permute.xlu0 %2452  ;;  %v548_v50 = vsel %vm4199_vm5, %v543_v59, %v547_v42  ;;  %v360_v4 = vor.u32 %v359_v60, %v355_v3  ;;  %v760_v5 = vrot.slane %v4765_v55, 5  ;;  %v763_v11 = vrot.slane %v4775_v54, 5  ;;  %v620_v42 = vld [vmem:[%s4110_s17 + $0x9c] sm:$0xe]  ;;  %v4949_v59 = vld [vmem:[%s4110_s17 + $0xa0] sm:$0xf] }
  0xb9   : > { %v558_v18 = vsel %vm4199_vm5, %v553_v40, %v557_v52  ;;  %v351_v39 = vrot.slane %v350_v62, 4  ;;  %v3503_v25 = vrot.slane %v611_v45, 9  ;;  %v704_v46 = vrot.slane %v4783_v47, 5  ;;  %v3523_v19 = vld [vmem:[%s4110_s17 + $0x3c] sm:$0xf] }
  0xba   : > { %v4898_v16 = vpop.permute.xlu1 %2470  ;;  %v3704_v49 = vcombine.low %v548_v50, %v558_v18  ;;  %v361_v23 = vrot.slane %v360_v4, 4  ;;  %v761_v33 = vsel %vm4141_vm2, %v3511_v28, %v760_v5  ;;  %v762_v44 = vrot.slane %v760_v5, 4  ;;  %v4973_v18 = vld [vmem:[%s4110_s17 + $0x40] sm:$0xf] }
  0xbb   : > { %v356_v32 = vsel %vm4199_vm5, %v351_v39, %v355_v3  ;;  %v707_v55 = vrot.slane %v4791_v31, 5  ;;  %v2793_v47 = vsel %vm2789_vm7, %v4819_v9, %v4750_v14  ;;  %v705_v36 = vsel %vm4141_vm2, %v3503_v25, %v704_v46 }
  0xbc   : > { %v4906_v20 = vpop.permute.xlu0 %2454  ;;  %2142 = vrot.lane.b32.xlu1 %v3704_v49, %s4069_s20  ;;  %v366_v54 = vsel %vm4199_vm5, %v361_v23, %v365_v63  ;;  %v706_v41 = vrot.slane %v704_v46, 4  ;;  %v2842_v31 = vsel %vm2822_vm8, %v2809_v0, %v4802_v22  ;;  %v2826_v6 = vsel %vm2822_vm8, %v2793_v47, %v4823_v34  ;;  %v3541_v0 = vld [vmem:[%s4110_s17 + $0xa8] sm:$0xf]  ;;  %v4978_v49 = vld [vmem:[%s4110_s17 + $0xac] sm:$0xf] }
  0xbd   : > { %v3696_v51 = vcombine.low %v356_v32, %v366_v54  ;;  %v764_v1 = vsel %vm4141_vm2, %v762_v44, %v763_v11  ;;  %v2840_v9 = vsel %vm2822_vm8, %v2807_v58, %v4663_v37  ;;  %v3512_v34 = vrot.slane %v620_v42, 9  ;;  %v3525_v23 = vld [vmem:[%s4110_s17 + $0x48] sm:$0xf]  ;;  %v4985_v44 = vld [vmem:[%s4110_s17 + $0x4c] sm:$0xf] }
  0xbe   : > { %v4924_v10 = vpop.permute.xlu1 %2564  ;;  %v3719_v13 = vcombine.low %v761_v33, %v764_v1  ;;  %v708_v14 = vsel %vm4141_vm2, %v706_v41, %v707_v55  ;;  %v767_v29 = vrot.slane %v4839_v61, 5  ;;  %v770_v57 = vrot.slane %v4844_v12, 5  ;;  %v5003_v1 = vld [vmem:[%s4110_s17 + $0xa4] sm:$0x1] }
  0xbf   : > { %2126 = vrot.lane.b32.xlu0 %v3696_v51, %s4069_s20  ;;  %v3711_v22 = vcombine.low %v705_v36, %v708_v14  ;;  %v2824_v52 = vsel %vm2822_vm8, %v2791_v26, %v4700_v8  ;;  %v3504_v2 = vrot.slane %v612_v35, 9  ;;  %v711_v37 = vrot.slane %v4858_v17, 5 }
  0xc0   : > { %v4936_v56 = vpop.permute.xlu0 %2548  ;;  %2220 = vrot.lane.b32.xlu1 %v3719_v13, %s4068_s19  ;;  %v714_v3 = vrot.slane %v4868_v27, 5  ;;  %v2873_v58 = vsel %vm2855_vm9, %v2840_v9, %v4825_v43  ;;  %v768_v61 = vsel %vm4141_vm2, %v3512_v34, %v767_v29  ;;  %v769_v12 = vrot.slane %v767_v29, 4 }
  0xc1   : > { %v1124_v60 = vshrl.u32 %v4931_v24, 16  ;;  %v2857_v17 = vsel %vm2855_vm9, %v2824_v52, %v4851_v15  ;;  %v712_v27 = vsel %vm4141_vm2, %v3504_v2, %v711_v37  ;;  %v713_v26 = vrot.slane %v711_v37, 4 }
  0xc2   : > { %v4952_v8 = vpop.permute.xlu1 %2566  ;;  %v1127_v43 = vshll.u32 %v4931_v24, 16  ;;  %v771_v40 = vsel %vm4141_vm2, %v769_v12, %v770_v57  ;;  %v2875_v62 = vsel %vm2855_vm9, %v2842_v31, %v4870_v48  ;;  %v2859_v63 = vsel %vm2855_vm9, %v2826_v6, %v4875_v7 }
  0xc3   : > { %2204 = vrot.lane.b32.xlu0 %v3711_v22, %s4068_s19  ;;  %v932_v15 = vshrl.u32 %v3523_v19, 16  ;;  %v3720_v50 = vcombine.low %v768_v61, %v771_v40  ;;  %v715_v4 = vsel %vm4141_vm2, %v713_v26, %v714_v3  ;;  %v1137_v28 = vshrl.u32 %v4949_v59, 16  ;;  %v5025_v26 = vld [vmem:[%s4110_s17 + $0xb0] sm:$0x1] }
  0xc4   : > { %v4967_v45 = vpop.permute.xlu0 %2550  ;;  %v935_v39 = vshll.u32 %v3523_v19, 16  ;;  %v3712_v5 = vcombine.low %v712_v27, %v715_v4  ;;  %v1126_v11 = vrot.slane %v1124_v60, 4  ;;  %v1129_v48 = vrot.slane %v1127_v43, 5 }
  0xc5   : > { %v3735_v7 = vcombine.low %v4931_v24, %v4949_v59  ;;  %2222 = vrot.lane.b32.xlu1 %v3720_v50, %s4068_s19  ;;  %v934_v46 = vrot.slane %v932_v15, 4  ;;  %v1148_v32 = vshrl.u32 %v3541_v0, 16  ;;  %v1151_v33 = vshll.u32 %v3541_v0, 16 }
  0xc6   : > { %v4981_v25 = vpop.permute.xlu1 %2644  ;;  %v937_v55 = vrot.slane %v935_v39, 5  ;;  %v945_v54 = vshrl.u32 %v4973_v18, 16  ;;  %v3727_v47 = vcombine.low %v3523_v19, %v4973_v18  ;;  %v4992_v36 = vsel %vm2888_vm10, %v2873_v58, %v4881_v53  ;;  %v5007_v53 = vld [vmem:[%s4110_s17 + $0x44] sm:$0x1] }
  0xc7   : > { %2206 = vrot.lane.b32.xlu0 %v3712_v5, %s4068_s19  ;;  %v4998_v42 = vsel %vm2888_vm10, %v2857_v17, %v4890_v38  ;;  %v1150_v51 = vrot.slane %v1148_v32, 4  ;;  %v1161_v31 = vshrl.u32 %v4978_v49, 16  ;;  %v3736_v6 = vcombine.low %v3541_v0, %v4978_v49 }
  0xc8   : > { %v4994_v41 = vpop.permute.xlu0 %2628  ;;  %v1153_v35 = vrot.slane %v1151_v33, 5  ;;  %v956_v13 = vshrl.u32 %v3525_v23, 16  ;;  %v959_v14 = vshll.u32 %v3525_v23, 16  ;;  %v969_v9 = vshrl.u32 %v4985_v44, 16 }
  0xc9   : > { %2316 = vrot.lane.b32.xlu1 %v3735_v7, %s4067_s18  ;;  %v3728_v38 = vcombine.low %v3525_v23, %v4985_v44  ;;  %v5015_v22 = vsel %vm2888_vm10, %v2875_v62, %v4898_v16  ;;  %v1130_v34 = vor.u32 %v1129_v48, %v1126_v11  ;;  %v1133_v29 = vshll.u32 %v4949_v59, 16  ;;  %v5042_v23 = vld [vmem:[%s4110_s17 + $0x50] sm:$0x1] }
  0xca   : > { %v5009_v24 = vpop.permute.xlu1 %2646  ;;  %v1139_v57 = vrot.slane %v1137_v28, 4  ;;  %v1143_v52 = vshll.u32 %v5003_v1, 16  ;;  %v938_v2 = vor.u32 %v937_v55, %v934_v46  ;;  %v941_v37 = vshll.u32 %v4973_v18, 16 }
  0xcb   : > { %2300 = vrot.lane.b32.xlu0 %v3727_v47, %s4067_s18  ;;  %v1131_v3 = vrot.slane %v1130_v34, 4  ;;  %v1135_v19 = vrot.slane %v1133_v29, 5  ;;  %v947_v58 = vrot.slane %v945_v54, 4  ;;  %v951_v61 = vshll.u32 %v5007_v53, 16 }
  0xcc   : > { %v5022_v12 = vpop.permute.xlu0 %2630  ;;  %v958_v16 = vrot.slane %v956_v13, 4  ;;  %v961_v60 = vrot.slane %v959_v14, 5  ;;  %v939_v17 = vrot.slane %v938_v2, 4  ;;  %v943_v27 = vrot.slane %v941_v37, 5  ;;  %v3575_v13 = vld [vmem:[%s4110_s17 + $0x9c] sm:$0xe] }
  0xcd   : > { %2318 = vrot.lane.b32.xlu1 %v3736_v6, %s4067_s18  ;;  %v5030_v43 = vsel %vm2888_vm10, %v2859_v63, %v4906_v20  ;;  %v1136_v40 = vsel %vm4199_vm5, %v1131_v3, %v1135_v19  ;;  %v1140_v62 = vor.u32 %v1139_v57, %v1135_v19  ;;  %v1145_v15 = vrot.slane %v1143_v52, 5  ;;  %v3567_v57 = vld [vmem:[%s4110_s17 + $0x3c] sm:$0xe] }
  0xce   : > { %v944_v0 = vsel %vm4199_vm5, %v939_v17, %v943_v27  ;;  %v948_v50 = vor.u32 %v947_v58, %v943_v27  ;;  %v953_v4 = vrot.slane %v951_v61, 5  ;;  %v1154_v28 = vor.u32 %v1153_v35, %v1150_v51  ;;  %v5037_v39 = vpop.permute.xlu1 %2724  ;;  %v3576_v27 = vld [vmem:[%s4110_s17 + $0xa8] sm:$0xe] }
  0xcf   : > { %2302 = vrot.lane.b32.xlu0 %v3728_v38, %s4067_s18  ;;  %v1141_v5 = vrot.slane %v1140_v62, 4  ;;  %v1157_v20 = vshll.u32 %v4978_v49, 16  ;;  %v1163_v63 = vrot.slane %v1161_v31, 4  ;;  %v1167_v11 = vshll.u32 %v5025_v26, 16 }
  0xd0   : > { %v949_v48 = vrot.slane %v948_v50, 4  ;;  %v1155_v7 = vrot.slane %v1154_v28, 4  ;;  %v962_v46 = vor.u32 %v961_v60, %v958_v16  ;;  %v965_v32 = vshll.u32 %v4985_v44, 16  ;;  %v5047_v47 = vpop.permute.xlu0 %2708  ;;  %v3568_v28 = vld [vmem:[%s4110_s17 + $0x48] sm:$0xe] }
  0xd1   : > { %v1146_v33 = vsel %vm4199_vm5, %v1141_v5, %v1145_v15  ;;  %v1159_v55 = vrot.slane %v1157_v20, 5  ;;  %v971_v54 = vrot.slane %v969_v9, 4  ;;  %v1169_v34 = vrot.slane %v1167_v11, 5 }
  0xd2   : > { %v3751_v51 = vcombine.low %v1136_v40, %v1146_v33  ;;  %v954_v31 = vsel %vm4199_vm5, %v949_v48, %v953_v4  ;;  %v963_v6 = vrot.slane %v962_v46, 4  ;;  %v967_v35 = vrot.slane %v965_v32, 5  ;;  %v5093_v46 = vld [vmem:[%s4110_s17 + $0xa8] sm:$0xf] }
  0xd3   : > { %v3743_v14 = vcombine.low %v944_v0, %v954_v31  ;;  %v1164_v38 = vor.u32 %v1163_v63, %v1159_v55  ;;  %v975_v29 = vshll.u32 %v5042_v23, 16  ;;  %v2939_v9 = vsel %vm2921_vm11, %v4992_v36, %v4924_v10  ;;  %v5108_v31 = vld [vmem:[%s4110_s17 + $0xac] sm:$0xf] }
  0xd4   : > { %2396 = vrot.lane.b32.xlu1 %v3751_v51, %s4070_s21  ;;  %v1160_v52 = vsel %vm4199_vm5, %v1155_v7, %v1159_v55  ;;  %v968_v2 = vsel %vm4199_vm5, %v963_v6, %v967_v35  ;;  %v972_v37 = vor.u32 %v971_v54, %v967_v35  ;;  %v3591_v61 = vrot.slane %v3575_v13, 9  ;;  %v3603_v6 = vld [vmem:[%s4110_s17 + $0x48] sm:$0xf] }
  0xd5   : > { %2380 = vrot.lane.b32.xlu0 %v3743_v14, %s4070_s21  ;;  %v1165_v19 = vrot.slane %v1164_v38, 4  ;;  %v977_v58 = vrot.slane %v975_v29, 5  ;;  %v1369_v16 = vrot.slane %v4949_v59, 5  ;;  %v1372_v10 = vrot.slane %v5003_v1, 5  ;;  %v5127_v14 = vld [vmem:[%s4110_s17 + $0xb4] sm:$0xf] }
  0xd6   : > { %v5062_v3 = vpop.permute.xlu1 %2136  ;;  %v973_v60 = vrot.slane %v972_v37, 4  ;;  %v3583_v36 = vrot.slane %v3567_v57, 9  ;;  %v1313_v17 = vrot.slane %v4973_v18, 5  ;;  %v1316_v0 = vrot.slane %v5007_v53, 5  ;;  %v5138_v29 = vld [vmem:[%s4110_s17 + $0x4c] sm:$0xf] }
  0xd7   : > { %v1170_v40 = vsel %vm4199_vm5, %v1165_v19, %v1169_v34  ;;  %v1370_v62 = vsel %vm4141_vm2, %v3591_v61, %v1369_v16  ;;  %v1371_v15 = vrot.slane %v1369_v16, 4  ;;  %v3592_v63 = vrot.slane %v3576_v27, 9  ;;  %v5145_v37 = vld [vmem:[%s4110_s17 + $0xb8] sm:$0xf]  ;;  %v3605_v19 = vld [vmem:[%s4110_s17 + $0x54] sm:$0xf] }
  0xd8   : > { %v3752_v59 = vcombine.low %v1160_v52, %v1170_v40  ;;  %v978_v1 = vsel %vm4199_vm5, %v973_v60, %v977_v58  ;;  %v1314_v18 = vsel %vm4141_vm2, %v3583_v36, %v1313_v17  ;;  %v1315_v4 = vrot.slane %v1313_v17, 4  ;;  %v5158_v40 = vld [vmem:[%s4110_s17 + $0x58] sm:$0xf] }
  0xd9   : > { %v5074_v50 = vpop.permute.xlu0 %2120  ;;  %v3744_v5 = vcombine.low %v968_v2, %v978_v1  ;;  %v1373_v20 = vsel %vm4141_vm2, %v1371_v15, %v1372_v10  ;;  %v2923_v53 = vsel %vm2921_vm11, %v4998_v42, %v4936_v56  ;;  %v2941_v11 = vsel %vm2921_vm11, %v5015_v22, %v4952_v8 }
  0xda   : > { %2398 = vrot.lane.b32.xlu1 %v3752_v59, %s4070_s21  ;;  %v3767_v48 = vcombine.low %v1370_v62, %v1373_v20  ;;  %v1317_v7 = vsel %vm4141_vm2, %v1315_v4, %v1316_v0  ;;  %v5095_v32 = vpop.permute.xlu1 %2726  ;;  %v1376_v56 = vrot.slane %v4978_v49, 5  ;;  %v1379_v42 = vrot.slane %v5025_v26, 5 }
  0xdb   : > { %2382 = vrot.lane.b32.xlu0 %v3744_v5, %s4070_s21  ;;  %v3759_v33 = vcombine.low %v1314_v18, %v1317_v7  ;;  %v3584_v55 = vrot.slane %v3568_v28, 9  ;;  %v2925_v8 = vsel %vm2921_vm11, %v5030_v43, %v4967_v45  ;;  %v2972_v22 = vsel %vm2954_vm12, %v2939_v9, %v4981_v25 }
  0xdc   : > { %v1320_v54 = vrot.slane %v4985_v44, 5  ;;  %v1323_v51 = vrot.slane %v5042_v23, 5  ;;  %v1377_v49 = vsel %vm4141_vm2, %v3592_v63, %v1376_v56  ;;  %v1378_v26 = vrot.slane %v1376_v56, 4 }
  0xdd   : > { %v1733_v35 = vshrl.u32 %v5093_v46, 16  ;;  %v1736_v45 = vshll.u32 %v5093_v46, 16  ;;  %v5115_v43 = vpop.permute.xlu0 %2710  ;;  %v2956_v25 = vsel %vm2954_vm12, %v2923_v53, %v4994_v41  ;;  %v5124_v13 = vsel %vm2954_vm12, %v2941_v11, %v5009_v24  ;;  %v5176_v11 = vld [vmem:[%s4110_s17 + $0xb0] sm:$0x1] }
  0xde   : > { %2476 = vrot.lane.b32.xlu1 %v3767_v48, %s4071_s22  ;;  %v1321_v44 = vsel %vm4141_vm2, %v3584_v55, %v1320_v54  ;;  %v1322_v23 = vrot.slane %v1320_v54, 4  ;;  %v1380_v38 = vsel %vm4141_vm2, %v1378_v26, %v1379_v42  ;;  %v5134_v34 = vsel %vm2954_vm12, %v2925_v8, %v5022_v12  ;;  %v5192_v55 = vld [vmem:[%s4110_s17 + $0x78] sm:$0xf]  ;;  %v4040_v8 = vld [vmem:[%s4110_s17 + $0x7c] sm:$0xf] }
  0xdf   : > { %2460 = vrot.lane.b32.xlu0 %v3759_v33, %s4071_s22  ;;  %v1746_v41 = vshrl.u32 %v5108_v31, 16  ;;  %v1541_v57 = vshrl.u32 %v3603_v6, 16  ;;  %v3768_v9 = vcombine.low %v1377_v49, %v1380_v38  ;;  %v3783_v52 = vcombine.low %v5093_v46, %v5108_v31  ;;  %v4012_v46 = vld [vmem:[%s6004_s1 + $0x8] sm:$0x3f]   ;;  %v5198_v49 = vld [vmem:[%s4110_s17 + $0x50] sm:$0x1] }
  0xe0   : > { %v1324_v24 = vsel %vm4141_vm2, %v1322_v23, %v1323_v51  ;;  %v1544_v2 = vshll.u32 %v3603_v6, 16  ;;  %v1735_v61 = vrot.slane %v1733_v35, 4  ;;  %v1738_v16 = vrot.slane %v1736_v45, 5  ;;  %v4041_v23 = vld [vmem:[%s4110_s17 + $0x18] sm:$0xf] }
  0xe1   : > { %v3760_v12 = vcombine.low %v1321_v44, %v1324_v24  ;;  %v1757_v60 = vshrl.u32 %v5127_v14, 16  ;;  %v5152_v10 = vrot.slane %v1541_v57, 4  ;;  %v1554_v36 = vshrl.u32 %v5138_v29, 16 }
  0xe2   : > { %v5148_v58 = vpop.permute.xlu1 %2138  ;;  %2478 = vrot.lane.b32.xlu1 %v3768_v9, %s4071_s22  ;;  %v3775_v17 = vcombine.low %v3603_v6, %v5138_v29  ;;  %v1760_v27 = vshll.u32 %v5127_v14, 16  ;;  %v1546_v62 = vrot.slane %v1544_v2, 5  ;;  %v1770_v15 = vshrl.u32 %v5145_v37, 16 }
  0xe3   : > { %2462 = vrot.lane.b32.xlu0 %v3760_v12, %s4071_s22  ;;  %v3784_v0 = vcombine.low %v5127_v14, %v5145_v37  ;;  %v1565_v59 = vshrl.u32 %v3605_v19, 16  ;;  %v5166_v18 = vrot.slane %v1757_v60, 4  ;;  %v1568_v4 = vshll.u32 %v3605_v19, 16  ;;  %v4042_v14 = vld [vmem:[%s4110_s17 + $0x1c] sm:$0xf] }
  0xe4   : > { %v1762_v5 = vrot.slane %v1760_v27, 5  ;;  %v1578_v20 = vshrl.u32 %v5158_v40, 16  ;;  %v2989_v63 = vsel %vm2987_vm13, %v2956_v25, %v5047_v47  ;;  %v3005_v53 = vsel %vm2987_vm13, %v2972_v22, %v5037_v39  ;;  %v5213_v12 = vld [vmem:[%s4110_s17 + $0xbc] sm:$0x1] }
  0xe5   : > { %v5164_v1 = vpop.permute.xlu0 %2122  ;;  %v5179_v48 = vrot.slane %v1565_v59, 4  ;;  %v3776_v7 = vcombine.low %v3605_v19, %v5158_v40  ;;  %3927 = vmatprep.mubr.msk.bf16.mxu0 %vm3042_vm14, %v2989_v63  ;;  %3943 = vmatprep.mubr.msk.bf16.mxu1 %vm3042_vm14, %v3005_v53  ;;  %v1739_v39 = vor.u32 %v1738_v16, %v1735_v61  ;;  %v1742_v47 = vshll.u32 %v5108_v31, 16 }
  0xe6   : > { %v5168_v28 = vpop.permute.xlu1 %2216  ;;  %2572 = vrot.lane.b32.xlu1 %v3783_v52, %s4072_s23  ;;  %v1748_v33 = vrot.slane %v1746_v41, 4  ;;  %v1570_v42 = vrot.slane %v1568_v4, 5  ;;  %v3685_v22 = vcombine.low %v5192_v55, %v4040_v8  ;;  %v4075_v54 = vmov 65535  }
  0xe7   : > { %2556 = vrot.lane.b32.xlu0 %v3775_v17, %s4072_s23  ;;  %v3077_v51 = vsel %vm3075_vm15, 4294967295, %v4075_v54  ;;  %v1752_v6 = vshll.u32 %v5176_v11, 16  ;;  %v1740_v45 = vrot.slane %v1739_v39, 4  ;;  %v1744_v25 = vrot.slane %v1742_v47, 5  ;;  %v3655_v54 = vld [vmem:[%s4110_s17 + $0xa8] sm:$0xe] }
  0xe8   : > { %v3078_v35 = vsel %vm3076_vm0, %v3077_v51, 0  ;;  %v1547_v44 = vor.u32 %v1546_v62, %v5152_v10  ;;  %v3677_v38 = vcombine.low %v4041_v23, %v4042_v14  ;;  %v1550_v57 = vshll.u32 %v5138_v29, 16  ;;  %v3647_v23 = vld [vmem:[%s4110_s17 + $0x48] sm:$0xe] }
  0xe9   : > { %v5189_v56 = vpop.permute.xlu0 %2200  ;;  %v3080_v41 = vand.u32 %v4012_v46, %v3078_v35  ;;  %v1556_v9 = vrot.slane %v1554_v36, 4  ;;  %v1745_v24 = vsel %vm4199_vm5, %v1740_v45, %v1744_v25  ;;  %v1749_v52 = vor.u32 %v1748_v33, %v1744_v25 }
  0xea   : > { %v5200_v26 = vpop.permute.xlu1 %2218  ;;  %2574 = vrot.lane.b32.xlu1 %v3784_v0, %s4072_s23  ;;  %v1754_v2 = vrot.slane %v1752_v6, 5  ;;  %v1560_v19 = vshll.u32 %v5198_v49, 16  ;;  %v1548_v16 = vrot.slane %v1547_v44, 4  ;;  %v1552_v60 = vrot.slane %v1550_v57, 5 }
  0xeb   : > { %2558 = vrot.lane.b32.xlu0 %v3776_v7, %s4072_s23  ;;  %3925 = vmatprep.subr.bf16.mxu0 %v3080_v41  ;;  %v3007_v10 = vsel %vm2987_vm13, %v5124_v13, %v5095_v32  ;;  %v1763_v36 = vor.u32 %v1762_v5, %v5166_v18  ;;  %v1750_v27 = vrot.slane %v1749_v52, 4  ;;  %v2991_v62 = vsel %vm2987_vm13, %v5134_v34, %v5115_v43  ;;  %v5233_v5 = vld [vmem:[%s4110_s17 + $0x5c] sm:$0x1] }
  0xec   : > { %3960 = vmatprep.subr.bf16.mxu1 %v3080_v41  ;;  %3926 = vmatpush3.bf16.msra.mxu0 %v3080_v41  ;;  %v1766_v0 = vshll.u32 %v5145_v37, 16  ;;  %v1772_v59 = vrot.slane %v1770_v15, 4  ;;  %v1557_v4 = vor.u32 %v1556_v9, %v1552_v60  ;;  %v1562_v63 = vrot.slane %v1560_v19, 5 }
  0xed   : > { %v5215_v61 = vpop.permute.xlu0 %2202  ;;  %3962 = vmatpush3.bf16.msra.mxu1 %v3080_v41  ;;  %v1764_v53 = vrot.slane %v1763_v36, 4  ;;  %v1776_v32 = vshll.u32 %v5213_v12, 16  ;;  %v1755_v13 = vsel %vm4199_vm5, %v1750_v27, %v1754_v2  ;;  %v1571_v7 = vor.u32 %v1570_v42, %v5179_v48  ;;  %v5278_v36 = vld [vmem:[%s4110_s17 + $0xac] sm:$0xf] }
  0xee   : > { %v5221_v17 = vpop.permute.xlu1 %2312  ;;  %v1768_v18 = vrot.slane %v1766_v0, 5  ;;  %v1574_v43 = vshll.u32 %v5158_v40, 16  ;;  %v3799_v46 = vcombine.low %v1745_v24, %v1755_v13  ;;  %v1553_v15 = vsel %vm4199_vm5, %v1548_v16, %v1552_v60 }
  0xef   : > { %v1558_v39 = vrot.slane %v1557_v4, 4  ;;  %v1580_v47 = vrot.slane %v1578_v20, 4  ;;  %3928 = vmatmul.mubr.msk.bf16.vlgmr.msra.gmra.mrb[0].mxu0 %vm3042_vm14, %v2991_v62  ;;  %v1778_v42 = vrot.slane %v1776_v32, 5  ;;  %v1572_v55 = vrot.slane %v1571_v7, 4  ;;  %v4043_v62 = vld [vmem:[%s4110_s17 + $0x84] sm:$0xf] }
  0xf0   : > { %3944 = vmatmul.mubr.msk.bf16.vlgmr.msra.gmra.mrb[0].mxu1 %vm3042_vm14, %v3007_v10  ;;  %v1773_v48 = vor.u32 %v1772_v59, %v1768_v18  ;;  %v1576_v8 = vrot.slane %v1574_v43, 5  ;;  %v5250_v51 = vsel %vm2740_vm6, %v3685_v22, %v5062_v3  ;;  %2652 = vrot.lane.b32.xlu1 %v3799_v46, %s4073_s24  ;;  %v1584_v6 = vshll.u32 %v5233_v5, 16  ;;  %v5287_v4 = vld [vmem:[%s4110_s17 + $0xb0] sm:$0x1] }
  0xf1   : > { %v5237_v34 = vpop.permute.xlu0 %2296  ;;  %v1563_v20 = vsel %vm4199_vm5, %v1558_v39, %v1562_v63  ;;  %v1769_v45 = vsel %vm4199_vm5, %v1764_v53, %v1768_v18  ;;  %v5263_v3 = vsel %vm2740_vm6, %v3677_v38, %v5074_v50  ;;  %v3671_v57 = vrot.slane %v3655_v54, 9  ;;  %v200_v50 = vld [vmem:[%s4110_s17 + $0xa8] sm:$0xf]  ;;  %v5308_v54 = vld [vmem:[%s4110_s17 + $0x4c] sm:$0xf] }
  0xf2   : > { %v5245_v33 = vpop.permute.xlu1 %2314  ;;  %v3791_v35 = vcombine.low %v1553_v15, %v1563_v20  ;;  %v1774_v25 = vrot.slane %v1773_v48, 4  ;;  %v1581_v44 = vor.u32 %v1580_v47, %v1576_v8  ;;  %v1577_v22 = vsel %vm4199_vm5, %v1572_v55, %v1576_v8  ;;  %v4046_v53 = vld [vmem:[%s4110_s17 + $0x28] sm:$0xf] }
  0xf3   : > { %v1586_v41 = vrot.slane %v1584_v6, 5  ;;  %v1978_v52 = vrot.slane %v5108_v31, 5  ;;  %v1981_v2 = vrot.slane %v5176_v11, 5  ;;  %v3663_v16 = vrot.slane %v3647_v23, 9  ;;  %v4044_v31 = vld [vmem:[%s4110_s17 + $0x88] sm:$0xf] }
  0xf4   : > { %2636 = vrot.lane.b32.xlu0 %v3791_v35, %s4073_s24  ;;  %v1779_v9 = vsel %vm4199_vm5, %v1774_v25, %v1778_v42  ;;  %v1582_v24 = vrot.slane %v1581_v44, 4  ;;  %v1922_v60 = vrot.slane %v5138_v29, 5  ;;  %v1925_v10 = vrot.slane %v5198_v49, 5  ;;  %v4045_v49 = vld [vmem:[%s4110_s17 + $0x24] sm:$0xf] }
  0xf5   : > { %v5259_v14 = vpop.permute.xlu0 %2298  ;;  %v3800_v19 = vcombine.low %v1769_v45, %v1779_v9  ;;  %v3686_v0 = vcombine.low %v4043_v62, %v4044_v31  ;;  %v1979_v11 = vsel %vm4141_vm2, %v3671_v57, %v1978_v52  ;;  %v1980_v59 = vrot.slane %v1978_v52, 4  ;;  %v184_v39 = vld [vmem:[%s4110_s17 + $0x48] sm:$0xf]  ;;  %v5311_v25 = vld [vmem:[%s4110_s17 + $0x50] sm:$0x1] }
  0xf6   : > { %v1587_v27 = vsel %vm4199_vm5, %v1582_v24, %v1586_v41  ;;  %v3678_v32 = vcombine.low %v4045_v49, %v4046_v53  ;;  %v1923_v13 = vsel %vm4141_vm2, %v3663_v16, %v1922_v60  ;;  %v1924_v18 = vrot.slane %v1922_v60, 4  ;;  %v3656_v60 = vld [vmem:[%s4110_s17 + $0xb4] sm:$0xe] }
  0xf7   : > { %v5273_v38 = vpop.permute.xlu1 %2392  ;;  %2654 = vrot.lane.b32.xlu1 %v3800_v19, %s4073_s24  ;;  %v3792_v29 = vcombine.low %v1577_v22, %v1587_v27  ;;  %v1982_v7 = vsel %vm4141_vm2, %v1980_v59, %v1981_v2  ;;  %v560_v43 = vshrl.u32 %v200_v50, 16  ;;  %v563_v46 = vshll.u32 %v200_v50, 16 }
  0xf8   : > { %v569_v15 = vshll.u32 %v5278_v36, 16  ;;  %v3815_v48 = vcombine.low %v1979_v11, %v1982_v7  ;;  %v1926_v42 = vsel %vm4141_vm2, %v1924_v18, %v1925_v10  ;;  %v573_v55 = vshrl.u32 %v5278_v36, 16 }
  0xf9   : > { %v5289_v63 = vpop.permute.xlu0 %2376  ;;  %2638 = vrot.lane.b32.xlu0 %v3792_v29, %s4073_s24  ;;  %v579_v8 = vshll.u32 %v5287_v4, 16  ;;  %v3807_v20 = vcombine.low %v1923_v13, %v1926_v42  ;;  %v562_v6 = vrot.slane %v560_v43, 4  ;;  %v565_v35 = vrot.slane %v563_v46, 5  ;;  %v5354_v42 = vld [vmem:[%s4110_s17 + $0xb4] sm:$0xf] }
  0xfa   : > { %v571_v45 = vrot.slane %v569_v15, 5  ;;  %v5317_v23 = vsel %vm2740_vm6, %v3686_v0, %v5148_v58  ;;  %v5321_v22 = vsel %vm2740_vm6, %v3678_v32, %v5164_v1  ;;  %v575_v41 = vrot.slane %v573_v55, 4  ;;  %v3648_v0 = vld [vmem:[%s4110_s17 + $0x54] sm:$0xe] }
  0xfb   : > { %v5300_v47 = vpop.permute.xlu1 %2394  ;;  %2732 = vrot.lane.b32.xlu1 %v3815_v48, %s4074_s25  ;;  %v368_v57 = vshrl.u32 %v184_v39, 16  ;;  %v566_v9 = vor.u32 %v565_v35, %v562_v6  ;;  %v371_v24 = vshll.u32 %v184_v39, 16  ;;  %v377_v52 = vshll.u32 %v5308_v54, 16  ;;  %v5363_v6 = vld [vmem:[%s4110_s17 + $0xb8] sm:$0xf] }
  0xfc   : > { %v381_v2 = vshrl.u32 %v5308_v54, 16  ;;  %v576_v58 = vor.u32 %v575_v41, %v571_v45  ;;  %v581_v19 = vrot.slane %v579_v8, 5  ;;  %v387_v1 = vshll.u32 %v5311_v25, 16 }
  0xfd   : > { %v5313_v44 = vpop.permute.xlu0 %2378  ;;  %2716 = vrot.lane.b32.xlu0 %v3807_v20, %s4074_s25  ;;  %v370_v16 = vrot.slane %v368_v57, 4  ;;  %v567_v10 = vrot.slane %v566_v9, 4  ;;  %v373_v27 = vrot.slane %v371_v24, 5  ;;  %v379_v62 = vrot.slane %v377_v52, 5  ;;  %v5373_v57 = vld [vmem:[%s4110_s17 + $0xbc] sm:$0x1] }
  0xfe   : > { %v383_v31 = vrot.slane %v381_v2, 4  ;;  %v5337_v59 = vsel %vm2789_vm7, %v5250_v51, %v5168_v28  ;;  %v5342_v29 = vsel %vm2789_vm7, %v5263_v3, %v5189_v56  ;;  %v577_v49 = vrot.slane %v576_v58, 4  ;;  %v5382_v58 = vld [vmem:[%s4110_s17 + $0x54] sm:$0xf] }
  0xff   : > { %v5326_v50 = vpop.permute.xlu1 %2472  ;;  %v389_v53 = vrot.slane %v387_v1, 5  ;;  %v572_v32 = vsel %vm4199_vm5, %v567_v10, %v571_v45  ;;  %v374_v13 = vor.u32 %v373_v27, %v370_v16  ;;  %v3672_v7 = vrot.slane %v3656_v60, 9  ;;  %v5389_v10 = vld [vmem:[%s4110_s17 + $0x58] sm:$0xf] }
 0x100   : > { %v384_v18 = vor.u32 %v383_v31, %v379_v62  ;;  %v582_v28 = vsel %vm4199_vm5, %v577_v49, %v581_v19  ;;  %v1985_v51 = vrot.slane %v5145_v37, 5  ;;  %v1988_v56 = vrot.slane %v5213_v12, 5 }
 0x101   : > { %v5332_v11 = vpop.permute.xlu0 %2456  ;;  %v3664_v3 = vrot.slane %v3648_v0, 9  ;;  %v3705_v46 = vcombine.low %v572_v32, %v582_v28  ;;  %v375_v15 = vrot.slane %v374_v13, 4  ;;  %v1929_v48 = vrot.slane %v5158_v40, 5 }
 0x102   : > { %v385_v39 = vrot.slane %v384_v18, 4  ;;  %v777_v8 = vrot.slane %v5287_v4, 5  ;;  %v1986_v20 = vsel %vm4141_vm2, %v3672_v7, %v1985_v51  ;;  %v1987_v37 = vrot.slane %v1985_v51, 4 }
 0x103   : > { %v5346_v43 = vpop.permute.xlu1 %2474  ;;  %v1932_v12 = vrot.slane %v5233_v5, 5  ;;  %2144 = vrot.lane.b32.xlu1 %v3705_v46, %s4069_s20  ;;  %v380_v40 = vsel %vm4199_vm5, %v375_v15, %v379_v62  ;;  %v1930_v45 = vsel %vm4141_vm2, %v3664_v3, %v1929_v48  ;;  %v1931_v41 = vrot.slane %v1929_v48, 4 }
 0x104   : > { %v390_v35 = vsel %vm4199_vm5, %v385_v39, %v389_v53  ;;  %v721_v5 = vrot.slane %v5311_v25, 5  ;;  %v1989_v52 = vsel %vm4141_vm2, %v1987_v37, %v1988_v56  ;;  %v584_v2 = vshrl.u32 %v5354_v42, 16  ;;  %v5397_v53 = vld [vmem:[%s4110_s17 + $0x5c] sm:$0x1]  ;;  %v621_v37 = vld [vmem:[%s4110_s17 + $0xa8] sm:$0xe] }
 0x105   : > { %v5356_v55 = vpop.permute.xlu0 %2458  ;;  %v3697_v24 = vcombine.low %v380_v40, %v390_v35  ;;  %v3816_v19 = vcombine.low %v1986_v20, %v1989_v52  ;;  %v1933_v16 = vsel %vm4141_vm2, %v1931_v41, %v1932_v12  ;;  %v587_v1 = vshll.u32 %v5354_v42, 16  ;;  %v613_v41 = vld [vmem:[%s4110_s17 + $0x48] sm:$0xe] }
 0x106   : > { %v593_v60 = vshll.u32 %v5363_v6, 16  ;;  %v3808_v62 = vcombine.low %v1930_v45, %v1933_v16  ;;  %v586_v31 = vrot.slane %v584_v2, 4  ;;  %v597_v0 = vshrl.u32 %v5363_v6, 16 }
 0x107   : > { %v5375_v9 = vpop.permute.xlu1 %2568  ;;  %2128 = vrot.lane.b32.xlu0 %v3697_v24, %s4069_s20  ;;  %v603_v49 = vshll.u32 %v5373_v57, 16  ;;  %2734 = vrot.lane.b32.xlu1 %v3816_v19, %s4074_s25  ;;  %v589_v32 = vrot.slane %v587_v1, 5  ;;  %v392_v18 = vshrl.u32 %v5382_v58, 16  ;;  %v395_v7 = vshll.u32 %v5382_v58, 16 }
 0x108   : > { %v595_v13 = vrot.slane %v593_v60, 5  ;;  %v2813_v51 = vsel %vm2789_vm7, %v5317_v23, %v5200_v26  ;;  %v599_v56 = vrot.slane %v597_v0, 4  ;;  %v401_v3 = vshll.u32 %v5389_v10, 16 }
 0x109   : > { %v5391_v27 = vpop.permute.xlu0 %2552  ;;  %v405_v46 = vshrl.u32 %v5389_v10, 16  ;;  %v590_v15 = vor.u32 %v589_v32, %v586_v31  ;;  %v394_v39 = vrot.slane %v392_v18, 4  ;;  %v397_v48 = vrot.slane %v395_v7, 5 }
 0x10a   : > { %v411_v20 = vshll.u32 %v5397_v53, 16  ;;  %v600_v12 = vor.u32 %v599_v56, %v595_v13  ;;  %v605_v40 = vrot.slane %v603_v49, 5  ;;  %v403_v35 = vrot.slane %v401_v3, 5  ;;  %v622_v56 = vld [vmem:[%s4110_s17 + $0xb4] sm:$0xe] }
 0x10b   : > { %v5402_v28 = vpop.permute.xlu1 %2570  ;;  %2718 = vrot.lane.b32.xlu0 %v3808_v62, %s4074_s25  ;;  %v407_v45 = vrot.slane %v405_v46, 4  ;;  %v2797_v26 = vsel %vm2789_vm7, %v5321_v22, %v5215_v61  ;;  %v591_v23 = vrot.slane %v590_v15, 4  ;;  %v398_v52 = vor.u32 %v397_v48, %v394_v39  ;;  %v614_v46 = vld [vmem:[%s4110_s17 + $0x54] sm:$0xe] }
 0x10c   : > { %v413_v2 = vrot.slane %v411_v20, 5  ;;  %v601_v19 = vrot.slane %v600_v12, 4  ;;  %v3513_v1 = vrot.slane %v621_v37, 9  ;;  %v774_v60 = vrot.slane %v5278_v36, 5 }
 0x10d   : > { %v5413_v24 = vpop.permute.xlu0 %2554  ;;  %v408_v16 = vor.u32 %v407_v45, %v403_v35  ;;  %v596_v62 = vsel %vm4199_vm5, %v591_v23, %v595_v13  ;;  %v399_v31 = vrot.slane %v398_v52, 4  ;;  %v3505_v0 = vrot.slane %v613_v41, 9  ;;  %v3527_v23 = vld [vmem:[%s4110_s17 + $0x54] sm:$0xf] }
 0x10e   : > { %v718_v49 = vrot.slane %v5308_v54, 5  ;;  %v606_v61 = vsel %vm4199_vm5, %v601_v19, %v605_v40  ;;  %v775_v18 = vsel %vm4141_vm2, %v3513_v1, %v774_v60  ;;  %v776_v7 = vrot.slane %v774_v60, 4 }
 0x10f   : > { %v409_v22 = vrot.slane %v408_v16, 4  ;;  %v2844_v36 = vsel %vm2822_vm8, %v5337_v59, %v5221_v17  ;;  %v3706_v13 = vcombine.low %v596_v62, %v606_v61  ;;  %v404_v54 = vsel %vm4199_vm5, %v399_v31, %v403_v35 }
 0x110   : > { %v5422_v32 = vpop.permute.xlu1 %2648  ;;  %v720_v3 = vrot.slane %v718_v49, 4  ;;  %v2828_v15 = vsel %vm2822_vm8, %v5342_v29, %v5237_v34  ;;  %v778_v48 = vsel %vm4141_vm2, %v776_v7, %v777_v8  ;;  %v719_v17 = vsel %vm4141_vm2, %v3505_v0, %v718_v49  ;;  %v5454_v29 = vld [vmem:[%s4110_s17 + $0xb4] sm:$0xf] }
 0x111   : > { %v414_v39 = vsel %vm4199_vm5, %v409_v22, %v413_v2  ;;  %v5446_v59 = vpop.permute.xlu0 %2632  ;;  %2146 = vrot.lane.b32.xlu1 %v3706_v13, %s4069_s20  ;;  %v3721_v37 = vcombine.low %v775_v18, %v778_v48  ;;  %v3514_v4 = vrot.slane %v622_v56, 9  ;;  %v2846_v8 = vsel %vm2822_vm8, %v2813_v51, %v5245_v33  ;;  %v5471_v51 = vld [vmem:[%s4110_s17 + $0xb8] sm:$0xf]  ;;  %v3529_v13 = vld [vmem:[%s4110_s17 + $0x60] sm:$0xf] }
 0x112   : > { %v3698_v20 = vcombine.low %v404_v54, %v414_v39  ;;  %v722_v34 = vsel %vm4141_vm2, %v720_v3, %v721_v5  ;;  %v781_v12 = vrot.slane %v5363_v6, 5  ;;  %v784_v40 = vrot.slane %v5373_v57, 5  ;;  %v5509_v39 = vld [vmem:[%s4110_s17 + $0x64] sm:$0xf] }
 0x113   : > { %v3506_v35 = vrot.slane %v614_v46, 9  ;;  %v2830_v25 = vsel %vm2822_vm8, %v2797_v26, %v5259_v14  ;;  %v3713_v45 = vcombine.low %v719_v17, %v722_v34  ;;  %v725_v5 = vrot.slane %v5389_v10, 5 }
 0x114   : > { %2130 = vrot.lane.b32.xlu0 %v3698_v20, %s4069_s20  ;;  %v728_v41 = vrot.slane %v5397_v53, 5  ;;  %v5466_v52 = vpop.permute.xlu1 %2650  ;;  %v782_v33 = vsel %vm4141_vm2, %v3514_v4, %v781_v12  ;;  %v783_v57 = vrot.slane %v781_v12, 4  ;;  %v1172_v2 = vshrl.u32 %v5454_v29, 16  ;;  %v5523_v4 = vld [vmem:[%s4110_s17 + $0xbc] sm:$0x1] }
 0x115   : > { %v1175_v14 = vshll.u32 %v5454_v29, 16  ;;  %2224 = vrot.lane.b32.xlu1 %v3721_v37, %s4068_s19  ;;  %v2877_v53 = vsel %vm2855_vm9, %v2844_v36, %v5273_v38  ;;  %v2861_v26 = vsel %vm2855_vm9, %v2828_v15, %v5289_v63  ;;  %v726_v19 = vsel %vm4141_vm2, %v3506_v35, %v725_v5  ;;  %v5491_v38 = vld [vmem:[%s4110_s17 + $0x58] sm:$0xf]  ;;  %v3545_v63 = vld [vmem:[%s4110_s17 + $0xc0] sm:$0xf] }
 0x116   : > { %v727_v16 = vrot.slane %v725_v5, 4  ;;  %v785_v1 = vsel %vm4141_vm2, %v783_v57, %v784_v40  ;;  %v2879_v60 = vsel %vm2855_vm9, %v2846_v8, %v5300_v47  ;;  %v5488_v62 = vsel %vm2855_vm9, %v2830_v25, %v5313_v44  ;;  %v5494_v0 = vpop.permute.xlu0 %2634  ;;  %v5503_v36 = vld [vmem:[%s4110_s17 + $0xc4] sm:$0xf]  ;;  %v5529_v35 = vld [vmem:[%s4110_s17 + $0x5c] sm:$0x1] }
 0x117   : > { %v980_v31 = vshrl.u32 %v3527_v23, 16  ;;  %v3722_v49 = vcombine.low %v782_v33, %v785_v1  ;;  %v1185_v47 = vshrl.u32 %v5471_v51, 16  ;;  %v983_v22 = vshll.u32 %v3527_v23, 16 }
 0x118   : > { %2208 = vrot.lane.b32.xlu0 %v3713_v45, %s4068_s19  ;;  %v729_v61 = vsel %vm4141_vm2, %v727_v16, %v728_v41  ;;  %v1174_v7 = vrot.slane %v1172_v2, 4  ;;  %v1177_v44 = vrot.slane %v1175_v14, 5  ;;  %v3737_v56 = vcombine.low %v5454_v29, %v5471_v51  ;;  %v5511_v48 = vpop.permute.xlu1 %2728 }
 0x119   : > { %v3714_v18 = vcombine.low %v726_v19, %v729_v61  ;;  %2226 = vrot.lane.b32.xlu1 %v3722_v49, %s4068_s19  ;;  %v982_v54 = vrot.slane %v980_v31, 4  ;;  %v993_v3 = vshrl.u32 %v5491_v38, 16  ;;  %v1196_v46 = vshrl.u32 %v3545_v63, 16 }
 0x11a   : > { %v1199_v15 = vshll.u32 %v3545_v63, 16  ;;  %v985_v17 = vrot.slane %v983_v22, 5  ;;  %v3729_v20 = vcombine.low %v3527_v23, %v5491_v38  ;;  %v5516_v37 = vsel %vm2888_vm10, %v2877_v53, %v5326_v50 }
 0x11b   : > { %v5520_v34 = vsel %vm2888_vm10, %v2861_v26, %v5332_v11  ;;  %v1209_v29 = vshrl.u32 %v5503_v36, 16  ;;  %v3738_v8 = vcombine.low %v3545_v63, %v5503_v36  ;;  %v1004_v12 = vshrl.u32 %v3529_v13, 16  ;;  %v5533_v11 = vpop.permute.xlu0 %2712  ;;  %v5542_v63 = vld [vmem:[%s4110_s17 + $0xc8] sm:$0x1] }
 0x11c   : > { %2210 = vrot.lane.b32.xlu0 %v3714_v18, %s4068_s19  ;;  %v1007_v40 = vshll.u32 %v3529_v13, 16  ;;  %v1198_v25 = vrot.slane %v1196_v46, 4  ;;  %v1201_v45 = vrot.slane %v1199_v15, 5  ;;  %v1017_v50 = vshrl.u32 %v5509_v39, 16 }
 0x11d   : > { %v3730_v5 = vcombine.low %v3529_v13, %v5509_v39  ;;  %2320 = vrot.lane.b32.xlu1 %v3737_v56, %s4067_s18  ;;  %v1178_v41 = vor.u32 %v1177_v44, %v1174_v7  ;;  %v1181_v23 = vshll.u32 %v5471_v51, 16  ;;  %v1187_v33 = vrot.slane %v1185_v47, 4 }
 0x11e   : > { %v1191_v57 = vshll.u32 %v5523_v4, 16  ;;  %v986_v2 = vor.u32 %v985_v17, %v982_v54  ;;  %v989_v14 = vshll.u32 %v5491_v38, 16  ;;  %v995_v53 = vrot.slane %v993_v3, 4 }
 0x11f   : > { %v999_v26 = vshll.u32 %v5529_v35, 16  ;;  %v1006_v19 = vrot.slane %v1004_v12, 4  ;;  %v1009_v16 = vrot.slane %v1007_v40, 5  ;;  %v1179_v1 = vrot.slane %v1178_v41, 4 }
 0x120   : > { %2304 = vrot.lane.b32.xlu0 %v3729_v20, %s4067_s18  ;;  %v1183_v31 = vrot.slane %v1181_v23, 5  ;;  %v5544_v49 = vpop.permute.xlu1 %2140  ;;  %v5548_v61 = vsel %vm2888_vm10, %v2879_v60, %v5346_v43  ;;  %v1193_v47 = vrot.slane %v1191_v57, 5  ;;  %v987_v22 = vrot.slane %v986_v2, 4  ;;  %v3577_v57 = vld [vmem:[%s4110_s17 + $0xb4] sm:$0xe] }
 0x121   : > { %v991_v18 = vrot.slane %v989_v14, 5  ;;  %2322 = vrot.lane.b32.xlu1 %v3738_v8, %s4067_s18  ;;  %v1001_v44 = vrot.slane %v999_v26, 5  ;;  %v1202_v56 = vor.u32 %v1201_v45, %v1198_v25  ;;  %v1205_v13 = vshll.u32 %v5503_v36, 16  ;;  %v5559_v8 = vld [vmem:[%s4110_s17 + $0x68] sm:$0x1] }
 0x122   : > { %v1188_v7 = vor.u32 %v1187_v33, %v1183_v31  ;;  %v1184_v54 = vsel %vm4199_vm5, %v1179_v1, %v1183_v31  ;;  %v1211_v46 = vrot.slane %v1209_v29, 4  ;;  %v1215_v15 = vshll.u32 %v5542_v63, 16 }
 0x123   : > { %v996_v3 = vor.u32 %v995_v53, %v991_v18  ;;  %v5555_v43 = vpop.permute.xlu0 %2124  ;;  %v1203_v17 = vrot.slane %v1202_v56, 4  ;;  %v1207_v20 = vrot.slane %v1205_v13, 5  ;;  %v1010_v12 = vor.u32 %v1009_v16, %v1006_v19  ;;  %v3569_v16 = vld [vmem:[%s4110_s17 + $0x54] sm:$0xe] }
 0x124   : > { %2306 = vrot.lane.b32.xlu0 %v3730_v5, %s4067_s18  ;;  %v1189_v60 = vrot.slane %v1188_v7, 4  ;;  %v992_v40 = vsel %vm4199_vm5, %v987_v22, %v991_v18  ;;  %v1013_v29 = vshll.u32 %v5509_v39, 16  ;;  %v1019_v45 = vrot.slane %v1017_v50, 4  ;;  %v5567_v2 = vpop.permute.xlu1 %2730 }
 0x125   : > { %v997_v25 = vrot.slane %v996_v3, 4  ;;  %v1212_v23 = vor.u32 %v1211_v46, %v1207_v20  ;;  %v1217_v33 = vrot.slane %v1215_v15, 5  ;;  %v1011_v5 = vrot.slane %v1010_v12, 4  ;;  %v3578_v3 = vld [vmem:[%s4110_s17 + $0xc0] sm:$0xe] }
 0x126   : > { %v1194_v41 = vsel %vm4199_vm5, %v1189_v60, %v1193_v47  ;;  %v1015_v26 = vrot.slane %v1013_v29, 5  ;;  %v1023_v19 = vshll.u32 %v5559_v8, 16  ;;  %v2896_v50 = vsel %vm2888_vm10, %v5488_v62, %v5356_v55 }
 0x127   : > { %v3753_v14 = vcombine.low %v1184_v54, %v1194_v41  ;;  %v1002_v53 = vsel %vm4199_vm5, %v997_v25, %v1001_v44  ;;  %v1208_v31 = vsel %vm4199_vm5, %v1203_v17, %v1207_v20  ;;  %v1213_v47 = vrot.slane %v1212_v23, 4  ;;  %v5581_v56 = vpop.permute.xlu0 %2714 }
 0x128   : > { %v3745_v1 = vcombine.low %v992_v40, %v1002_v53  ;;  %v1016_v22 = vsel %vm4199_vm5, %v1011_v5, %v1015_v26  ;;  %v1020_v18 = vor.u32 %v1019_v45, %v1015_v26  ;;  %v1025_v7 = vrot.slane %v1023_v19, 5  ;;  %v3570_v40 = vld [vmem:[%s4110_s17 + $0x60] sm:$0xe] }
 0x129   : > { %2400 = vrot.lane.b32.xlu1 %v3753_v14, %s4070_s21  ;;  %v3593_v44 = vrot.slane %v3577_v57, 9  ;;  %v1218_v55 = vsel %vm4199_vm5, %v1213_v47, %v1217_v33  ;;  %v1383_v62 = vrot.slane %v5471_v51, 5  ;;  %v1386_v13 = vrot.slane %v5523_v4, 5  ;;  %v3623_v57 = vld [vmem:[%s4110_s17 + $0xc0] sm:$0xf] }
 0x12a   : > { %2384 = vrot.lane.b32.xlu0 %v3745_v1, %s4070_s21  ;;  %v3585_v54 = vrot.slane %v3569_v16, 9  ;;  %v3754_v46 = vcombine.low %v1208_v31, %v1218_v55  ;;  %v1021_v15 = vrot.slane %v1020_v18, 4  ;;  %v1327_v60 = vrot.slane %v5491_v38, 5  ;;  %v5622_v19 = vld [vmem:[%s4110_s17 + $0x60] sm:$0xf] }
 0x12b   : > { %v1330_v17 = vrot.slane %v5529_v35, 5  ;;  %v2943_v20 = vsel %vm2921_vm11, %v5516_v37, %v5375_v9  ;;  %v2927_v12 = vsel %vm2921_vm11, %v5520_v34, %v5391_v27  ;;  %v1384_v51 = vsel %vm4141_vm2, %v3593_v44, %v1383_v62  ;;  %v5639_v18 = vld [vmem:[%s4110_s17 + $0xc4] sm:$0xf] }
 0x12c   : > { %v1385_v4 = vrot.slane %v1383_v62, 4  ;;  %v1026_v38 = vsel %vm4199_vm5, %v1021_v15, %v1025_v7  ;;  %v1328_v9 = vsel %vm4141_vm2, %v3585_v54, %v1327_v60  ;;  %v1329_v37 = vrot.slane %v1327_v60, 4 }
 0x12d   : > { %2402 = vrot.lane.b32.xlu1 %v3754_v46, %s4070_s21  ;;  %v3594_v35 = vrot.slane %v3578_v3, 9  ;;  %v3746_v27 = vcombine.low %v1016_v22, %v1026_v38  ;;  %v1390_v29 = vrot.slane %v5503_v36, 5  ;;  %v1393_v45 = vrot.slane %v5542_v63, 5  ;;  %v5656_v3 = vld [vmem:[%s4110_s17 + $0x6c] sm:$0xf] }
 0x12e   : > { %v5600_v25 = vpop.permute.xlu1 %2142  ;;  %v1387_v34 = vsel %vm4141_vm2, %v1385_v4, %v1386_v13  ;;  %v1331_v23 = vsel %vm4141_vm2, %v1329_v37, %v1330_v17  ;;  %v3586_v33 = vrot.slane %v3570_v40, 9  ;;  %v1334_v5 = vrot.slane %v5509_v39, 5  ;;  %v5662_v17 = vld [vmem:[%s4110_s17 + $0x64] sm:$0xf]  ;;  %v5673_v40 = vld [vmem:[%s4110_s17 + $0x70] sm:$0xf] }
 0x12f   : > { %v3769_v41 = vcombine.low %v1384_v51, %v1387_v34  ;;  %2386 = vrot.lane.b32.xlu0 %v3746_v27, %s4070_s21  ;;  %v3761_v53 = vcombine.low %v1328_v9, %v1331_v23  ;;  %v1391_v26 = vsel %vm4141_vm2, %v3594_v35, %v1390_v29  ;;  %v1392_v36 = vrot.slane %v1390_v29, 4  ;;  %v5681_v27 = vld [vmem:[%s4110_s17 + $0xc8] sm:$0x1] }
 0x130   : > { %v1337_v63 = vrot.slane %v5559_v8, 5  ;;  %v2945_v39 = vsel %vm2921_vm11, %v5548_v61, %v5402_v28  ;;  %v2929_v1 = vsel %vm2921_vm11, %v2896_v50, %v5413_v24  ;;  %v1335_v31 = vsel %vm4141_vm2, %v3586_v33, %v1334_v5 }
 0x131   : > { %v5615_v14 = vpop.permute.xlu0 %2126  ;;  %2480 = vrot.lane.b32.xlu1 %v3769_v41, %s4071_s22  ;;  %v1336_v47 = vrot.slane %v1334_v5, 4  ;;  %v2976_v8 = vsel %vm2954_vm12, %v2943_v20, %v5422_v32  ;;  %v1394_v22 = vsel %vm4141_vm2, %v1392_v36, %v1393_v45  ;;  %v1781_v7 = vshrl.u32 %v3623_v57, 16  ;;  %v3625_v32 = vld [vmem:[%s4110_s17 + $0xcc] sm:$0xf]  ;;  %v5667_v20 = vld [vmem:[%s4110_s17 + $0xd0] sm:$0xf] }
 0x132   : > { %v5624_v16 = vpop.permute.xlu1 %2220  ;;  %v1784_v28 = vshll.u32 %v3623_v57, 16  ;;  %v2960_v24 = vsel %vm2954_vm12, %v2927_v12, %v5446_v59  ;;  %v3770_v61 = vcombine.low %v1391_v26, %v1394_v22  ;;  %v1589_v44 = vshrl.u32 %v5622_v19, 16 }
 0x133   : > { %v1338_v50 = vsel %vm4141_vm2, %v1336_v47, %v1337_v63  ;;  %2464 = vrot.lane.b32.xlu0 %v3761_v53, %s4071_s22  ;;  %v2978_v13 = vsel %vm2954_vm12, %v2945_v39, %v5466_v52  ;;  %v2962_v59 = vsel %vm2954_vm12, %v2929_v1, %v5494_v0  ;;  %v1592_v54 = vshll.u32 %v5622_v19, 16 }
 0x134   : > { %v3762_v62 = vcombine.low %v1335_v31, %v1338_v50  ;;  %v1783_v46 = vrot.slane %v1781_v7, 4  ;;  %v1794_v15 = vshrl.u32 %v5639_v18, 16  ;;  %v3785_v60 = vcombine.low %v3623_v57, %v5639_v18 }
 0x135   : > { %v5647_v55 = vpop.permute.xlu0 %2204  ;;  %2482 = vrot.lane.b32.xlu1 %v3770_v61, %s4071_s22  ;;  %v3009_v52 = vsel %vm2987_vm13, %v2976_v8, %v5511_v48  ;;  %v1786_v0 = vrot.slane %v1784_v28, 5  ;;  %v2993_v12 = vsel %vm2987_vm13, %v2960_v24, %v5533_v11  ;;  %v1805_v51 = vshrl.u32 %v3625_v32, 16 }
 0x136   : > { %v1808_v4 = vshll.u32 %v3625_v32, 16  ;;  %3947 = vmatprep.mubr.msk.bf16.mxu1 %vm3042_vm14, %v3009_v52  ;;  %v1591_v9 = vrot.slane %v1589_v44, 4  ;;  %v1594_v37 = vrot.slane %v1592_v54, 5  ;;  %v1613_v35 = vshrl.u32 %v5656_v3, 16  ;;  %3931 = vmatprep.mubr.msk.bf16.mxu0 %vm3042_vm14, %v2993_v12  ;;  %v5711_v54 = vld [vmem:[%s4110_s17 + $0xd4] sm:$0x1] }
 0x137   : > { %v5675_v38 = vpop.permute.xlu1 %2222  ;;  %v1616_v48 = vshll.u32 %v5656_v3, 16  ;;  %2466 = vrot.lane.b32.xlu0 %v3762_v62, %s4071_s22  ;;  %v1602_v34 = vshrl.u32 %v5662_v17, 16  ;;  %v3777_v29 = vcombine.low %v5622_v19, %v5662_v17  ;;  %v1818_v45 = vshrl.u32 %v5667_v20, 16  ;;  %v5698_v19 = vld [vmem:[%s4110_s17 + $0x68] sm:$0x1] }
 0x138   : > { %v3786_v41 = vcombine.low %v3625_v32, %v5667_v20  ;;  %v1807_v23 = vrot.slane %v1805_v51, 4  ;;  %v1810_v33 = vrot.slane %v1808_v4, 5  ;;  %v1626_v5 = vshrl.u32 %v5673_v40, 16 }
 0x139   : > { %v5683_v11 = vpop.permute.xlu0 %2206  ;;  %2576 = vrot.lane.b32.xlu1 %v3785_v60, %s4072_s23  ;;  %v3778_v57 = vcombine.low %v5656_v3, %v5673_v40  ;;  %v1787_v53 = vor.u32 %v1786_v0, %v1783_v46  ;;  %v1790_v26 = vshll.u32 %v5639_v18, 16  ;;  %v1796_v36 = vrot.slane %v1794_v15, 4 }
 0x13a   : > { %v1800_v63 = vshll.u32 %v5681_v27, 16  ;;  %v1615_v1 = vrot.slane %v1613_v35, 4  ;;  %v1618_v31 = vrot.slane %v1616_v48, 5  ;;  %v1595_v47 = vor.u32 %v1594_v37, %v1591_v9 }
 0x13b   : > { %v5700_v39 = vpop.permute.xlu1 %2316  ;;  %v1598_v8 = vshll.u32 %v5662_v17, 16  ;;  %2560 = vrot.lane.b32.xlu0 %v3777_v29, %s4072_s23  ;;  %v1788_v7 = vrot.slane %v1787_v53, 4  ;;  %v1792_v28 = vrot.slane %v1790_v26, 5  ;;  %v1604_v61 = vrot.slane %v1602_v34, 4 }
 0x13c   : > { %v1802_v24 = vrot.slane %v1800_v63, 5  ;;  %v1596_v50 = vrot.slane %v1595_v47, 4  ;;  %v1608_v32 = vshll.u32 %v5698_v19, 16  ;;  %v3011_v62 = vsel %vm2987_vm13, %v2978_v13, %v5567_v2  ;;  %v5722_v2 = vld [vmem:[%s4110_s17 + $0x74] sm:$0x1] }
 0x13d   : > { %v5703_v22 = vpop.permute.xlu0 %2300  ;;  %2578 = vrot.lane.b32.xlu1 %v3786_v41, %s4072_s23  ;;  %v1600_v44 = vrot.slane %v1598_v8, 5  ;;  %v1793_v3 = vsel %vm4199_vm5, %v1788_v7, %v1792_v28  ;;  %v1797_v46 = vor.u32 %v1796_v36, %v1792_v28  ;;  %v2995_v15 = vsel %vm2987_vm13, %v2962_v59, %v5581_v56  ;;  %3948 = vmatmul.mubr.msk.bf16.gmra.mrb[4].mxu1 %vm3042_vm14, %v3011_v62 }
 0x13e   : > { %v1811_v60 = vor.u32 %v1810_v33, %v1807_v23  ;;  %v1610_v12 = vrot.slane %v1608_v32, 5  ;;  %v1814_v51 = vshll.u32 %v5667_v20, 16  ;;  %3932 = vmatmul.mubr.msk.bf16.gmra.mrb[4].mxu0 %vm3042_vm14, %v2995_v15  ;;  %v1820_v4 = vrot.slane %v1818_v45, 4  ;;  %v3658_v15 = vld [vmem:[%s4110_s17 + $0xcc] sm:$0xe] }
 0x13f   : > { %v1601_v52 = vsel %vm4199_vm5, %v1596_v50, %v1600_v44  ;;  %v1605_v0 = vor.u32 %v1604_v61, %v1600_v44  ;;  %v5725_v13 = vpop.permute.xlu1 %2318  ;;  %2562 = vrot.lane.b32.xlu0 %v3778_v57, %s4072_s23  ;;  %v1798_v56 = vrot.slane %v1797_v46, 4  ;;  %v1824_v9 = vshll.u32 %v5711_v54, 16  ;;  %v3657_v57 = vld [vmem:[%s4110_s17 + $0xc0] sm:$0xe] }
 0x140   : > { %v1812_v59 = vrot.slane %v1811_v60, 4  ;;  %v1816_v48 = vrot.slane %v1814_v51, 5  ;;  %v1619_v34 = vor.u32 %v1618_v31, %v1615_v1  ;;  %v1622_v29 = vshll.u32 %v5673_v40, 16  ;;  %v3649_v1 = vld [vmem:[%s4110_s17 + $0x60] sm:$0xe] }
 0x141   : > { %v5729_v37 = vpop.permute.xlu0 %2302  ;;  %v1606_v35 = vrot.slane %v1605_v0, 4  ;;  %v1803_v41 = vsel %vm4199_vm5, %v1798_v56, %v1802_v24  ;;  %v1628_v23 = vrot.slane %v1626_v5, 4  ;;  %v1632_v33 = vshll.u32 %v5722_v2, 16  ;;  %v3650_v51 = vld [vmem:[%s4110_s17 + $0x6c] sm:$0xe] }
 0x142   : > { %v3801_v53 = vcombine.low %v1793_v3, %v1803_v41  ;;  %v1821_v26 = vor.u32 %v1820_v4, %v1816_v48  ;;  %v1826_v36 = vrot.slane %v1824_v9, 5  ;;  %v1620_v47 = vrot.slane %v1619_v34, 4 }
 0x143   : > { %v1611_v45 = vsel %vm4199_vm5, %v1606_v35, %v1610_v12  ;;  %v1624_v8 = vrot.slane %v1622_v29, 5  ;;  %v1817_v31 = vsel %vm4199_vm5, %v1812_v59, %v1816_v48  ;;  %v3673_v7 = vrot.slane %v3657_v57, 9 }
 0x144   : > { %v3793_v63 = vcombine.low %v1601_v52, %v1611_v45  ;;  %2656 = vrot.lane.b32.xlu1 %v3801_v53, %s4073_s24  ;;  %v1822_v5 = vrot.slane %v1821_v26, 4  ;;  %v1634_v61 = vrot.slane %v1632_v33, 5  ;;  %v1992_v50 = vrot.slane %v5639_v18, 5 }
 0x145   : > { %v1629_v24 = vor.u32 %v1628_v23, %v1624_v8  ;;  %v1995_v44 = vrot.slane %v5681_v27, 5  ;;  %v1625_v3 = vsel %vm4199_vm5, %v1620_v47, %v1624_v8  ;;  %v3665_v46 = vrot.slane %v3649_v1, 9 }
 0x146   : > { %v5742_v28 = vpop.permute.xlu1 %2396  ;;  %2640 = vrot.lane.b32.xlu0 %v3793_v63, %s4073_s24  ;;  %v1827_v62 = vsel %vm4199_vm5, %v1822_v5, %v1826_v36  ;;  %v1993_v0 = vsel %vm4141_vm2, %v3673_v7, %v1992_v50  ;;  %v1994_v12 = vrot.slane %v1992_v50, 4  ;;  %v1936_v18 = vrot.slane %v5662_v17, 5  ;;  %v4047_v50 = vld [vmem:[%s4110_s17 + $0x90] sm:$0xf] }
 0x147   : > { %v5747_v32 = vpop.permute.xlu0 %2380  ;;  %v3802_v60 = vcombine.low %v1817_v31, %v1827_v62  ;;  %v1630_v52 = vrot.slane %v1629_v24, 4  ;;  %v1939_v27 = vrot.slane %v5698_v19, 5  ;;  %v3674_v4 = vrot.slane %v3658_v15, 9  ;;  %v4050_v15 = vld [vmem:[%s4110_s17 + $0x34] sm:$0xf] }
 0x148   : > { %v1996_v59 = vsel %vm4141_vm2, %v1994_v12, %v1995_v44  ;;  %v1999_v9 = vrot.slane %v5667_v20, 5  ;;  %v1937_v34 = vsel %vm4141_vm2, %v3665_v46, %v1936_v18  ;;  %v1938_v17 = vrot.slane %v1936_v18, 4  ;;  %v4048_v44 = vld [vmem:[%s4110_s17 + $0x94] sm:$0xf]  ;;  %v4049_v46 = vld [vmem:[%s4110_s17 + $0x30] sm:$0xf] }
 0x149   : > { %2658 = vrot.lane.b32.xlu1 %v3802_v60, %s4073_s24  ;;  %v1635_v56 = vsel %vm4199_vm5, %v1630_v52, %v1634_v61  ;;  %v3817_v48 = vcombine.low %v1993_v0, %v1996_v59  ;;  %v2002_v30 = vrot.slane %v5711_v54, 5  ;;  %v3666_v23 = vrot.slane %v3650_v51, 9 }
 0x14a   : > { %v3794_v35 = vcombine.low %v1625_v3, %v1635_v56  ;;  %v2000_v19 = vsel %vm4141_vm2, %v3674_v4, %v1999_v9  ;;  %v2001_v41 = vrot.slane %v1999_v9, 4  ;;  %v1940_v20 = vsel %vm4141_vm2, %v1938_v17, %v1939_v27  ;;  %v4052_v17 = vld [vmem:[%s4110_s17 + $0xa0] sm:$0xf] }
 0x14b   : > { %v1943_v57 = vrot.slane %v5673_v40, 5  ;;  %v1946_v53 = vrot.slane %v5722_v2, 5  ;;  %v3809_v45 = vcombine.low %v1937_v34, %v1940_v20  ;;  %v3687_v62 = vcombine.low %v4047_v50, %v4048_v44  ;;  %v4051_v34 = vld [vmem:[%s4110_s17 + $0x9c] sm:$0xf] }
 0x14c   : > { %v5767_v29 = vpop.permute.xlu1 %2398  ;;  %2642 = vrot.lane.b32.xlu0 %v3794_v35, %s4073_s24  ;;  %v2003_v26 = vsel %vm4141_vm2, %v2001_v41, %v2002_v30  ;;  %v3679_v21 = vcombine.low %v4049_v46, %v4050_v15  ;;  %v4053_v41 = vld [vmem:[%s4110_s17 + $0x3c] sm:$0xf]  ;;  %v4054_v30 = vld [vmem:[%s4110_s17 + $0x40] sm:$0xf] }
 0x14d   : > { %v5772_v33 = vpop.permute.xlu0 %2382  ;;  %2736 = vrot.lane.b32.xlu1 %v3817_v48, %s4074_s25  ;;  %v3818_v36 = vcombine.low %v2000_v19, %v2003_v26  ;;  %v1944_v54 = vsel %vm4141_vm2, %v3666_v23, %v1943_v57  ;;  %v1945_v63 = vrot.slane %v1943_v57, 4  ;;  %v2779_v52 = vsel %vm2740_vm6, %v3687_v62, %v5544_v49 }
 0x14e   : > { %v2815_v0 = vsel %vm2789_vm7, %v2779_v52, %v5624_v16  ;;  %v2755_v12 = vsel %vm2740_vm6, %v3679_v21, %v5555_v43  ;;  %v3680_v23 = vcombine.low %v4053_v41, %v4054_v30 }
 0x14f   : > { %v1947_v40 = vsel %vm4141_vm2, %v1945_v63, %v1946_v53  ;;  %v2848_v18 = vsel %vm2822_vm8, %v2815_v0, %v5700_v39  ;;  %v2799_v51 = vsel %vm2789_vm7, %v2755_v12, %v5647_v55 }
 0x150   : > { %v2477_v47 = vpop.permute.xlu1 %2476  ;;  %2720 = vrot.lane.b32.xlu0 %v3809_v45, %s4074_s25  ;;  %v3810_v2 = vcombine.low %v1944_v54, %v1947_v40  ;;  %v2881_v56 = vsel %vm2855_vm9, %v2848_v18, %v5742_v28  ;;  %v2832_v49 = vsel %vm2822_vm8, %v2799_v51, %v5703_v22  ;;  %v2758_v26 = vsel %vm2740_vm6, %v3680_v23, %v5615_v14 }
 0x151   : > { %v2461_v8 = vpop.permute.xlu0 %2460  ;;  %2738 = vrot.lane.b32.xlu1 %v3818_v36, %s4074_s25  ;;  %v2914_v16 = vsel %vm2888_vm10, %v2881_v56, %v2477_v47  ;;  %v2865_v43 = vsel %vm2855_vm9, %v2832_v49, %v5747_v32  ;;  %v3688_v32 = vcombine.low %v4051_v34, %v4052_v17  ;;  %v2801_v54 = vsel %vm2789_vm7, %v2758_v26, %v5683_v11 }
 0x152   : > { %v2898_v4 = vsel %vm2888_vm10, %v2865_v43, %v2461_v8 }
 0x153   : > { %v2782_v20 = vsel %vm2740_vm6, %v3688_v32, %v5600_v25  ;;  %v2834_v25 = vsel %vm2822_vm8, %v2801_v54, %v5729_v37 }
 0x154   : > { %v2479_v1 = vpop.permute.xlu1 %2478  ;;  %2722 = vrot.lane.b32.xlu0 %v3810_v2, %s4074_s25  ;;  %v2817_v57 = vsel %vm2789_vm7, %v2782_v20, %v5675_v38 }
 0x155   : > { %v2463_v31 = vpop.permute.xlu0 %2462  ;;  %v2850_v53 = vsel %vm2822_vm8, %v2817_v57, %v5725_v13  ;;  %v2867_v13 = vsel %vm2855_vm9, %v2834_v25, %v5772_v33  ;;  %v5877_v25 = vld [vmem:[%s6005_s2] ss:$0 sm:$0xff] }
 0x156   : > { %v2883_v36 = vsel %vm2855_vm9, %v2850_v53, %v5767_v29  ;;  %v2900_v40 = vsel %vm2888_vm10, %v2867_v13, %v2463_v31 }
 0x157   : > { %v2916_v63 = vsel %vm2888_vm10, %v2883_v36, %v2479_v1 }
 0x158   : > { %v2573_v5 = vpop.permute.xlu1 %2572 }
 0x159   : > { %v2557_v7 = vpop.permute.xlu0 %2556  ;;  %v2947_v39 = vsel %vm2921_vm11, %v2914_v16, %v2573_v5  ;;  %v4055_v16 = vld [vmem:[%s4110_s17 + $0xa8] sm:$0xf] }
 0x15a   : > { %v2931_v28 = vsel %vm2921_vm11, %v2898_v4, %v2557_v7  ;;  %v4057_v4 = vld [vmem:[%s4110_s17 + $0x48] sm:$0xf] }
 0x15c   : > { %v2575_v24 = vpop.permute.xlu1 %2574 }
 0x15d   : > { %v2559_v61 = vpop.permute.xlu0 %2558  ;;  %v2949_v38 = vsel %vm2921_vm11, %v2916_v63, %v2575_v24 }
 0x15e   : > { %v2933_v11 = vsel %vm2921_vm11, %v2900_v40, %v2559_v61 }
 0x162   : > { %v2653_v3 = vpop.permute.xlu1 %2652 }
 0x163   : > { %v2980_v55 = vsel %vm2954_vm12, %v2947_v39, %v2653_v3 }
 0x166   : > { %v2637_v60 = vpop.permute.xlu0 %2636 }
 0x167   : > { %v2964_v22 = vsel %vm2954_vm12, %v2931_v28, %v2637_v60 }
 0x169   : > { %v2655_v27 = vpop.permute.xlu1 %2654 }
 0x16a   : > { %v2982_v8 = vsel %vm2954_vm12, %v2949_v38, %v2655_v27 }
 0x16b   : > { %v2639_v59 = vpop.permute.xlu0 %2638 }
 0x16c   : > { %v2966_v2 = vsel %vm2954_vm12, %v2933_v11, %v2639_v59  ;;  %v4056_v59 = vld [vmem:[%s4110_s17 + $0xac] sm:$0xf] }
 0x16d   : > { %v2733_v9 = vpop.permute.xlu1 %2732  ;;  %v3689_v43 = vcombine.low %v4055_v16, %v4056_v59 }
 0x16e   : > { %v3013_v35 = vsel %vm2987_vm13, %v2980_v55, %v2733_v9  ;;  %v4058_v55 = vld [vmem:[%s4110_s17 + $0x4c] sm:$0xf] }
 0x16f   : > { %v2717_v48 = vpop.permute.xlu0 %2716  ;;  %3951 = vmatprep.mubr.msk.bf16.mxu1 %vm3042_vm14, %v3013_v35  ;;  %v3681_v9 = vcombine.low %v4057_v4, %v4058_v55 }
 0x170   : > { %v2997_v19 = vsel %vm2987_vm13, %v2964_v22, %v2717_v48  ;;  %v3690_v22 = vcombine.low %v5354_v42, %v5363_v6  ;;  %v3682_v48 = vcombine.low %v5382_v58, %v5389_v10 }
 0x171   : > { %3935 = vmatprep.mubr.msk.bf16.mxu0 %vm3042_vm14, %v2997_v19 }
 0x175   : > { %v2145_v45 = vpop.permute.xlu1 %2144 }
 0x176   : > { %v2785_v35 = vsel %vm2740_vm6, %v3689_v43, %v2145_v45 }
 0x179   : > { %v2129_v47 = vpop.permute.xlu0 %2128  ;;  %v2735_v14 = vpop.permute.xlu1 %2734 }
 0x17a   : > { %v3015_v29 = vsel %vm2987_vm13, %v2982_v8, %v2735_v14  ;;  %v2761_v19 = vsel %vm2740_vm6, %v3681_v9, %v2129_v47 }
 0x17b   : > { %3952 = vmatmul.mubr.msk.bf16.gmra.mrb[8].mxu1 %vm3042_vm14, %v3015_v29 }
 0x17d   : > { %v2719_v37 = vpop.permute.xlu0 %2718 }
 0x17e   : > { %v2999_v1 = vsel %vm2987_vm13, %v2966_v2, %v2719_v37 }
 0x17f   : > { %3936 = vmatmul.mubr.msk.bf16.gmra.mrb[8].mxu0 %vm3042_vm14, %v2999_v1 }
 0x183   : > { %v2147_v5 = vpop.permute.xlu1 %2146 }
 0x184   : > { %v2788_v30 = vsel %vm2740_vm6, %v3690_v22, %v2147_v5 }
 0x186   : > { %v2131_v33 = vpop.permute.xlu0 %2130 }
 0x187   : > { %v2225_v7 = vpop.permute.xlu1 %2224  ;;  %v2764_v23 = vsel %vm2740_vm6, %v3682_v48, %v2131_v33 }
 0x188   : > { %v2819_v34 = vsel %vm2789_vm7, %v2785_v35, %v2225_v7 }
 0x18a   : > { %v2209_v24 = vpop.permute.xlu0 %2208 }
 0x18b   : > { %v2227_v50 = vpop.permute.xlu1 %2226  ;;  %v2803_v20 = vsel %vm2789_vm7, %v2761_v19, %v2209_v24 }
 0x18c   : > { %v2821_v6 = vsel %vm2789_vm7, %v2788_v30, %v2227_v50 }
 0x18e   : > { %v2211_v44 = vpop.permute.xlu0 %2210 }
 0x18f   : > { %v2321_v31 = vpop.permute.xlu1 %2320  ;;  %v2805_v58 = vsel %vm2789_vm7, %v2764_v23, %v2211_v44 }
 0x190   : > { %v2852_v17 = vsel %vm2822_vm8, %v2819_v34, %v2321_v31 }
 0x192   : > { %v2305_v62 = vpop.permute.xlu0 %2304 }
 0x193   : > { %v2323_v61 = vpop.permute.xlu1 %2322  ;;  %v2836_v10 = vsel %vm2822_vm8, %v2803_v20, %v2305_v62 }
 0x194   : > { %v2854_v45 = vsel %vm2822_vm8, %v2821_v6, %v2323_v61 }
 0x196   : > { %v2307_v3 = vpop.permute.xlu0 %2306 }
 0x197   : > { %v2838_v26 = vsel %vm2822_vm8, %v2805_v58, %v2307_v3 }
 0x19b   : > { %v2401_v46 = vpop.permute.xlu1 %2400 }
 0x19c   : > { %v2385_v15 = vpop.permute.xlu0 %2384  ;;  %v2885_v41 = vsel %vm2855_vm9, %v2852_v17, %v2401_v46 }
 0x19d   : > { %v2869_v36 = vsel %vm2855_vm9, %v2836_v10, %v2385_v15 }
 0x19f   : > { %v2403_v21 = vpop.permute.xlu1 %2402 }
 0x1a0   : > { %v2887_v38 = vsel %vm2855_vm9, %v2854_v45, %v2403_v21 }
 0x1a1   : > { %v2387_v60 = vpop.permute.xlu0 %2386 }
 0x1a2   : > { %v2871_v47 = vsel %vm2855_vm9, %v2838_v26, %v2387_v60 }
 0x1a3   : > { %v2481_v52 = vpop.permute.xlu1 %2480 }
 0x1a4   : > { %v2918_v42 = vsel %vm2888_vm10, %v2885_v41, %v2481_v52 }
 0x1a5   : > { %v2465_v0 = vpop.permute.xlu0 %2464 }
 0x1a6   : > { %v2902_v13 = vsel %vm2888_vm10, %v2869_v36, %v2465_v0 }
 0x1a7   : > { %v2483_v12 = vpop.permute.xlu1 %2482 }
 0x1a8   : > { %v2920_v14 = vsel %vm2888_vm10, %v2887_v38, %v2483_v12 }
 0x1a9   : > { %v2467_v18 = vpop.permute.xlu0 %2466 }
 0x1aa   : > { %v2904_v40 = vsel %vm2888_vm10, %v2871_v47, %v2467_v18 }
 0x1ab   : > { %v2577_v27 = vpop.permute.xlu1 %2576 }
 0x1ac   : > { %v2951_v57 = vsel %vm2921_vm11, %v2918_v42, %v2577_v27 }
 0x1ad   : > { %v2561_v51 = vpop.permute.xlu0 %2560 }
 0x1ae   : > { %v2935_v29 = vsel %vm2921_vm11, %v2902_v13, %v2561_v51 }
 0x1af   : > { %v2579_v56 = vpop.permute.xlu1 %2578 }
 0x1b0   : > { %v2953_v37 = vsel %vm2921_vm11, %v2920_v14, %v2579_v56 }
 0x1b1   : > { %v2563_v49 = vpop.permute.xlu0 %2562 }
 0x1b2   : > { %v2937_v50 = vsel %vm2921_vm11, %v2904_v40, %v2563_v49 }
 0x1b6   : > { %v2657_v39 = vpop.permute.xlu1 %2656 }
 0x1b7   : > { %v2984_v54 = vsel %vm2954_vm12, %v2951_v57, %v2657_v39 }
 0x1b8   : > { %v2641_v28 = vpop.permute.xlu0 %2640 }
 0x1b9   : > { %v2968_v1 = vsel %vm2954_vm12, %v2935_v29, %v2641_v28 }
 0x1bb   : > { %v2659_v32 = vpop.permute.xlu1 %2658 }
 0x1bc   : > { %v2986_v44 = vsel %vm2954_vm12, %v2953_v37, %v2659_v32 }
 0x1be   : > { %v2643_v53 = vpop.permute.xlu0 %2642 }
 0x1bf   : > { %v2737_v63 = vpop.permute.xlu1 %2736  ;;  %v2970_v12 = vsel %vm2954_vm12, %v2937_v50, %v2643_v53 }
 0x1c0   : > { %v3017_v8 = vsel %vm2987_vm13, %v2984_v54, %v2737_v63 }
 0x1c1   : > { %3955 = vmatprep.mubr.msk.bf16.mxu1 %vm3042_vm14, %v3017_v8 }
 0x1c2   : > { %v3929_v11 = vpop.f32.mrb[0].mxu0  ;;  %v2721_v5 = vpop.permute.xlu0 %2720 }
 0x1c3   : > { %v3945_v2 = vpop.f32.mrb[0].mxu1  ;;  %v3125_v33 = vadd.f32 %v3929_v11, %v5877_v25  ;;  %v3116_v24 = vpop.f32.mrb[1].mxu0  ;;  %v3001_v31 = vsel %vm2987_vm13, %v2968_v1, %v2721_v5 }
 0x1c4   : > { %v3189_v7 = vadd.f32 %v3945_v2, %v5877_v25  ;;  %v2739_v62 = vpop.permute.xlu1 %2738  ;;  %v3117_v61 = vadd.f32 %v5877_v25, %v3116_v24  ;;  %v3180_v3 = vpop.f32.mrb[1].mxu1  ;;  %3939 = vmatprep.mubr.msk.bf16.mxu0 %vm3042_vm14, %v3001_v31 }
 0x1c5   : > { %v3019_v46 = vsel %vm2987_vm13, %v2986_v44, %v2739_v62  ;;  %v3245_v15 = vmax.f32 %v3125_v33, 0.0  ;;  %v3181_v60 = vadd.f32 %v5877_v25, %v3180_v3  ;;  %v3930_v52 = vpop.f32.mrb[2].mxu0  ;;  %v3946_v0 = vpop.f32.mrb[2].mxu1 }
 0x1c6   : > { %v3261_v21 = vmax.f32 %v3189_v7, 0.0  ;;  %3956 = vmatmul.mubr.msk.bf16.gmra.mrb[12].mxu1 %vm3042_vm14, %v3019_v46  ;;  %v3243_v18 = vmax.f32 %v3117_v61, 0.0  ;;  %v3128_v27 = vadd.f32 %v3930_v52, %v5877_v25  ;;  %v3192_v51 = vadd.f32 %v3946_v0, %v5877_v25  ;;  %v3119_v56 = vpop.f32.mrb[3].mxu0  ;;  %v3183_v49 = vpop.f32.mrb[3].mxu1 }
 0x1c7   : > { %v2723_v16 = vpop.permute.xlu0 %2722  ;;  %v3875_v59 = vpack.c.bf16 %v3245_v15, %v3245_v15  ;;  %v3259_v39 = vmax.f32 %v3181_v60, 0.0  ;;  %v3120_v4 = vadd.f32 %v5877_v25, %v3119_v56  ;;  %v3184_v34 = vadd.f32 %v5877_v25, %v3183_v49 }
 0x1c8   : > { %v3891_v43 = vpack.c.bf16 %v3261_v21, %v3261_v21  ;;  %v3003_v55 = vsel %vm2987_vm13, %v2970_v12, %v2723_v16  ;;  %v3873_v9 = vpack.c.bf16 %v3243_v18, %v3243_v18  ;;  %v3246_v28 = vmax.f32 %v3128_v27, 0.0 }
 0x1c9   : > { %v3262_v35 = vmax.f32 %v3192_v51, 0.0  ;;  %3940 = vmatmul.mubr.msk.bf16.gmra.mrb[12].mxu0 %vm3042_vm14, %v3003_v55  ;;  %3406 = vst.msk [vmem:[%s5904_s8 + $0x8] sm:$0xf] %vm3403_vm1, %v3875_v59  ;;  %v3889_v22 = vpack.c.bf16 %v3259_v39, %v3259_v39  ;;  %v3244_v48 = vmax.f32 %v3120_v4, 0.0  ;;  %v3260_v41 = vmax.f32 %v3184_v34, 0.0 }
 0x1ca   : > { %3422 = vst.msk [vmem:[%s5904_s8 + $0x48] sm:$0xf] %vm3403_vm1, %v3891_v43  ;;  %3404 = vst.msk [vmem:[%s5904_s8] sm:$0xf] %vm3403_vm1, %v3873_v9  ;;  %v3876_v17 = vpack.c.bf16 %v3246_v28, %v3246_v28 }
 0x1cb   : > { %v3892_v32 = vpack.c.bf16 %v3262_v35, %v3262_v35  ;;  %3420 = vst.msk [vmem:[%s5904_s8 + $0x40] sm:$0xf] %vm3403_vm1, %v3889_v22  ;;  %v3874_v19 = vpack.c.bf16 %v3244_v48, %v3244_v48  ;;  %v3890_v30 = vpack.c.bf16 %v3260_v41, %v3260_v41 }
 0x1cc   : > { %3407 = vst.msk [vmem:[%s5904_s8 + $0xc] sm:$0xf] %vm3403_vm1, %v3876_v17 }
 0x1cd   : > { %3423 = vst.msk [vmem:[%s5904_s8 + $0x4c] sm:$0xf] %vm3403_vm1, %v3892_v32  ;;  %3405 = vst.msk [vmem:[%s5904_s8 + $0x4] sm:$0xf] %vm3403_vm1, %v3874_v19 }
 0x1ce   : > { %3421 = vst.msk [vmem:[%s5904_s8 + $0x44] sm:$0xf] %vm3403_vm1, %v3890_v30 }
 0x210   : > { %v3949_v23 = vpop.f32.mrb[4].mxu1 }
 0x211   : > { %v3933_v20 = vpop.f32.mrb[4].mxu0  ;;  %v3205_v42 = vadd.f32 %v3949_v23, %v5877_v25  ;;  %v3196_v6 = vpop.f32.mrb[5].mxu1 }
 0x212   : > { %v3141_v58 = vadd.f32 %v3933_v20, %v5877_v25  ;;  %v3132_v10 = vpop.f32.mrb[5].mxu0  ;;  %v3197_v57 = vadd.f32 %v5877_v25, %v3196_v6  ;;  %v3950_v53 = vpop.f32.mrb[6].mxu1 }
 0x213   : > { %v3265_v45 = vmax.f32 %v3205_v42, 0.0  ;;  %v3133_v26 = vadd.f32 %v5877_v25, %v3132_v10  ;;  %v3934_v36 = vpop.f32.mrb[6].mxu0  ;;  %v3208_v54 = vadd.f32 %v3950_v53, %v5877_v25  ;;  %v3199_v63 = vpop.f32.mrb[7].mxu1 }
 0x214   : > { %v3249_v38 = vmax.f32 %v3141_v58, 0.0  ;;  %v3263_v47 = vmax.f32 %v3197_v57, 0.0  ;;  %v3144_v13 = vadd.f32 %v3934_v36, %v5877_v25  ;;  %v3135_v8 = vpop.f32.mrb[7].mxu0  ;;  %v3200_v14 = vadd.f32 %v5877_v25, %v3199_v63 }
 0x215   : > { %v3895_v40 = vpack.c.bf16 %v3265_v45, %v3265_v45  ;;  %v3247_v29 = vmax.f32 %v3133_v26, 0.0  ;;  %v3266_v11 = vmax.f32 %v3208_v54, 0.0  ;;  %v3136_v2 = vadd.f32 %v5877_v25, %v3135_v8 }
 0x216   : > { %v3879_v37 = vpack.c.bf16 %v3249_v38, %v3249_v38  ;;  %v3893_v1 = vpack.c.bf16 %v3263_v47, %v3263_v47  ;;  %v3250_v5 = vmax.f32 %v3144_v13, 0.0  ;;  %v3264_v33 = vmax.f32 %v3200_v14, 0.0 }
 0x217   : > { %3426 = vst.msk [vmem:[%s5904_s8 + $0x58] sm:$0xf] %vm3403_vm1, %v3895_v40  ;;  %v3877_v7 = vpack.c.bf16 %v3247_v29, %v3247_v29  ;;  %v3896_v24 = vpack.c.bf16 %v3266_v11, %v3266_v11  ;;  %v3248_v50 = vmax.f32 %v3136_v2, 0.0 }
 0x218   : > { %3410 = vst.msk [vmem:[%s5904_s8 + $0x18] sm:$0xf] %vm3403_vm1, %v3879_v37  ;;  %3424 = vst.msk [vmem:[%s5904_s8 + $0x50] sm:$0xf] %vm3403_vm1, %v3893_v1  ;;  %v3880_v44 = vpack.c.bf16 %v3250_v5, %v3250_v5  ;;  %v3894_v31 = vpack.c.bf16 %v3264_v33, %v3264_v33 }
 0x219   : > { %3408 = vst.msk [vmem:[%s5904_s8 + $0x10] sm:$0xf] %vm3403_vm1, %v3877_v7  ;;  %3427 = vst.msk [vmem:[%s5904_s8 + $0x5c] sm:$0xf] %vm3403_vm1, %v3896_v24  ;;  %v3878_v62 = vpack.c.bf16 %v3248_v50, %v3248_v50 }
 0x21a   : > { %3411 = vst.msk [vmem:[%s5904_s8 + $0x1c] sm:$0xf] %vm3403_vm1, %v3880_v44  ;;  %3425 = vst.msk [vmem:[%s5904_s8 + $0x54] sm:$0xf] %vm3403_vm1, %v3894_v31 }
 0x21b   : > { %3409 = vst.msk [vmem:[%s5904_s8 + $0x14] sm:$0xf] %vm3403_vm1, %v3878_v62 }
 0x24e   : > { %v3953_v61 = vpop.f32.mrb[8].mxu1 }
 0x24f   : > { %v3221_v3 = vadd.f32 %v3953_v61, %v5877_v25  ;;  %v3212_v46 = vpop.f32.mrb[9].mxu1 }
 0x250   : > { %v3213_v15 = vadd.f32 %v5877_v25, %v3212_v46  ;;  %v3954_v21 = vpop.f32.mrb[10].mxu1 }
 0x251   : > { %v3269_v52 = vmax.f32 %v3221_v3, 0.0  ;;  %v3224_v0 = vadd.f32 %v3954_v21, %v5877_v25  ;;  %v3215_v12 = vpop.f32.mrb[11].mxu1 }
 0x252   : > { %v3937_v60 = vpop.f32.mrb[8].mxu0  ;;  %v3267_v51 = vmax.f32 %v3213_v15, 0.0  ;;  %v3216_v56 = vadd.f32 %v5877_v25, %v3215_v12 }
 0x253   : > { %v3157_v18 = vadd.f32 %v3937_v60, %v5877_v25  ;;  %v3148_v27 = vpop.f32.mrb[9].mxu0  ;;  %v3899_v49 = vpack.c.bf16 %v3269_v52, %v3269_v52  ;;  %v3270_v43 = vmax.f32 %v3224_v0, 0.0 }
 0x254   : > { %v3149_v16 = vadd.f32 %v5877_v25, %v3148_v27  ;;  %v3938_v59 = vpop.f32.mrb[10].mxu0  ;;  %v3897_v4 = vpack.c.bf16 %v3267_v51, %v3267_v51  ;;  %v3268_v28 = vmax.f32 %v3216_v56, 0.0 }
 0x255   : > { %v3253_v39 = vmax.f32 %v3157_v18, 0.0  ;;  %v3160_v55 = vadd.f32 %v3938_v59, %v5877_v25  ;;  %v3151_v9 = vpop.f32.mrb[11].mxu0  ;;  %3430 = vst.msk [vmem:[%s5904_s8 + $0x68] sm:$0xf] %vm3403_vm1, %v3899_v49  ;;  %v3900_v22 = vpack.c.bf16 %v3270_v43, %v3270_v43 }
 0x256   : > { %v3251_v35 = vmax.f32 %v3149_v16, 0.0  ;;  %v3152_v48 = vadd.f32 %v5877_v25, %v3151_v9  ;;  %3428 = vst.msk [vmem:[%s5904_s8 + $0x60] sm:$0xf] %vm3403_vm1, %v3897_v4  ;;  %v3898_v32 = vpack.c.bf16 %v3268_v28, %v3268_v28 }
 0x257   : > { %v3883_v34 = vpack.c.bf16 %v3253_v39, %v3253_v39  ;;  %v3254_v17 = vmax.f32 %v3160_v55, 0.0  ;;  %3431 = vst.msk [vmem:[%s5904_s8 + $0x6c] sm:$0xf] %vm3403_vm1, %v3900_v22 }
 0x258   : > { %v3881_v19 = vpack.c.bf16 %v3251_v35, %v3251_v35  ;;  %v3252_v41 = vmax.f32 %v3152_v48, 0.0  ;;  %3429 = vst.msk [vmem:[%s5904_s8 + $0x64] sm:$0xf] %vm3403_vm1, %v3898_v32 }
 0x259   : > { %3414 = vst.msk [vmem:[%s5904_s8 + $0x28] sm:$0xf] %vm3403_vm1, %v3883_v34  ;;  %v3884_v30 = vpack.c.bf16 %v3254_v17, %v3254_v17 }
 0x25a   : > { %3412 = vst.msk [vmem:[%s5904_s8 + $0x20] sm:$0xf] %vm3403_vm1, %v3881_v19  ;;  %v3882_v23 = vpack.c.bf16 %v3252_v41, %v3252_v41 }
 0x25b   : > { %3415 = vst.msk [vmem:[%s5904_s8 + $0x2c] sm:$0xf] %vm3403_vm1, %v3884_v30 }
 0x25c   : > { %3413 = vst.msk [vmem:[%s5904_s8 + $0x24] sm:$0xf] %vm3403_vm1, %v3882_v23 }
 0x299   : > { %v3957_v20 = vpop.f32.mrb[12].mxu1 }
 0x29a   : > { %v3237_v42 = vadd.f32 %v3957_v20, %v5877_v25  ;;  %v3228_v6 = vpop.f32.mrb[13].mxu1 }
 0x29b   : > { %v3229_v58 = vadd.f32 %v5877_v25, %v3228_v6  ;;  %v3958_v10 = vpop.f32.mrb[14].mxu1 }
 0x29c   : > { %v3941_v57 = vpop.f32.mrb[12].mxu0  ;;  %v3273_v53 = vmax.f32 %v3237_v42, 0.0  ;;  %v3240_v45 = vadd.f32 %v3958_v10, %v5877_v25  ;;  %v3231_v26 = vpop.f32.mrb[15].mxu1 }
 0x29d   : > { %v3173_v36 = vadd.f32 %v3941_v57, %v5877_v25  ;;  %v3164_v54 = vpop.f32.mrb[13].mxu0  ;;  %v3271_v63 = vmax.f32 %v3229_v58, 0.0  ;;  %v3232_v38 = vadd.f32 %v5877_v25, %v3231_v26 }
 0x29e   : > { %v3903_v47 = vpack.c.bf16 %v3273_v53, %v3273_v53  ;;  %v3165_v13 = vadd.f32 %v5877_v25, %v3164_v54  ;;  %v3942_v8 = vpop.f32.mrb[14].mxu0  ;;  %v3274_v14 = vmax.f32 %v3240_v45, 0.0 }
 0x29f   : > { %v3257_v40 = vmax.f32 %v3173_v36, 0.0  ;;  %v3901_v29 = vpack.c.bf16 %v3271_v63, %v3271_v63  ;;  %v3176_v11 = vadd.f32 %v3942_v8, %v5877_v25  ;;  %v3167_v2 = vpop.f32.mrb[15].mxu0  ;;  %v3272_v37 = vmax.f32 %v3232_v38, 0.0 }
 0x2a0   : > { %3434 = vst.msk [vmem:[%s5904_s8 + $0x78] sm:$0xf] %vm3403_vm1, %v3903_v47  ;;  %v3255_v1 = vmax.f32 %v3165_v13, 0.0  ;;  %v3904_v5 = vpack.c.bf16 %v3274_v14, %v3274_v14  ;;  %v3168_v33 = vadd.f32 %v5877_v25, %v3167_v2 }
 0x2a1   : > { %v3887_v7 = vpack.c.bf16 %v3257_v40, %v3257_v40  ;;  %3432 = vst.msk [vmem:[%s5904_s8 + $0x70] sm:$0xf] %vm3403_vm1, %v3901_v29  ;;  %v3258_v24 = vmax.f32 %v3176_v11, 0.0  ;;  %v3902_v50 = vpack.c.bf16 %v3272_v37, %v3272_v37 }
 0x2a2   : > { %v3885_v44 = vpack.c.bf16 %v3255_v1, %v3255_v1  ;;  %3435 = vst.msk [vmem:[%s5904_s8 + $0x7c] sm:$0xf] %vm3403_vm1, %v3904_v5  ;;  %v3256_v31 = vmax.f32 %v3168_v33, 0.0 }
 0x2a3   : > { %3418 = vst.msk [vmem:[%s5904_s8 + $0x38] sm:$0xf] %vm3403_vm1, %v3887_v7  ;;  %v3888_v62 = vpack.c.bf16 %v3258_v24, %v3258_v24  ;;  %3433 = vst.msk [vmem:[%s5904_s8 + $0x74] sm:$0xf] %vm3403_vm1, %v3902_v50 }
 0x2a4   : > { %3416 = vst.msk [vmem:[%s5904_s8 + $0x30] sm:$0xf] %vm3403_vm1, %v3885_v44  ;;  %v3886_v61 = vpack.c.bf16 %v3256_v31, %v3256_v31 }
 0x2a5   : > { %3419 = vst.msk [vmem:[%s5904_s8 + $0x3c] sm:$0xf] %vm3403_vm1, %v3888_v62 }
 0x2a6   : > { %3417 = vst.msk [vmem:[%s5904_s8 + $0x34] sm:$0xf] %vm3403_vm1, %v3886_v61 }
 0x2a7 PF: > { %s13_s12 = sadd.s32 1, %s4065_s12  }
 0x2a8   : > { %p10_p4 = scmp.ge.s32.totalorder %s13_s12, 4  }
 0x2aa   :  { %12 = sbr.rel (!%p10_p4) target bundleno = 1 (0x1), region = 64 }

// kernel: exifnet_forward.10
= control target key start
LH: loop header
LB: loop body
LE: loop exit
PB: predicated region body
PF: predicated region fallthrough
CT: control target
= control target key end

     0   :  { %v580_v1 = vmov 0.0   ;;  %vm581_vm0 = vmmov 0   ;;  %s785_s0 = inlined_call_operand.vmem [shape: bf16[2,256,32], index: 0, kind: input, shape index: {}]   ;;  %s786_s1 = inlined_call_operand.vmem [shape: bf16[32,64], index: 1, kind: input, shape index: {}]   ;;  %s787_s2 = inlined_call_operand.vmem [shape: f32[1,64], index: 2, kind: input, shape index: {}]   ;;  %s788_s3 = inlined_call_operand.hbm [shape: f32[2,64], index: 3, kind: output, shape index: {}]  }
   0x1   :  { %v554_v0 = vld [vmem:[%s786_s1] sm:$0xff]   ;;  %543 = vmatprep.subr.bf16.mxu0 %v580_v1  ;;  %v555_v2 = vld [vmem:[%s786_s1 + $0x8] sm:$0xff]   ;;  %547 = vmatprep.mubr.msk.bf16.mxu0 %vm581_vm0, %v580_v1 }
   0x2   :  { %544 = vmatpush3.bf16.msra.mxu0 %v554_v0  ;;  %v382_v3 = vld [vmem:[%s785_s0] sm:$0xff]   ;;  %v509_v4 = vld [vmem:[%s785_s0 + $0x8] sm:$0xff]  }
   0x3   :  { %545 = vmatprep.subr.bf16.mxu0 %v580_v1 }
   0x6   :  { %546 = vmatpush3.bf16.msra.mxu0 %v555_v2 }
   0x7   :  { %8 = vsyncpa [#allocation3], 0  ;;  %v383_v5 = vunpack.c.l.bf16 %v382_v3  ;;  %v384_v6 = vunpack.c.h.bf16 %v382_v3  ;;  %v387_v7 = vunpack.c.l.bf16 %v509_v4  ;;  %v510_v8 = vld [vmem:[%s785_s0 + $0x10] sm:$0xff]   ;;  %vm144_vm1 = vcmask 261120   ;;  %v511_v14 = vld [vmem:[%s785_s0 + $0x18] sm:$0xff]   ;;  %s582_s24 = smov [#allocation2]  }
   0x8   :  { %v388_v9 = vunpack.c.h.bf16 %v509_v4  ;;  %v391_v10 = vunpack.c.l.bf16 %v510_v8  ;;  %v392_v16 = vunpack.c.h.bf16 %v510_v8  ;;  %v524_v17 = vld [vmem:[%s785_s0 + $0x80] sm:$0xff]   ;;  %v525_v18 = vld [vmem:[%s785_s0 + $0x88] sm:$0xff]   ;;  %v395_v21 = vunpack.c.l.bf16 %v511_v14  ;;  %v526_v27 = vld [vmem:[%s785_s0 + $0x90] sm:$0xff]   ;;  %s369_s25 = sshll.u32 %s582_s24, 4  ;;  %s370_s25 = int_to_ptr.vmem [resolvable:$true] %s369_s25 }
   0x9   :  { %v145_v11 = vsel %vm144_vm1, %v383_v5, 0.0  ;;  %v146_v12 = vsel %vm144_vm1, %v384_v6, 0.0  ;;  %v148_v13 = vsel %vm144_vm1, %v387_v7, 0.0  ;;  %v512_v23 = vld [vmem:[%s785_s0 + $0x20] sm:$0xff]   ;;  %v447_v24 = vunpack.c.l.bf16 %v524_v17  ;;  %v513_v36 = vld [vmem:[%s785_s0 + $0x28] sm:$0xff]   ;;  %v527_v42 = vld [vmem:[%s785_s0 + $0x98] sm:$0xff]   ;;  %p561_p1 = scmp.lt.s32.totalorder %s370_s25, %s370_s25 }
   0xa   :  { %v147_v15 = vadd.f32 %v146_v12, %v145_v11  ;;  %v150_v19 = vsel %vm144_vm1, %v388_v9, 0.0  ;;  %v152_v22 = vsel %vm144_vm1, %v391_v10, 0.0  ;;  %v448_v25 = vunpack.c.h.bf16 %v524_v17  ;;  %v514_v51 = vld [vmem:[%s785_s0 + $0x30] sm:$0xff]   ;;  %v528_v56 = vld [vmem:[%s785_s0 + $0xa0] sm:$0xff]   ;;  %v515_v1 = vld [vmem:[%s785_s0 + $0x38] sm:$0xff]   ;;  %s556_s26 = scalar_lea.vmem %s370_s25, 32 }
   0xb   :  { %v451_v26 = vunpack.c.l.bf16 %v525_v18  ;;  %v396_v29 = vunpack.c.h.bf16 %v511_v14  ;;  %v154_v30 = vsel %vm144_vm1, %v392_v16, 0.0  ;;  %v452_v31 = vunpack.c.h.bf16 %v525_v18  ;;  %v529_v6 = vld [vmem:[%s785_s0 + $0xa8] sm:$0xff]   ;;  %p557_p0 = scmp.ne.s32.totalorder %s370_s25, %s556_s26  ;;  %p562_p2 = scmp.lt.s32.totalorder %s556_s26, %s556_s26 }
   0xc   :  { %v149_v20 = vadd.f32 %v148_v13, %v147_v15  ;;  %v399_v33 = vunpack.c.l.bf16 %v512_v23  ;;  %v455_v34 = vunpack.c.l.bf16 %v526_v27  ;;  %v156_v35 = vsel %vm144_vm1, %v395_v21, 0.0  ;;  %v516_v15 = vld [vmem:[%s785_s0 + $0x40] sm:$0xff]  }
   0xd   :  { %v214_v38 = vsel %vm144_vm1, %v447_v24, 0.0  ;;  %v215_v39 = vsel %vm144_vm1, %v448_v25, 0.0  ;;  %v217_v40 = vsel %vm144_vm1, %v451_v26, 0.0  ;;  %v400_v41 = vunpack.c.h.bf16 %v512_v23  ;;  %p563_p3 = por %p562_p2, %p561_p1 }
   0xe   :  { %v151_v28 = vadd.f32 %v150_v19, %v149_v20  ;;  %v158_v43 = vsel %vm144_vm1, %v396_v29, 0.0  ;;  %v216_v44 = vadd.f32 %v215_v39, %v214_v38  ;;  %v456_v45 = vunpack.c.h.bf16 %v526_v27  ;;  %v530_v20 = vld [vmem:[%s785_s0 + $0xb0] sm:$0xff]   ;;  %v517_v29 = vld [vmem:[%s785_s0 + $0x48] sm:$0xff]  }
   0xf   :  { %v219_v47 = vsel %vm144_vm1, %v452_v31, 0.0  ;;  %v403_v48 = vunpack.c.l.bf16 %v513_v36  ;;  %v160_v49 = vsel %vm144_vm1, %v399_v33, 0.0  ;;  %v459_v52 = vunpack.c.l.bf16 %v527_v42  ;;  %p564_p4 = pnand %p563_p3, %p557_p0 }
  0x10   :  { %v153_v32 = vadd.f32 %v152_v22, %v151_v28  ;;  %v218_v50 = vadd.f32 %v217_v40, %v216_v44  ;;  %v221_v54 = vsel %vm144_vm1, %v455_v34, 0.0  ;;  %v404_v55 = vunpack.c.h.bf16 %v513_v36  ;;  %v531_v34 = vld [vmem:[%s785_s0 + $0xb8] sm:$0xff]  }
  0x11   :  { %v162_v57 = vsel %vm144_vm1, %v400_v41, 0.0  ;;  %v460_v59 = vunpack.c.h.bf16 %v527_v42  ;;  %v223_v61 = vsel %vm144_vm1, %v456_v45, 0.0  ;;  %v407_v62 = vunpack.c.l.bf16 %v514_v51 }
  0x12   :  { %v155_v37 = vadd.f32 %v154_v30, %v153_v32  ;;  %v220_v58 = vadd.f32 %v219_v47, %v218_v50  ;;  %v164_v63 = vsel %vm144_vm1, %v403_v48, 0.0  ;;  %v463_v2 = vunpack.c.l.bf16 %v528_v56  ;;  %v532_v48 = vld [vmem:[%s785_s0 + $0xc0] sm:$0xff]  }
  0x13   :  { %v225_v4 = vsel %vm144_vm1, %v459_v52, 0.0  ;;  %v408_v5 = vunpack.c.h.bf16 %v514_v51  ;;  %v166_v7 = vsel %vm144_vm1, %v404_v55, 0.0  ;;  %v464_v9 = vunpack.c.h.bf16 %v528_v56 }
  0x14   :  { %v157_v46 = vadd.f32 %v156_v35, %v155_v37  ;;  %v222_v0 = vadd.f32 %v221_v54, %v220_v58  ;;  %v227_v11 = vsel %vm144_vm1, %v460_v59, 0.0  ;;  %v411_v12 = vunpack.c.l.bf16 %v515_v1 }
  0x15   :  { %v168_v13 = vsel %vm144_vm1, %v407_v62, 0.0  ;;  %v467_v16 = vunpack.c.l.bf16 %v529_v6  ;;  %v229_v18 = vsel %vm144_vm1, %v463_v2, 0.0  ;;  %v412_v19 = vunpack.c.h.bf16 %v515_v1  ;;  %v533_v62 = vld [vmem:[%s785_s0 + $0xc8] sm:$0xff]  }
  0x16   :  { %v159_v53 = vadd.f32 %v158_v43, %v157_v46  ;;  %v224_v8 = vadd.f32 %v223_v61, %v222_v0  ;;  %v170_v21 = vsel %vm144_vm1, %v408_v5, 0.0  ;;  %v468_v23 = vunpack.c.h.bf16 %v529_v6  ;;  %v518_v43 = vld [vmem:[%s785_s0 + $0x50] sm:$0xff]  }
  0x17   :  { %v231_v25 = vsel %vm144_vm1, %v464_v9, 0.0  ;;  %v415_v26 = vunpack.c.l.bf16 %v516_v15  ;;  %v172_v27 = vsel %vm144_vm1, %v411_v12, 0.0  ;;  %v471_v30 = vunpack.c.l.bf16 %v530_v20  ;;  %v534_v12 = vld [vmem:[%s785_s0 + $0xd0] sm:$0xff]  }
  0x18   :  { %v161_v60 = vadd.f32 %v160_v49, %v159_v53  ;;  %v226_v14 = vadd.f32 %v225_v4, %v224_v8  ;;  %v233_v32 = vsel %vm144_vm1, %v467_v16, 0.0  ;;  %v416_v33 = vunpack.c.h.bf16 %v516_v15 }
  0x19   :  { %v174_v35 = vsel %vm144_vm1, %v412_v19, 0.0  ;;  %v472_v37 = vunpack.c.h.bf16 %v530_v20  ;;  %v235_v39 = vsel %vm144_vm1, %v468_v23, 0.0  ;;  %v419_v40 = vunpack.c.l.bf16 %v517_v29 }
  0x1a   :  { %v163_v3 = vadd.f32 %v162_v57, %v161_v60  ;;  %v228_v22 = vadd.f32 %v227_v11, %v226_v14  ;;  %v176_v41 = vsel %vm144_vm1, %v415_v26, 0.0  ;;  %v475_v44 = vunpack.c.l.bf16 %v531_v34  ;;  %v519_v57 = vld [vmem:[%s785_s0 + $0x58] sm:$0xff]  }
  0x1b   :  { %v237_v46 = vsel %vm144_vm1, %v471_v30, 0.0  ;;  %v420_v47 = vunpack.c.h.bf16 %v517_v29  ;;  %v178_v49 = vsel %vm144_vm1, %v416_v33, 0.0  ;;  %v476_v51 = vunpack.c.h.bf16 %v531_v34  ;;  %v535_v26 = vld [vmem:[%s785_s0 + $0xd8] sm:$0xff]  }
  0x1c   :  { %v165_v10 = vadd.f32 %v164_v63, %v163_v3  ;;  %v230_v28 = vadd.f32 %v229_v18, %v228_v22  ;;  %v239_v53 = vsel %vm144_vm1, %v472_v37, 0.0  ;;  %v423_v54 = vunpack.c.l.bf16 %v518_v43 }
  0x1d   :  { %v180_v55 = vsel %vm144_vm1, %v419_v40, 0.0  ;;  %v479_v58 = vunpack.c.l.bf16 %v532_v48  ;;  %v241_v60 = vsel %vm144_vm1, %v475_v44, 0.0  ;;  %v424_v61 = vunpack.c.h.bf16 %v518_v43  ;;  %v536_v40 = vld [vmem:[%s785_s0 + $0xe0] sm:$0xff]  }
  0x1e   :  { %v167_v17 = vadd.f32 %v166_v7, %v165_v10  ;;  %v232_v36 = vadd.f32 %v231_v25, %v230_v28  ;;  %v182_v63 = vsel %vm144_vm1, %v420_v47, 0.0  ;;  %v480_v1 = vunpack.c.h.bf16 %v532_v48  ;;  %v520_v7 = vld [vmem:[%s785_s0 + $0x60] sm:$0xff]  }
  0x1f   :  { %v243_v3 = vsel %vm144_vm1, %v476_v51, 0.0  ;;  %v427_v4 = vunpack.c.l.bf16 %v519_v57  ;;  %v184_v5 = vsel %vm144_vm1, %v423_v54, 0.0  ;;  %v483_v8 = vunpack.c.l.bf16 %v533_v62  ;;  %v537_v54 = vld [vmem:[%s785_s0 + $0xe8] sm:$0xff]  }
  0x20   :  { %v169_v24 = vadd.f32 %v168_v13, %v167_v17  ;;  %v234_v42 = vadd.f32 %v233_v32, %v232_v36  ;;  %v245_v10 = vsel %vm144_vm1, %v479_v58, 0.0  ;;  %v428_v11 = vunpack.c.h.bf16 %v519_v57 }
  0x21   :  { %v186_v13 = vsel %vm144_vm1, %v424_v61, 0.0  ;;  %v484_v15 = vunpack.c.h.bf16 %v533_v62  ;;  %v247_v17 = vsel %vm144_vm1, %v480_v1, 0.0  ;;  %v431_v18 = vunpack.c.l.bf16 %v520_v7 }
  0x22   :  { %v171_v31 = vadd.f32 %v170_v21, %v169_v24  ;;  %v236_v50 = vadd.f32 %v235_v39, %v234_v42  ;;  %v188_v19 = vsel %vm144_vm1, %v427_v4, 0.0  ;;  %v521_v21 = vld [vmem:[%s785_s0 + $0x68] sm:$0xff]   ;;  %v487_v22 = vunpack.c.l.bf16 %v534_v12 }
  0x23   :  { %v249_v24 = vsel %vm144_vm1, %v483_v8, 0.0  ;;  %v432_v25 = vunpack.c.h.bf16 %v520_v7  ;;  %v488_v29 = vunpack.c.h.bf16 %v534_v12  ;;  %v435_v32 = vunpack.c.l.bf16 %v521_v21 }
  0x24   :  { %v173_v38 = vadd.f32 %v172_v27, %v171_v31  ;;  %v238_v56 = vadd.f32 %v237_v46, %v236_v50  ;;  %v190_v27 = vsel %vm144_vm1, %v428_v11, 0.0  ;;  %v251_v31 = vsel %vm144_vm1, %v484_v15, 0.0 }
  0x25   :  { %v192_v33 = vsel %vm144_vm1, %v431_v18, 0.0  ;;  %v491_v36 = vunpack.c.l.bf16 %v535_v26  ;;  %v436_v39 = vunpack.c.h.bf16 %v521_v21  ;;  %v492_v43 = vunpack.c.h.bf16 %v535_v26 }
  0x26   :  { %v175_v45 = vadd.f32 %v174_v35, %v173_v38  ;;  %v240_v0 = vadd.f32 %v239_v53, %v238_v56  ;;  %v522_v35 = vld [vmem:[%s785_s0 + $0x70] sm:$0xff]   ;;  %v253_v38 = vsel %vm144_vm1, %v487_v22, 0.0  ;;  %v196_v47 = vsel %vm144_vm1, %v435_v32, 0.0 }
  0x27   :  { %v439_v46 = vunpack.c.l.bf16 %v522_v35  ;;  %v495_v50 = vunpack.c.l.bf16 %v536_v40  ;;  %v440_v53 = vunpack.c.h.bf16 %v522_v35  ;;  %v496_v57 = vunpack.c.h.bf16 %v536_v40 }
  0x28   :  { %v177_v52 = vadd.f32 %v176_v41, %v175_v45  ;;  %v242_v6 = vadd.f32 %v241_v60, %v240_v0  ;;  %v194_v41 = vsel %vm144_vm1, %v432_v25, 0.0  ;;  %v255_v45 = vsel %vm144_vm1, %v488_v29, 0.0 }
  0x29   :  { %v200_v61 = vsel %vm144_vm1, %v439_v46, 0.0  ;;  %v261_v1 = vsel %vm144_vm1, %v495_v50, 0.0  ;;  %v202_v4 = vsel %vm144_vm1, %v440_v53, 0.0  ;;  %v263_v8 = vsel %vm144_vm1, %v496_v57, 0.0  ;;  %v377_v53 = vld [vmem:[%s787_s2] ss:$0 sm:$0xff] }
  0x2a   :  { %v179_v59 = vadd.f32 %v178_v49, %v177_v52  ;;  %v244_v14 = vadd.f32 %v243_v3, %v242_v6  ;;  %v523_v49 = vld [vmem:[%s785_s0 + $0x78] sm:$0xff]   ;;  %v257_v52 = vsel %vm144_vm1, %v491_v36, 0.0  ;;  %v538_v3 = vld [vmem:[%s785_s0 + $0xf0] sm:$0xff]   ;;  %v500_v6 = vunpack.c.h.bf16 %v537_v54 }
  0x2b   :  { %v443_v60 = vunpack.c.l.bf16 %v523_v49  ;;  %v503_v11 = vunpack.c.l.bf16 %v538_v3  ;;  %vm303_vm2 = vcmask 1041409   ;;  %vm361_vm3 = vcmask 517120  }
  0x2c   :  { %v181_v2 = vadd.f32 %v180_v55, %v179_v59  ;;  %v246_v20 = vadd.f32 %v245_v10, %v244_v14  ;;  %v198_v55 = vsel %vm144_vm1, %v436_v39, 0.0  ;;  %v259_v59 = vsel %vm144_vm1, %v492_v43, 0.0  ;;  %v539_v14 = vld [vmem:[%s785_s0 + $0xf8] sm:$0xff]  }
  0x2d   :  { %v507_v21 = vunpack.c.l.bf16 %v539_v14  ;;  %v508_v25 = vunpack.c.h.bf16 %v539_v14 }
  0x2e   :  { %v183_v9 = vadd.f32 %v182_v63, %v181_v2  ;;  %v248_v28 = vadd.f32 %v247_v17, %v246_v20  ;;  %v499_v63 = vunpack.c.l.bf16 %v537_v54  ;;  %v444_v2 = vunpack.c.h.bf16 %v523_v49 }
  0x2f   :  { %v504_v17 = vunpack.c.h.bf16 %v538_v3 }
  0x30   :  { %v185_v16 = vadd.f32 %v184_v5, %v183_v9  ;;  %v250_v34 = vadd.f32 %v249_v24, %v248_v28  ;;  %v204_v9 = vsel %vm144_vm1, %v443_v60, 0.0  ;;  %v206_v15 = vsel %vm144_vm1, %v444_v2, 0.0 }
  0x32   :  { %v187_v23 = vadd.f32 %v186_v13, %v185_v16  ;;  %v252_v42 = vadd.f32 %v251_v31, %v250_v34  ;;  %v265_v13 = vsel %vm144_vm1, %v499_v63, 0.0 }
  0x34   :  { %v189_v30 = vadd.f32 %v188_v19, %v187_v23  ;;  %v254_v48 = vadd.f32 %v253_v38, %v252_v42  ;;  %v267_v19 = vsel %vm144_vm1, %v500_v6, 0.0  ;;  %v269_v23 = vsel %vm144_vm1, %v503_v11, 0.0 }
  0x36   :  { %v191_v37 = vadd.f32 %v190_v27, %v189_v30  ;;  %v256_v56 = vadd.f32 %v255_v45, %v254_v48  ;;  %v271_v27 = vsel %vm144_vm1, %v504_v17, 0.0  ;;  %v273_v30 = vsel %vm144_vm1, %v507_v21, 0.0 }
  0x38   :  { %v193_v44 = vadd.f32 %v192_v33, %v191_v37  ;;  %v258_v62 = vadd.f32 %v257_v52, %v256_v56  ;;  %v275_v33 = vsel %vm144_vm1, %v508_v25, 0.0 }
  0x3a   :  { %v195_v51 = vadd.f32 %v194_v41, %v193_v44  ;;  %v260_v5 = vadd.f32 %v259_v59, %v258_v62 }
  0x3c   :  { %v197_v58 = vadd.f32 %v196_v47, %v195_v51  ;;  %v262_v10 = vadd.f32 %v261_v1, %v260_v5 }
  0x3e   :  { %v199_v0 = vadd.f32 %v198_v55, %v197_v58  ;;  %v264_v16 = vadd.f32 %v263_v8, %v262_v10 }
  0x40   :  { %v201_v7 = vadd.f32 %v200_v61, %v199_v0  ;;  %v266_v20 = vadd.f32 %v265_v13, %v264_v16 }
  0x42   :  { %v203_v12 = vadd.f32 %v202_v4, %v201_v7  ;;  %v268_v24 = vadd.f32 %v267_v19, %v266_v20 }
  0x44   :  { %v205_v18 = vadd.f32 %v204_v9, %v203_v12  ;;  %v270_v28 = vadd.f32 %v269_v23, %v268_v24 }
  0x46   :  { %v207_v22 = vadd.f32 %v206_v15, %v205_v18  ;;  %v272_v31 = vadd.f32 %v271_v27, %v270_v28 }
  0x48   :  { %v208_v26 = vrot.slane %v207_v22, 4  ;;  %v274_v34 = vadd.f32 %v273_v30, %v272_v31 }
  0x4a   :  { %v209_v29 = vadd.f32 %v208_v26, %v207_v22  ;;  %v276_v36 = vadd.f32 %v275_v33, %v274_v34 }
  0x4c   :  { %v210_v32 = vrot.slane %v209_v29, 2  ;;  %v277_v38 = vrot.slane %v276_v36, 4 }
  0x4e   :  { %v211_v35 = vadd.f32 %v210_v32, %v209_v29  ;;  %v278_v40 = vadd.f32 %v277_v38, %v276_v36 }
  0x50   :  { %v212_v37 = vrot.slane %v211_v35, 1  ;;  %v279_v41 = vrot.slane %v278_v40, 2 }
  0x52   :  { %v213_v39 = vadd.f32 %v212_v37, %v211_v35  ;;  %v280_v42 = vadd.f32 %v279_v41, %v278_v40 }
  0x54   :  { %v284_v43 = vmul.f32 0.00390625, %v213_v39  ;;  %v281_v44 = vrot.slane %v280_v42, 1 }
  0x56   :  { %v282_v45 = vadd.f32 %v281_v44, %v280_v42  ;;  %v286_v46 = vpack.c.bf16 %v284_v43, %v284_v43 }
  0x58   :  { %v285_v47 = vmul.f32 0.00390625, %v282_v45  ;;  %v301_v49 = vunpack.c.l.b16 %v286_v46 }
  0x5a   :  { %v287_v48 = vpack.c.bf16 %v285_v47, %v285_v47 }
  0x5c   :  { %v302_v50 = vunpack.c.l.b16 %v287_v48 }
  0x5e   :  { %v304_v51 = vsel %vm303_vm2, %v302_v50, %v301_v49 }
  0x5f   :  { %v305_v52 = vpack.c.b16 %v304_v51, %v304_v51 }
  0x61   :  { %548 = vmatmul.mubr.msk.bf16.vlgmr.msra.gmra.mrb[0].mxu0 %vm144_vm1, %v305_v52 }
 0x134   :  { %v355_v54 = vpop.f32.mrb[0].mxu0 }
 0x135   :  { %v356_v55 = vadd.f32 %v377_v53, %v355_v54  ;;  %v549_v56 = vpop.f32.mrb[1].mxu0 }
 0x136   :  { %v358_v57 = vpop.f32.mrb[2].mxu0 }
 0x137   :  { %v550_v58 = vpop.f32.mrb[3].mxu0  ;;  %362 = vst.msk [vmem:[#allocation2] sm:$0x3] %vm361_vm3, %v356_v55 }
 0x138   :  { %567 = shalt.err (!%p564_p4)
}
 0x139   :  { %s568_s2 = scalar_lea.hbm %s788_s3, 32 }
 0x13a   :  { %p569_p5 = scmp.ne.s32.totalorder %s788_s3, %s568_s2  ;;  %p572_p6 = scmp.lt.u32.totalorder %s568_s2, %s788_s3 }
 0x13c   :  { %p574_p7 = pnand %p572_p6, %p569_p5 }
 0x13e   :  { %577 = shalt.err (!%p574_p7)
}
 0x13f   :  { %372 = dma.vmem_to_hbm [thread:$0]  %s370_s25, 32, %s788_s3, [#allocation3]  }
 0x140   :  { %578 = dma.done.wait [#allocation3], 32  }
 0x141   :  { %579 = vsyncadd [#allocation3], 4294967264 }
 0x142   :  { %376 = vsyncpa [#allocation3], 1 }

// kernel: exifnet_forward.8
= control target key start
LH: loop header
LB: loop body
LE: loop exit
PB: predicated region body
PF: predicated region fallthrough
CT: control target
= control target key end

     0   :  { %s4088_s12 = smov 0   ;;  %s5855_s0 = inlined_call_operand.vmem [shape: bf16[2,18,18,16], index: 0, kind: input, shape index: {}]   ;;  %s5856_s1 = inlined_call_operand.vmem [shape: bf16[144,16], index: 1, kind: input, shape index: {}]   ;;  %s5857_s2 = inlined_call_operand.vmem [shape: f32[1,16], index: 2, kind: input, shape index: {}]   ;;  %s5858_s3 = inlined_call_operand.vmem [shape: bf16[2,16,16,16], index: 3, kind: output, shape index: {}]  }
   0x1 LB: > { %s3507_s13 = sadd.s32 4294967295, %s4058_s12   ;;  %p3511_p0 = scmp.ge.s32.totalorder %s4058_s12, 1  ;;  %s4058_s12 = sphi %s4088_s12, %s13_s12  }
   0x2   : > { %p137_p1 = scmp.lt.s32.totalorder %s4058_s12, 3 }
   0x4   : > { %p138_p2 = pnand %p3511_p0, %p137_p1 }
   0x6   : > { %141 = sbr.rel (%p138_p2) target bundleno = 659 (0x293), region = 32 }
   0xd   : > { %p161_p3 = scmp.lt.s32.totalorder %s3507_s13, 1  ;;  %vm671_vm0 = vcmask 1042432   ;;  %vm672_vm1 = vcmask 1046532   ;;  %s4060_s18 = smov 48   ;;  %vm220_vm3 = vsmask.f32 3328 }
   0xe   : > { %vm4126_vm2 = vmor %vm671_vm0, %vm672_vm1  ;;  %vm221_vm4 = vsmask.f32 7440  ;;  %s4061_s19 = smov 80   ;;  %s4062_s20 = smov 32   ;;  %vm2708_vm6 = vcmask 130048   ;;  %vm2757_vm7 = vcmask 261120  }
   0xf   : > { %s5898_s13 = smov (!%p161_p3, %s3507_s13), 1  ;;  %vm4170_vm5 = vmor %vm220_vm3, %vm221_vm4  ;;  %s4063_s21 = smov 16   ;;  %vm2790_vm8 = vcmask 392192   ;;  %vm2823_vm9 = vcmask 523264   ;;  %vm2856_vm10 = vcmask 654336   ;;  %vm2889_vm11 = vcmask 785408  }
  0x10   : > { %s3946_s14 = smul.u32 216, %s5898_s13  ;;  %s4064_s22 = smov 64   ;;  %vm2922_vm12 = vcmask 916480   ;;  %vm3419_vm13 = vcmask 125952  }
  0x11   : > { %s4065_s23 = smov 96   ;;  %s4066_s24 = smov 112  }
  0x12   : > { %s4102_s17 = scalar_lea.vmem %s5855_s0, %s3946_s14 }
  0x13   : > { %v3547_v0 = vld [vmem:[%s4102_s17 + $0x6c] sm:$0xf]  ;;  %v4106_v1 = vld [vmem:[%s4102_s17 + $0x70] sm:$0xf]  ;;  %v4119_v12 = vld [vmem:[%s4102_s17 + $0x14] sm:$0x1] }
  0x14   : > { %v3531_v2 = vld [vmem:[%s4102_s17 + $0xc] sm:$0xf]  ;;  %v1037_v3 = vshll.u32 %v4106_v1, 16  ;;  %v1041_v4 = vshrl.u32 %v4106_v1, 16  ;;  %v3747_v5 = vcombine.low %v3547_v0, %v4106_v1  ;;  %v1028_v6 = vshrl.u32 %v3547_v0, 16 }
  0x15   : > { %v4113_v7 = vld [vmem:[%s4102_s17 + $0x10] sm:$0xf]  ;;  %v1031_v8 = vshll.u32 %v3547_v0, 16  ;;  %v836_v15 = vshrl.u32 %v3531_v2, 16  ;;  %v839_v16 = vshll.u32 %v3531_v2, 16  ;;  %v1288_v26 = vrot.slane %v4119_v12, 5 }
  0x16   : > { %v845_v9 = vshll.u32 %v4113_v7, 16  ;;  %v849_v10 = vshrl.u32 %v4113_v7, 16  ;;  %v3739_v11 = vcombine.low %v3531_v2, %v4113_v7  ;;  %v4121_v13 = vrot.slane %v1041_v4, 4  ;;  %2308 = vrot.lane.b32.xlu1 %v3747_v5, %s4060_s18  ;;  %v3579_v18 = vld [vmem:[%s4102_s17 + $0xc] sm:$0xe] }
  0x17   : > { %v1030_v14 = vrot.slane %v1028_v6, 4  ;;  %v1033_v19 = vrot.slane %v1031_v8, 5  ;;  %v3595_v21 = vrot.slane %v3579_v18, 9  ;;  %v1285_v22 = vrot.slane %v4113_v7, 5  ;;  %v173_v23 = vld [vmem:[%s4102_s17 + $0x4] sm:$0xf] }
  0x18   : > { %v4131_v20 = vrot.slane %v849_v10, 4  ;;  %2292 = vrot.lane.b32.xlu0 %v3739_v11, %s4060_s18  ;;  %v838_v24 = vrot.slane %v836_v15, 4  ;;  %v841_v25 = vrot.slane %v839_v16, 5  ;;  %v204_v27 = vld [vmem:[%s4102_s17 + $0x8] sm:$0x1]  ;;  %v676_v28 = vrot.slane %v173_v23, 5 }
  0x19   : > { %v1034_v29 = vor.u32 %v1033_v19, %v1030_v14  ;;  %v1286_v30 = vsel %vm4126_vm2, %v3595_v21, %v1285_v22  ;;  %v1287_v31 = vrot.slane %v1285_v22, 4  ;;  %v607_v32 = vld [vmem:[%s4102_s17] sm:$0xe]  ;;  %v679_v33 = vrot.slane %v204_v27, 5  ;;  %v189_v34 = vld [vmem:[%s4102_s17 + $0x64] sm:$0xf] }
  0x1a   : > { %v842_v35 = vor.u32 %v841_v25, %v838_v24  ;;  %v3515_v36 = vrot.slane %v607_v32, 9  ;;  %v678_v37 = vrot.slane %v676_v28, 4  ;;  %v212_v38 = vld [vmem:[%s4102_s17 + $0x68] sm:$0x1]  ;;  %v615_v39 = vld [vmem:[%s4102_s17 + $0x60] sm:$0xe] }
  0x1b   : > { %v4144_v40 = vrot.slane %v1034_v29, 4  ;;  %v1289_v41 = vsel %vm4126_vm2, %v1287_v31, %v1288_v26  ;;  %v3523_v42 = vrot.slane %v615_v39, 9  ;;  %v732_v43 = vrot.slane %v189_v34, 5  ;;  %v172_v44 = vld [vmem:[%s4102_s17] sm:$0xf] }
  0x1c   : > { %v4149_v45 = vrot.slane %v842_v35, 4  ;;  %v3771_v46 = vcombine.low %v1286_v30, %v1289_v41  ;;  %v677_v47 = vsel %vm4126_vm2, %v3515_v36, %v676_v28  ;;  %v680_v48 = vsel %vm4126_vm2, %v678_v37, %v679_v33  ;;  %v3587_v49 = vld [vmem:[%s4102_s17 + $0x6c] sm:$0xe]  ;;  %v3571_v58 = vld [vmem:[%s4102_s17 + $0x74] sm:$0x1] }
  0x1d   : > { %v3723_v50 = vcombine.low %v677_v47, %v680_v48  ;;  %v733_v51 = vsel %vm4126_vm2, %v3523_v42, %v732_v43  ;;  %v734_v52 = vrot.slane %v732_v43, 4  ;;  %v735_v53 = vrot.slane %v212_v38, 5  ;;  %v188_v63 = vld [vmem:[%s4102_s17 + $0x60] sm:$0xf]  ;;  %v3627_v42 = vld [vmem:[%s4102_s17 + $0x78] sm:$0xf] }
  0x1e   : > { %2452 = vrot.lane.b32.xlu0 %v3771_v46, %s4061_s19  ;;  %v224_v54 = vshrl.u32 %v172_v44, 16  ;;  %v227_v55 = vshll.u32 %v172_v44, 16  ;;  %v233_v56 = vshll.u32 %v173_v23, 16  ;;  %v237_v57 = vshrl.u32 %v173_v23, 16 }
  0x1f   : > { %2196 = vrot.lane.b32.xlu1 %v3723_v50, %s4062_s20  ;;  %v736_v59 = vsel %vm4126_vm2, %v734_v52, %v735_v53  ;;  %v243_v60 = vshll.u32 %v204_v27, 16  ;;  %v3603_v61 = vrot.slane %v3587_v49, 9  ;;  %v1341_v62 = vrot.slane %v4106_v1, 5 }
  0x20   : > { %v3731_v0 = vcombine.low %v733_v51, %v736_v59  ;;  %v226_v2 = vrot.slane %v224_v54, 4  ;;  %v229_v4 = vrot.slane %v227_v55, 5  ;;  %v235_v5 = vrot.slane %v233_v56, 5  ;;  %v3611_v51 = vld [vmem:[%s4102_s17 + $0x18] sm:$0xf] }
  0x21   : > { %v239_v6 = vrot.slane %v237_v57, 4  ;;  %v245_v8 = vrot.slane %v243_v60, 5  ;;  %v1342_v10 = vsel %vm4126_vm2, %v3603_v61, %v1341_v62  ;;  %v1343_v11 = vrot.slane %v1341_v62, 4  ;;  %v3651_v62 = vld [vmem:[%s4102_s17 + $0x80] sm:$0x1] }
  0x22   : > { %v230_v14 = vor.u32 %v229_v4, %v226_v2  ;;  %v1344_v15 = vrot.slane %v3571_v58, 5  ;;  %v416_v16 = vshrl.u32 %v188_v63, 16  ;;  %v419_v18 = vshll.u32 %v188_v63, 16 }
  0x23   : > { %2212 = vrot.lane.b32.xlu1 %v3731_v0, %s4062_s20  ;;  %v240_v21 = vor.u32 %v239_v6, %v235_v5  ;;  %v425_v22 = vshll.u32 %v189_v34, 16  ;;  %v429_v23 = vshrl.u32 %v189_v34, 16  ;;  %v435_v24 = vshll.u32 %v212_v38, 16 }
  0x24   : > { %v231_v25 = vrot.slane %v230_v14, 4  ;;  %v1345_v26 = vsel %vm4126_vm2, %v1343_v11, %v1344_v15  ;;  %v418_v27 = vrot.slane %v416_v16, 4  ;;  %v421_v28 = vrot.slane %v419_v18, 5  ;;  %v190_v14 = vld [vmem:[%s4102_s17 + $0x6c] sm:$0xf] }
  0x25   : > { %v241_v29 = vrot.slane %v240_v21, 4  ;;  %v3779_v30 = vcombine.low %v1342_v10, %v1345_v26  ;;  %v427_v31 = vrot.slane %v425_v22, 5  ;;  %v431_v32 = vrot.slane %v429_v23, 4  ;;  %v191_v26 = vld [vmem:[%s4102_s17 + $0x70] sm:$0xf] }
  0x26   : > { %v236_v33 = vsel %vm4170_vm5, %v231_v25, %v235_v5  ;;  %v422_v35 = vor.u32 %v421_v28, %v418_v27  ;;  %v437_v36 = vrot.slane %v435_v24, 5  ;;  %v1039_v34 = vrot.slane %v1037_v3, 5  ;;  %v3628_v3 = vld [vmem:[%s4102_s17 + $0x7c] sm:$0xf]  ;;  %v3643_v5 = vld [vmem:[%s4102_s17 + $0x20] sm:$0x1] }
  0x27   : > { %v246_v37 = vsel %vm4170_vm5, %v241_v29, %v245_v8  ;;  %2468 = vrot.lane.b32.xlu1 %v3779_v30, %s4061_s19  ;;  %v432_v38 = vor.u32 %v431_v32, %v427_v31  ;;  %v1047_v39 = vshll.u32 %v3571_v58, 16  ;;  %v847_v41 = vrot.slane %v845_v9, 5  ;;  %v4215_v30 = vld [vmem:[%s4102_s17 + $0x74] sm:$0x1] }
  0x28   : > { %v3707_v43 = vcombine.low %v236_v33, %v246_v37  ;;  %v423_v44 = vrot.slane %v422_v35, 4  ;;  %v1040_v46 = vsel %vm4170_vm5, %v4144_v40, %v1039_v34  ;;  %v1044_v1 = vor.u32 %v4121_v13, %v1039_v34  ;;  %v174_v34 = vld [vmem:[%s4102_s17 + $0xc] sm:$0xf] }
  0x29   : > { %v433_v47 = vrot.slane %v432_v38, 4  ;;  %v1049_v48 = vrot.slane %v1047_v39, 5  ;;  %v848_v49 = vsel %vm4170_vm5, %v4149_v45, %v847_v41  ;;  %v852_v7 = vor.u32 %v4131_v20, %v847_v41  ;;  %v3612_v20 = vld [vmem:[%s4102_s17 + $0x1c] sm:$0xf] }
  0x2a   : > { %2116 = vrot.lane.b32.xlu0 %v3707_v43, %s4063_s21  ;;  %v428_v9 = vsel %vm4170_vm5, %v423_v44, %v427_v31  ;;  %v1045_v50 = vrot.slane %v1044_v1, 4  ;;  %v855_v40 = vshll.u32 %v4119_v12, 16  ;;  %v1637_v13 = vshrl.u32 %v3627_v42, 16 }
  0x2b   : > { %v438_v52 = vsel %vm4170_vm5, %v433_v47, %v437_v36  ;;  %v853_v53 = vrot.slane %v852_v7, 4  ;;  %v1640_v54 = vshll.u32 %v3627_v42, 16  ;;  %v1650_v45 = vshrl.u32 %v3628_v3, 16 }
  0x2c   : > { %v3715_v55 = vcombine.low %v428_v9, %v438_v52  ;;  %v1050_v56 = vsel %vm4170_vm5, %v1045_v50, %v1049_v48  ;;  %v857_v57 = vrot.slane %v855_v40, 5  ;;  %v1639_v58 = vrot.slane %v1637_v13, 4  ;;  %v175_v48 = vld [vmem:[%s4102_s17 + $0x10] sm:$0xf]  ;;  %v205_v13 = vld [vmem:[%s4102_s17 + $0x14] sm:$0x1] }
  0x2d   : > { %v3763_v59 = vcombine.low %v1040_v46, %v1050_v56  ;;  %v1642_v60 = vrot.slane %v1640_v54, 5  ;;  %v3795_v12 = vcombine.low %v3627_v42, %v3628_v3  ;;  %v1445_v61 = vshrl.u32 %v3611_v51, 16 }
  0x2e   : > { %2132 = vrot.lane.b32.xlu0 %v3715_v55, %s4063_s21  ;;  %v858_v63 = vsel %vm4170_vm5, %v853_v53, %v857_v57  ;;  %v1448_v0 = vshll.u32 %v3611_v51, 16  ;;  %v1458_v2 = vshrl.u32 %v3612_v20, 16  ;;  %v3787_v4 = vcombine.low %v3611_v51, %v3612_v20  ;;  %v616_v51 = vld [vmem:[%s4102_s17 + $0x6c] sm:$0xe] }
  0x2f   : > { %2388 = vrot.lane.b32.xlu1 %v3763_v59, %s4064_s22  ;;  %v3755_v6 = vcombine.low %v848_v49, %v858_v63  ;;  %v1447_v8 = vrot.slane %v1445_v61, 4  ;;  %v1643_v10 = vor.u32 %v1642_v60, %v1639_v58  ;;  %v1646_v11 = vshll.u32 %v3628_v3, 16  ;;  %v608_v61 = vld [vmem:[%s4102_s17 + $0xc] sm:$0xe] }
  0x30   : > { %v1450_v15 = vrot.slane %v1448_v0, 5  ;;  %v1652_v16 = vrot.slane %v1650_v45, 4  ;;  %v1656_v18 = vshll.u32 %v3651_v62, 16  ;;  %v1454_v21 = vshll.u32 %v3612_v20, 16 }
  0x31   : > { %v1644_v22 = vrot.slane %v1643_v10, 4  ;;  %v1648_v23 = vrot.slane %v1646_v11, 5  ;;  %v1460_v24 = vrot.slane %v1458_v2, 4  ;;  %v1464_v25 = vshll.u32 %v3643_v5, 16  ;;  %v3549_v10 = vld [vmem:[%s4102_s17 + $0x78] sm:$0xf] }
  0x32   : > { %2372 = vrot.lane.b32.xlu0 %v3755_v6, %s4064_s22  ;;  %v1658_v27 = vrot.slane %v1656_v18, 5  ;;  %v1451_v28 = vor.u32 %v1450_v15, %v1447_v8  ;;  %v1456_v29 = vrot.slane %v1454_v21, 5  ;;  %v440_v31 = vshrl.u32 %v190_v14, 16 }
  0x33   : > { %2564 = vrot.lane.b32.xlu1 %v3795_v12, %s4065_s23  ;;  %v1649_v32 = vsel %vm4170_vm5, %v1644_v22, %v1648_v23  ;;  %v1653_v33 = vor.u32 %v1652_v16, %v1648_v23  ;;  %v1466_v35 = vrot.slane %v1464_v25, 5  ;;  %v443_v36 = vshll.u32 %v190_v14, 16 }
  0x34   : > { %v1452_v37 = vrot.slane %v1451_v28, 4  ;;  %v1461_v38 = vor.u32 %v1460_v24, %v1456_v29  ;;  %v442_v39 = vrot.slane %v440_v31, 4  ;;  %v449_v41 = vshll.u32 %v191_v26, 16  ;;  %v4244_v24 = vld [vmem:[%s4102_s17 + $0x7c] sm:$0xf] }
  0x35   : > { %v1654_v42 = vrot.slane %v1653_v33, 4  ;;  %v445_v43 = vrot.slane %v443_v36, 5  ;;  %v453_v44 = vshrl.u32 %v191_v26, 16  ;;  %v459_v46 = vshll.u32 %v4215_v30, 16 }
  0x36   : > { %2548 = vrot.lane.b32.xlu0 %v3787_v4, %s4065_s23  ;;  %v1457_v1 = vsel %vm4170_vm5, %v1452_v37, %v1456_v29  ;;  %v1462_v3 = vrot.slane %v1461_v38, 4  ;;  %v451_v47 = vrot.slane %v449_v41, 5  ;;  %v248_v49 = vshrl.u32 %v174_v34, 16  ;;  %v4249_v29 = vld [vmem:[%s4102_s17 + $0x18] sm:$0xf] }
  0x37   : > { %v1659_v7 = vsel %vm4170_vm5, %v1654_v42, %v1658_v27  ;;  %v446_v9 = vor.u32 %v445_v43, %v442_v39  ;;  %v455_v50 = vrot.slane %v453_v44, 4  ;;  %v461_v40 = vrot.slane %v459_v46, 5  ;;  %v3572_v43 = vld [vmem:[%s4102_s17 + $0x80] sm:$0x1] }
  0x38   : > { %v3811_v52 = vcombine.low %v1649_v32, %v1659_v7  ;;  %v1467_v53 = vsel %vm4170_vm5, %v1462_v3, %v1466_v35  ;;  %v250_v54 = vrot.slane %v248_v49, 4  ;;  %v251_v45 = vshll.u32 %v174_v34, 16  ;;  %v4257_v35 = vld [vmem:[%s4102_s17 + $0x1c] sm:$0xf] }
  0x39   : > { %v3803_v20 = vcombine.low %v1457_v1, %v1467_v53  ;;  %v447_v55 = vrot.slane %v446_v9, 4  ;;  %v456_v56 = vor.u32 %v455_v50, %v451_v47  ;;  %v257_v57 = vshll.u32 %v175_v48, 16 }
  0x3a   : > { %2644 = vrot.lane.b32.xlu1 %v3811_v52, %s4066_s24  ;;  %v253_v58 = vrot.slane %v251_v45, 5  ;;  %v261_v59 = vshrl.u32 %v175_v48, 16  ;;  %v267_v60 = vshll.u32 %v205_v13, 16  ;;  %v3524_v12 = vrot.slane %v616_v51, 9  ;;  %v3588_v52 = vld [vmem:[%s4102_s17 + $0x78] sm:$0xe] }
  0x3b   : > { %2628 = vrot.lane.b32.xlu0 %v3803_v20, %s4066_s24  ;;  %v452_v62 = vsel %vm4170_vm5, %v447_v55, %v451_v47  ;;  %v457_v63 = vrot.slane %v456_v56, 4  ;;  %v259_v0 = vrot.slane %v257_v57, 5  ;;  %v739_v2 = vrot.slane %v191_v26, 5  ;;  %v3564_v47 = vld [vmem:[%s4102_s17 + $0x20] sm:$0x1] }
  0x3c   : > { %v254_v4 = vor.u32 %v253_v58, %v250_v54  ;;  %v263_v5 = vrot.slane %v261_v59, 4  ;;  %v269_v6 = vrot.slane %v267_v60, 5  ;;  %v742_v8 = vrot.slane %v4215_v30, 5  ;;  %v3580_v55 = vld [vmem:[%s4102_s17 + $0x18] sm:$0xe] }
  0x3d   : > { %v462_v11 = vsel %vm4170_vm5, %v457_v63, %v461_v40  ;;  %v740_v14 = vsel %vm4126_vm2, %v3524_v12, %v739_v2  ;;  %v741_v15 = vrot.slane %v739_v2, 4  ;;  %v3516_v16 = vrot.slane %v608_v61, 9  ;;  %v4281_v63 = vld [vmem:[%s4102_s17 + $0x84] sm:$0xf] }
  0x3e   : > { %v3716_v18 = vcombine.low %v452_v62, %v462_v11  ;;  %v255_v21 = vrot.slane %v254_v4, 4  ;;  %v264_v22 = vor.u32 %v263_v5, %v259_v0  ;;  %v683_v23 = vrot.slane %v175_v48, 5 }
  0x3f   : > { %v743_v25 = vsel %vm4126_vm2, %v741_v15, %v742_v8  ;;  %v686_v26 = vrot.slane %v205_v13, 5  ;;  %v1052_v27 = vshrl.u32 %v3549_v10, 16  ;;  %v1055_v28 = vshll.u32 %v3549_v10, 16 }
  0x40   : > { %2134 = vrot.lane.b32.xlu1 %v3716_v18, %s4063_s21  ;;  %v260_v30 = vsel %vm4170_vm5, %v255_v21, %v259_v0  ;;  %v265_v31 = vrot.slane %v264_v22, 4  ;;  %v3732_v32 = vcombine.low %v740_v14, %v743_v25  ;;  %v684_v33 = vsel %vm4126_vm2, %v3516_v16, %v683_v23 }
  0x41   : > { %v685_v36 = vrot.slane %v683_v23, 4  ;;  %v1054_v34 = vrot.slane %v1052_v27, 4  ;;  %v1057_v37 = vrot.slane %v1055_v28, 5  ;;  %v1065_v38 = vshrl.u32 %v4244_v24, 16 }
  0x42   : > { %v270_v39 = vsel %vm4170_vm5, %v265_v31, %v269_v6  ;;  %v860_v41 = vshrl.u32 %v4249_v29, 16  ;;  %v863_v42 = vshll.u32 %v4249_v29, 16  ;;  %v3748_v1 = vcombine.low %v3549_v10, %v4244_v24  ;;  %v4307_v31 = vld [vmem:[%s4102_s17 + $0x28] sm:$0xf] }
  0x43   : > { %v3708_v44 = vcombine.low %v260_v30, %v270_v39  ;;  %v687_v46 = vsel %vm4126_vm2, %v685_v36, %v686_v26  ;;  %v873_v3 = vshrl.u32 %v4257_v35, 16  ;;  %v1058_v9 = vor.u32 %v1057_v37, %v1054_v34  ;;  %v3613_v30 = vld [vmem:[%s4102_s17 + $0x24] sm:$0xf]  ;;  %v4313_v37 = vld [vmem:[%s4102_s17 + $0x8c] sm:$0x1] }
  0x44   : > { %2214 = vrot.lane.b32.xlu1 %v3732_v32, %s4062_s20  ;;  %v3724_v48 = vcombine.low %v684_v33, %v687_v46  ;;  %v862_v49 = vrot.slane %v860_v41, 4  ;;  %v865_v7 = vrot.slane %v863_v42, 5  ;;  %v1061_v50 = vshll.u32 %v4244_v24, 16 }
  0x45   : > { %2118 = vrot.lane.b32.xlu0 %v3708_v44, %s4063_s21  ;;  %v1067_v40 = vrot.slane %v1065_v38, 4  ;;  %v1071_v13 = vshll.u32 %v3572_v43, 16  ;;  %v869_v51 = vshll.u32 %v4257_v35, 16  ;;  %v1059_v53 = vrot.slane %v1058_v9, 4  ;;  %v192_v9 = vld [vmem:[%s4102_s17 + $0x78] sm:$0xf] }
  0x46   : > { %v866_v54 = vor.u32 %v865_v7, %v862_v49  ;;  %v875_v45 = vrot.slane %v873_v3, 4  ;;  %v879_v20 = vshll.u32 %v3564_v47, 16  ;;  %v3740_v56 = vcombine.low %v4249_v29, %v4257_v35  ;;  %v4320_v3 = vld [vmem:[%s4102_s17 + $0x2c] sm:$0x1] }
  0x47   : > { %v1063_v57 = vrot.slane %v1061_v50, 5  ;;  %v1073_v58 = vrot.slane %v1071_v13, 5  ;;  %v871_v59 = vrot.slane %v869_v51, 5  ;;  %v3604_v12 = vrot.slane %v3588_v52, 9  ;;  %v4328_v52 = vld [vmem:[%s4102_s17 + $0x7c] sm:$0xf] }
  0x48   : > { %2310 = vrot.lane.b32.xlu1 %v3748_v1, %s4060_s18  ;;  %v867_v60 = vrot.slane %v866_v54, 4  ;;  %v1348_v61 = vrot.slane %v4244_v24, 5  ;;  %v1351_v62 = vrot.slane %v3572_v43, 5  ;;  %v881_v4 = vrot.slane %v879_v20, 5  ;;  %v4295_v24 = vld [vmem:[%s4102_s17 + $0x88] sm:$0xf] }
  0x49   : > { %2198 = vrot.lane.b32.xlu0 %v3724_v48, %s4062_s20  ;;  %v1068_v0 = vor.u32 %v1067_v40, %v1063_v57  ;;  %v876_v2 = vor.u32 %v875_v45, %v871_v59  ;;  %v3596_v5 = vrot.slane %v3580_v55, 9  ;;  %v1064_v6 = vsel %vm4170_vm5, %v1059_v53, %v1063_v57 }
  0x4a   : > { %v872_v8 = vsel %vm4170_vm5, %v867_v60, %v871_v59  ;;  %v1350_v10 = vrot.slane %v1348_v61, 4  ;;  %v1292_v11 = vrot.slane %v4257_v35, 5  ;;  %v1295_v16 = vrot.slane %v3564_v47, 5 }
  0x4b   : > { %v1069_v14 = vrot.slane %v1068_v0, 4  ;;  %v877_v15 = vrot.slane %v876_v2, 4  ;;  %v1661_v18 = vshrl.u32 %v4281_v63, 16  ;;  %v1349_v21 = vsel %vm4126_vm2, %v3604_v12, %v1348_v61 }
  0x4c   : > { %v1352_v22 = vsel %vm4126_vm2, %v1350_v10, %v1351_v62  ;;  %v1294_v23 = vrot.slane %v1292_v11, 4  ;;  %v1664_v25 = vshll.u32 %v4281_v63, 16  ;;  %v1293_v28 = vsel %vm4126_vm2, %v3596_v5, %v1292_v11 }
  0x4d   : > { %2294 = vrot.lane.b32.xlu0 %v3740_v56, %s4060_s18  ;;  %v1074_v26 = vsel %vm4170_vm5, %v1069_v14, %v1073_v58  ;;  %v882_v27 = vsel %vm4170_vm5, %v877_v15, %v881_v4  ;;  %v1663_v29 = vrot.slane %v1661_v18, 4  ;;  %v1674_v34 = vshrl.u32 %v4295_v24, 16  ;;  %v4337_v58 = vld [vmem:[%s4102_s17 + $0x80] sm:$0x1]  ;;  %v177_v14 = vld [vmem:[%s4102_s17 + $0x1c] sm:$0xf] }
  0x4e   : > { %v3764_v32 = vcombine.low %v1064_v6, %v1074_v26  ;;  %v3756_v33 = vcombine.low %v872_v8, %v882_v27  ;;  %v1296_v35 = vsel %vm4126_vm2, %v1294_v23, %v1295_v16  ;;  %v1666_v36 = vrot.slane %v1664_v25, 5 }
  0x4f   : > { %v3780_v38 = vcombine.low %v1349_v21, %v1352_v22  ;;  %v1469_v39 = vshrl.u32 %v3613_v30, 16  ;;  %v1472_v41 = vshll.u32 %v3613_v30, 16  ;;  %v1482_v42 = vshrl.u32 %v4307_v31, 16  ;;  %v206_v21 = vld [vmem:[%s4102_s17 + $0x20] sm:$0x1] }
  0x50   : > { %2390 = vrot.lane.b32.xlu1 %v3764_v32, %s4064_s22  ;;  %v3772_v43 = vcombine.low %v1293_v28, %v1296_v35  ;;  %v1667_v44 = vor.u32 %v1666_v36, %v1663_v29  ;;  %v1670_v46 = vshll.u32 %v4295_v24, 16  ;;  %v1676_v1 = vrot.slane %v1674_v34, 4  ;;  %v617_v28 = vld [vmem:[%s4102_s17 + $0x78] sm:$0xe] }
  0x51   : > { %2374 = vrot.lane.b32.xlu0 %v3756_v33, %s4064_s22  ;;  %v3796_v47 = vcombine.low %v4281_v63, %v4295_v24  ;;  %v1471_v48 = vrot.slane %v1469_v39, 4  ;;  %v1474_v49 = vrot.slane %v1472_v41, 5  ;;  %v1680_v7 = vshll.u32 %v4313_v37, 16  ;;  %v176_v63 = vld [vmem:[%s4102_s17 + $0x18] sm:$0xf] }
  0x52   : > { %v1668_v50 = vrot.slane %v1667_v44, 4  ;;  %v1672_v40 = vrot.slane %v1670_v46, 5  ;;  %v1478_v13 = vshll.u32 %v4307_v31, 16  ;;  %v1484_v51 = vrot.slane %v1482_v42, 4  ;;  %v609_v39 = vld [vmem:[%s4102_s17 + $0x18] sm:$0xe] }
  0x53   : > { %v3788_v53 = vcombine.low %v3613_v30, %v4307_v31  ;;  %v1682_v54 = vrot.slane %v1680_v7, 5  ;;  %v1475_v45 = vor.u32 %v1474_v49, %v1471_v48  ;;  %v1488_v20 = vshll.u32 %v4320_v3, 16  ;;  %v3551_v46 = vld [vmem:[%s4102_s17 + $0x84] sm:$0xf]  ;;  %v4362_v7 = vld [vmem:[%s4102_s17 + $0x88] sm:$0xf] }
  0x54   : > { %2470 = vrot.lane.b32.xlu1 %v3780_v38, %s4061_s19  ;;  %v1673_v55 = vsel %vm4170_vm5, %v1668_v50, %v1672_v40  ;;  %v1677_v56 = vor.u32 %v1676_v1, %v1672_v40  ;;  %v1480_v57 = vrot.slane %v1478_v13, 5  ;;  %v464_v59 = vshrl.u32 %v192_v9, 16 }
  0x55   : > { %2454 = vrot.lane.b32.xlu0 %v3772_v43, %s4061_s19  ;;  %v1476_v60 = vrot.slane %v1475_v45, 4  ;;  %v1490_v12 = vrot.slane %v1488_v20, 5  ;;  %v467_v61 = vshll.u32 %v192_v9, 16  ;;  %v473_v62 = vshll.u32 %v4328_v52, 16  ;;  %v4370_v20 = vld [vmem:[%s4102_s17 + $0x24] sm:$0xf] }
  0x56   : > { %v1678_v0 = vrot.slane %v1677_v56, 4  ;;  %v1485_v2 = vor.u32 %v1484_v51, %v1480_v57  ;;  %v466_v4 = vrot.slane %v464_v59, 4  ;;  %v477_v5 = vshrl.u32 %v4328_v52, 16 }
  0x57   : > { %v1481_v6 = vsel %vm4170_vm5, %v1476_v60, %v1480_v57  ;;  %v469_v8 = vrot.slane %v467_v61, 5  ;;  %v475_v10 = vrot.slane %v473_v62, 5  ;;  %v483_v11 = vshll.u32 %v4337_v58, 16 }
  0x58   : > { %2566 = vrot.lane.b32.xlu1 %v3796_v47, %s4065_s23  ;;  %v1683_v15 = vsel %vm4170_vm5, %v1678_v0, %v1682_v54  ;;  %v1486_v16 = vrot.slane %v1485_v2, 4  ;;  %v479_v18 = vrot.slane %v477_v5, 4  ;;  %v272_v22 = vshrl.u32 %v176_v63, 16  ;;  %v3536_v2 = vld [vmem:[%s4102_s17 + $0x28] sm:$0xf] }
  0x59   : > { %2550 = vrot.lane.b32.xlu0 %v3788_v53, %s4065_s23  ;;  %v3812_v23 = vcombine.low %v1673_v55, %v1683_v15  ;;  %v470_v25 = vor.u32 %v469_v8, %v466_v4  ;;  %v485_v26 = vrot.slane %v483_v11, 5  ;;  %v275_v27 = vshll.u32 %v176_v63, 16  ;;  %v3573_v15 = vld [vmem:[%s4102_s17 + $0x8c] sm:$0x1] }
  0x5a   : > { %v1491_v29 = vsel %vm4170_vm5, %v1486_v16, %v1490_v12  ;;  %v480_v30 = vor.u32 %v479_v18, %v475_v10  ;;  %v274_v32 = vrot.slane %v272_v22, 4  ;;  %v281_v33 = vshll.u32 %v177_v14, 16 }
  0x5b   : > { %v3804_v35 = vcombine.low %v1481_v6, %v1491_v29  ;;  %v471_v36 = vrot.slane %v470_v25, 4  ;;  %v277_v34 = vrot.slane %v275_v27, 5  ;;  %v285_v38 = vshrl.u32 %v177_v14, 16  ;;  %v3589_v25 = vld [vmem:[%s4102_s17 + $0x84] sm:$0xe] }
  0x5c   : > { %2646 = vrot.lane.b32.xlu1 %v3812_v23, %s4066_s24  ;;  %v481_v41 = vrot.slane %v480_v30, 4  ;;  %v283_v42 = vrot.slane %v281_v33, 5  ;;  %v291_v43 = vshll.u32 %v206_v21, 16  ;;  %v3525_v44 = vrot.slane %v617_v28, 9  ;;  %v3565_v23 = vld [vmem:[%s4102_s17 + $0x2c] sm:$0x1] }
  0x5d   : > { %2630 = vrot.lane.b32.xlu0 %v3804_v35, %s4066_s24  ;;  %v476_v1 = vsel %vm4170_vm5, %v471_v36, %v475_v10  ;;  %v278_v47 = vor.u32 %v277_v34, %v274_v32  ;;  %v287_v48 = vrot.slane %v285_v38, 4  ;;  %v746_v49 = vrot.slane %v4328_v52, 5 }
  0x5e   : > { %v486_v9 = vsel %vm4170_vm5, %v481_v41, %v485_v26  ;;  %v293_v50 = vrot.slane %v291_v43, 5  ;;  %v749_v40 = vrot.slane %v4337_v58, 5  ;;  %v3517_v13 = vrot.slane %v609_v39, 9  ;;  %v3581_v41 = vld [vmem:[%s4102_s17 + $0x24] sm:$0xe] }
  0x5f   : > { %v3717_v51 = vcombine.low %v476_v1, %v486_v9  ;;  %v279_v53 = vrot.slane %v278_v47, 4  ;;  %v288_v54 = vor.u32 %v287_v48, %v283_v42  ;;  %v747_v45 = vsel %vm4126_vm2, %v3525_v44, %v746_v49  ;;  %v4402_v9 = vld [vmem:[%s4102_s17 + $0x90] sm:$0xf] }
  0x60   : > { %v748_v55 = vrot.slane %v746_v49, 4  ;;  %v690_v52 = vrot.slane %v177_v14, 5  ;;  %v693_v56 = vrot.slane %v206_v21, 5  ;;  %v1076_v57 = vshrl.u32 %v3551_v46, 16 }
  0x61   : > { %2136 = vrot.lane.b32.xlu1 %v3717_v51, %s4063_s21  ;;  %v284_v59 = vsel %vm4170_vm5, %v279_v53, %v283_v42  ;;  %v289_v58 = vrot.slane %v288_v54, 4  ;;  %v1079_v60 = vshll.u32 %v3551_v46, 16  ;;  %v1089_v12 = vshrl.u32 %v4362_v7, 16 }
  0x62   : > { %v750_v61 = vsel %vm4126_vm2, %v748_v55, %v749_v40  ;;  %v691_v62 = vsel %vm4126_vm2, %v3517_v13, %v690_v52  ;;  %v692_v63 = vrot.slane %v690_v52, 4  ;;  %v1078_v0 = vrot.slane %v1076_v57, 4  ;;  %v4409_v52 = vld [vmem:[%s4102_s17 + $0x94] sm:$0xf] }
  0x63   : > { %v294_v4 = vsel %vm4170_vm5, %v289_v58, %v293_v50  ;;  %v3733_v5 = vcombine.low %v747_v45, %v750_v61  ;;  %v1081_v6 = vrot.slane %v1079_v60, 5  ;;  %v884_v11 = vshrl.u32 %v4370_v20, 16  ;;  %v3615_v61 = vld [vmem:[%s4102_s17 + $0x30] sm:$0xf] }
  0x64   : > { %v3709_v8 = vcombine.low %v284_v59, %v294_v4  ;;  %v694_v10 = vsel %vm4126_vm2, %v692_v63, %v693_v56  ;;  %v887_v14 = vshll.u32 %v4370_v20, 16  ;;  %v3749_v18 = vcombine.low %v3551_v46, %v4362_v7  ;;  %v4424_v4 = vld [vmem:[%s4102_s17 + $0x34] sm:$0xf] }
  0x65   : > { %2216 = vrot.lane.b32.xlu1 %v3733_v5, %s4062_s20  ;;  %v3725_v16 = vcombine.low %v691_v62, %v694_v10  ;;  %v897_v21 = vshrl.u32 %v3536_v2, 16  ;;  %v1082_v22 = vor.u32 %v1081_v6, %v1078_v0  ;;  %v886_v26 = vrot.slane %v884_v11, 4 }
  0x66   : > { %2120 = vrot.lane.b32.xlu0 %v3709_v8, %s4063_s21  ;;  %v889_v27 = vrot.slane %v887_v14, 5  ;;  %v1085_v28 = vshll.u32 %v4362_v7, 16  ;;  %v1091_v29 = vrot.slane %v1089_v12, 4  ;;  %v1095_v32 = vshll.u32 %v3573_v15, 16 }
  0x67   : > { %v1083_v30 = vrot.slane %v1082_v22, 4  ;;  %v893_v33 = vshll.u32 %v3536_v2, 16  ;;  %v899_v35 = vrot.slane %v897_v21, 4  ;;  %v903_v38 = vshll.u32 %v3565_v23, 16 }
  0x68   : > { %v1087_v36 = vrot.slane %v1085_v28, 5  ;;  %v890_v34 = vor.u32 %v889_v27, %v886_v26  ;;  %v3605_v39 = vrot.slane %v3589_v25, 9  ;;  %v3741_v42 = vcombine.low %v4370_v20, %v3536_v2  ;;  %v4438_v25 = vld [vmem:[%s4102_s17 + $0x38] sm:$0x1] }
  0x69   : > { %2312 = vrot.lane.b32.xlu1 %v3749_v18, %s4060_s18  ;;  %v1097_v43 = vrot.slane %v1095_v32, 5  ;;  %v895_v44 = vrot.slane %v893_v33, 5  ;;  %v1355_v46 = vrot.slane %v4362_v7, 5  ;;  %v1358_v49 = vrot.slane %v3573_v15, 5 }
  0x6a   : > { %2200 = vrot.lane.b32.xlu0 %v3725_v16, %s4062_s20  ;;  %v1088_v1 = vsel %vm4170_vm5, %v1083_v30, %v1087_v36  ;;  %v1092_v47 = vor.u32 %v1091_v29, %v1087_v36  ;;  %v891_v48 = vrot.slane %v890_v34, 4  ;;  %v905_v40 = vrot.slane %v903_v38, 5  ;;  %v4432_v16 = vld [vmem:[%s4102_s17 + $0x98] sm:$0x1]  ;;  %v194_v30 = vld [vmem:[%s4102_s17 + $0x84] sm:$0xf] }
  0x6b   : > { %v900_v50 = vor.u32 %v899_v35, %v895_v44  ;;  %v1357_v13 = vrot.slane %v1355_v46, 4  ;;  %v3597_v51 = vrot.slane %v3581_v41, 9  ;;  %v1356_v7 = vsel %vm4126_vm2, %v3605_v39, %v1355_v46 }
  0x6c   : > { %v1093_v53 = vrot.slane %v1092_v47, 4  ;;  %v1299_v54 = vrot.slane %v3536_v2, 5  ;;  %v1302_v45 = vrot.slane %v3565_v23, 5  ;;  %v896_v20 = vsel %vm4170_vm5, %v891_v48, %v895_v44 }
  0x6d   : > { %v901_v55 = vrot.slane %v900_v50, 4  ;;  %v1685_v56 = vshrl.u32 %v4402_v9, 16  ;;  %v1688_v57 = vshll.u32 %v4402_v9, 16  ;;  %v1359_v58 = vsel %vm4126_vm2, %v1357_v13, %v1358_v49 }
  0x6e   : > { %2296 = vrot.lane.b32.xlu0 %v3741_v42, %s4060_s18  ;;  %v1098_v59 = vsel %vm4170_vm5, %v1093_v53, %v1097_v43  ;;  %v1300_v60 = vsel %vm4126_vm2, %v3597_v51, %v1299_v54  ;;  %v1301_v12 = vrot.slane %v1299_v54, 4  ;;  %v1698_v8 = vshrl.u32 %v4409_v52, 16  ;;  %v195_v42 = vld [vmem:[%s4102_s17 + $0x88] sm:$0xf] }
  0x6f   : > { %v3765_v62 = vcombine.low %v1088_v1, %v1098_v59  ;;  %v906_v63 = vsel %vm4170_vm5, %v901_v55, %v905_v40  ;;  %v1687_v0 = vrot.slane %v1685_v56, 4  ;;  %v1690_v2 = vrot.slane %v1688_v57, 5  ;;  %v4452_v1 = vld [vmem:[%s4102_s17 + $0x8c] sm:$0x1]  ;;  %v178_v40 = vld [vmem:[%s4102_s17 + $0x24] sm:$0xf] }
  0x70   : > { %v3757_v5 = vcombine.low %v896_v20, %v906_v63  ;;  %v1303_v6 = vsel %vm4126_vm2, %v1301_v12, %v1302_v45  ;;  %v3781_v11 = vcombine.low %v1356_v7, %v1359_v58  ;;  %v1493_v14 = vshrl.u32 %v3615_v61, 16  ;;  %v179_v56 = vld [vmem:[%s4102_s17 + $0x28] sm:$0xf] }
  0x71   : > { %2392 = vrot.lane.b32.xlu1 %v3765_v62, %s4064_s22  ;;  %v1496_v15 = vshll.u32 %v3615_v61, 16  ;;  %v1901_v18 = vrot.slane %v4307_v31, 5  ;;  %v3773_v21 = vcombine.low %v1300_v60, %v1303_v6  ;;  %v1506_v22 = vshrl.u32 %v4424_v4, 16  ;;  %v207_v60 = vld [vmem:[%s4102_s17 + $0x2c] sm:$0x1] }
  0x72   : > { %2376 = vrot.lane.b32.xlu0 %v3757_v5, %s4064_s22  ;;  %v1691_v23 = vor.u32 %v1690_v2, %v1687_v0  ;;  %v1495_v26 = vrot.slane %v1493_v14, 4  ;;  %v1694_v28 = vshll.u32 %v4409_v52, 16  ;;  %v1700_v29 = vrot.slane %v1698_v8, 4  ;;  %v618_v2 = vld [vmem:[%s4102_s17 + $0x84] sm:$0xe] }
  0x73   : > { %v1498_v27 = vrot.slane %v1496_v15, 5  ;;  %v3797_v32 = vcombine.low %v4402_v9, %v4409_v52  ;;  %v1704_v35 = vshll.u32 %v4432_v16, 16  ;;  %v1502_v36 = vshll.u32 %v4424_v4, 16 }
  0x74   : > { %v1692_v33 = vrot.slane %v1691_v23, 4  ;;  %v1696_v34 = vrot.slane %v1694_v28, 5  ;;  %v1508_v39 = vrot.slane %v1506_v22, 4  ;;  %v1512_v41 = vshll.u32 %v4438_v25, 16 }
  0x75   : > { %2472 = vrot.lane.b32.xlu1 %v3781_v11, %s4061_s19  ;;  %v1499_v38 = vor.u32 %v1498_v27, %v1495_v26  ;;  %v3789_v43 = vcombine.low %v3615_v61, %v4424_v4  ;;  %v1706_v44 = vrot.slane %v1704_v35, 5  ;;  %v1504_v46 = vrot.slane %v1502_v36, 5  ;;  %v610_v35 = vld [vmem:[%s4102_s17 + $0x24] sm:$0xe] }
  0x76   : > { %2456 = vrot.lane.b32.xlu0 %v3773_v21, %s4061_s19  ;;  %v488_v47 = vshrl.u32 %v194_v30, 16  ;;  %v1697_v48 = vsel %vm4170_vm5, %v1692_v33, %v1696_v34  ;;  %v1701_v49 = vor.u32 %v1700_v29, %v1696_v34  ;;  %v1514_v50 = vrot.slane %v1512_v41, 5  ;;  %v3553_v41 = vld [vmem:[%s4102_s17 + $0x90] sm:$0xf] }
  0x77   : > { %v1500_v9 = vrot.slane %v1499_v38, 4  ;;  %v1509_v13 = vor.u32 %v1508_v39, %v1504_v46  ;;  %v491_v53 = vshll.u32 %v194_v30, 16  ;;  %v497_v7 = vshll.u32 %v195_v42, 16 }
  0x78   : > { %v490_v51 = vrot.slane %v488_v47, 4  ;;  %v1702_v54 = vrot.slane %v1701_v49, 4  ;;  %v501_v20 = vshrl.u32 %v195_v42, 16  ;;  %v507_v55 = vshll.u32 %v4452_v1, 16 }
  0x79   : > { %2568 = vrot.lane.b32.xlu1 %v3797_v32, %s4065_s23  ;;  %v1505_v45 = vsel %vm4170_vm5, %v1500_v9, %v1504_v46  ;;  %v1510_v57 = vrot.slane %v1509_v13, 4  ;;  %v493_v59 = vrot.slane %v491_v53, 5  ;;  %v499_v58 = vrot.slane %v497_v7, 5  ;;  %v4486_v53 = vld [vmem:[%s4102_s17 + $0x30] sm:$0xf] }
  0x7a   : > { %2552 = vrot.lane.b32.xlu0 %v3789_v43, %s4065_s23  ;;  %v296_v12 = vshrl.u32 %v178_v40, 16  ;;  %v1707_v61 = vsel %vm4170_vm5, %v1702_v54, %v1706_v44  ;;  %v503_v62 = vrot.slane %v501_v20, 4  ;;  %v509_v63 = vrot.slane %v507_v55, 5  ;;  %v4492_v55 = vld [vmem:[%s4102_s17 + $0x34] sm:$0xf] }
  0x7b   : > { %v299_v0 = vshll.u32 %v178_v40, 16  ;;  %v3813_v5 = vcombine.low %v1697_v48, %v1707_v61  ;;  %v1515_v6 = vsel %vm4170_vm5, %v1510_v57, %v1514_v50  ;;  %v494_v8 = vor.u32 %v493_v59, %v490_v51  ;;  %v3554_v50 = vld [vmem:[%s4102_s17 + $0x94] sm:$0xf] }
  0x7c   : > { %v298_v11 = vrot.slane %v296_v12, 4  ;;  %v3805_v14 = vcombine.low %v1505_v45, %v1515_v6  ;;  %v504_v15 = vor.u32 %v503_v62, %v499_v58  ;;  %v305_v22 = vshll.u32 %v179_v56, 16 }
  0x7d   : > { %v301_v21 = vrot.slane %v299_v0, 5  ;;  %2648 = vrot.lane.b32.xlu1 %v3813_v5, %s4066_s24  ;;  %v495_v23 = vrot.slane %v494_v8, 4  ;;  %v309_v26 = vshrl.u32 %v179_v56, 16  ;;  %v315_v27 = vshll.u32 %v207_v60, 16  ;;  %v4503_v8 = vld [vmem:[%s4102_s17 + $0x38] sm:$0x1] }
  0x7e   : > { %v3526_v28 = vrot.slane %v618_v2, 9  ;;  %2632 = vrot.lane.b32.xlu0 %v3805_v14, %s4066_s24  ;;  %v505_v29 = vrot.slane %v504_v15, 4  ;;  %v307_v32 = vrot.slane %v305_v22, 5  ;;  %v753_v33 = vrot.slane %v195_v42, 5  ;;  %v3590_v22 = vld [vmem:[%s4102_s17 + $0x90] sm:$0xe] }
  0x7f   : > { %v302_v30 = vor.u32 %v301_v21, %v298_v11  ;;  %v500_v36 = vsel %vm4170_vm5, %v495_v23, %v499_v58  ;;  %v311_v34 = vrot.slane %v309_v26, 4  ;;  %v317_v38 = vrot.slane %v315_v27, 5 }
  0x80   : > { %v756_v39 = vrot.slane %v4452_v1, 5  ;;  %v510_v43 = vsel %vm4170_vm5, %v505_v29, %v509_v63  ;;  %v754_v46 = vsel %vm4126_vm2, %v3526_v28, %v753_v33  ;;  %v755_v47 = vrot.slane %v753_v33, 4  ;;  %v3574_v63 = vld [vmem:[%s4102_s17 + $0x98] sm:$0x1] }
  0x81   : > { %v303_v44 = vrot.slane %v302_v30, 4  ;;  %v3718_v42 = vcombine.low %v500_v36, %v510_v43  ;;  %v312_v48 = vor.u32 %v311_v34, %v307_v32  ;;  %v3518_v49 = vrot.slane %v610_v35, 9  ;;  %v3582_v35 = vld [vmem:[%s4102_s17 + $0x30] sm:$0xe] }
  0x82   : > { %v697_v9 = vrot.slane %v179_v56, 5  ;;  %v757_v1 = vsel %vm4126_vm2, %v755_v47, %v756_v39  ;;  %v700_v13 = vrot.slane %v207_v60, 5  ;;  %v1100_v51 = vshrl.u32 %v3553_v41, 16 }
  0x83   : > { %v308_v40 = vsel %vm4170_vm5, %v303_v44, %v307_v32  ;;  %2138 = vrot.lane.b32.xlu1 %v3718_v42, %s4063_s21  ;;  %v313_v7 = vrot.slane %v312_v48, 4  ;;  %v3734_v54 = vcombine.low %v754_v46, %v757_v1  ;;  %v1103_v57 = vshll.u32 %v3553_v41, 16 }
  0x84   : > { %v698_v45 = vsel %vm4126_vm2, %v3518_v49, %v697_v9  ;;  %v699_v20 = vrot.slane %v697_v9, 4  ;;  %v1102_v56 = vrot.slane %v1100_v51, 4  ;;  %v1113_v59 = vshrl.u32 %v3554_v50, 16 }
  0x85   : > { %v3750_v58 = vcombine.low %v3553_v41, %v3554_v50  ;;  %v318_v60 = vsel %vm4170_vm5, %v313_v7, %v317_v38  ;;  %v908_v61 = vshrl.u32 %v4486_v53, 16  ;;  %v911_v62 = vshll.u32 %v4486_v53, 16 }
  0x86   : > { %v701_v12 = vsel %vm4126_vm2, %v699_v20, %v700_v13  ;;  %v3710_v0 = vcombine.low %v308_v40, %v318_v60  ;;  %v1105_v5 = vrot.slane %v1103_v57, 5  ;;  %v921_v6 = vshrl.u32 %v4492_v55, 16  ;;  %v4520_v40 = vld [vmem:[%s4102_s17 + $0x9c] sm:$0xf] }
  0x87   : > { %v3726_v2 = vcombine.low %v698_v45, %v701_v12  ;;  %2218 = vrot.lane.b32.xlu1 %v3734_v54, %s4062_s20  ;;  %v910_v11 = vrot.slane %v908_v61, 4  ;;  %v913_v14 = vrot.slane %v911_v62, 5  ;;  %v3742_v15 = vcombine.low %v4486_v53, %v4492_v55  ;;  %v3979_v53 = vld [vmem:[%s5856_s1] sm:$0xff]   ;;  %v4545_v12 = vld [vmem:[%s4102_s17 + $0x3c] sm:$0xf] }
  0x88   : > { %v1109_v21 = vshll.u32 %v3554_v50, 16  ;;  %2122 = vrot.lane.b32.xlu0 %v3710_v0, %s4063_s21  ;;  %v1106_v23 = vor.u32 %v1105_v5, %v1102_v56  ;;  %v1115_v26 = vrot.slane %v1113_v59, 4  ;;  %v1119_v27 = vshll.u32 %v3574_v63, 16  ;;  %v4513_v36 = vpop.permute.xlu1 %2308  ;;  %v4556_v5 = vld [vmem:[%s4102_s17 + $0x40] sm:$0xf] }
  0x89   : > { %v917_v28 = vshll.u32 %v4492_v55, 16  ;;  %v914_v30 = vor.u32 %v913_v14, %v910_v11  ;;  %v923_v32 = vrot.slane %v921_v6, 4  ;;  %v927_v33 = vshll.u32 %v4503_v8, 16 }
  0x8a   : > { %v1111_v29 = vrot.slane %v1109_v21, 5  ;;  %v1107_v34 = vrot.slane %v1106_v23, 4  ;;  %v1121_v38 = vrot.slane %v1119_v27, 5  ;;  %v3606_v41 = vrot.slane %v3590_v22, 9  ;;  %v4531_v20 = vpop.permute.xlu0 %2292  ;;  %v4567_v27 = vld [vmem:[%s4102_s17 + $0xa4] sm:$0x1] }
  0x8b   : > { %v919_v39 = vrot.slane %v917_v28, 5  ;;  %2314 = vrot.lane.b32.xlu1 %v3750_v58, %s4060_s18  ;;  %v915_v44 = vrot.slane %v914_v30, 4  ;;  %v929_v46 = vrot.slane %v927_v33, 5  ;;  %v1362_v47 = vrot.slane %v3554_v50, 5  ;;  %v4540_v58 = vld [vmem:[%s4102_s17 + $0xa0] sm:$0xf] }
  0x8c   : > { %v1116_v43 = vor.u32 %v1115_v26, %v1111_v29  ;;  %2202 = vrot.lane.b32.xlu0 %v3726_v2, %s4062_s20  ;;  %v1112_v42 = vsel %vm4170_vm5, %v1107_v34, %v1111_v29  ;;  %v1365_v49 = vrot.slane %v3574_v63, 5  ;;  %v3598_v9 = vrot.slane %v3582_v35, 9 }
  0x8d   : > { %v924_v48 = vor.u32 %v923_v32, %v919_v39  ;;  %v920_v13 = vsel %vm4170_vm5, %v915_v44, %v919_v39  ;;  %v1363_v51 = vsel %vm4126_vm2, %v3606_v41, %v1362_v47  ;;  %v1364_v50 = vrot.slane %v1362_v47, 4  ;;  %v4580_v41 = vld [vmem:[%s4102_s17 + $0x44] sm:$0x1] }
  0x8e   : > { %v1117_v1 = vrot.slane %v1116_v43, 4  ;;  %v1306_v54 = vrot.slane %v4492_v55, 5  ;;  %v1309_v45 = vrot.slane %v4503_v8, 5  ;;  %v4067_v59 = vmov 0   ;;  %v3981_v43 = vld [vmem:[%s5856_s1 + $0x10] sm:$0xff]  }
  0x8f   : > { %v925_v7 = vrot.slane %v924_v48, 4  ;;  %v1366_v57 = vsel %vm4126_vm2, %v1364_v50, %v1365_v49  ;;  %3098 = vmatprep.subr.bf16.mxu0 %v4067_v59  ;;  %3928 = vmatprep.subr.bf16.mxu1 %v4067_v59  ;;  %v1709_v55 = vshrl.u32 %v4520_v40, 16  ;;  %v1712_v60 = vshll.u32 %v4520_v40, 16  ;;  %v196_v49 = vld [vmem:[%s4102_s17 + $0x90] sm:$0xf] }
  0x90   : > { %v1122_v56 = vsel %vm4170_vm5, %v1117_v1, %v1121_v38  ;;  %2298 = vrot.lane.b32.xlu0 %v3742_v15, %s4060_s18  ;;  %v1307_v2 = vsel %vm4126_vm2, %v3598_v9, %v1306_v54  ;;  %v1308_v8 = vrot.slane %v1306_v54, 4  ;;  %3099 = vmatpush1.bf16.msra.mxu0 %v3979_v53  ;;  %v3980_v15 = vld [vmem:[%s5856_s1 + $0x8] sm:$0xff]   ;;  %v3782_v22 = vcombine.low %v1363_v51, %v1366_v57  ;;  %v4585_v44 = vpop.permute.xlu0 %2452  ;;  %v4604_v57 = vld [vmem:[%s4102_s17 + $0x98] sm:$0x1] }
  0x91   : > { %v4547_v61 = vpop.permute.xlu1 %2196  ;;  %v3766_v63 = vcombine.low %v1112_v42, %v1122_v56  ;;  %v930_v0 = vsel %vm4170_vm5, %v925_v7, %v929_v46  ;;  %v1711_v11 = vrot.slane %v1709_v55, 4  ;;  %v1714_v14 = vrot.slane %v1712_v60, 5  ;;  %3937 = vmatpush1.bf16.msra.mxu1 %v3979_v53  ;;  %3100 = vmatprep.subr.bf16.mxu0 %v4067_v59 }
  0x92   : > { %v3758_v6 = vcombine.low %v920_v13, %v930_v0  ;;  %v1722_v23 = vshrl.u32 %v4540_v58, 16  ;;  %v1517_v26 = vshrl.u32 %v4545_v12, 16  ;;  %v1310_v29 = vsel %vm4126_vm2, %v1308_v8, %v1309_v45  ;;  %3929 = vmatprep.subr.bf16.mxu1 %v4067_v59  ;;  %v4600_v45 = vld [vmem:[%s4102_s17 + $0x94] sm:$0xf]  ;;  %v3982_v8 = vld [vmem:[%s5856_s1 + $0x18] sm:$0xff]  }
  0x93   : > { %2394 = vrot.lane.b32.xlu1 %v3766_v63, %s4064_s22  ;;  %v1520_v30 = vshll.u32 %v4545_v12, 16  ;;  %v1530_v32 = vshrl.u32 %v4556_v5, 16  ;;  %v3774_v34 = vcombine.low %v1307_v2, %v1310_v29  ;;  %v1715_v39 = vor.u32 %v1714_v14, %v1711_v11 }
  0x94   : > { %2378 = vrot.lane.b32.xlu0 %v3758_v6, %s4064_s22  ;;  %v1519_v38 = vrot.slane %v1517_v26, 4  ;;  %v1718_v47 = vshll.u32 %v4540_v58, 16  ;;  %v1724_v42 = vrot.slane %v1722_v23, 4  ;;  %v1728_v48 = vshll.u32 %v4567_v27, 16  ;;  %3101 = vmatpush1.bf16.msra.mxu0 %v3980_v15  ;;  %v180_v6 = vld [vmem:[%s4102_s17 + $0x30] sm:$0xf] }
  0x95   : > { %v4575_v33 = vpop.permute.xlu1 %2212  ;;  %v1522_v46 = vrot.slane %v1520_v30, 5  ;;  %3938 = vmatpush1.bf16.msra.mxu1 %v3980_v15  ;;  %v3798_v9 = vcombine.low %v4520_v40, %v4540_v58  ;;  %v1716_v1 = vrot.slane %v1715_v39, 4  ;;  %v1526_v13 = vshll.u32 %v4556_v5, 16  ;;  %3102 = vmatprep.subr.bf16.mxu0 %v4067_v59 }
  0x96   : > { %v1532_v51 = vrot.slane %v1530_v32, 4  ;;  %v3790_v50 = vcombine.low %v4545_v12, %v4556_v5  ;;  %v1720_v53 = vrot.slane %v1718_v47, 5  ;;  %v1536_v54 = vshll.u32 %v4580_v41, 16  ;;  %3930 = vmatprep.subr.bf16.mxu1 %v4067_v59  ;;  %v4629_v47 = vld [vmem:[%s4102_s17 + $0x38] sm:$0x1] }
  0x97   : > { %2474 = vrot.lane.b32.xlu1 %v3782_v22, %s4061_s19  ;;  %v1523_v7 = vor.u32 %v1522_v46, %v1519_v38  ;;  %v1730_v40 = vrot.slane %v1728_v48, 5  ;;  %v1528_v56 = vrot.slane %v1526_v13, 5  ;;  %v512_v55 = vshrl.u32 %v196_v49, 16  ;;  %v4624_v38 = vld [vmem:[%s4102_s17 + $0x34] sm:$0xf] }
  0x98   : > { %2458 = vrot.lane.b32.xlu0 %v3774_v34, %s4061_s19  ;;  %v515_v60 = vshll.u32 %v196_v49, 16  ;;  %v1721_v12 = vsel %vm4170_vm5, %v1716_v1, %v1720_v53  ;;  %v1725_v63 = vor.u32 %v1724_v42, %v1720_v53  ;;  %v1538_v2 = vrot.slane %v1536_v54, 5  ;;  %3103 = vmatpush1.bf16.msra.mxu0 %v3981_v43  ;;  %v619_v13 = vld [vmem:[%s4102_s17 + $0x90] sm:$0xe] }
  0x99   : > { %v1524_v0 = vrot.slane %v1523_v7, 4  ;;  %3939 = vmatpush1.bf16.msra.mxu1 %v3981_v43  ;;  %v4612_v11 = vpop.permute.xlu1 %2468  ;;  %v1533_v14 = vor.u32 %v1532_v51, %v1528_v56  ;;  %v514_v15 = vrot.slane %v512_v55, 4  ;;  %v521_v23 = vshll.u32 %v4600_v45, 16  ;;  %3104 = vmatprep.subr.bf16.mxu0 %v4067_v59  ;;  %v3985_v51 = vld [vmem:[%s5856_s1 + $0x20] sm:$0xff]  }
  0x9a   : > { %v517_v22 = vrot.slane %v515_v60, 5  ;;  %v1726_v29 = vrot.slane %v1725_v63, 4  ;;  %v525_v32 = vshrl.u32 %v4600_v45, 16  ;;  %v531_v34 = vshll.u32 %v4604_v57, 16  ;;  %3931 = vmatprep.subr.bf16.mxu1 %v4067_v59 }
  0x9b   : > { %2570 = vrot.lane.b32.xlu1 %v3798_v9, %s4065_s23  ;;  %v1529_v30 = vsel %vm4170_vm5, %v1524_v0, %v1528_v56  ;;  %v1534_v39 = vrot.slane %v1533_v14, 4  ;;  %v523_v46 = vrot.slane %v521_v23, 5  ;;  %v320_v42 = vshrl.u32 %v180_v6, 16  ;;  %v611_v0 = vld [vmem:[%s4102_s17 + $0x30] sm:$0xe] }
  0x9c   : > { %v4617_v26 = vpop.permute.xlu0 %2116  ;;  %2554 = vrot.lane.b32.xlu0 %v3790_v50, %s4065_s23  ;;  %v518_v43 = vor.u32 %v517_v22, %v514_v15  ;;  %v1731_v48 = vsel %vm4170_vm5, %v1726_v29, %v1730_v40  ;;  %v527_v49 = vrot.slane %v525_v32, 4  ;;  %v533_v9 = vrot.slane %v531_v34, 5  ;;  %3105 = vmatpush1.bf16.msra.mxu0 %v3982_v8 }
  0x9d   : > { %v323_v1 = vshll.u32 %v180_v6, 16  ;;  %3940 = vmatpush1.bf16.msra.mxu1 %v3982_v8  ;;  %v3814_v50 = vcombine.low %v1721_v12, %v1731_v48  ;;  %v1539_v53 = vsel %vm4170_vm5, %v1534_v39, %v1538_v2  ;;  %v322_v54 = vrot.slane %v320_v42, 4  ;;  %3106 = vmatprep.subr.bf16.mxu0 %v4067_v59 }
  0x9e   : > { %v519_v7 = vrot.slane %v518_v43, 4  ;;  %3932 = vmatprep.subr.bf16.mxu1 %v4067_v59  ;;  %v3806_v56 = vcombine.low %v1529_v30, %v1539_v53  ;;  %v528_v55 = vor.u32 %v527_v49, %v523_v46  ;;  %v329_v63 = vshll.u32 %v4624_v38, 16  ;;  %v3987_v30 = vld [vmem:[%s5856_s1 + $0x28] sm:$0xff]   ;;  %v4672_v53 = vld [vmem:[%s4102_s17 + $0xa0] sm:$0xf] }
  0x9f   : > { %v325_v60 = vrot.slane %v323_v1, 5  ;;  %2650 = vrot.lane.b32.xlu1 %v3814_v50, %s4066_s24  ;;  %v333_v2 = vshrl.u32 %v4624_v38, 16  ;;  %v339_v8 = vshll.u32 %v4629_v47, 16  ;;  %v3527_v14 = vrot.slane %v619_v13, 9 }
  0xa0   : > { %v4641_v40 = vpop.permute.xlu0 %2132  ;;  %v524_v12 = vsel %vm4170_vm5, %v519_v7, %v523_v46  ;;  %2634 = vrot.lane.b32.xlu0 %v3806_v56, %s4066_s24  ;;  %v529_v15 = vrot.slane %v528_v55, 4  ;;  %v331_v23 = vrot.slane %v329_v63, 5  ;;  %v760_v29 = vrot.slane %v4600_v45, 5  ;;  %3107 = vmatpush1.bf16.msra.mxu0 %v3985_v51  ;;  %v4659_v46 = vld [vmem:[%s4102_s17 + $0x9c] sm:$0xf] }
  0xa1   : > { %v4645_v6 = vpop.permute.xlu1 %2388  ;;  %v326_v22 = vor.u32 %v325_v60, %v322_v54  ;;  %v335_v32 = vrot.slane %v333_v2, 4  ;;  %v341_v34 = vrot.slane %v339_v8, 5  ;;  %v763_v39 = vrot.slane %v4604_v57, 5  ;;  %3941 = vmatpush1.bf16.msra.mxu1 %v3985_v51  ;;  %3108 = vmatprep.subr.bf16.mxu0 %v4067_v59  ;;  %v4683_v60 = vld [vmem:[%s4102_s17 + $0x3c] sm:$0xf] }
  0xa2   : > { %v3519_v43 = vrot.slane %v611_v0, 9  ;;  %v534_v42 = vsel %vm4170_vm5, %v529_v15, %v533_v9  ;;  %v761_v48 = vsel %vm4126_vm2, %v3527_v14, %v760_v29  ;;  %v762_v49 = vrot.slane %v760_v29, 4  ;;  %3933 = vmatprep.subr.bf16.mxu1 %v4067_v59  ;;  %v4692_v2 = vld [vmem:[%s4102_s17 + $0x40] sm:$0xf]  ;;  %v182_v8 = vld [vmem:[%s4102_s17 + $0x3c] sm:$0xf] }
  0xa3   : > { %v327_v45 = vrot.slane %v326_v22, 4  ;;  %v3719_v57 = vcombine.low %v524_v12, %v534_v42  ;;  %v336_v13 = vor.u32 %v335_v32, %v331_v23  ;;  %v704_v50 = vrot.slane %v4624_v38, 5  ;;  %v3989_v38 = vld [vmem:[%s5856_s1 + $0x30] sm:$0xff]  }
  0xa4   : > { %v4667_v1 = vpop.permute.xlu0 %2372  ;;  %v707_v51 = vrot.slane %v4629_v47, 5  ;;  %v764_v54 = vsel %vm4126_vm2, %v762_v49, %v763_v39  ;;  %v1124_v56 = vshrl.u32 %v4659_v46, 16  ;;  %v1127_v55 = vshll.u32 %v4659_v46, 16  ;;  %3109 = vmatpush1.bf16.msra.mxu0 %v3987_v30 }
  0xa5   : > { %v4674_v9 = vpop.permute.xlu1 %2564  ;;  %v332_v7 = vsel %vm4170_vm5, %v327_v45, %v331_v23  ;;  %2140 = vrot.lane.b32.xlu1 %v3719_v57, %s4063_s21  ;;  %v337_v47 = vrot.slane %v336_v13, 4  ;;  %v3735_v63 = vcombine.low %v761_v48, %v764_v54  ;;  %v705_v0 = vsel %vm4126_vm2, %v3519_v43, %v704_v50  ;;  %3942 = vmatpush1.bf16.msra.mxu1 %v3987_v30  ;;  %v4708_v48 = vld [vmem:[%s4102_s17 + $0xa4] sm:$0x1] }
  0xa6   : > { %v706_v12 = vrot.slane %v704_v50, 4  ;;  %v1126_v14 = vrot.slane %v1124_v56, 4  ;;  %v1129_v15 = vrot.slane %v1127_v55, 5  ;;  %v1137_v22 = vshrl.u32 %v4672_v53, 16  ;;  %3110 = vmatprep.subr.bf16.mxu0 %v4067_v59  ;;  %3934 = vmatprep.subr.bf16.mxu1 %v4067_v59  ;;  %v4020_v50 = vld [vmem:[%s4102_s17 + $0x4] sm:$0xf] }
  0xa7   : > { %v342_v23 = vsel %vm4170_vm5, %v337_v47, %v341_v34  ;;  %v932_v30 = vshrl.u32 %v4683_v60, 16  ;;  %v935_v32 = vshll.u32 %v4683_v60, 16  ;;  %v3751_v42 = vcombine.low %v4659_v46, %v4672_v53  ;;  %v3992_v34 = vld [vmem:[%s5856_s1 + $0x38] sm:$0xff]   ;;  %v4723_v47 = vld [vmem:[%s4102_s17 + $0x44] sm:$0x1] }
  0xa8   : > { %v708_v29 = vsel %vm4126_vm2, %v706_v12, %v707_v51  ;;  %v3711_v39 = vcombine.low %v332_v7, %v342_v23  ;;  %v945_v45 = vshrl.u32 %v4692_v2, 16  ;;  %3111 = vmatpush1.bf16.msra.mxu0 %v3989_v38  ;;  %v4713_v49 = vpop.permute.xlu0 %2548  ;;  %v4021_v51 = vld [vmem:[%s4102_s17] sm:$0xf]  ;;  %v1130_v54 = vor.u32 %v1129_v15, %v1126_v14  ;;  %v3591_v23 = vld [vmem:[%s4102_s17 + $0x9c] sm:$0xe] }
  0xa9   : > { %v3727_v43 = vcombine.low %v705_v0, %v708_v29  ;;  %2220 = vrot.lane.b32.xlu1 %v3735_v63, %s4062_s20  ;;  %v934_v57 = vrot.slane %v932_v30, 4  ;;  %v937_v13 = vrot.slane %v935_v32, 5  ;;  %v3691_v46 = vcombine.low %v4021_v51, %v4020_v50  ;;  %3943 = vmatpush1.bf16.msra.mxu1 %v3989_v38  ;;  %v4022_v50 = vld [vmem:[%s4102_s17 + $0x64] sm:$0xf]  ;;  %v4023_v51 = vld [vmem:[%s4102_s17 + $0x60] sm:$0xf] }
  0xaa   : > { %2124 = vrot.lane.b32.xlu0 %v3711_v39, %s4063_s21  ;;  %v1133_v56 = vshll.u32 %v4672_v53, 16  ;;  %v1139_v55 = vrot.slane %v1137_v22, 4  ;;  %3112 = vmatprep.subr.bf16.mxu0 %v4067_v59  ;;  %v1143_v0 = vshll.u32 %v4708_v48, 16  ;;  %v941_v12 = vshll.u32 %v4692_v2, 16 }
  0xab   : > { %v2711_v63 = vsel %vm2708_vm6, %v3691_v46, %v4617_v26  ;;  %v938_v38 = vor.u32 %v937_v13, %v934_v57  ;;  %3935 = vmatprep.subr.bf16.mxu1 %v4067_v59  ;;  %v3743_v14 = vcombine.low %v4683_v60, %v4692_v2  ;;  %v1131_v15 = vrot.slane %v1130_v54, 4  ;;  %v3993_v26 = vld [vmem:[%s5856_s1 + $0x40] sm:$0xff]   ;;  %v3583_v60 = vld [vmem:[%s4102_s17 + $0x3c] sm:$0xe] }
  0xac   : > { %v4718_v7 = vpop.permute.xlu1 %2644  ;;  %v1135_v22 = vrot.slane %v1133_v56, 5  ;;  %v947_v29 = vrot.slane %v945_v45, 4  ;;  %3113 = vmatpush1.bf16.msra.mxu0 %v3992_v34  ;;  %v2759_v30 = vsel %vm2757_vm7, %v2711_v63, %v4547_v61  ;;  %v943_v39 = vrot.slane %v941_v12, 5 }
  0xad   : > { %2316 = vrot.lane.b32.xlu1 %v3751_v42, %s4060_s18  ;;  %v939_v32 = vrot.slane %v938_v38, 4  ;;  %v951_v57 = vshll.u32 %v4723_v47, 16  ;;  %3944 = vmatpush1.bf16.msra.mxu1 %v3992_v34  ;;  %v1145_v45 = vrot.slane %v1143_v0, 5  ;;  %v3699_v46 = vcombine.low %v4023_v51, %v4022_v50  ;;  %v4746_v42 = vpop.permute.xlu0 %2628  ;;  %v4783_v50 = vld [vmem:[%s4102_s17 + $0xac] sm:$0xf] }
  0xae   : > { %2204 = vrot.lane.b32.xlu0 %v3727_v43, %s4062_s20  ;;  %v1140_v13 = vor.u32 %v1139_v55, %v1135_v22  ;;  %v3607_v54 = vrot.slane %v3591_v23, 9  ;;  %3114 = vmatprep.subr.bf16.mxu0 %v4067_v59  ;;  %v1136_v61 = vsel %vm4170_vm5, %v1131_v15, %v1135_v22  ;;  %v948_v56 = vor.u32 %v947_v29, %v943_v39 }
  0xaf   : > { %v953_v63 = vrot.slane %v951_v57, 5  ;;  %v1369_v38 = vrot.slane %v4672_v53, 5  ;;  %3936 = vmatprep.subr.bf16.mxu1 %v4067_v59  ;;  %v2735_v55 = vsel %vm2708_vm6, %v3699_v46, %v4641_v40  ;;  %v1372_v0 = vrot.slane %v4708_v48, 5 }
  0xb0   : > { %v1141_v34 = vrot.slane %v1140_v13, 4  ;;  %v3599_v12 = vrot.slane %v3583_v60, 9  ;;  %3115 = vmatpush1.bf16.msra.mxu0 %v3993_v26  ;;  %v944_v23 = vsel %vm4170_vm5, %v939_v32, %v943_v39  ;;  %v949_v15 = vrot.slane %v948_v56, 4  ;;  %v3635_v32 = vld [vmem:[%s4102_s17 + $0xa8] sm:$0xf] }
  0xb1   : > { %v2775_v53 = vsel %vm2757_vm7, %v2735_v55, %v4575_v33  ;;  %v1371_v22 = vrot.slane %v1369_v38, 4  ;;  %3945 = vmatpush1.bf16.msra.mxu1 %v3993_v26  ;;  %v1370_v40 = vsel %vm4126_vm2, %v3607_v54, %v1369_v38  ;;  %v1313_v48 = vrot.slane %v4692_v2, 5  ;;  %v3619_v54 = vld [vmem:[%s4102_s17 + $0x48] sm:$0xf]  ;;  %v4854_v56 = vld [vmem:[%s4102_s17 + $0xa0] sm:$0xf] }
  0xb2   : > { %v4752_v43 = vpop.permute.xlu1 %2134  ;;  %2300 = vrot.lane.b32.xlu0 %v3743_v14, %s4060_s18  ;;  %v1146_v59 = vsel %vm4170_vm5, %v1141_v34, %v1145_v45  ;;  %v1316_v29 = vrot.slane %v4723_v47, 5  ;;  %v954_v33 = vsel %vm4170_vm5, %v949_v15, %v953_v63  ;;  %v2808_v45 = vsel %vm2790_vm8, %v2775_v53, %v4513_v36  ;;  %v4793_v34 = vld [vmem:[%s4102_s17 + $0x4c] sm:$0xf] }
  0xb3   : > { %v3767_v39 = vcombine.low %v1136_v61, %v1146_v59  ;;  %v1373_v14 = vsel %vm4126_vm2, %v1371_v22, %v1372_v0  ;;  %v3759_v57 = vcombine.low %v944_v23, %v954_v33  ;;  %v1314_v60 = vsel %vm4126_vm2, %v3599_v12, %v1313_v48 }
  0xb4   : > { %v1315_v2 = vrot.slane %v1313_v48, 4  ;;  %v3783_v13 = vcombine.low %v1370_v40, %v1373_v14  ;;  %v1733_v51 = vshrl.u32 %v3635_v32, 16  ;;  %v1736_v46 = vshll.u32 %v3635_v32, 16 }
  0xb5   : > { %2396 = vrot.lane.b32.xlu1 %v3767_v39, %s4064_s22  ;;  %v2792_v55 = vsel %vm2790_vm8, %v2759_v30, %v4531_v20  ;;  %v2841_v23 = vsel %vm2823_vm9, %v2808_v45, %v4645_v6  ;;  %v1746_v15 = vshrl.u32 %v4783_v50, 16  ;;  %v1541_v53 = vshrl.u32 %v3619_v54, 16  ;;  %v4808_v30 = vld [vmem:[%s4102_s17 + $0xb0] sm:$0x1] }
  0xb6   : > { %v4773_v26 = vpop.permute.xlu1 %2214  ;;  %2380 = vrot.lane.b32.xlu0 %v3759_v57, %s4064_s22  ;;  %v1317_v38 = vsel %vm4126_vm2, %v1315_v2, %v1316_v29  ;;  %v1735_v0 = vrot.slane %v1733_v51, 4  ;;  %v1738_v12 = vrot.slane %v1736_v46, 5  ;;  %v1544_v22 = vshll.u32 %v3619_v54, 16  ;;  %v3659_v46 = vld [vmem:[%s4102_s17 + $0x18] sm:$0xe] }
  0xb7   : > { %v4777_v47 = vpop.permute.xlu0 %2118  ;;  %v3775_v36 = vcombine.low %v1314_v60, %v1317_v38  ;;  %v2825_v40 = vsel %vm2823_vm9, %v2792_v55, %v4667_v1  ;;  %v3799_v48 = vcombine.low %v3635_v32, %v4783_v50  ;;  %v1554_v20 = vshrl.u32 %v4793_v34, 16  ;;  %v4819_v60 = vld [vmem:[%s4102_s17 + $0x50] sm:$0x1]  ;;  %v4027_v29 = vld [vmem:[%s4102_s17 + $0x80] sm:$0x1] }
  0xb8   : > { %v1543_v39 = vrot.slane %v1541_v53, 4  ;;  %v1546_v33 = vrot.slane %v1544_v22, 5  ;;  %v3791_v14 = vcombine.low %v3619_v54, %v4793_v34  ;;  %v2874_v1 = vsel %vm2856_vm10, %v2841_v23, %v4612_v11 }
  0xb9   : > { %2476 = vrot.lane.b32.xlu1 %v3783_v13, %s4061_s19  ;;  %v1739_v32 = vor.u32 %v1738_v12, %v1735_v0  ;;  %v1742_v57 = vshll.u32 %v4783_v50, 16  ;;  %v4823_v2 = vsel %vm2856_vm10, %v2825_v40, %v4585_v44  ;;  %v1748_v13 = vrot.slane %v1746_v15, 4  ;;  %v3667_v0 = vld [vmem:[%s4102_s17 + $0x78] sm:$0xe] }
  0xba   : > { %v4810_v6 = vpop.permute.xlu1 %2310  ;;  %2460 = vrot.lane.b32.xlu0 %v3775_v36, %s4061_s19  ;;  %v1752_v45 = vshll.u32 %v4808_v30, 16  ;;  %v1547_v51 = vor.u32 %v1546_v33, %v1543_v39  ;;  %v1550_v36 = vshll.u32 %v4793_v34, 16  ;;  %v1556_v55 = vrot.slane %v1554_v20, 4  ;;  %v198_v20 = vld [vmem:[%s4102_s17 + $0x9c] sm:$0xf] }
  0xbb   : > { %v4800_v59 = vpop.permute.xlu0 %2198  ;;  %v1740_v11 = vrot.slane %v1739_v32, 4  ;;  %v1744_v38 = vrot.slane %v1742_v57, 5  ;;  %v4835_v44 = vsel %vm2889_vm11, %v2874_v1, %v4674_v9  ;;  %v1560_v15 = vshll.u32 %v4819_v60, 16  ;;  %v4025_v1 = vld [vmem:[%s4102_s17 + $0x20] sm:$0x1] }
  0xbc   : > { %v1754_v12 = vrot.slane %v1752_v45, 5  ;;  %v1548_v23 = vrot.slane %v1547_v51, 4  ;;  %v1552_v40 = vrot.slane %v1550_v36, 5  ;;  %v1897_v32 = vrot.slane %v4025_v1, 5 }
  0xbd   : > { %2572 = vrot.lane.b32.xlu1 %v3799_v48, %s4065_s23  ;;  %v1745_v53 = vsel %vm4170_vm5, %v1740_v11, %v1744_v38  ;;  %v1749_v22 = vor.u32 %v1748_v13, %v1744_v38  ;;  %v3675_v48 = vrot.slane %v3659_v46, 9  ;;  %v1562_v33 = vrot.slane %v1560_v15, 5  ;;  %v4026_v46 = vld [vmem:[%s4102_s17 + $0x7c] sm:$0xf] }
  0xbe   : > { %2556 = vrot.lane.b32.xlu0 %v3791_v14, %s4065_s23  ;;  %v4024_v14 = vld [vmem:[%s4102_s17 + $0x1c] sm:$0xf]  ;;  %v3683_v57 = vrot.slane %v3667_v0, 9  ;;  %v1553_v11 = vsel %vm4170_vm5, %v1548_v23, %v1552_v40  ;;  %v1557_v13 = vor.u32 %v1556_v55, %v1552_v40  ;;  %v1950_v38 = vrot.slane %v4026_v46, 5 }
  0xbf   : > { %v4827_v54 = vpop.permute.xlu0 %2294  ;;  %v1894_v9 = vrot.slane %v4024_v14, 5  ;;  %v1750_v51 = vrot.slane %v1749_v22, 4  ;;  %v1953_v14 = vrot.slane %v4027_v29, 5  ;;  %v536_v0 = vshrl.u32 %v198_v20, 16  ;;  %v4865_v29 = vld [vmem:[%s4102_s17 + $0xa4] sm:$0x1] }
  0xc0   : > { %v1558_v1 = vrot.slane %v1557_v13, 4  ;;  %v1951_v55 = vsel %vm4126_vm2, %v3683_v57, %v1950_v38  ;;  %v1952_v23 = vrot.slane %v1950_v38, 4  ;;  %v539_v63 = vshll.u32 %v198_v20, 16  ;;  %v4876_v13 = vld [vmem:[%s4102_s17 + $0x40] sm:$0xf] }
  0xc1   : > { %v1895_v36 = vsel %vm4126_vm2, %v3675_v48, %v1894_v9  ;;  %v1896_v15 = vrot.slane %v1894_v9, 4  ;;  %v1755_v22 = vsel %vm4170_vm5, %v1750_v51, %v1754_v12  ;;  %v538_v9 = vrot.slane %v536_v0, 4  ;;  %v4881_v0 = vld [vmem:[%s4102_s17 + $0x44] sm:$0x1] }
  0xc2   : > { %v4841_v39 = vpop.permute.xlu1 %2390  ;;  %v3815_v46 = vcombine.low %v1745_v53, %v1755_v22  ;;  %v1563_v12 = vsel %vm4170_vm5, %v1558_v1, %v1562_v33  ;;  %v1954_v57 = vsel %vm4126_vm2, %v1952_v23, %v1953_v14  ;;  %v545_v53 = vshll.u32 %v4854_v56, 16 }
  0xc3   : > { %v4845_v45 = vpop.permute.xlu0 %2374  ;;  %v1898_v48 = vsel %vm4126_vm2, %v1896_v15, %v1897_v32  ;;  %v3807_v32 = vcombine.low %v1553_v11, %v1563_v12  ;;  %v3827_v38 = vcombine.low %v1951_v55, %v1954_v57  ;;  %v541_v15 = vrot.slane %v539_v63, 5 }
  0xc4   : > { %v3819_v51 = vcombine.low %v1895_v36, %v1898_v48  ;;  %2652 = vrot.lane.b32.xlu1 %v3815_v46, %s4066_s24  ;;  %v549_v20 = vshrl.u32 %v4854_v56, 16  ;;  %v547_v33 = vrot.slane %v545_v53, 5  ;;  %v555_v36 = vshll.u32 %v4865_v29, 16 }
  0xc5   : > { %v344_v22 = vshrl.u32 %v182_v8, 16  ;;  %v347_v14 = vshll.u32 %v182_v8, 16  ;;  %2636 = vrot.lane.b32.xlu0 %v3807_v32, %s4066_s24  ;;  %3853 = vmatprep.mubr.msk.bf16.mxu1 %vm2708_vm6, %v3827_v38  ;;  %v542_v11 = vor.u32 %v541_v15, %v538_v9  ;;  %v353_v63 = vshll.u32 %v4876_v13, 16  ;;  %v620_v15 = vld [vmem:[%s4102_s17 + $0x9c] sm:$0xe] }
  0xc6   : > { %v4860_v40 = vpop.permute.xlu1 %2470  ;;  %3845 = vmatprep.mubr.msk.bf16.mxu0 %vm2708_vm6, %v3819_v51  ;;  %v551_v55 = vrot.slane %v549_v20, 4  ;;  %v357_v23 = vshrl.u32 %v4876_v13, 16  ;;  %v557_v46 = vrot.slane %v555_v36, 5  ;;  %v363_v51 = vshll.u32 %v4881_v0, 16 }
  0xc7   : > { %v4868_v28 = vpop.permute.xlu0 %2454  ;;  %v346_v48 = vrot.slane %v344_v22, 4  ;;  %v349_v12 = vrot.slane %v347_v14, 5  ;;  %v543_v57 = vrot.slane %v542_v11, 4  ;;  %v355_v53 = vrot.slane %v353_v63, 5 }
  0xc8   : > { %v552_v8 = vor.u32 %v551_v55, %v547_v33  ;;  %v359_v61 = vrot.slane %v357_v23, 4  ;;  %v2891_v9 = vsel %vm2889_vm11, %v4823_v2, %v4713_v49  ;;  %v365_v38 = vrot.slane %v363_v51, 5  ;;  %v612_v23 = vld [vmem:[%s4102_s17 + $0x3c] sm:$0xe] }
  0xc9   : > { %v350_v32 = vor.u32 %v349_v12, %v346_v48  ;;  %v548_v36 = vsel %vm4170_vm5, %v543_v57, %v547_v33  ;;  %v2924_v11 = vsel %vm2922_vm12, %v2891_v9, %v4746_v42  ;;  %v2948_v63 = vsel %vm2922_vm12, %v4835_v44, %v4718_v7  ;;  %v4028_v57 = vld [vmem:[%s4102_s17 + $0x6c] sm:$0xf]  ;;  %v3557_v44 = vld [vmem:[%s4102_s17 + $0xa8] sm:$0xf] }
  0xca   : > { %v4885_v1 = vpop.permute.xlu1 %2566  ;;  %v553_v22 = vrot.slane %v552_v8, 4  ;;  %v360_v14 = vor.u32 %v359_v61, %v355_v53  ;;  %3131 = vmatmul.mubr.bf16.vlgmr.msra.gmra.mrb[0].mxu0 %v2924_v11  ;;  %3195 = vmatmul.mubr.bf16.vlgmr.msra.gmra.mrb[0].mxu1 %v2948_v63  ;;  %v3528_v48 = vrot.slane %v620_v15, 9  ;;  %v767_v42 = vrot.slane %v4854_v56, 5  ;;  %v4029_v8 = vld [vmem:[%s4102_s17 + $0x70] sm:$0xf] }
  0xcb   : > { %v4892_v35 = vpop.permute.xlu0 %2550  ;;  %v351_v2 = vrot.slane %v350_v32, 4  ;;  %v3700_v9 = vcombine.low %v4028_v57, %v4029_v8  ;;  %v770_v7 = vrot.slane %v4865_v29, 5  ;;  %v3520_v15 = vrot.slane %v612_v23, 9  ;;  %v4030_v63 = vld [vmem:[%s4102_s17 + $0xc] sm:$0xf] }
  0xcc   : > { %v558_v33 = vsel %vm4170_vm5, %v553_v22, %v557_v46  ;;  %v361_v61 = vrot.slane %v360_v14, 4  ;;  %v768_v32 = vsel %vm4126_vm2, %v3528_v48, %v767_v42  ;;  %v769_v56 = vrot.slane %v767_v42, 4  ;;  %v4940_v57 = vld [vmem:[%s4102_s17 + $0x4c] sm:$0xf] }
  0xcd   : > { %v3720_v12 = vcombine.low %v548_v36, %v558_v33  ;;  %v356_v51 = vsel %vm4170_vm5, %v351_v2, %v355_v53  ;;  %v4924_v36 = vld [vmem:[%s4102_s17 + $0xac] sm:$0xf]  ;;  %v711_v14 = vrot.slane %v4876_v13, 5  ;;  %v714_v11 = vrot.slane %v4881_v0, 5  ;;  %v4031_v33 = vld [vmem:[%s4102_s17 + $0x10] sm:$0xf] }
  0xce   : > { %v4898_v20 = vpop.permute.xlu1 %2646  ;;  %v366_v46 = vsel %vm4170_vm5, %v361_v61, %v365_v38  ;;  %v3541_v38 = vld [vmem:[%s4102_s17 + $0x48] sm:$0xf]  ;;  %v3692_v23 = vcombine.low %v4030_v63, %v4031_v33  ;;  %v771_v61 = vsel %vm4126_vm2, %v769_v56, %v770_v7  ;;  %v1148_v48 = vshrl.u32 %v3557_v44, 16 }
  0xcf   : > { %v4926_v53 = vpop.permute.xlu0 %2630  ;;  %2142 = vrot.lane.b32.xlu1 %v3720_v12, %s4063_s21  ;;  %v3712_v29 = vcombine.low %v356_v51, %v366_v46  ;;  %v1151_v42 = vshll.u32 %v3557_v44, 16  ;;  %v3736_v13 = vcombine.low %v768_v32, %v771_v61  ;;  %v712_v0 = vsel %vm4126_vm2, %v3520_v15, %v711_v14  ;;  %v3576_v15 = vld [vmem:[%s4102_s17 + $0xb0] sm:$0x1] }
  0xd0   : > { %v713_v12 = vrot.slane %v711_v14, 4  ;;  %v1161_v51 = vshrl.u32 %v4924_v36, 16  ;;  %v2738_v8 = vsel %vm2708_vm6, %v3700_v9, %v4752_v43  ;;  %v1150_v46 = vrot.slane %v1148_v48, 4  ;;  %v3568_v14 = vld [vmem:[%s4102_s17 + $0x50] sm:$0x1] }
  0xd1   : > { %2126 = vrot.lane.b32.xlu0 %v3712_v29, %s4063_s21  ;;  %v1153_v7 = vrot.slane %v1151_v42, 5  ;;  %v956_v56 = vshrl.u32 %v3541_v38, 16  ;;  %v3752_v29 = vcombine.low %v3557_v44, %v4924_v36  ;;  %v959_v32 = vshll.u32 %v3541_v38, 16 }
  0xd2   : > { %v715_v63 = vsel %vm4126_vm2, %v713_v12, %v714_v11  ;;  %v969_v33 = vshrl.u32 %v4940_v57, 16  ;;  %v2714_v43 = vsel %vm2708_vm6, %v3692_v23, %v4777_v47  ;;  %v3744_v42 = vcombine.low %v3541_v38, %v4940_v57  ;;  %v3592_v47 = vld [vmem:[%s4102_s17 + $0xa8] sm:$0xe] }
  0xd3   : > { %v4933_v2 = vpop.permute.xlu1 %2136  ;;  %2222 = vrot.lane.b32.xlu1 %v3736_v13, %s4062_s20  ;;  %v3728_v9 = vcombine.low %v712_v0, %v715_v63  ;;  %v958_v48 = vrot.slane %v956_v56, 4  ;;  %v961_v11 = vrot.slane %v959_v32, 5  ;;  %v1154_v44 = vor.u32 %v1153_v7, %v1150_v46  ;;  %v3584_v46 = vld [vmem:[%s4102_s17 + $0x48] sm:$0xe] }
  0xd4   : > { %v1157_v12 = vshll.u32 %v4924_v36, 16  ;;  %v1163_v49 = vrot.slane %v1161_v51, 4  ;;  %v1167_v22 = vshll.u32 %v3576_v15, 16  ;;  %v965_v55 = vshll.u32 %v4940_v57, 16 }
  0xd5   : > { %2206 = vrot.lane.b32.xlu0 %v3728_v9, %s4062_s20  ;;  %v971_v62 = vrot.slane %v969_v33, 4  ;;  %v975_v10 = vshll.u32 %v3568_v14, 16  ;;  %v2777_v23 = vsel %vm2757_vm7, %v2738_v8, %v4773_v26  ;;  %v1155_v38 = vrot.slane %v1154_v44, 4 }
  0xd6   : > { %v1159_v0 = vrot.slane %v1157_v12, 5  ;;  %v962_v56 = vor.u32 %v961_v11, %v958_v48  ;;  %v2761_v51 = vsel %vm2757_vm7, %v2714_v43, %v4800_v59  ;;  %v2810_v7 = vsel %vm2790_vm8, %v2777_v23, %v4810_v6  ;;  %v4999_v23 = vld [vmem:[%s4102_s17 + $0xb8] sm:$0xf] }
  0xd7   : > { %v4955_v61 = vpop.permute.xlu1 %2216  ;;  %2318 = vrot.lane.b32.xlu1 %v3752_v29, %s4060_s18  ;;  %v1169_v63 = vrot.slane %v1167_v22, 5  ;;  %v967_v32 = vrot.slane %v965_v55, 5  ;;  %v977_v26 = vrot.slane %v975_v10, 5  ;;  %v3608_v8 = vrot.slane %v3592_v47, 9  ;;  %v4984_v10 = vld [vmem:[%s4102_s17 + $0xb4] sm:$0xf] }
  0xd8   : > { %v4960_v13 = vpop.permute.xlu0 %2120  ;;  %v1164_v9 = vor.u32 %v1163_v49, %v1159_v0  ;;  %v963_v21 = vrot.slane %v962_v56, 4  ;;  %v1376_v11 = vrot.slane %v4924_v36, 5  ;;  %v1379_v59 = vrot.slane %v3576_v15, 5  ;;  %5867 = vst [vmem:[#allocation2_spill] sm:$0xff] %v4999_v23  ;;  %v3621_v56 = vld [vmem:[%s4102_s17 + $0x54] sm:$0xf] }
  0xd9   : > { %2302 = vrot.lane.b32.xlu0 %v3744_v42, %s4060_s18  ;;  %v972_v48 = vor.u32 %v971_v62, %v967_v32  ;;  %v3600_v43 = vrot.slane %v3584_v46, 9  ;;  %v1160_v6 = vsel %vm4170_vm5, %v1155_v38, %v1159_v0  ;;  %v1320_v22 = vrot.slane %v4940_v57, 5 }
  0xda   : > { %v1165_v55 = vrot.slane %v1164_v9, 4  ;;  %v1323_v49 = vrot.slane %v3568_v14, 5  ;;  %v2794_v44 = vsel %vm2790_vm8, %v2761_v51, %v4827_v54  ;;  %v968_v62 = vsel %vm4170_vm5, %v963_v21, %v967_v32  ;;  %v5013_v9 = vld [vmem:[%s4102_s17 + $0x58] sm:$0xf] }
  0xdb   : > { %v4976_v29 = vpop.permute.xlu1 %2312  ;;  %v973_v36 = vrot.slane %v972_v48, 4  ;;  %v1378_v15 = vrot.slane %v1376_v11, 4  ;;  %v1377_v57 = vsel %vm4126_vm2, %v3608_v8, %v1376_v11  ;;  %v1321_v14 = vsel %vm4126_vm2, %v3600_v43, %v1320_v22  ;;  %5868 = vst [vmem:[#allocation3_spill] sm:$0xff] %v5013_v9 }
  0xdc   : > { %v4974_v33 = vpop.permute.xlu0 %2200  ;;  %v1170_v12 = vsel %vm4170_vm5, %v1165_v55, %v1169_v63  ;;  %v1322_v47 = vrot.slane %v1320_v22, 4  ;;  %v1757_v0 = vshrl.u32 %v4984_v10, 16  ;;  %v2843_v51 = vsel %vm2823_vm9, %v2810_v7, %v4841_v39  ;;  %v5025_v22 = vld [vmem:[%s4102_s17 + $0xbc] sm:$0x1] }
  0xdd   : > { %v3768_v54 = vcombine.low %v1160_v6, %v1170_v12  ;;  %v978_v21 = vsel %vm4170_vm5, %v973_v36, %v977_v26  ;;  %v1380_v38 = vsel %vm4126_vm2, %v1378_v15, %v1379_v59  ;;  %v1760_v32 = vshll.u32 %v4984_v10, 16 }
  0xde   : > { %v3760_v46 = vcombine.low %v968_v62, %v978_v21  ;;  %v1324_v63 = vsel %vm4126_vm2, %v1322_v47, %v1323_v49  ;;  %v2827_v26 = vsel %vm2823_vm9, %v2794_v44, %v4845_v45  ;;  %v3784_v48 = vcombine.low %v1377_v57, %v1380_v38  ;;  %v3660_v38 = vld [vmem:[%s4102_s17 + $0x24] sm:$0xe] }
  0xdf   : > { %2398 = vrot.lane.b32.xlu1 %v3768_v54, %s4064_s22  ;;  %v1759_v11 = vrot.slane %v1757_v0, 4  ;;  %v1770_v59 = vshrl.u32 %v4999_v23, 16  ;;  %v3776_v7 = vcombine.low %v1321_v14, %v1324_v63  ;;  %v1762_v43 = vrot.slane %v1760_v32, 5  ;;  %v5038_v14 = vld [vmem:[%s4102_s17 + $0x5c] sm:$0x1] }
  0xe0   : > { %v4990_v42 = vpop.permute.xlu0 %2296  ;;  %2382 = vrot.lane.b32.xlu0 %v3760_v46, %s4064_s22  ;;  %v1565_v6 = vshrl.u32 %v3621_v56, 16  ;;  %v1568_v55 = vshll.u32 %v3621_v56, 16  ;;  %v5030_v45 = vsel %vm2856_vm10, %v2843_v51, %v4860_v40  ;;  %v2860_v44 = vsel %vm2856_vm10, %v2827_v26, %v4868_v28  ;;  %v3668_v63 = vld [vmem:[%s4102_s17 + $0x84] sm:$0xe] }
  0xe1   : > { %v1578_v62 = vshrl.u32 %v5013_v9, 16  ;;  %v3800_v36 = vcombine.low %v4984_v10, %v4999_v23  ;;  %v1763_v57 = vor.u32 %v1762_v43, %v1759_v11  ;;  %v3792_v40 = vcombine.low %v3621_v56, %v5013_v9 }
  0xe2   : > { %v1567_v15 = vrot.slane %v1565_v6, 4  ;;  %v1570_v12 = vrot.slane %v1568_v55, 5  ;;  %v1766_v54 = vshll.u32 %v4999_v23, 16  ;;  %v1772_v28 = vrot.slane %v1770_v59, 4 }
  0xe3   : > { %v5015_v8 = vpop.permute.xlu1 %2392  ;;  %2478 = vrot.lane.b32.xlu1 %v3784_v48, %s4061_s19  ;;  %v1776_v21 = vshll.u32 %v5025_v22, 16  ;;  %v1764_v10 = vrot.slane %v1763_v57, 4  ;;  %v1574_v46 = vshll.u32 %v5013_v9, 16  ;;  %v1580_v51 = vrot.slane %v1578_v62, 4  ;;  %v5066_v57 = vld [vmem:[%s4102_s17 + $0xac] sm:$0xf] }
  0xe4   : > { %v5021_v39 = vpop.permute.xlu0 %2376  ;;  %2462 = vrot.lane.b32.xlu0 %v3776_v7, %s4061_s19  ;;  %v1571_v0 = vor.u32 %v1570_v12, %v1567_v15  ;;  %v5054_v56 = vsel %vm2889_vm11, %v2860_v44, %v4892_v35  ;;  %v1768_v26 = vrot.slane %v1766_v54, 5  ;;  %v1584_v11 = vshll.u32 %v5038_v14, 16  ;;  %v200_v12 = vld [vmem:[%s4102_s17 + $0xa8] sm:$0xf] }
  0xe5   : > { %v1778_v48 = vrot.slane %v1776_v21, 5  ;;  %v1576_v7 = vrot.slane %v1574_v46, 5  ;;  %v3676_v43 = vrot.slane %v3660_v38, 9  ;;  %v1903_v6 = vrot.slane %v1901_v18, 4 }
  0xe6   : > { %v1572_v59 = vrot.slane %v1571_v0, 4  ;;  %v1769_v62 = vsel %vm4170_vm5, %v1764_v10, %v1768_v26  ;;  %v1773_v35 = vor.u32 %v1772_v28, %v1768_v26  ;;  %v1586_v44 = vrot.slane %v1584_v11, 5  ;;  %v5080_v10 = vld [vmem:[%s4102_s17 + $0xb0] sm:$0x1] }
  0xe7   : > { %v5040_v47 = vpop.permute.xlu1 %2472  ;;  %2574 = vrot.lane.b32.xlu1 %v3800_v36, %s4065_s23  ;;  %v3684_v15 = vrot.slane %v3668_v63, 9  ;;  %v1581_v21 = vor.u32 %v1580_v51, %v1576_v7  ;;  %v1902_v36 = vsel %vm4126_vm2, %v3676_v43, %v1901_v18  ;;  %v5869_v38 = vrot.slane %v4320_v3, 5 }
  0xe8   : > { %v5050_v32 = vpop.permute.xlu0 %2456  ;;  %2558 = vrot.lane.b32.xlu0 %v3792_v40, %s4065_s23  ;;  %v1577_v54 = vsel %vm4170_vm5, %v1572_v59, %v1576_v7  ;;  %v1774_v0 = vrot.slane %v1773_v35, 4  ;;  %v5870_v46 = vrot.slane %v4295_v24, 5  ;;  %v560_v26 = vshrl.u32 %v200_v12, 16 }
  0xe9   : > { %v1905_v28 = vsel %vm4126_vm2, %v1903_v6, %v5869_v38  ;;  %v1582_v18 = vrot.slane %v1581_v21, 4  ;;  %v563_v3 = vshll.u32 %v200_v12, 16  ;;  %v569_v11 = vshll.u32 %v5066_v57, 16  ;;  %v5102_v12 = vld [vmem:[%s4102_s17 + $0x4c] sm:$0xf] }
  0xea   : > { %v3820_v40 = vcombine.low %v1902_v36, %v1905_v28  ;;  %v1958_v51 = vsel %vm4126_vm2, %v3684_v15, %v5870_v46  ;;  %v5871_v31 = vmov %v5870_v46  ;;  %v1779_v7 = vsel %vm4170_vm5, %v1774_v0, %v1778_v48  ;;  %v184_v15 = vld [vmem:[%s4102_s17 + $0x48] sm:$0xf]  ;;  %v5109_v0 = vld [vmem:[%s4102_s17 + $0x50] sm:$0x1] }
  0xeb   : > { %v5059_v55 = vpop.permute.xlu1 %2568  ;;  %v1959_v63 = vrot.slane %v5871_v31, 4  ;;  %v5872_v43 = vrot.slane %v4313_v37, 5  ;;  %v573_v24 = vshrl.u32 %v5066_v57, 16  ;;  %v579_v35 = vshll.u32 %v5080_v10, 16 }
  0xec   : > { %v5089_v59 = vpop.permute.xlu0 %2552  ;;  %3846 = vmatprep.mubr.msk.bf16.mxu0 %vm2708_vm6, %v3820_v40  ;;  %v3816_v36 = vcombine.low %v1769_v62, %v1779_v7  ;;  %v1587_v48 = vsel %vm4170_vm5, %v1582_v18, %v1586_v44  ;;  %v562_v28 = vrot.slane %v560_v26, 4  ;;  %v565_v40 = vrot.slane %v563_v3, 5 }
  0xed   : > { %v1961_v6 = vsel %vm4126_vm2, %v1959_v63, %v5872_v43  ;;  %v3808_v37 = vcombine.low %v1577_v54, %v1587_v48  ;;  %v571_v46 = vrot.slane %v569_v11, 5  ;;  %v575_v31 = vrot.slane %v573_v24, 4 }
  0xee   : > { %v3828_v38 = vcombine.low %v1958_v51, %v1961_v6  ;;  %2654 = vrot.lane.b32.xlu1 %v3816_v36, %s4066_s24  ;;  %v581_v63 = vrot.slane %v579_v35, 5  ;;  %v368_v43 = vshrl.u32 %v184_v15, 16  ;;  %v371_v49 = vshll.u32 %v184_v15, 16  ;;  %v621_v6 = vld [vmem:[%s4102_s17 + $0xa8] sm:$0xe] }
  0xef   : > { %v5104_v21 = vpop.permute.xlu1 %2648  ;;  %v377_v62 = vshll.u32 %v5102_v12, 16  ;;  %2638 = vrot.lane.b32.xlu0 %v3808_v37, %s4066_s24  ;;  %v566_v44 = vor.u32 %v565_v40, %v562_v28  ;;  %v576_v51 = vor.u32 %v575_v31, %v571_v46  ;;  %v381_v18 = vshrl.u32 %v5102_v12, 16 }
  0xf0   : > { %3854 = vmatprep.mubr.msk.bf16.mxu1 %vm2708_vm6, %v3828_v38  ;;  %v387_v54 = vshll.u32 %v5109_v0, 16  ;;  %v370_v26 = vrot.slane %v368_v43, 4  ;;  %v373_v3 = vrot.slane %v371_v49, 5  ;;  %v2927_v7 = vsel %vm2922_vm12, %v5054_v56, %v4926_v53  ;;  %v5121_v24 = vpop.permute.xlu0 %2632  ;;  %v613_v56 = vld [vmem:[%s4102_s17 + $0x48] sm:$0xe] }
  0xf1   : > { %v379_v11 = vrot.slane %v377_v62, 5  ;;  %v2909_v35 = vsel %vm2889_vm11, %v5030_v45, %v4885_v1  ;;  %v567_v15 = vrot.slane %v566_v44, 4  ;;  %v577_v36 = vrot.slane %v576_v51, 4  ;;  %3139 = vmatmul.mubr.bf16.gmra.mrb[4].mxu0 %v2927_v7  ;;  %v4032_v51 = vld [vmem:[%s4102_s17 + $0x78] sm:$0xf] }
  0xf2   : > { %v383_v48 = vrot.slane %v381_v18, 4  ;;  %v374_v28 = vor.u32 %v373_v3, %v370_v26  ;;  %v389_v37 = vrot.slane %v387_v54, 5  ;;  %v2951_v53 = vsel %vm2922_vm12, %v2909_v35, %v4898_v20  ;;  %v4033_v18 = vld [vmem:[%s4102_s17 + $0x7c] sm:$0xf] }
  0xf3   : > { %v572_v1 = vsel %vm4170_vm5, %v567_v15, %v571_v46  ;;  %v582_v45 = vsel %vm4170_vm5, %v577_v36, %v581_v63  ;;  %3203 = vmatmul.mubr.bf16.gmra.mrb[4].mxu1 %v2951_v53  ;;  %v3529_v31 = vrot.slane %v621_v6, 9  ;;  %v3701_v20 = vcombine.low %v4032_v51, %v4033_v18  ;;  %v3559_v63 = vld [vmem:[%s4102_s17 + $0xb4] sm:$0xf]  ;;  %v4035_v53 = vld [vmem:[%s4102_s17 + $0x1c] sm:$0xf] }
  0xf4   : > { %v384_v40 = vor.u32 %v383_v48, %v379_v11  ;;  %v3721_v62 = vcombine.low %v572_v1, %v582_v45  ;;  %v375_v44 = vrot.slane %v374_v28, 4  ;;  %v774_v26 = vrot.slane %v5066_v57, 5  ;;  %v5151_v57 = vld [vmem:[%s4102_s17 + $0xb8] sm:$0xf] }
  0xf5   : > { %v5126_v38 = vpop.permute.xlu1 %2138  ;;  %v777_v46 = vrot.slane %v5080_v10, 5  ;;  %v3521_v3 = vrot.slane %v613_v56, 9  ;;  %v718_v15 = vrot.slane %v5102_v12, 5  ;;  %v721_v36 = vrot.slane %v5109_v0, 5  ;;  %v4034_v28 = vld [vmem:[%s4102_s17 + $0x18] sm:$0xf] }
  0xf6   : > { %v385_v54 = vrot.slane %v384_v40, 4  ;;  %2144 = vrot.lane.b32.xlu1 %v3721_v62, %s4063_s21  ;;  %v380_v35 = vsel %vm4170_vm5, %v375_v44, %v379_v11  ;;  %v3693_v56 = vcombine.low %v4034_v28, %v4035_v53  ;;  %v775_v1 = vsel %vm4126_vm2, %v3529_v31, %v774_v26  ;;  %v3543_v11 = vld [vmem:[%s4102_s17 + $0x54] sm:$0xf]  ;;  %v5165_v44 = vld [vmem:[%s4102_s17 + $0x58] sm:$0xf] }
  0xf7   : > { %v776_v45 = vrot.slane %v774_v26, 4  ;;  %v719_v12 = vsel %vm4126_vm2, %v3521_v3, %v718_v15  ;;  %v720_v0 = vrot.slane %v718_v15, 4  ;;  %v1172_v62 = vshrl.u32 %v3559_v63, 16  ;;  %v5176_v15 = vld [vmem:[%s4102_s17 + $0xbc] sm:$0x1] }
  0xf8   : > { %v390_v48 = vsel %vm4170_vm5, %v385_v54, %v389_v37  ;;  %v2741_v37 = vsel %vm2708_vm6, %v3701_v20, %v4933_v2  ;;  %v1175_v18 = vshll.u32 %v3559_v63, 16  ;;  %v1185_v31 = vshrl.u32 %v5151_v57, 16 }
  0xf9   : > { %v5142_v7 = vpop.permute.xlu1 %2218  ;;  %v3713_v40 = vcombine.low %v380_v35, %v390_v48  ;;  %v778_v51 = vsel %vm4126_vm2, %v776_v45, %v777_v46  ;;  %v722_v26 = vsel %vm4126_vm2, %v720_v0, %v721_v36  ;;  %v1174_v3 = vrot.slane %v1172_v62, 4  ;;  %v3569_v45 = vld [vmem:[%s4102_s17 + $0x5c] sm:$0x1] }
  0xfa   : > { %v5153_v10 = vpop.permute.xlu0 %2122  ;;  %v3737_v54 = vcombine.low %v775_v1, %v778_v51  ;;  %v980_v35 = vshrl.u32 %v3543_v11, 16  ;;  %v3729_v20 = vcombine.low %v719_v12, %v722_v26  ;;  %v1177_v28 = vrot.slane %v1175_v18, 5 }
  0xfb   : > { %2128 = vrot.lane.b32.xlu0 %v3713_v40, %s4063_s21  ;;  %v983_v46 = vshll.u32 %v3543_v11, 16  ;;  %v993_v53 = vshrl.u32 %v5165_v44, 16  ;;  %v2717_v1 = vsel %vm2708_vm6, %v3693_v56, %v4960_v13  ;;  %v3753_v36 = vcombine.low %v3559_v63, %v5151_v57 }
  0xfc   : > { %2224 = vrot.lane.b32.xlu1 %v3737_v54, %s4062_s20  ;;  %v982_v40 = vrot.slane %v980_v35, 4  ;;  %v3745_v0 = vcombine.low %v3543_v11, %v5165_v44  ;;  %v1178_v51 = vor.u32 %v1177_v28, %v1174_v3  ;;  %v1181_v12 = vshll.u32 %v5151_v57, 16  ;;  %v3593_v54 = vld [vmem:[%s4102_s17 + $0xb4] sm:$0xe] }
  0xfd   : > { %v5180_v2 = vpop.permute.xlu1 %2314  ;;  %v985_v62 = vrot.slane %v983_v46, 5  ;;  %v1187_v18 = vrot.slane %v1185_v31, 4  ;;  %v1191_v26 = vshll.u32 %v5176_v15, 16  ;;  %v989_v43 = vshll.u32 %v5165_v44, 16  ;;  %v3585_v28 = vld [vmem:[%s4102_s17 + $0x54] sm:$0xe] }
  0xfe   : > { %v5178_v48 = vpop.permute.xlu0 %2202  ;;  %v995_v13 = vrot.slane %v993_v53, 4  ;;  %v999_v56 = vshll.u32 %v3569_v45, 16  ;;  %v2779_v63 = vsel %vm2757_vm7, %v2741_v37, %v4955_v61  ;;  %v1179_v11 = vrot.slane %v1178_v51, 4 }
  0xff   : > { %2208 = vrot.lane.b32.xlu0 %v3729_v20, %s4062_s20  ;;  %v1183_v35 = vrot.slane %v1181_v12, 5  ;;  %v986_v3 = vor.u32 %v985_v62, %v982_v40  ;;  %v2763_v31 = vsel %vm2757_vm7, %v2717_v1, %v4974_v33  ;;  %v2812_v20 = vsel %vm2790_vm8, %v2779_v63, %v4976_v29 }
 0x100   : > { %2320 = vrot.lane.b32.xlu1 %v3753_v36, %s4060_s18  ;;  %v1193_v46 = vrot.slane %v1191_v26, 5  ;;  %v991_v53 = vrot.slane %v989_v43, 5  ;;  %v1001_v61 = vrot.slane %v999_v56, 5  ;;  %v3609_v37 = vrot.slane %v3593_v54, 9  ;;  %v5230_v54 = vld [vmem:[%s4102_s17 + $0xc4] sm:$0xf] }
 0x101   : > { %v1188_v23 = vor.u32 %v1187_v18, %v1183_v35  ;;  %v987_v9 = vrot.slane %v986_v3, 4  ;;  %v1383_v62 = vrot.slane %v5151_v57, 5  ;;  %v1386_v33 = vrot.slane %v5176_v15, 5  ;;  %v5215_v18 = vld [vmem:[%s4102_s17 + $0xc0] sm:$0xf] }
 0x102   : > { %v5194_v6 = vpop.permute.xlu0 %2298  ;;  %v996_v40 = vor.u32 %v995_v13, %v991_v53  ;;  %v3601_v1 = vrot.slane %v3585_v28, 9  ;;  %v1184_v29 = vsel %vm4170_vm5, %v1179_v11, %v1183_v35  ;;  %v1327_v51 = vrot.slane %v5165_v44, 5  ;;  %v3623_v35 = vld [vmem:[%s4102_s17 + $0x60] sm:$0xf] }
 0x103   : > { %2304 = vrot.lane.b32.xlu0 %v3745_v0, %s4060_s18  ;;  %v1189_v43 = vrot.slane %v1188_v23, 4  ;;  %v1330_v12 = vrot.slane %v3569_v45, 5  ;;  %v2796_v0 = vsel %vm2790_vm8, %v2763_v31, %v4990_v42  ;;  %v992_v57 = vsel %vm4170_vm5, %v987_v9, %v991_v53  ;;  %v5244_v53 = vld [vmem:[%s4102_s17 + $0x64] sm:$0xf] }
 0x104   : > { %v997_v15 = vrot.slane %v996_v40, 4  ;;  %v1385_v26 = vrot.slane %v1383_v62, 4  ;;  %v1384_v44 = vsel %vm4126_vm2, %v3609_v37, %v1383_v62  ;;  %v1328_v45 = vsel %vm4126_vm2, %v3601_v1, %v1327_v51 }
 0x105   : > { %v5204_v49 = vpop.permute.xlu1 %2394  ;;  %v1194_v23 = vsel %vm4170_vm5, %v1189_v43, %v1193_v46  ;;  %v1329_v56 = vrot.slane %v1327_v51, 4  ;;  %v1781_v11 = vshrl.u32 %v5215_v18, 16  ;;  %v2845_v28 = vsel %vm2823_vm9, %v2812_v20, %v5015_v8  ;;  %v5254_v43 = vld [vmem:[%s4102_s17 + $0xc8] sm:$0x1] }
 0x106   : > { %v5209_v36 = vpop.permute.xlu0 %2378  ;;  %v3769_v42 = vcombine.low %v1184_v29, %v1194_v23  ;;  %v1002_v9 = vsel %vm4170_vm5, %v997_v15, %v1001_v61  ;;  %v1387_v63 = vsel %vm4126_vm2, %v1385_v26, %v1386_v33  ;;  %v1784_v46 = vshll.u32 %v5215_v18, 16 }
 0x107   : > { %v3761_v3 = vcombine.low %v992_v57, %v1002_v9  ;;  %v1331_v31 = vsel %vm4126_vm2, %v1329_v56, %v1330_v12  ;;  %v2829_v61 = vsel %vm2823_vm9, %v2796_v0, %v5021_v39  ;;  %v3785_v40 = vcombine.low %v1384_v44, %v1387_v63 }
 0x108   : > { %2400 = vrot.lane.b32.xlu1 %v3769_v42, %s4064_s22  ;;  %v1783_v62 = vrot.slane %v1781_v11, 4  ;;  %v1794_v33 = vshrl.u32 %v5230_v54, 16  ;;  %v3777_v8 = vcombine.low %v1328_v45, %v1331_v31  ;;  %v1786_v20 = vrot.slane %v1784_v46, 5  ;;  %v5267_v45 = vld [vmem:[%s4102_s17 + $0x68] sm:$0x1] }
 0x109   : > { %v5221_v13 = vpop.permute.xlu1 %2474  ;;  %2384 = vrot.lane.b32.xlu0 %v3761_v3, %s4064_s22  ;;  %v1589_v1 = vshrl.u32 %v3623_v35, 16  ;;  %v1592_v29 = vshll.u32 %v3623_v35, 16  ;;  %v2878_v51 = vsel %vm2856_vm10, %v2845_v28, %v5040_v47  ;;  %v2862_v39 = vsel %vm2856_vm10, %v2829_v61, %v5050_v32  ;;  %v3661_v42 = vld [vmem:[%s4102_s17 + $0x30] sm:$0xe] }
 0x10a   : > { %v5246_v37 = vpop.permute.xlu0 %2458  ;;  %v3801_v12 = vcombine.low %v5215_v18, %v5230_v54  ;;  %v1602_v0 = vshrl.u32 %v5244_v53, 16  ;;  %v3793_v23 = vcombine.low %v3623_v35, %v5244_v53  ;;  %v1787_v44 = vor.u32 %v1786_v20, %v1783_v62  ;;  %v3669_v3 = vld [vmem:[%s4102_s17 + $0x90] sm:$0xe] }
 0x10b   : > { %v1591_v15 = vrot.slane %v1589_v1, 4  ;;  %v1594_v26 = vrot.slane %v1592_v29, 5  ;;  %v5272_v47 = vsel %vm2889_vm11, %v2878_v51, %v5059_v55  ;;  %v1790_v32 = vshll.u32 %v5230_v54, 16 }
 0x10c   : > { %2480 = vrot.lane.b32.xlu1 %v3785_v40, %s4061_s19  ;;  %v1796_v18 = vrot.slane %v1794_v33, 4  ;;  %v1800_v56 = vshll.u32 %v5254_v43, 16  ;;  %v1788_v9 = vrot.slane %v1787_v44, 4  ;;  %v1598_v11 = vshll.u32 %v5244_v53, 16 }
 0x10d   : > { %v5263_v57 = vpop.permute.xlu1 %2570  ;;  %2464 = vrot.lane.b32.xlu0 %v3777_v8, %s4061_s19  ;;  %v1595_v63 = vor.u32 %v1594_v26, %v1591_v15  ;;  %v1604_v35 = vrot.slane %v1602_v0, 4  ;;  %v5284_v55 = vsel %vm2889_vm11, %v2862_v39, %v5089_v59  ;;  %v1792_v31 = vrot.slane %v1790_v32, 5  ;;  %v5293_v39 = vld [vmem:[%s4102_s17 + $0xb4] sm:$0xf]  ;;  %v5296_v0 = vld [vmem:[%s4102_s17 + $0xb8] sm:$0xf] }
 0x10e   : > { %v5280_v28 = vpop.permute.xlu0 %2554  ;;  %v1802_v46 = vrot.slane %v1800_v56, 5  ;;  %v1608_v61 = vshll.u32 %v5267_v45, 16  ;;  %v1600_v62 = vrot.slane %v1598_v11, 5  ;;  %v3677_v33 = vrot.slane %v3661_v42, 9  ;;  %v5312_v42 = vld [vmem:[%s4102_s17 + $0xbc] sm:$0x1] }
 0x10f   : > { %v1596_v40 = vrot.slane %v1595_v63, 4  ;;  %v5873_v8 = vrot.slane %v4424_v4, 5  ;;  %v1793_v1 = vsel %vm4170_vm5, %v1788_v9, %v1792_v31  ;;  %v1797_v29 = vor.u32 %v1796_v18, %v1792_v31 }
 0x110   : > { %2576 = vrot.lane.b32.xlu1 %v3801_v12, %s4065_s23  ;;  %v1610_v51 = vrot.slane %v1608_v61, 5  ;;  %v3685_v59 = vrot.slane %v3669_v3, 9  ;;  %v1605_v44 = vor.u32 %v1604_v35, %v1600_v62  ;;  %v5875_v18 = vrot.slane %v4438_v25, 5 }
 0x111   : > { %v1910_v20 = vrot.slane %v5873_v8, 4  ;;  %v5298_v15 = vpop.permute.xlu1 %2650  ;;  %2560 = vrot.lane.b32.xlu0 %v3793_v23, %s4065_s23  ;;  %v1601_v26 = vsel %vm4170_vm5, %v1596_v40, %v1600_v62  ;;  %v5874_v12 = vmov %v5873_v8  ;;  %v1798_v9 = vrot.slane %v1797_v29, 4  ;;  %v5335_v29 = vld [vmem:[%s4102_s17 + $0x54] sm:$0xf] }
 0x112   : > { %v1909_v32 = vsel %vm4126_vm2, %v3677_v33, %v5874_v12  ;;  %v5876_v63 = vrot.slane %v4409_v52, 5  ;;  %v1606_v3 = vrot.slane %v1605_v44, 4  ;;  %v584_v25 = vshrl.u32 %v5293_v39, 16  ;;  %v5323_v40 = vpop.permute.xlu0 %2634 }
 0x113   : > { %v1912_v56 = vsel %vm4126_vm2, %v1910_v20, %v5875_v18  ;;  %v587_v31 = vshll.u32 %v5293_v39, 16  ;;  %v593_v61 = vshll.u32 %v5296_v0, 16  ;;  %v1803_v62 = vsel %vm4170_vm5, %v1798_v9, %v1802_v46  ;;  %v5343_v18 = vld [vmem:[%s4102_s17 + $0x5c] sm:$0x1] }
 0x114   : > { %v3821_v23 = vcombine.low %v1909_v32, %v1912_v56  ;;  %v1965_v11 = vsel %vm4126_vm2, %v3685_v59, %v5876_v63  ;;  %v5877_v4 = vmov %v5876_v63  ;;  %v5878_v33 = vrot.slane %v4432_v16, 5  ;;  %v5338_v59 = vld [vmem:[%s4102_s17 + $0x58] sm:$0xf] }
 0x115   : > { %v1966_v35 = vrot.slane %v5877_v4, 4  ;;  %v597_v8 = vshrl.u32 %v5296_v0, 16  ;;  %v603_v20 = vshll.u32 %v5312_v42, 16  ;;  %v3817_v44 = vcombine.low %v1793_v1, %v1803_v62 }
 0x116   : > { %3847 = vmatprep.mubr.msk.bf16.mxu0 %vm2708_vm6, %v3821_v23  ;;  %v1611_v12 = vsel %vm4170_vm5, %v1606_v3, %v1610_v51  ;;  %v586_v32 = vrot.slane %v584_v25, 4  ;;  %v589_v56 = vrot.slane %v587_v31, 5  ;;  %v595_v9 = vrot.slane %v593_v61, 5 }
 0x117   : > { %v1968_v52 = vsel %vm4126_vm2, %v1966_v35, %v5878_v33  ;;  %v3809_v16 = vcombine.low %v1601_v26, %v1611_v12  ;;  %v599_v23 = vrot.slane %v597_v8, 4  ;;  %v5345_v63 = vpop.permute.xlu1 %2140  ;;  %2656 = vrot.lane.b32.xlu1 %v3817_v44, %s4066_s24  ;;  %v605_v4 = vrot.slane %v603_v20, 5 }
 0x118   : > { %v3829_v46 = vcombine.low %v1965_v11, %v1968_v52  ;;  %v392_v1 = vshrl.u32 %v5335_v29, 16  ;;  %v395_v51 = vshll.u32 %v5335_v29, 16  ;;  %v401_v11 = vshll.u32 %v5338_v59, 16  ;;  %v622_v52 = vld [vmem:[%s4102_s17 + $0xb4] sm:$0xe] }
 0x119   : > { %2640 = vrot.lane.b32.xlu0 %v3809_v16, %s4066_s24  ;;  %v590_v26 = vor.u32 %v589_v56, %v586_v32  ;;  %v600_v35 = vor.u32 %v599_v23, %v595_v9  ;;  %v405_v3 = vshrl.u32 %v5338_v59, 16  ;;  %v411_v25 = vshll.u32 %v5343_v18, 16  ;;  %v4036_v56 = vld [vmem:[%s4102_s17 + $0x84] sm:$0xf]  ;;  %v4037_v23 = vld [vmem:[%s4102_s17 + $0x88] sm:$0xf] }
 0x11a   : > { %3855 = vmatprep.mubr.msk.bf16.mxu1 %vm2708_vm6, %v3829_v46  ;;  %v394_v31 = vrot.slane %v392_v1, 4  ;;  %v397_v61 = vrot.slane %v395_v51, 5  ;;  %v403_v62 = vrot.slane %v401_v11, 5  ;;  %v2930_v33 = vsel %vm2922_vm12, %v5284_v55, %v5121_v24  ;;  %v4038_v51 = vld [vmem:[%s4102_s17 + $0x24] sm:$0xf] }
 0x11b   : > { %v591_v20 = vrot.slane %v590_v26, 4  ;;  %v601_v44 = vrot.slane %v600_v35, 4  ;;  %v407_v12 = vrot.slane %v405_v3, 4  ;;  %v413_v46 = vrot.slane %v411_v25, 5  ;;  %3147 = vmatmul.mubr.bf16.gmra.mrb[8].mxu0 %v2930_v33  ;;  %v4039_v11 = vld [vmem:[%s4102_s17 + $0x28] sm:$0xf] }
 0x11c   : > { %v5359_v8 = vpop.permute.xlu0 %2124  ;;  %v398_v32 = vor.u32 %v397_v61, %v394_v31  ;;  %v2954_v16 = vsel %vm2922_vm12, %v5272_v47, %v5104_v21  ;;  %v3702_v1 = vcombine.low %v4036_v56, %v4037_v23  ;;  %v3694_v24 = vcombine.low %v4038_v51, %v4039_v11  ;;  %v614_v55 = vld [vmem:[%s4102_s17 + $0x54] sm:$0xe]  ;;  %v5373_v31 = vpop.permute.xlu1 %2220 }
 0x11d   : > { %v596_v26 = vsel %vm4170_vm5, %v591_v20, %v595_v9  ;;  %v606_v35 = vsel %vm4170_vm5, %v601_v44, %v605_v4  ;;  %v408_v3 = vor.u32 %v407_v12, %v403_v62  ;;  %3211 = vmatmul.mubr.bf16.gmra.mrb[8].mxu1 %v2954_v16  ;;  %v3530_v25 = vrot.slane %v622_v52, 9  ;;  %v3561_v44 = vld [vmem:[%s4102_s17 + $0xc0] sm:$0xf]  ;;  %v5392_v16 = vld [vmem:[%s4102_s17 + $0xc4] sm:$0xf] }
 0x11e   : > { %v3722_v21 = vcombine.low %v596_v26, %v606_v35  ;;  %v399_v47 = vrot.slane %v398_v32, 4  ;;  %v2744_v61 = vsel %vm2708_vm6, %v3702_v1, %v5126_v38  ;;  %v2720_v33 = vsel %vm2708_vm6, %v3694_v24, %v5153_v10 }
 0x11f   : > { %v409_v56 = vrot.slane %v408_v3, 4  ;;  %v781_v9 = vrot.slane %v5296_v0, 5  ;;  %v784_v4 = vrot.slane %v5312_v42, 5  ;;  %v3522_v20 = vrot.slane %v614_v55, 9  ;;  %v5404_v55 = vld [vmem:[%s4102_s17 + $0x64] sm:$0xf] }
 0x120   : > { %v5382_v52 = vpop.permute.xlu0 %2204  ;;  %2146 = vrot.lane.b32.xlu1 %v3722_v21, %s4063_s21  ;;  %v404_v12 = vsel %vm4170_vm5, %v399_v47, %v403_v62  ;;  %v725_v38 = vrot.slane %v5338_v59, 5  ;;  %v728_v10 = vrot.slane %v5343_v18, 5  ;;  %v2781_v32 = vsel %vm2757_vm7, %v2744_v61, %v5142_v7  ;;  %v3545_v62 = vld [vmem:[%s4102_s17 + $0x60] sm:$0xf] }
 0x121   : > { %v414_v42 = vsel %vm4170_vm5, %v409_v56, %v413_v46  ;;  %v782_v23 = vsel %vm4126_vm2, %v3530_v25, %v781_v9  ;;  %v783_v1 = vrot.slane %v781_v9, 4  ;;  %v2765_v51 = vsel %vm2757_vm7, %v2720_v33, %v5178_v48  ;;  %v5410_v48 = vpop.permute.xlu1 %2316  ;;  %v3578_v33 = vld [vmem:[%s4102_s17 + $0xc8] sm:$0x1] }
 0x122   : > { %v3714_v11 = vcombine.low %v404_v12, %v414_v42  ;;  %v726_v18 = vsel %vm4126_vm2, %v3522_v20, %v725_v38  ;;  %v727_v24 = vrot.slane %v725_v38, 4  ;;  %v1196_v7 = vshrl.u32 %v3561_v44, 16  ;;  %v5418_v12 = vld [vmem:[%s4102_s17 + $0x68] sm:$0x1] }
 0x123   : > { %v785_v46 = vsel %vm4126_vm2, %v783_v1, %v784_v4  ;;  %v1199_v26 = vshll.u32 %v3561_v44, 16  ;;  %v1209_v35 = vshrl.u32 %v5392_v16, 16  ;;  %v3754_v3 = vcombine.low %v3561_v44, %v5392_v16 }
 0x124   : > { %2130 = vrot.lane.b32.xlu0 %v3714_v11, %s4063_s21  ;;  %v3738_v25 = vcombine.low %v782_v23, %v785_v46  ;;  %v729_v21 = vsel %vm4126_vm2, %v727_v24, %v728_v10  ;;  %v1198_v47 = vrot.slane %v1196_v7, 4  ;;  %v1004_v61 = vshrl.u32 %v3545_v62, 16  ;;  %v5420_v44 = vpop.permute.xlu0 %2300 }
 0x125   : > { %v3730_v56 = vcombine.low %v726_v18, %v729_v21  ;;  %v1201_v9 = vrot.slane %v1199_v26, 5  ;;  %v1007_v20 = vshll.u32 %v3545_v62, 16  ;;  %v1017_v4 = vshrl.u32 %v5404_v55, 16 }
 0x126   : > { %2226 = vrot.lane.b32.xlu1 %v3738_v25, %s4062_s20  ;;  %v1006_v38 = vrot.slane %v1004_v61, 4  ;;  %v3746_v42 = vcombine.low %v3545_v62, %v5404_v55  ;;  %v2814_v10 = vsel %vm2790_vm8, %v2781_v32, %v5180_v2  ;;  %v2798_v23 = vsel %vm2790_vm8, %v2765_v51, %v5194_v6  ;;  %v3594_v25 = vld [vmem:[%s4102_s17 + $0xc0] sm:$0xe] }
 0x127   : > { %v1009_v1 = vrot.slane %v1007_v20, 5  ;;  %v1202_v11 = vor.u32 %v1201_v9, %v1198_v47  ;;  %v1205_v18 = vshll.u32 %v5392_v16, 16  ;;  %v1211_v24 = vrot.slane %v1209_v35, 4  ;;  %v3586_v51 = vld [vmem:[%s4102_s17 + $0x60] sm:$0xe]  ;;  %v5436_v47 = vpop.permute.xlu1 %2396 }
 0x128   : > { %2210 = vrot.lane.b32.xlu0 %v3730_v56, %s4062_s20  ;;  %v1215_v7 = vshll.u32 %v3578_v33, 16  ;;  %v1013_v46 = vshll.u32 %v5404_v55, 16  ;;  %v1019_v26 = vrot.slane %v1017_v4, 4  ;;  %v1023_v62 = vshll.u32 %v5418_v12, 16 }
 0x129   : > { %v1203_v21 = vrot.slane %v1202_v11, 4  ;;  %v1207_v2 = vrot.slane %v1205_v18, 5  ;;  %v1010_v32 = vor.u32 %v1009_v1, %v1006_v38  ;;  %v2847_v6 = vsel %vm2823_vm9, %v2814_v10, %v5204_v49  ;;  %v5443_v11 = vpop.permute.xlu0 %2380 }
 0x12a   : > { %2322 = vrot.lane.b32.xlu1 %v3754_v3, %s4060_s18  ;;  %v1217_v35 = vrot.slane %v1215_v7, 5  ;;  %v1015_v61 = vrot.slane %v1013_v46, 5  ;;  %v1025_v56 = vrot.slane %v1023_v62, 5  ;;  %v2831_v9 = vsel %vm2823_vm9, %v2798_v23, %v5209_v36  ;;  %v5452_v46 = vld [vmem:[%s4102_s17 + $0xcc] sm:$0xf] }
 0x12b   : > { %v1208_v20 = vsel %vm4170_vm5, %v1203_v21, %v1207_v2  ;;  %v1212_v4 = vor.u32 %v1211_v24, %v1207_v2  ;;  %v1011_v38 = vrot.slane %v1010_v32, 4  ;;  %v3610_v1 = vrot.slane %v3594_v25, 9  ;;  %v5465_v21 = vld [vmem:[%s4102_s17 + $0xd0] sm:$0xf]  ;;  %v5467_v2 = vpop.permute.xlu1 %2476 }
 0x12c   : > { %2306 = vrot.lane.b32.xlu0 %v3746_v42, %s4060_s18  ;;  %v1020_v49 = vor.u32 %v1019_v26, %v1015_v61  ;;  %v1390_v3 = vrot.slane %v5392_v16, 5  ;;  %v1393_v10 = vrot.slane %v3578_v33, 5  ;;  %v3602_v18 = vrot.slane %v3586_v51, 9 }
 0x12d   : > { %v1213_v7 = vrot.slane %v1212_v4, 4  ;;  %v1016_v36 = vsel %vm4170_vm5, %v1011_v38, %v1015_v61  ;;  %v1334_v23 = vrot.slane %v5404_v55, 5  ;;  %v1337_v24 = vrot.slane %v5418_v12, 5  ;;  %v5476_v61 = vld [vmem:[%s4102_s17 + $0x70] sm:$0xf] }
 0x12e   : > { %v1021_v62 = vrot.slane %v1020_v49, 4  ;;  %v1391_v42 = vsel %vm4126_vm2, %v3610_v1, %v1390_v3  ;;  %v1392_v16 = vrot.slane %v1390_v3, 4  ;;  %v2880_v33 = vsel %vm2856_vm10, %v2847_v6, %v5221_v13 }
 0x12f   : > { %v1218_v26 = vsel %vm4170_vm5, %v1213_v7, %v1217_v35  ;;  %v1335_v55 = vsel %vm4126_vm2, %v3602_v18, %v1334_v23  ;;  %v1336_v25 = vrot.slane %v1334_v23, 4  ;;  %v2864_v12 = vsel %vm2856_vm10, %v2831_v9, %v5246_v37  ;;  %v3625_v35 = vld [vmem:[%s4102_s17 + $0x6c] sm:$0xf]  ;;  %v5490_v23 = vld [vmem:[%s4102_s17 + $0xd4] sm:$0x1] }
 0x130   : > { %v3770_v32 = vcombine.low %v1208_v20, %v1218_v26  ;;  %v1026_v51 = vsel %vm4170_vm5, %v1021_v62, %v1025_v56  ;;  %v1394_v13 = vsel %vm4126_vm2, %v1392_v16, %v1393_v10  ;;  %v1805_v6 = vshrl.u32 %v5452_v46, 16  ;;  %v5481_v20 = vpop.permute.xlu0 %2460  ;;  %v3662_v26 = vld [vmem:[%s4102_s17 + $0x3c] sm:$0xe] }
 0x131   : > { %v3762_v4 = vcombine.low %v1016_v36, %v1026_v51  ;;  %v3786_v38 = vcombine.low %v1391_v42, %v1394_v13  ;;  %v1338_v37 = vsel %vm4126_vm2, %v1336_v25, %v1337_v24  ;;  %v1808_v9 = vshll.u32 %v5452_v46, 16  ;;  %v5502_v13 = vpop.permute.xlu1 %2572 }
 0x132   : > { %2402 = vrot.lane.b32.xlu1 %v3770_v32, %s4064_s22  ;;  %v3778_v56 = vcombine.low %v1335_v55, %v1338_v37  ;;  %v1807_v1 = vrot.slane %v1805_v6, 4  ;;  %v1818_v49 = vshrl.u32 %v5465_v21, 16  ;;  %v3802_v3 = vcombine.low %v5452_v46, %v5465_v21  ;;  %v5499_v46 = vld [vmem:[%s4102_s17 + $0x74] sm:$0x1] }
 0x133   : > { %2386 = vrot.lane.b32.xlu0 %v3762_v4, %s4064_s22  ;;  %v1810_v10 = vrot.slane %v1808_v9, 5  ;;  %v1613_v18 = vshrl.u32 %v3625_v35, 16  ;;  %v1616_v7 = vshll.u32 %v3625_v35, 16  ;;  %v1626_v36 = vshrl.u32 %v5476_v61, 16  ;;  %v3670_v9 = vld [vmem:[%s4102_s17 + $0x9c] sm:$0xe] }
 0x134   : > { %v3794_v24 = vcombine.low %v3625_v35, %v5476_v61  ;;  %v2913_v62 = vsel %vm2889_vm11, %v2880_v33, %v5263_v57  ;;  %v2897_v42 = vsel %vm2889_vm11, %v2864_v12, %v5280_v28  ;;  %v1814_v16 = vshll.u32 %v5465_v21, 16 }
 0x135   : > { %v1615_v55 = vrot.slane %v1613_v18, 4  ;;  %v1618_v25 = vrot.slane %v1616_v7, 5  ;;  %v1811_v32 = vor.u32 %v1810_v10, %v1807_v1  ;;  %v1820_v51 = vrot.slane %v1818_v49, 4  ;;  %v5510_v1 = vpop.permute.xlu0 %2556 }
 0x136   : > { %2482 = vrot.lane.b32.xlu1 %v3786_v38, %s4061_s19  ;;  %v1816_v6 = vrot.slane %v1814_v16, 5  ;;  %v1824_v57 = vshll.u32 %v5490_v23, 16  ;;  %v1622_v33 = vshll.u32 %v5476_v61, 16  ;;  %v1628_v28 = vrot.slane %v1626_v36, 4 }
 0x137   : > { %2466 = vrot.lane.b32.xlu0 %v3778_v56, %s4061_s19  ;;  %v1812_v12 = vrot.slane %v1811_v32, 4  ;;  %v1619_v35 = vor.u32 %v1618_v25, %v1615_v55  ;;  %v1632_v4 = vshll.u32 %v5499_v46, 16  ;;  %v3678_v37 = vrot.slane %v3662_v26, 9  ;;  %s3895_s19 = sshll.u32 %s5898_s13, 7 }
 0x138   : > { %v1821_v49 = vor.u32 %v1820_v51, %v1816_v6  ;;  %v1826_v10 = vrot.slane %v1824_v57, 5  ;;  %v1624_v18 = vrot.slane %v1622_v33, 5  ;;  %v5879_v38 = vrot.slane %v4556_v5, 5  ;;  %s5737_s22 = scalar_lea.vmem %s5858_s3, %s3895_s19 }
 0x139   : > { %v1817_v36 = vsel %vm4170_vm5, %v1812_v12, %v1816_v6  ;;  %v1620_v16 = vrot.slane %v1619_v35, 4  ;;  %v1634_v56 = vrot.slane %v1632_v4, 5  ;;  %v5881_v51 = vrot.slane %v4580_v41, 5  ;;  %v3663_v35 = vld [vmem:[%s4102_s17 + $0x48] sm:$0xe] }
 0x13a   : > { %v1917_v7 = vrot.slane %v5879_v38, 4  ;;  %v5880_v55 = vmov %v5879_v38  ;;  %2578 = vrot.lane.b32.xlu1 %v3802_v3, %s4065_s23  ;;  %v1822_v25 = vrot.slane %v1821_v49, 4  ;;  %v1629_v32 = vor.u32 %v1628_v28, %v1624_v18  ;;  %v5532_v28 = vpop.permute.xlu1 %2652 }
 0x13b   : > { %v1916_v26 = vsel %vm4126_vm2, %v3678_v37, %v5880_v55  ;;  %v3686_v33 = vrot.slane %v3670_v9, 9  ;;  %2562 = vrot.lane.b32.xlu0 %v3794_v24, %s4065_s23  ;;  %v1625_v5 = vsel %vm4170_vm5, %v1620_v16, %v1624_v18  ;;  %v5882_v12 = vrot.slane %v4540_v58, 5  ;;  %v3671_v18 = vld [vmem:[%s4102_s17 + $0xa8] sm:$0xe]  ;;  %v4042_v55 = vld [vmem:[%s4102_s17 + $0x30] sm:$0xf] }
 0x13c   : > { %v1919_v57 = vsel %vm4126_vm2, %v1917_v7, %v5881_v51  ;;  %v2933_v41 = vsel %vm2922_vm12, %v2897_v42, %v5323_v40  ;;  %v1827_v4 = vsel %vm4170_vm5, %v1822_v25, %v1826_v10  ;;  %v1630_v24 = vrot.slane %v1629_v32, 4  ;;  %v4040_v7 = vld [vmem:[%s4102_s17 + $0x90] sm:$0xf]  ;;  %v4041_v10 = vld [vmem:[%s4102_s17 + $0x94] sm:$0xf]  ;;  %v2637_v25 = vpop.permute.xlu0 %2636 }
 0x13d   : > { %v3822_v6 = vcombine.low %v1916_v26, %v1919_v57  ;;  %v1973_v3 = vrot.slane %v5882_v12, 4  ;;  %v5883_v37 = vmov %v5882_v12  ;;  %v2957_v49 = vsel %vm2922_vm12, %v2913_v62, %v5298_v15  ;;  %v4043_v58 = vld [vmem:[%s4102_s17 + $0x34] sm:$0xf] }
 0x13e   : > { %v1972_v9 = vsel %vm4126_vm2, %v3686_v33, %v5883_v37  ;;  %v3818_v38 = vcombine.low %v1817_v36, %v1827_v4  ;;  %v5884_v40 = vrot.slane %v4567_v27, 5  ;;  %v3703_v16 = vcombine.low %v4040_v7, %v4041_v10  ;;  %v3664_v37 = vld [vmem:[%s4102_s17 + $0x54] sm:$0xe] }
 0x13f   : > { %3848 = vmatprep.mubr.msk.bf16.mxu0 %vm2708_vm6, %v3822_v6  ;;  %v3695_v26 = vcombine.low %v4042_v55, %v4043_v58  ;;  %v1635_v32 = vsel %vm4170_vm5, %v1630_v24, %v1634_v56  ;;  %v3679_v62 = vrot.slane %v3663_v35, 9  ;;  %v5885_v36 = vrot.slane %v4793_v34, 5 }
 0x140   : > { %v1975_v42 = vsel %vm4126_vm2, %v1973_v3, %v5884_v40  ;;  %3155 = vmatmul.mubr.bf16.gmra.mrb[12].mxu0 %v2933_v41  ;;  %v1988_v27 = vrot.slane %v5025_v22, 5  ;;  %2658 = vrot.lane.b32.xlu1 %v3818_v38, %s4066_s24  ;;  %v3810_v57 = vcombine.low %v1625_v5, %v1635_v32  ;;  %v3687_v6 = vrot.slane %v3671_v18, 9  ;;  %v3672_v18 = vld [vmem:[%s4102_s17 + $0xb4] sm:$0xe] }
 0x141   : > { %v3830_v15 = vcombine.low %v1972_v9, %v1975_v42  ;;  %v1924_v51 = vrot.slane %v5885_v36, 4  ;;  %v2723_v33 = vsel %vm2708_vm6, %v3695_v26, %v5359_v8  ;;  %v2747_v19 = vsel %vm2708_vm6, %v3703_v16, %v5345_v63  ;;  %v5581_v35 = vpop.permute.xlu1 %2142  ;;  %v5893_v26 = vld [vmem:[#allocation2_spill] sm:$0xff] }
 0x142   : > { %v2767_v56 = vsel %vm2757_vm7, %v2723_v33, %v5382_v52  ;;  %v5886_v12 = vmov %v5885_v36  ;;  %v5887_v5 = vrot.slane %v4819_v60, 5  ;;  %2642 = vrot.lane.b32.xlu0 %v3810_v57, %s4066_s24  ;;  %v2783_v3 = vsel %vm2757_vm7, %v2747_v19, %v5373_v31  ;;  %v3673_v36 = vld [vmem:[%s4102_s17 + $0xc0] sm:$0xe]  ;;  %v3666_v19 = vld [vmem:[%s4102_s17 + $0x6c] sm:$0xe] }
 0x143   : > { %3856 = vmatprep.mubr.msk.bf16.mxu1 %vm2708_vm6, %v3830_v15  ;;  %v1923_v22 = vsel %vm4126_vm2, %v3679_v62, %v5886_v12  ;;  %v2800_v63 = vsel %vm2790_vm8, %v2767_v56, %v5420_v44  ;;  %v5888_v34 = vrot.slane %v4783_v50, 5  ;;  %v1932_v60 = vrot.slane %v5038_v14, 5  ;;  %v5603_v50 = vpop.permute.xlu0 %2126 }
 0x144   : > { %v1926_v8 = vsel %vm4126_vm2, %v1924_v51, %v5887_v5  ;;  %3219 = vmatmul.mubr.bf16.gmra.mrb[12].mxu1 %v2957_v49  ;;  %v2816_v4 = vsel %vm2790_vm8, %v2783_v3, %v5410_v48  ;;  %v2833_v24 = vsel %vm2823_vm9, %v2800_v63, %v5443_v11  ;;  %v1992_v9 = vrot.slane %v5230_v54, 5  ;;  %v3674_v63 = vld [vmem:[%s4102_s17 + $0xcc] sm:$0xe] }
 0x145   : > { %v3823_v52 = vcombine.low %v1923_v22, %v1926_v8  ;;  %v1980_v41 = vrot.slane %v5888_v34, 4  ;;  %v5889_v31 = vmov %v5888_v34  ;;  %v2849_v49 = vsel %vm2823_vm9, %v2816_v4, %v5436_v47 }
 0x146   : > { %v1979_v44 = vsel %vm4126_vm2, %v3687_v6, %v5889_v31  ;;  %v2866_v14 = vsel %vm2856_vm10, %v2833_v24, %v5481_v20  ;;  %v5890_v48 = vrot.slane %v4808_v30, 5  ;;  %v1936_v38 = vrot.slane %v5244_v53, 5  ;;  %v3665_v20 = vld [vmem:[%s4102_s17 + $0x60] sm:$0xe] }
 0x147   : > { %3849 = vmatprep.mubr.msk.bf16.mxu0 %vm2708_vm6, %v3823_v52  ;;  %v2882_v54 = vsel %vm2856_vm10, %v2849_v49, %v5467_v2  ;;  %v2899_v47 = vsel %vm2889_vm11, %v2866_v14, %v5510_v1  ;;  %v1939_v42 = vrot.slane %v5267_v45, 5  ;;  %v3680_v10 = vrot.slane %v3664_v37, 9  ;;  %v2223_v2 = vpop.permute.xlu1 %2222  ;;  %v5891_v1 = vld [vmem:[#allocation3_spill] sm:$0xff]  ;;  %v2207_v51 = vpop.permute.xlu0 %2206 }
 0x148   : > { %v1982_v11 = vsel %vm4126_vm2, %v1980_v41, %v5890_v48  ;;  %v2915_v30 = vsel %vm2889_vm11, %v2882_v54, %v5502_v13  ;;  %v2936_v7 = vsel %vm2922_vm12, %v2899_v47, %v2637_v25  ;;  %v5892_v16 = vrot.slane %v5891_v1, 5  ;;  %v4047_v1 = vld [vmem:[%s4102_s17 + $0x40] sm:$0xf] }
 0x149   : > { %v3831_v40 = vcombine.low %v1979_v44, %v1982_v11  ;;  %3163 = vmatmul.mubr.bf16.gmra.mrb[16].mxu0 %v2936_v7  ;;  %v2960_v53 = vsel %vm2922_vm12, %v2915_v30, %v5532_v28  ;;  %v3688_v58 = vrot.slane %v3672_v18, 9  ;;  %v5894_v45 = vrot.slane %v5893_v26, 5  ;;  %v4044_v30 = vld [vmem:[%s4102_s17 + $0x9c] sm:$0xf]  ;;  %v4045_v7 = vld [vmem:[%s4102_s17 + $0xa0] sm:$0xf] }
 0x14a   : > { %v1931_v55 = vrot.slane %v5892_v16, 4  ;;  %v1995_v13 = vrot.slane %v5254_v43, 5  ;;  %v5895_v25 = vmov %v5892_v16  ;;  %v3681_v62 = vrot.slane %v3665_v20, 9 }
 0x14b   : > { %3857 = vmatprep.mubr.msk.bf16.mxu1 %vm2708_vm6, %v3831_v40  ;;  %v1987_v32 = vrot.slane %v5894_v45, 4  ;;  %v1930_v15 = vsel %vm4126_vm2, %v3680_v10, %v5895_v25  ;;  %v5896_v57 = vmov %v5894_v45  ;;  %v1938_v6 = vrot.slane %v1936_v38, 4  ;;  %v2303_v37 = vpop.permute.xlu0 %2302 }
 0x14c   : > { %v1933_v28 = vsel %vm4126_vm2, %v1931_v55, %v1932_v60  ;;  %v1986_v33 = vsel %vm4126_vm2, %v3688_v58, %v5896_v57  ;;  %3227 = vmatmul.mubr.bf16.gmra.mrb[16].mxu1 %v2960_v53  ;;  %v1937_v22 = vsel %vm4126_vm2, %v3681_v62, %v1936_v38  ;;  %v3689_v8 = vrot.slane %v3673_v36, 9  ;;  %v2319_v60 = vpop.permute.xlu1 %2318  ;;  %v4046_v53 = vld [vmem:[%s4102_s17 + $0x3c] sm:$0xf] }
 0x14d   : > { %v1989_v43 = vsel %vm4126_vm2, %v1987_v32, %v1988_v27  ;;  %v3824_v56 = vcombine.low %v1930_v15, %v1933_v28  ;;  %v1940_v5 = vsel %vm4126_vm2, %v1938_v6, %v1939_v42  ;;  %v1994_v3 = vrot.slane %v1992_v9, 4 }
 0x14e   : > { %v3832_v12 = vcombine.low %v1986_v33, %v1989_v43  ;;  %v3825_v52 = vcombine.low %v1937_v22, %v1940_v5  ;;  %v3706_v27 = vcombine.low %v5293_v39, %v5296_v0  ;;  %v3698_v34 = vcombine.low %v5335_v29, %v5338_v59 }
 0x14f   : > { %3850 = vmatprep.mubr.msk.bf16.mxu0 %vm2708_vm6, %v3824_v56  ;;  %v3682_v41 = vrot.slane %v3666_v19, 9  ;;  %v1993_v4 = vsel %vm4126_vm2, %v3689_v8, %v1992_v9  ;;  %v1996_v24 = vsel %vm4126_vm2, %v1994_v3, %v1995_v13  ;;  %v1943_v31 = vrot.slane %v5476_v61, 5 }
 0x150   : > { %3858 = vmatprep.mubr.msk.bf16.mxu1 %vm2708_vm6, %v3832_v12  ;;  %v1946_v44 = vrot.slane %v5499_v46, 5  ;;  %v3833_v49 = vcombine.low %v1993_v4, %v1996_v24  ;;  %v3690_v14 = vrot.slane %v3674_v63, 9  ;;  %v1999_v48 = vrot.slane %v5465_v21, 5  ;;  %v4050_v24 = vld [vmem:[%s4102_s17 + $0x48] sm:$0xf] }
 0x151   : > { %v5658_v11 = vsel %vm4126_vm2, %v3682_v41, %v1943_v31  ;;  %v1945_v9 = vrot.slane %v1943_v31, 4  ;;  %v2002_v18 = vrot.slane %v5490_v23, 5  ;;  %v2399_v47 = vpop.permute.xlu1 %2398  ;;  %v3704_v10 = vcombine.low %v4044_v30, %v4045_v7  ;;  %v4048_v41 = vld [vmem:[%s4102_s17 + $0xa8] sm:$0xf]  ;;  %v4051_v31 = vld [vmem:[%s4102_s17 + $0x4c] sm:$0xf] }
 0x152   : > { %v5663_v61 = vsel %vm4126_vm2, %v3690_v14, %v1999_v48  ;;  %v2001_v46 = vrot.slane %v1999_v48, 4  ;;  %v2383_v40 = vpop.permute.xlu0 %2382  ;;  %v3696_v16 = vcombine.low %v4046_v53, %v4047_v1 }
 0x153   : > { %v5667_v38 = vsel %vm4126_vm2, %v1945_v9, %v1946_v44  ;;  %v2750_v58 = vsel %vm2708_vm6, %v3704_v10, %v5581_v35  ;;  %v3697_v44 = vcombine.low %v4050_v24, %v4051_v31 }
 0x154   : > { %v3826_v21 = vcombine.low %v5658_v11, %v5667_v38  ;;  %v5673_v54 = vsel %vm4126_vm2, %v2001_v46, %v2002_v18  ;;  %v2726_v26 = vsel %vm2708_vm6, %v3696_v16, %v5603_v50  ;;  %v2785_v45 = vsel %vm2757_vm7, %v2750_v58, %v2223_v2 }
 0x155   : > { %v3834_v23 = vcombine.low %v5663_v61, %v5673_v54  ;;  %v2479_v20 = vpop.permute.xlu1 %2478  ;;  %v2769_v32 = vsel %vm2757_vm7, %v2726_v26, %v2207_v51  ;;  %v2818_v13 = vsel %vm2790_vm8, %v2785_v45, %v2319_v60  ;;  %v4049_v60 = vld [vmem:[%s4102_s17 + $0xac] sm:$0xf]  ;;  %v5728_v45 = vld [vmem:[%s5857_s2] ss:$0 sm:$0xff] }
 0x156   : > { %v2463_v42 = vpop.permute.xlu0 %2462  ;;  %v2802_v25 = vsel %vm2790_vm8, %v2769_v32, %v2303_v37  ;;  %v2851_v15 = vsel %vm2823_vm9, %v2818_v13, %v2399_v47  ;;  %v3705_v4 = vcombine.low %v4048_v41, %v4049_v60 }
 0x157   : > { %v2835_v62 = vsel %vm2823_vm9, %v2802_v25, %v2383_v40  ;;  %v2884_v36 = vsel %vm2856_vm10, %v2851_v15, %v2479_v20 }
 0x158   : > { %v2868_v35 = vsel %vm2856_vm10, %v2835_v62, %v2463_v42 }
 0x159   : > { %v2575_v55 = vpop.permute.xlu1 %2574 }
 0x15a   : > { %v2559_v17 = vpop.permute.xlu0 %2558  ;;  %v2917_v28 = vsel %vm2889_vm11, %v2884_v36, %v2575_v55 }
 0x15b   : > { %v2901_v50 = vsel %vm2889_vm11, %v2868_v35, %v2559_v17 }
 0x160   : > { %v2655_v57 = vpop.permute.xlu1 %2654 }
 0x161   : > { %v2639_v2 = vpop.permute.xlu0 %2638  ;;  %v2963_v51 = vsel %vm2922_vm12, %v2917_v28, %v2655_v57 }
 0x162   : > { %v2939_v33 = vsel %vm2922_vm12, %v2901_v50, %v2639_v2  ;;  %3235 = vmatmul.mubr.bf16.gmra.mrb[20].mxu1 %v2963_v51 }
 0x163   : > { %3171 = vmatmul.mubr.bf16.gmra.mrb[20].mxu0 %v2939_v33  ;;  %3859 = vmatprep.mubr.msk.bf16.mxu1 %vm2708_vm6, %v3833_v49 }
 0x164   : > { %3851 = vmatprep.mubr.msk.bf16.mxu0 %vm2708_vm6, %v3825_v52 }
 0x168   : > { %v2145_v43 = vpop.permute.xlu1 %2144 }
 0x169   : > { %v2753_v49 = vsel %vm2708_vm6, %v3705_v4, %v2145_v43 }
 0x16d   : > { %v2129_v6 = vpop.permute.xlu0 %2128 }
 0x16e   : > { %v2225_v19 = vpop.permute.xlu1 %2224  ;;  %v2729_v14 = vsel %vm2708_vm6, %v3697_v44, %v2129_v6 }
 0x16f   : > { %v2787_v48 = vsel %vm2757_vm7, %v2753_v49, %v2225_v19 }
 0x171   : > { %v2209_v56 = vpop.permute.xlu0 %2208 }
 0x172   : > { %v2321_v12 = vpop.permute.xlu1 %2320  ;;  %v2771_v9 = vsel %vm2757_vm7, %v2729_v14, %v2209_v56 }
 0x173   : > { %v2820_v18 = vsel %vm2790_vm8, %v2787_v48, %v2321_v12 }
 0x175   : > { %v2305_v22 = vpop.permute.xlu0 %2304 }
 0x176   : > { %v2804_v46 = vsel %vm2790_vm8, %v2771_v9, %v2305_v22 }
 0x17a   : > { %v2401_v5 = vpop.permute.xlu1 %2400 }
 0x17b   : > { %v2385_v8 = vpop.permute.xlu0 %2384  ;;  %v2853_v47 = vsel %vm2823_vm9, %v2820_v18, %v2401_v5 }
 0x17c   : > { %v2837_v40 = vsel %vm2823_vm9, %v2804_v46, %v2385_v8 }
 0x17e   : > { %v2481_v3 = vpop.permute.xlu1 %2480 }
 0x17f   : > { %v2465_v63 = vpop.permute.xlu0 %2464  ;;  %v2886_v20 = vsel %vm2856_vm10, %v2853_v47, %v2481_v3 }
 0x180   : > { %v2870_v42 = vsel %vm2856_vm10, %v2837_v40, %v2465_v63 }
 0x182   : > { %v2577_v37 = vpop.permute.xlu1 %2576 }
 0x183   : > { %v2561_v52 = vpop.permute.xlu0 %2560  ;;  %v2919_v30 = vsel %vm2889_vm11, %v2886_v20, %v2577_v37 }
 0x184   : > { %v2903_v10 = vsel %vm2889_vm11, %v2870_v42, %v2561_v52 }
 0x189   : > { %v2657_v7 = vpop.permute.xlu1 %2656 }
 0x18a   : > { %v2966_v1 = vsel %vm2922_vm12, %v2919_v30, %v2657_v7 }
 0x18b   : > { %v2641_v53 = vpop.permute.xlu0 %2640  ;;  %3243 = vmatmul.mubr.bf16.gmra.mrb[24].mxu1 %v2966_v1 }
 0x18c   : > { %v2942_v16 = vsel %vm2922_vm12, %v2903_v10, %v2641_v53  ;;  %3860 = vmatprep.mubr.msk.bf16.mxu1 %vm2708_vm6, %v3834_v23 }
 0x18d   : > { %3179 = vmatmul.mubr.bf16.gmra.mrb[24].mxu0 %v2942_v16 }
 0x18e   : > { %3852 = vmatprep.mubr.msk.bf16.mxu0 %vm2708_vm6, %v3826_v21 }
 0x192   : > { %v2147_v55 = vpop.permute.xlu1 %2146 }
 0x193   : > { %v2756_v8 = vsel %vm2708_vm6, %v3706_v27, %v2147_v55 }
 0x196   : > { %v2131_v58 = vpop.permute.xlu0 %2130 }
 0x197   : > { %v2732_v60 = vsel %vm2708_vm6, %v3698_v34, %v2131_v58 }
 0x198   : > { %v2227_v17 = vpop.permute.xlu1 %2226 }
 0x199   : > { %v2789_v63 = vsel %vm2757_vm7, %v2756_v8, %v2227_v17 }
 0x19a   : > { %v2211_v26 = vpop.permute.xlu0 %2210 }
 0x19b   : > { %v2773_v24 = vsel %vm2757_vm7, %v2732_v60, %v2211_v26 }
 0x19c   : > { %v2323_v32 = vpop.permute.xlu1 %2322 }
 0x19d   : > { %v3132_v25 = vpop.f32.mrb[0].mxu0  ;;  %v3196_v54 = vpop.f32.mrb[0].mxu1  ;;  %v2822_v4 = vsel %vm2790_vm8, %v2789_v63, %v2323_v32 }
 0x19e   : > { %v2307_v13 = vpop.permute.xlu0 %2306  ;;  %v3133_v61 = vadd.f32 %v5728_v45, %v3132_v25  ;;  %v3134_v23 = vpop.f32.mrb[1].mxu0  ;;  %v3197_v11 = vadd.f32 %v5728_v45, %v3196_v54 }
 0x19f   : > { %v3198_v38 = vpop.f32.mrb[1].mxu1  ;;  %v3135_v21 = vpop.f32.mrb[2].mxu0  ;;  %v2806_v44 = vsel %vm2790_vm8, %v2773_v24, %v2307_v13 }
 0x1a0   : > { %v3259_v15 = vmax.f32 %v3133_v61, 0.0  ;;  %v3136_v62 = vadd.f32 %v5728_v45, %v3135_v21  ;;  %v3199_v36 = vpop.f32.mrb[2].mxu1  ;;  %v3137_v35 = vpop.f32.mrb[3].mxu0  ;;  %v3275_v28 = vmax.f32 %v3197_v11, 0.0 }
 0x1a1   : > { %v3200_v57 = vadd.f32 %v5728_v45, %v3199_v36  ;;  %v3201_v50 = vpop.f32.mrb[3].mxu1 }
 0x1a2   : > { %v3896_v2 = vpack.c.bf16 %v3259_v15, %v3259_v15  ;;  %v3260_v51 = vmax.f32 %v3136_v62, 0.0  ;;  %v3912_v43 = vpack.c.bf16 %v3275_v28, %v3275_v28 }
 0x1a3   : > { %v3276_v6 = vmax.f32 %v3200_v57, 0.0 }
 0x1a4   : > { %v2403_v33 = vpop.permute.xlu1 %2402  ;;  %3420 = vst.msk [vmem:[%s5737_s22] sm:$0xf] %vm3419_vm13, %v3896_v2  ;;  %v3897_v56 = vpack.c.bf16 %v3260_v51, %v3260_v51  ;;  %3436 = vst.msk [vmem:[%s5737_s22 + $0x40] sm:$0xf] %vm3419_vm13, %v3912_v43 }
 0x1a5   : > { %v2387_v19 = vpop.permute.xlu0 %2386  ;;  %v3913_v12 = vpack.c.bf16 %v3276_v6, %v3276_v6  ;;  %v2855_v31 = vsel %vm2823_vm9, %v2822_v4, %v2403_v33 }
 0x1a6   : > { %3421 = vst.msk [vmem:[%s5737_s22 + $0x4] sm:$0xf] %vm3419_vm13, %v3897_v56  ;;  %v2839_v0 = vsel %vm2823_vm9, %v2806_v44, %v2387_v19 }
 0x1a7   : > { %3437 = vst.msk [vmem:[%s5737_s22 + $0x44] sm:$0xf] %vm3419_vm13, %v3913_v12 }
 0x1a8   : > { %v2483_v22 = vpop.permute.xlu1 %2482 }
 0x1a9   : > { %v2467_v5 = vpop.permute.xlu0 %2466  ;;  %v2888_v39 = vsel %vm2856_vm10, %v2855_v31, %v2483_v22 }
 0x1aa   : > { %v2872_v49 = vsel %vm2856_vm10, %v2839_v0, %v2467_v5 }
 0x1ac   : > { %v2579_v3 = vpop.permute.xlu1 %2578 }
 0x1ad   : > { %v2563_v41 = vpop.permute.xlu0 %2562  ;;  %v2921_v27 = vsel %vm2889_vm11, %v2888_v39, %v2579_v3 }
 0x1ae   : > { %v2905_v59 = vsel %vm2889_vm11, %v2872_v49, %v2563_v41 }
 0x1b2   : > { %v2659_v37 = vpop.permute.xlu1 %2658 }
 0x1b3   : > { %v2969_v29 = vsel %vm2922_vm12, %v2921_v27, %v2659_v37 }
 0x1b4   : > { %v2643_v34 = vpop.permute.xlu0 %2642  ;;  %3251 = vmatmul.mubr.bf16.gmra.mrb[28].mxu1 %v2969_v29 }
 0x1b5   : > { %v2945_v52 = vsel %vm2922_vm12, %v2905_v59, %v2643_v34 }
 0x1b6   : > { %3187 = vmatmul.mubr.bf16.gmra.mrb[28].mxu0 %v2945_v52 }
 0x1c4   : > { %v3140_v14 = vpop.f32.mrb[4].mxu0 }
 0x1c5   : > { %v3141_v48 = vadd.f32 %v5728_v45, %v3140_v14  ;;  %v3142_v9 = vpop.f32.mrb[5].mxu0 }
 0x1c6   : > { %v3204_v18 = vpop.f32.mrb[4].mxu1  ;;  %v3143_v46 = vpop.f32.mrb[6].mxu0 }
 0x1c7   : > { %v3261_v47 = vmax.f32 %v3141_v48, 0.0  ;;  %v3205_v40 = vadd.f32 %v5728_v45, %v3204_v18  ;;  %v3206_v20 = vpop.f32.mrb[5].mxu1  ;;  %v3144_v42 = vadd.f32 %v5728_v45, %v3143_v46  ;;  %v3145_v30 = vpop.f32.mrb[7].mxu0 }
 0x1c8   : > { %v3207_v7 = vpop.f32.mrb[6].mxu1 }
 0x1c9   : > { %v3898_v10 = vpack.c.bf16 %v3261_v47, %v3261_v47  ;;  %v3277_v53 = vmax.f32 %v3205_v40, 0.0  ;;  %v3262_v1 = vmax.f32 %v3144_v42, 0.0  ;;  %v3208_v16 = vadd.f32 %v5728_v45, %v3207_v7  ;;  %v3209_v55 = vpop.f32.mrb[7].mxu1 }
 0x1cb   : > { %3422 = vst.msk [vmem:[%s5737_s22 + $0x8] sm:$0xf] %vm3419_vm13, %v3898_v10  ;;  %v3914_v58 = vpack.c.bf16 %v3277_v53, %v3277_v53  ;;  %v3899_v17 = vpack.c.bf16 %v3262_v1, %v3262_v1  ;;  %v3278_v26 = vmax.f32 %v3208_v16, 0.0 }
 0x1cd   : > { %3438 = vst.msk [vmem:[%s5737_s22 + $0x48] sm:$0xf] %vm3419_vm13, %v3914_v58  ;;  %3423 = vst.msk [vmem:[%s5737_s22 + $0xc] sm:$0xf] %vm3419_vm13, %v3899_v17  ;;  %v3915_v32 = vpack.c.bf16 %v3278_v26, %v3278_v26 }
 0x1cf   : > { %3439 = vst.msk [vmem:[%s5737_s22 + $0x4c] sm:$0xf] %vm3419_vm13, %v3915_v32 }
 0x1ee   : > { %v3148_v13 = vpop.f32.mrb[8].mxu0 }
 0x1ef   : > { %v3149_v25 = vadd.f32 %v5728_v45, %v3148_v13  ;;  %v3150_v61 = vpop.f32.mrb[9].mxu0 }
 0x1f0   : > { %v3212_v54 = vpop.f32.mrb[8].mxu1  ;;  %v3151_v23 = vpop.f32.mrb[10].mxu0 }
 0x1f1   : > { %v3263_v11 = vmax.f32 %v3149_v25, 0.0  ;;  %v3213_v38 = vadd.f32 %v5728_v45, %v3212_v54  ;;  %v3214_v21 = vpop.f32.mrb[9].mxu1  ;;  %v3152_v15 = vadd.f32 %v5728_v45, %v3151_v23  ;;  %v3153_v62 = vpop.f32.mrb[11].mxu0 }
 0x1f2   : > { %v3215_v36 = vpop.f32.mrb[10].mxu1 }
 0x1f3   : > { %v3900_v35 = vpack.c.bf16 %v3263_v11, %v3263_v11  ;;  %v3279_v28 = vmax.f32 %v3213_v38, 0.0  ;;  %v3264_v57 = vmax.f32 %v3152_v15, 0.0  ;;  %v3216_v50 = vadd.f32 %v5728_v45, %v3215_v36  ;;  %v3217_v2 = vpop.f32.mrb[11].mxu1 }
 0x1f5   : > { %3424 = vst.msk [vmem:[%s5737_s22 + $0x10] sm:$0xf] %vm3419_vm13, %v3900_v35  ;;  %v3916_v51 = vpack.c.bf16 %v3279_v28, %v3279_v28  ;;  %v3901_v33 = vpack.c.bf16 %v3264_v57, %v3264_v57  ;;  %v3280_v43 = vmax.f32 %v3216_v50, 0.0 }
 0x1f7   : > { %3440 = vst.msk [vmem:[%s5737_s22 + $0x50] sm:$0xf] %vm3419_vm13, %v3916_v51  ;;  %3425 = vst.msk [vmem:[%s5737_s22 + $0x14] sm:$0xf] %vm3419_vm13, %v3901_v33  ;;  %v3917_v6 = vpack.c.bf16 %v3280_v43, %v3280_v43 }
 0x1f9   : > { %3441 = vst.msk [vmem:[%s5737_s22 + $0x54] sm:$0xf] %vm3419_vm13, %v3917_v6 }
 0x213   : > { %v3156_v19 = vpop.f32.mrb[12].mxu0 }
 0x214   : > { %v3157_v56 = vadd.f32 %v5728_v45, %v3156_v19  ;;  %v3158_v12 = vpop.f32.mrb[13].mxu0 }
 0x215   : > { %v3159_v22 = vpop.f32.mrb[14].mxu0 }
 0x216   : > { %v3265_v5 = vmax.f32 %v3157_v56, 0.0  ;;  %v3160_v3 = vadd.f32 %v5728_v45, %v3159_v22  ;;  %v3161_v63 = vpop.f32.mrb[15].mxu0 }
 0x217   : > { %v3220_v8 = vpop.f32.mrb[12].mxu1 }
 0x218   : > { %v3221_v41 = vadd.f32 %v5728_v45, %v3220_v8  ;;  %v3222_v60 = vpop.f32.mrb[13].mxu1  ;;  %v3902_v4 = vpack.c.bf16 %v3265_v5, %v3265_v5  ;;  %v3266_v24 = vmax.f32 %v3160_v3, 0.0 }
 0x219   : > { %v3223_v31 = vpop.f32.mrb[14].mxu1 }
 0x21a   : > { %v3281_v44 = vmax.f32 %v3221_v41, 0.0  ;;  %v3224_v39 = vadd.f32 %v5728_v45, %v3223_v31  ;;  %v3225_v0 = vpop.f32.mrb[15].mxu1  ;;  %3426 = vst.msk [vmem:[%s5737_s22 + $0x18] sm:$0xf] %vm3419_vm13, %v3902_v4  ;;  %v3903_v27 = vpack.c.bf16 %v3266_v24, %v3266_v24 }
 0x21c   : > { %v3918_v37 = vpack.c.bf16 %v3281_v44, %v3281_v44  ;;  %v3282_v49 = vmax.f32 %v3224_v39, 0.0  ;;  %v3164_v29 = vpop.f32.mrb[16].mxu0  ;;  %3427 = vst.msk [vmem:[%s5737_s22 + $0x1c] sm:$0xf] %vm3419_vm13, %v3903_v27 }
 0x21d   : > { %v3165_v59 = vadd.f32 %v5728_v45, %v3164_v29  ;;  %v3166_v34 = vpop.f32.mrb[17].mxu0 }
 0x21e   : > { %3442 = vst.msk [vmem:[%s5737_s22 + $0x58] sm:$0xf] %vm3419_vm13, %v3918_v37  ;;  %v3919_v52 = vpack.c.bf16 %v3282_v49, %v3282_v49  ;;  %v3167_v14 = vpop.f32.mrb[18].mxu0 }
 0x21f   : > { %v3267_v48 = vmax.f32 %v3165_v59, 0.0  ;;  %v3228_v9 = vpop.f32.mrb[16].mxu1  ;;  %v3168_v18 = vadd.f32 %v5728_v45, %v3167_v14  ;;  %v3169_v46 = vpop.f32.mrb[19].mxu0 }
 0x220   : > { %3443 = vst.msk [vmem:[%s5737_s22 + $0x5c] sm:$0xf] %vm3419_vm13, %v3919_v52  ;;  %v3229_v47 = vadd.f32 %v5728_v45, %v3228_v9  ;;  %v3230_v40 = vpop.f32.mrb[17].mxu1 }
 0x221   : > { %v3904_v20 = vpack.c.bf16 %v3267_v48, %v3267_v48  ;;  %v3268_v42 = vmax.f32 %v3168_v18, 0.0  ;;  %v3231_v30 = vpop.f32.mrb[18].mxu1 }
 0x222   : > { %v3283_v7 = vmax.f32 %v3229_v47, 0.0  ;;  %v3232_v10 = vadd.f32 %v5728_v45, %v3231_v30  ;;  %v3233_v53 = vpop.f32.mrb[19].mxu1 }
 0x223   : > { %3428 = vst.msk [vmem:[%s5737_s22 + $0x20] sm:$0xf] %vm3419_vm13, %v3904_v20  ;;  %v3905_v1 = vpack.c.bf16 %v3268_v42, %v3268_v42 }
 0x224   : > { %v3920_v16 = vpack.c.bf16 %v3283_v7, %v3283_v7  ;;  %v3284_v55 = vmax.f32 %v3232_v10, 0.0 }
 0x225   : > { %3429 = vst.msk [vmem:[%s5737_s22 + $0x24] sm:$0xf] %vm3419_vm13, %v3905_v1 }
 0x226   : > { %3444 = vst.msk [vmem:[%s5737_s22 + $0x60] sm:$0xf] %vm3419_vm13, %v3920_v16  ;;  %v3921_v58 = vpack.c.bf16 %v3284_v55, %v3284_v55 }
 0x228   : > { %3445 = vst.msk [vmem:[%s5737_s22 + $0x64] sm:$0xf] %vm3419_vm13, %v3921_v58 }
 0x235   : > { %v3236_v17 = vpop.f32.mrb[20].mxu1 }
 0x236   : > { %v3172_v26 = vpop.f32.mrb[20].mxu0  ;;  %v3237_v32 = vadd.f32 %v5728_v45, %v3236_v17  ;;  %v3238_v13 = vpop.f32.mrb[21].mxu1 }
 0x237   : > { %v3173_v25 = vadd.f32 %v5728_v45, %v3172_v26  ;;  %v3174_v61 = vpop.f32.mrb[21].mxu0  ;;  %v3239_v54 = vpop.f32.mrb[22].mxu1 }
 0x238   : > { %v3285_v23 = vmax.f32 %v3237_v32, 0.0  ;;  %v3175_v11 = vpop.f32.mrb[22].mxu0  ;;  %v3240_v38 = vadd.f32 %v5728_v45, %v3239_v54  ;;  %v3241_v21 = vpop.f32.mrb[23].mxu1 }
 0x239   : > { %v3269_v15 = vmax.f32 %v3173_v25, 0.0  ;;  %v3176_v62 = vadd.f32 %v5728_v45, %v3175_v11  ;;  %v3177_v36 = vpop.f32.mrb[23].mxu0 }
 0x23a   : > { %v3922_v35 = vpack.c.bf16 %v3285_v23, %v3285_v23  ;;  %v3286_v28 = vmax.f32 %v3240_v38, 0.0 }
 0x23b   : > { %v3906_v57 = vpack.c.bf16 %v3269_v15, %v3269_v15  ;;  %v3270_v50 = vmax.f32 %v3176_v62, 0.0 }
 0x23c   : > { %3446 = vst.msk [vmem:[%s5737_s22 + $0x68] sm:$0xf] %vm3419_vm13, %v3922_v35  ;;  %v3923_v2 = vpack.c.bf16 %v3286_v28, %v3286_v28 }
 0x23d   : > { %3430 = vst.msk [vmem:[%s5737_s22 + $0x28] sm:$0xf] %vm3419_vm13, %v3906_v57  ;;  %v3907_v51 = vpack.c.bf16 %v3270_v50, %v3270_v50 }
 0x23e   : > { %3447 = vst.msk [vmem:[%s5737_s22 + $0x6c] sm:$0xf] %vm3419_vm13, %v3923_v2 }
 0x23f   : > { %3431 = vst.msk [vmem:[%s5737_s22 + $0x2c] sm:$0xf] %vm3419_vm13, %v3907_v51 }
 0x25e   : > { %v3244_v33 = vpop.f32.mrb[24].mxu1 }
 0x25f   : > { %v3245_v6 = vadd.f32 %v5728_v45, %v3244_v33  ;;  %v3246_v19 = vpop.f32.mrb[25].mxu1 }
 0x260   : > { %v3180_v43 = vpop.f32.mrb[24].mxu0  ;;  %v3247_v22 = vpop.f32.mrb[26].mxu1 }
 0x261   : > { %v3181_v56 = vadd.f32 %v5728_v45, %v3180_v43  ;;  %v3182_v12 = vpop.f32.mrb[25].mxu0  ;;  %v3287_v5 = vmax.f32 %v3245_v6, 0.0  ;;  %v3248_v3 = vadd.f32 %v5728_v45, %v3247_v22  ;;  %v3249_v63 = vpop.f32.mrb[27].mxu1 }
 0x262   : > { %v3183_v8 = vpop.f32.mrb[26].mxu0 }
 0x263   : > { %v3271_v41 = vmax.f32 %v3181_v56, 0.0  ;;  %v3184_v60 = vadd.f32 %v5728_v45, %v3183_v8  ;;  %v3185_v4 = vpop.f32.mrb[27].mxu0  ;;  %v3924_v24 = vpack.c.bf16 %v3287_v5, %v3287_v5  ;;  %v3288_v31 = vmax.f32 %v3248_v3, 0.0 }
 0x265   : > { %v3908_v44 = vpack.c.bf16 %v3271_v41, %v3271_v41  ;;  %v3272_v39 = vmax.f32 %v3184_v60, 0.0  ;;  %3448 = vst.msk [vmem:[%s5737_s22 + $0x70] sm:$0xf] %vm3419_vm13, %v3924_v24  ;;  %v3925_v0 = vpack.c.bf16 %v3288_v31, %v3288_v31 }
 0x267   : > { %3432 = vst.msk [vmem:[%s5737_s22 + $0x30] sm:$0xf] %vm3419_vm13, %v3908_v44  ;;  %v3909_v27 = vpack.c.bf16 %v3272_v39, %v3272_v39  ;;  %3449 = vst.msk [vmem:[%s5737_s22 + $0x74] sm:$0xf] %vm3419_vm13, %v3925_v0 }
 0x269   : > { %3433 = vst.msk [vmem:[%s5737_s22 + $0x34] sm:$0xf] %vm3419_vm13, %v3909_v27 }
 0x287   : > { %v3252_v37 = vpop.f32.mrb[28].mxu1 }
 0x288   : > { %v3253_v49 = vadd.f32 %v5728_v45, %v3252_v37  ;;  %v3254_v29 = vpop.f32.mrb[29].mxu1 }
 0x289   : > { %v3188_v59 = vpop.f32.mrb[28].mxu0  ;;  %v3255_v34 = vpop.f32.mrb[30].mxu1 }
 0x28a   : > { %v3189_v52 = vadd.f32 %v5728_v45, %v3188_v59  ;;  %v3289_v14 = vmax.f32 %v3253_v49, 0.0  ;;  %v3190_v48 = vpop.f32.mrb[29].mxu0  ;;  %v3256_v9 = vadd.f32 %v5728_v45, %v3255_v34  ;;  %v3257_v18 = vpop.f32.mrb[31].mxu1 }
 0x28b   : > { %v3191_v46 = vpop.f32.mrb[30].mxu0 }
 0x28c   : > { %v3273_v47 = vmax.f32 %v3189_v52, 0.0  ;;  %v3926_v40 = vpack.c.bf16 %v3289_v14, %v3289_v14  ;;  %v3192_v20 = vadd.f32 %v5728_v45, %v3191_v46  ;;  %v3290_v42 = vmax.f32 %v3256_v9, 0.0  ;;  %v3193_v30 = vpop.f32.mrb[31].mxu0 }
 0x28e   : > { %v3910_v7 = vpack.c.bf16 %v3273_v47, %v3273_v47  ;;  %3450 = vst.msk [vmem:[%s5737_s22 + $0x78] sm:$0xf] %vm3419_vm13, %v3926_v40  ;;  %v3274_v10 = vmax.f32 %v3192_v20, 0.0  ;;  %v3927_v53 = vpack.c.bf16 %v3290_v42, %v3290_v42 }
 0x290   : > { %3434 = vst.msk [vmem:[%s5737_s22 + $0x38] sm:$0xf] %vm3419_vm13, %v3910_v7  ;;  %v3911_v1 = vpack.c.bf16 %v3274_v10, %v3274_v10  ;;  %3451 = vst.msk [vmem:[%s5737_s22 + $0x7c] sm:$0xf] %vm3419_vm13, %v3927_v53 }
 0x292   : > { %3435 = vst.msk [vmem:[%s5737_s22 + $0x3c] sm:$0xf] %vm3419_vm13, %v3911_v1 }
 0x293 PF: > { %s13_s12 = sadd.s32 1, %s4058_s12  }
 0x294   : > { %p10_p4 = scmp.ge.s32.totalorder %s13_s12, 4  }
 0x296   :  { %12 = sbr.rel (!%p10_p4) target bundleno = 1 (0x1), region = 64 }

// kernel: exifnet_forward.11
= control target key start
LH: loop header
LB: loop body
LE: loop exit
PB: predicated region body
PF: predicated region fallthrough
CT: control target
= control target key end

     0   :  { %s3521_s0 = inlined_call_operand.vmem [shape: f32[2,8,64], index: 0, kind: input, shape index: {}]   ;;  %s3522_s1 = inlined_call_operand.vmem [shape: f32[2,1,8], index: 1, kind: input, shape index: {}]   ;;  %s3523_s2 = inlined_call_operand.vmem [shape: f32[1,64], index: 2, kind: input, shape index: {}]   ;;  %s3524_s3 = inlined_call_operand.vmem [shape: f32[1,64], index: 3, kind: input, shape index: {}]   ;;  %s3525_s4 = inlined_call_operand.vmem [shape: bf16[2,64,192], index: 4, kind: input, shape index: {}]   ;;  %s3526_s5 = inlined_call_operand.vmem [shape: f32[2,1,192], index: 5, kind: input, shape index: {}]   ;;  %s3527_s6 = inlined_call_operand.vmem [shape: bf16[2,64,64], index: 6, kind: input, shape index: {}]   ;;  %s3528_s7 = inlined_call_operand.vmem [shape: f32[2,1,64], index: 7, kind: input, shape index: {}]   ;;  %s3529_s8 = inlined_call_operand.vmem [shape: f32[2,1,64], index: 8, kind: input, shape index: {}]   ;;  %s3530_s9 = inlined_call_operand.vmem [shape: f32[2,1,64], index: 9, kind: input, shape index: {}]   ;;  %s3531_s10 = inlined_call_operand.vmem [shape: bf16[2,64,128], index: 10, kind: input, shape index: {}]   ;;  %s3532_s11 = inlined_call_operand.vmem [shape: f32[2,1,128], index: 11, kind: input, shape index: {}]   ;;  %s3533_s12 = inlined_call_operand.vmem [shape: bf16[2,128,64], index: 12, kind: input, shape index: {}]   ;;  %s3534_s13 = inlined_call_operand.vmem [shape: f32[2,1,64], index: 13, kind: input, shape index: {}]   ;;  %s3535_s14 = inlined_call_operand.vmem [shape: f32[2,1,64], index: 14, kind: input, shape index: {}]   ;;  %s3536_s15 = inlined_call_operand.vmem [shape: f32[2,1,64], index: 15, kind: input, shape index: {}]   ;;  %s3537_s16 = inlined_call_operand.hbm [shape: f32[2,1,64], index: 16, kind: output, shape index: {}]  }
   0x1   :  { %3553 = sst [smem:[#allocation21_spill]] %s3521_s0 }
   0x2   :  { %3554 = sst [smem:[#allocation22_spill]] %s3522_s1 }
   0x3   :  { %3555 = sst [smem:[#allocation23_spill]] %s3523_s2 }
   0x4   :  { %3556 = sst [smem:[#allocation24_spill]] %s3524_s3 }
   0x5   :  { %3557 = sst [smem:[#allocation25_spill]] %s3525_s4 }
   0x6   :  { %3558 = sst [smem:[#allocation26_spill]] %s3526_s5 }
   0x7   :  { %3559 = sst [smem:[#allocation27_spill]] %s3527_s6 }
   0x8   :  { %3560 = sst [smem:[#allocation28_spill]] %s3537_s16 }
   0x9   :  { %21 = vsyncpa [#allocation4], 0 }
   0xa   :  { %23 = vsyncpa [#allocation4 + $0x1], 0  ;;  %s3048_s21 = smov 0   ;;  %s3050_s22 = smov 0  }
   0xb   :  { %s3052_s23 = smov 0   ;;  %s3054_s24 = smov 0  }
   0xc   :  { %s3056_s25 = smov 0   ;;  %s3058_s26 = smov 0  }
   0xd   :  { %s3060_s27 = smov 0   ;;  %s3062_s28 = smov 0  }
   0xe LB: > { %3561 = sst [smem:[#allocation6_spill]] %s2919_s21  ;;  %s2512_s29 = sadd.s32 4294967295, %s2947_s28   ;;  %s2947_s28 = sphi %s3062_s28, %s29_s28   ;;  %s2943_s27 = sphi %s3060_s27, %s3607_s27   ;;  %s2939_s26 = sphi %s3058_s26, %s3610_s26   ;;  %s2935_s25 = sphi %s3056_s25, %s3605_s25   ;;  %s2931_s24 = sphi %s3054_s24, %s3604_s24   ;;  %s2927_s23 = sphi %s3052_s23, %s3603_s23   ;;  %s2923_s22 = sphi %s3050_s22, %s3609_s22   ;;  %s2919_s21 = sphi %s3048_s21, %s3608_s21  }
   0xf   : > { %3562 = sst [smem:[#allocation7_spill]] %s2927_s23  ;;  %s2513_s30 = sadd.s32 4294967294, %s2947_s28  }
  0x10   : > { %3563 = sst [smem:[#allocation8_spill]] %s2931_s24  ;;  %s38_s0 = sadd.s32 1, %s2939_s26 }
  0x11   : > { %3564 = sst [smem:[#allocation9_spill]] %s2935_s25  ;;  %p39_p0 = scmp.ge.s32.totalorder %s38_s0, 2 }
  0x12   : > { %3565 = sst [smem:[#allocation10_spill]] %s2939_s26  ;;  %s41_s17 = sadd.s32 1, %s2943_s27 }
  0x13   : > { %3566 = sst [smem:[#allocation11_spill]] %s2943_s27  ;;  %p464_p1 = scmp.ne.s32.totalorder %s2927_s23, %s2923_s22 }
  0x14   : > { %3567 = sst [smem:[#allocation12_spill]] %s2947_s28  ;;  %p465_p2 = scmp.eq.s32.totalorder %s2512_s29, 3 }
  0x15   : > { %s3612_s0 = smov (%p39_p0, %s38_s0), 0  ;;  %s3614_s17 = smov (!%p39_p0, %s41_s17), %s2943_s27 }
  0x16   : > { %3568 = sst [smem:[#allocation13_spill]] %s3612_s0  ;;  %p3097_p3 = por %p465_p2, %p464_p1 }
  0x17   : > { %p470_p4 = scmp.ne.s32.totalorder %s2923_s22, %s2919_s21  ;;  %p43_p5 = scmp.ge.s32.totalorder %s3614_s17, 2 }
  0x18   : > { %s3569_s18 = scalar_select %p3097_p3, 1, 0 }
  0x19   : > { %p471_p6 = scmp.eq.s32.totalorder %s2513_s30, 3  ;;  %p2516_p7 = scmp.ge.s32.totalorder %s2947_s28, 1 }
  0x1a   : > { %3570 = sst [smem:[#allocation14_spill]] %s3569_s18  ;;  %p589_p8 = scmp.lt.s32.totalorder %s2947_s28, 5 }
  0x1b   : > { %s3616_s17 = smov (%p43_p5, %s3614_s17), 0  ;;  %p3107_p9 = por %p471_p6, %p470_p4 }
  0x1c   : > { %3571 = sst [smem:[#allocation15_spill]] %s3616_s17  ;;  %p590_p10 = pnand %p2516_p7, %p589_p8 }
  0x1d   : > { %s3572_s19 = scalar_select %p3107_p9, 1, 0 }
  0x1e   : > { %s451_s20 = ssub.s32 %s2943_s27, %s3616_s17  ;;  %s454_s29 = sadd.s32 1, %s2927_s23 }
  0x1f   : > { %3573 = sst [smem:[#allocation16_spill]] %s3572_s19  ;;  %p452_p11 = scmp.eq.s32.totalorder %s451_s20, 0 }
  0x20   : > { %593 = sbr.rel (%p590_p10) target bundleno = 3168 (0xc60), region = 84 }
  0x21   : > { %s3115_s0 = scalar_select %p452_p11, %s2927_s23, %s454_s29  }
  0x23   : > { %3574 = sst [smem:[#allocation17_spill]] %s3115_s0 }
  0x27   : > { %p685_p12 = scmp.lt.s32.totalorder %s2935_s25, 1  ;;  %p692_p13 = scmp.lt.s32.totalorder %s2931_s24, 1 }
  0x28   : > { %s3575_s1 = sld [smem:[#allocation22_spill]]  ;;  %s3577_s23 = sld [smem:[#allocation21_spill]] }
  0x29   : > { %s686_s26 = scalar_select %p685_p12, %s2935_s25, 1 }
  0x2a   : > { %s3122_s21 = scalar_select %p692_p13, %s2931_s24, 1 }
  0x2b   : > { %s2517_s20 = sshll.u32 %s686_s26, 3  ;;  %s3578_s4 = sld [smem:[#allocation25_spill]] }
  0x2c   : > { %s2584_s28 = sshll.u32 %s3122_s21, 6  ;;  %s2520_s3 = sshll.u32 %s3122_s21, 1 }
  0x2d   : > { %s3580_s5 = sld [smem:[#allocation26_spill]]  ;;  %s3581_s6 = sld [smem:[#allocation27_spill]] }
  0x2e   : > { %s3127_s27 = scalar_lea.vmem %s3575_s1, %s686_s26  ;;  %s688_s19 = scalar_lea.vmem %s3577_s23, %s2517_s20 }
  0x2f   : > { %3576 = sst [smem:[#allocation18_spill]] %s3127_s27  ;;  %s2585_s26 = sshll.u32 %s3122_s21, 5 }
  0x30   : > { %s3174_s30 = scalar_lea.vmem %s3533_s12, %s2584_s28  ;;  %s730_s18 = scalar_lea.vmem %s3534_s13, %s3122_s21 }
  0x31   : > { %s3136_s25 = scalar_lea.vmem %s3578_s4, %s2584_s28  ;;  %s733_s2 = scalar_lea.vmem %s3535_s14, %s3122_s21 }
  0x32   : > { %3579 = sst [smem:[#allocation19_spill]] %s3136_s25  ;;  %s736_s24 = scalar_lea.vmem %s3536_s15, %s3122_s21 }
  0x33   : > { %s3142_s17 = scalar_lea.vmem %s3580_s5, %s2520_s3  ;;  %s3148_s0 = scalar_lea.vmem %s3581_s6, %s2585_s26 }
  0x34   : > { %3582 = sst [smem:[#allocation20_spill]] %s3148_s0  ;;  %s3165_s5 = scalar_lea.vmem %s3531_s10, %s2585_s26 }
  0x35   : > { %s722_s6 = scalar_lea.vmem %s3532_s11, %s3122_s21  ;;  %s3583_s20 = sand.u32 1, %s2923_s22  }
  0x36   : > { %s3190_s1 = scalar_lea.vmem [#allocation3], %s3583_s20  ;;  %s3584_s29 = sld [smem:[#allocation8_spill]] }
  0x3c   : > { %p2527_p0 = scmp.ne.s32.totalorder %s3584_s29, 0 }
  0x3d   : > { %v742_v0 = vld [vmem:[%s688_s19] sm:$0xff] (!%p2527_p0)  ;;  %vm745_vm0 = vcmask (!%p2527_p0), 523264   ;;  %s3585_s20 = sld [smem:[#allocation23_spill]] (!%p2527_p0)  ;;  %s3586_s27 = sld [smem:[#allocation24_spill]] (!%p2527_p0) }
  0x3e   : > { %741 = sbr.rel (%p2527_p0) target bundleno = 376 (0x178), region = 88  ;;  %v746_v1 = vsel (!%p2527_p0), %vm745_vm0, %v742_v0, 0.0 }
  0x3f   : > { %747 = vadd.xlane.f32.xlu0 (!%p2527_p0), %v746_v1 }
  0x43   : > { %v2528_v11 = vld [vmem:[%s3585_s20] ss:$0 sm:$0xff] (!%p2527_p0) }
  0x44   : > { %v2529_v13 = vld [vmem:[%s3586_s27] ss:$0 sm:$0xff] (!%p2527_p0) }
  0xcc   : > { %v748_v2 = vpop.xlane.xlu0 %747 }
  0xcd   : > { %v750_v3 = vmul.f32 0.015625, %v748_v2 }
  0xcf   : > { %v751_v4 = vsub.f32 %v742_v0, %v750_v3 }
  0xd1   : > { %v752_v5 = vmul.f32 %v751_v4, %v751_v4 }
  0xd3   : > { %v753_v6 = vsel %vm745_vm0, %v752_v5, 0.0 }
  0xd4   : > { %754 = vadd.xlane.f32.xlu0 %v753_v6 }
 0x161   : > { %v755_v7 = vpop.xlane.xlu0 %754 }
 0x162   : > { %v756_v8 = vmul.f32 0.015625, %v755_v7 }
 0x164   : > { %v757_v9 = vadd.f32 1e-12, %v756_v8 }
 0x166   : > { %2799 = vrsqrt.f32 %v757_v9 }
 0x170   : > { %v2800_v10 = vpop.eup %2799 }
 0x171   : > { %v759_v12 = vmul.f32 %v2800_v10, %v751_v4 }
 0x173   : > { %v766_v14 = vmul.f32 %v2528_v11, %v759_v12 }
 0x175   : > { %v773_v15 = vadd.f32 %v2529_v13, %v766_v14 }
 0x177   : > { %774 = vst.msk [vmem:[#allocation2] sm:$0xff] %vm745_vm0, %v773_v15 }
 0x178 PF: > { %s3587_s16 = sld [smem:[#allocation19_spill]]  ;;  %v2949_v18 = vmov 0   ;;  %vm837_vm1 = vcmask 523264   ;;  %v787_v27 = vlaneseq  ;;  %v3221_v30 = vld [vmem:[%s3142_s17] sm:$0x3]  ;;  %s2950_s4 = smov 80  }
 0x179   : > { %873 = vmatprep.mubr.bf16.mxu1 %v2949_v18  ;;  %s2951_s25 = smov 112   ;;  %s2952_s3 = smov 64   ;;  %v2954_v37 = vmov 1983009808   ;;  %v2955_v39 = vmov 1934713408  }
 0x17a   : > { %v3215_v28 = vshrl.u32 %v787_v27, 7  ;;  %s2953_s26 = smov 96   ;;  %v895_v38 = vunpack.c.l.s4 %v2954_v37  ;;  %v927_v40 = vunpack.c.l.s4 %v2955_v39  ;;  %v2956_v48 = vmov 0.0   ;;  %s3588_s17 = sld [smem:[#allocation18_spill]] }
 0x17b   : > { %2635 = vmatprep.subr.bf16.mxu0 %v2956_v48  ;;  %vm2957_vm2 = vmmov 0   ;;  %vm1333_vm3 = vcmask 130048   ;;  %vm1532_vm5 = vcmask 64512   ;;  %vm1588_vm6 = vcmask 1043456   ;;  %s3589_s29 = sld [smem:[#allocation20_spill]]  ;;  %s2959_s28 = smov 32  }
 0x17c   : > { %v3218_v29 = vsub.s32 0, %v3215_v28  ;;  %v896_v41 = vunpack.c.0.s8 %v895_v38  ;;  %v928_v46 = vunpack.c.0.s8 %v927_v40  ;;  %2637 = vmatprep.mubr.msk.bf16.mxu0 %vm2957_vm2, %v2956_v48  ;;  %s2960_s0 = smov 16   ;;  %s2961_s20 = smov 48   ;;  %vm1919_vm7 = vcmask 261120  }
 0x17d   : > { %vm1921_vm8 = vcmask 392192   ;;  %s3590_s27 = scalar_lea.vmem %s3528_s7, %s3122_s21  ;;  %s3593_s19 = sld [smem:[#allocation8_spill]] }
 0x17e   : > { %v2801_v16 = vld [vmem:[%s3587_s16 + $0x4] ss:$8 sps:$4 sm:$0xff]   ;;  %v2803_v17 = vld [vmem:[%s3587_s16] ss:$8 sps:$4 sm:$0xff]   ;;  %v2804_v19 = vld [vmem:[%s3587_s16 + $0x14] ss:$8 sps:$4 sm:$0xff]   ;;  %v790_v31 = vrot.slane %v3221_v30, %v3218_v29  ;;  %v3231_v47 = vsub.s32 %v896_v41, %v3215_v28  ;;  %v3236_v52 = vsub.s32 %v928_v46, %v3215_v28 }
 0x17f   : > { %841 = vmatprep.subr.bf16.mxu1 %v2801_v16  ;;  %v2806_v20 = vld [vmem:[%s3587_s16 + $0x10] ss:$8 sps:$4 sm:$0xff]   ;;  %v2807_v21 = vld [vmem:[%s3587_s16 + $0x24] ss:$8 sps:$4 sm:$0xff]   ;;  %v2809_v22 = vld [vmem:[%s3587_s16 + $0x20] ss:$8 sps:$4 sm:$0xff]  }
 0x180   : > { %842 = vmatpush1.bf16.msra.mxu1 %v2803_v17  ;;  %v2810_v23 = vld [vmem:[%s3587_s16 + $0x34] ss:$8 sps:$4 sm:$0xff]   ;;  %v2812_v24 = vld [vmem:[%s3587_s16 + $0x30] ss:$8 sps:$4 sm:$0xff]   ;;  %v3210_v25 = vld [vmem:[#allocation2] sm:$0xff] }
 0x181   : > { %843 = vmatprep.subr.bf16.mxu1 %v2804_v19  ;;  %v776_v26 = vpack.c.bf16 %v3210_v25, %v3210_v25 }
 0x183   : > { %p2580_p1 = scmp.ne.s32.totalorder %s3593_s19, 1 }
 0x184   : > { %844 = vmatpush1.bf16.msra.mxu1 %v2806_v20  ;;  %s3594_s23 = sld [smem:[#allocation18_spill]] (!%p2580_p1)  ;;  %vm2292_vm9 = vcmask (!%p2580_p1), 57344   ;;  %vm2299_vm10 = vcmask (!%p2580_p1), 516096  }
 0x185   : > { %845 = vmatprep.subr.bf16.mxu1 %v2807_v21 }
 0x188   : > { %846 = vmatpush1.bf16.msra.mxu1 %v2809_v22 }
 0x189   : > { %847 = vmatprep.subr.bf16.mxu1 %v2810_v23 }
 0x18c   : > { %848 = vmatpush1.bf16.msra.mxu1 %v2812_v24 }
 0x18d   : > { %2623 = vmatprep.subr.bf16.mxu1 %v2956_v48 }
 0x18f   : > { %2538 = vmatmul.mubr.msk.bf16.vlgmr.msra.gmra.mrb[0].mxu1 %vm837_vm1, %v776_v26 }
 0x190   : > { %2625 = vmatprep.mubr.msk.bf16.mxu1 %vm2957_vm2, %v2956_v48 }
 0x262   : > { %v875_v32 = vpop.f32.mrb[0].mxu1 }
 0x263   : > { %v876_v33 = vadd.f32 %v875_v32, %v790_v31  ;;  %v3225_v34 = vpop.f32.mrb[1].mxu1 }
 0x264   : > { %v879_v35 = vpop.f32.mrb[2].mxu1 }
 0x265   : > { %v880_v36 = vpop.f32.mrb[3].mxu1  ;;  %889 = vrot.lane.b32.xlu1 %v876_v33, %s2950_s4  ;;  %883 = vrot.lane.b32.xlu0 %v876_v33, %s2951_s25 }
 0x269   : > { %1028 = vrot.lane.b32.xlu1 %v876_v33, %s2952_s3  ;;  %886 = vrot.lane.b32.xlu0 %v876_v33, %s2953_s26 }
 0x2d7   : > { %v890_v42 = vpop.permute.xlu1 %889  ;;  %v884_v43 = vpop.permute.xlu0 %883 }
 0x2d8   : > { %v908_v44 = vcombine.low %v884_v43, %v890_v42  ;;  %v909_v45 = vcombine.high %v884_v43, %v890_v42  ;;  %1030 = vrot.lane.b32.xlu0 %v884_v43, %s2952_s3 }
 0x2da   : > { %v916_v53 = vrot.slane %v908_v44, %v3231_v47  ;;  %v923_v54 = vrot.slane %v909_v45, %v3231_v47 }
 0x2db   : > { %v887_v49 = vpop.permute.xlu0 %886  ;;  %v1029_v21 = vpop.permute.xlu1 %1028 }
 0x2dc   : > { %v892_v50 = vcombine.low %v876_v33, %v887_v49  ;;  %v893_v51 = vcombine.high %v876_v33, %v887_v49  ;;  %1034 = vrot.lane.b32.xlu0 %v890_v42, %s2952_s3  ;;  %1032 = vrot.lane.b32.xlu1 %v887_v49, %s2952_s3 }
 0x2de   : > { %v900_v55 = vrot.slane %v892_v50, %v3231_v47  ;;  %v907_v56 = vrot.slane %v893_v51, %v3231_v47 }
 0x2e0   : > { %v924_v57 = vcombine.low %v900_v55, %v916_v53  ;;  %v925_v58 = vcombine.high %v900_v55, %v916_v53  ;;  %v940_v59 = vcombine.low %v907_v56, %v923_v54  ;;  %v941_v60 = vcombine.high %v907_v56, %v923_v54 }
 0x2e2   : > { %v932_v61 = vrot.slane %v924_v57, %v3236_v52  ;;  %v939_v62 = vrot.slane %v925_v58, %v3236_v52  ;;  %v948_v63 = vrot.slane %v940_v59, %v3236_v52  ;;  %v955_v0 = vrot.slane %v941_v60, %v3236_v52 }
 0x2e4   : > { %v960_v1 = vcombine.low %v932_v61, %v939_v62  ;;  %v2539_v2 = vcombine.high %v932_v61, %v939_v62  ;;  %v976_v3 = vcombine.low %v948_v63, %v955_v0  ;;  %v2540_v4 = vcombine.high %v948_v63, %v955_v0 }
 0x2e6   : > { %v967_v5 = vrot.slane %v960_v1, %v3231_v47  ;;  %v975_v6 = vrot.slane %v2539_v2, %v3231_v47  ;;  %v983_v7 = vrot.slane %v976_v3, %v3231_v47  ;;  %v991_v8 = vrot.slane %v2540_v4, %v3231_v47 }
 0x2e8   : > { %v992_v9 = vcombine.low %v967_v5, %v975_v6  ;;  %v1008_v10 = vcombine.low %v983_v7, %v991_v8  ;;  %v993_v11 = vcombine.high %v967_v5, %v975_v6  ;;  %v1009_v12 = vcombine.high %v983_v7, %v991_v8 }
 0x2ea   : > { %v1000_v13 = vrot.slane %v992_v9, %v3236_v52  ;;  %v1016_v14 = vrot.slane %v1008_v10, %v3236_v52  ;;  %v1007_v15 = vrot.slane %v993_v11, %v3236_v52  ;;  %v1023_v16 = vrot.slane %v1009_v12, %v3236_v52 }
 0x2ec   : > { %v1024_v17 = vcombine.low %v1000_v13, %v1016_v14  ;;  %v1026_v18 = vcombine.low %v1007_v15, %v1023_v16  ;;  %v3258_v19 = vcombine.high %v1007_v15, %v1023_v16  ;;  %v3260_v20 = vcombine.high %v1000_v13, %v1016_v14 }
 0x2ee   : > { %v1325_v9 = vpack.c.bf16 %v1024_v17, %v1024_v17  ;;  %v1327_v10 = vpack.c.bf16 %v1026_v18, %v1026_v18  ;;  %v1326_v14 = vpack.c.bf16 %v3260_v20, %v3260_v20  ;;  %v1328_v16 = vpack.c.bf16 %v3258_v19, %v3258_v19  ;;  %v1322_v17 = vld [vmem:[%s3588_s17] sm:$0x1]  ;;  %s3592_s17 = scalar_lea.vmem %s3530_s9, %s3122_s21 }
 0x2ef   : > { %vm1323_vm4 = vcmp.gt.f32.partialorder %v1322_v17, 0.0  ;;  %v2958_v18 = vmov -1e+09  }
 0x2f0   : > { %v1324_v20 = vsel %vm1323_vm4, 0.0, %v2958_v18 }
 0x34a   : > { %v1031_v22 = vpop.permute.xlu0 %1030 }
 0x34e   : > { %v1033_v23 = vpop.permute.xlu1 %1032  ;;  %v1035_v24 = vpop.permute.xlu0 %1034 }
 0x34f   : > { %v1040_v26 = vcombine.low %v1029_v21, %v1033_v23  ;;  %v1041_v27 = vcombine.high %v1029_v21, %v1033_v23  ;;  %v1056_v31 = vcombine.low %v1031_v22, %v1035_v24  ;;  %v1057_v32 = vcombine.high %v1031_v22, %v1035_v24 }
 0x350   : > { %v1526_v21 = vrot.slane %v1324_v20, %v3218_v29 }
 0x351   : > { %v1048_v33 = vrot.slane %v1040_v26, %v3231_v47  ;;  %v1055_v35 = vrot.slane %v1041_v27, %v3231_v47  ;;  %v1064_v36 = vrot.slane %v1056_v31, %v3231_v47  ;;  %v1071_v37 = vrot.slane %v1057_v32, %v3231_v47 }
 0x353   : > { %v1072_v38 = vcombine.low %v1048_v33, %v1064_v36  ;;  %v1073_v39 = vcombine.high %v1048_v33, %v1064_v36  ;;  %v1088_v40 = vcombine.low %v1055_v35, %v1071_v37  ;;  %v1089_v41 = vcombine.high %v1055_v35, %v1071_v37 }
 0x355   : > { %v1080_v42 = vrot.slane %v1072_v38, %v3236_v52  ;;  %v1087_v43 = vrot.slane %v1073_v39, %v3236_v52  ;;  %v1096_v44 = vrot.slane %v1088_v40, %v3236_v52  ;;  %v1103_v45 = vrot.slane %v1089_v41, %v3236_v52 }
 0x357   : > { %v1108_v46 = vcombine.low %v1080_v42, %v1087_v43  ;;  %v2541_v49 = vcombine.high %v1080_v42, %v1087_v43  ;;  %v1124_v50 = vcombine.low %v1096_v44, %v1103_v45  ;;  %v2542_v51 = vcombine.high %v1096_v44, %v1103_v45 }
 0x359   : > { %v1115_v53 = vrot.slane %v1108_v46, %v3231_v47  ;;  %v1123_v54 = vrot.slane %v2541_v49, %v3231_v47  ;;  %v1131_v55 = vrot.slane %v1124_v50, %v3231_v47  ;;  %v1139_v56 = vrot.slane %v2542_v51, %v3231_v47 }
 0x35b   : > { %v1140_v57 = vcombine.low %v1115_v53, %v1123_v54  ;;  %v1156_v58 = vcombine.low %v1131_v55, %v1139_v56  ;;  %v1141_v59 = vcombine.high %v1115_v53, %v1123_v54  ;;  %v1157_v60 = vcombine.high %v1131_v55, %v1139_v56 }
 0x35d   : > { %v1148_v61 = vrot.slane %v1140_v57, %v3236_v52  ;;  %v1164_v62 = vrot.slane %v1156_v58, %v3236_v52  ;;  %v1155_v63 = vrot.slane %v1141_v59, %v3236_v52  ;;  %v1171_v0 = vrot.slane %v1157_v60, %v3236_v52 }
 0x35e   : > { %v793_v57 = vsub.s32 1, %v3215_v28 }
 0x35f   : > { %v1172_v1 = vcombine.low %v1148_v61, %v1164_v62  ;;  %v1174_v2 = vcombine.low %v1155_v63, %v1171_v0  ;;  %v1173_v7 = vcombine.high %v1148_v61, %v1164_v62  ;;  %v1175_v12 = vcombine.high %v1155_v63, %v1171_v0 }
 0x360   : > { %v794_v58 = vrot.slane %v3221_v30, %v793_v57 }
 0x361   : > { %v1329_v3 = vpack.c.bf16 %v1172_v1, %v1172_v1  ;;  %v1331_v4 = vpack.c.bf16 %v1174_v2, %v1174_v2  ;;  %v1330_v8 = vpack.c.bf16 %v1173_v7, %v1173_v7  ;;  %v1332_v13 = vpack.c.bf16 %v1175_v12, %v1175_v12 }
 0x362   : > { %v878_v59 = vadd.f32 %v3225_v34, %v794_v58 }
 0x363   : > { %v1338_v5 = vsel %vm1333_vm3, %v1329_v3, 0  ;;  %v1430_v6 = vsel %vm1333_vm3, %v1331_v4, 0  ;;  %v1384_v11 = vsel %vm1333_vm3, %v1330_v8, 0  ;;  %v1476_v15 = vsel %vm1333_vm3, %v1332_v13, 0 }
 0x364   : > { %2624 = vmatpush3.bf16.xpose.msra.mxu1 %v1338_v5  ;;  %2636 = vmatpush3.bf16.xpose.msra.mxu0 %v1430_v6 }
 0x365   : > { %2629 = vmatprep.subr.bf16.mxu1 %v2956_v48  ;;  %2647 = vmatprep.subr.bf16.mxu0 %v2956_v48 }
 0x36b   : > { %2626 = vmatmul.mubr.msk.bf16.vlgmr.msra.gmra.mrb[4].mxu1 %vm1333_vm3, %v1325_v9  ;;  %2638 = vmatmul.mubr.msk.bf16.vlgmr.msra.gmra.mrb[0].mxu0 %vm1333_vm3, %v1327_v10 }
 0x36c   : > { %2630 = vmatpush3.bf16.xpose.msra.mxu1 %v1384_v11  ;;  %2631 = vmatprep.mubr.msk.bf16.mxu1 %vm2957_vm2, %v2956_v48 }
 0x36d   : > { %2641 = vmatprep.subr.bf16.mxu1 %v2956_v48  ;;  %2649 = vmatprep.mubr.msk.bf16.mxu0 %vm2957_vm2, %v2956_v48 }
 0x373   : > { %2632 = vmatmul.mubr.msk.bf16.vlgmr.msra.gmra.mrb[8].mxu1 %vm1333_vm3, %v1326_v14 }
 0x374   : > { %2642 = vmatpush3.bf16.xpose.msra.mxu1 %v1476_v15  ;;  %2643 = vmatprep.mubr.msk.bf16.mxu1 %vm2957_vm2, %v2956_v48 }
 0x375   : > { %2653 = vmatprep.subr.bf16.mxu1 %v2956_v48 }
 0x37b   : > { %2644 = vmatmul.mubr.msk.bf16.vlgmr.msra.gmra.mrb[12].mxu1 %vm1333_vm3, %v1328_v16 }
 0x37c   : > { %2655 = vmatprep.mubr.msk.bf16.mxu1 %vm2957_vm2, %v2956_v48 }
 0x43e   : > { %v1374_v22 = vpop.f32.mrb[4].mxu1  ;;  %v1466_v23 = vpop.f32.mrb[0].mxu0 }
 0x43f   : > { %v1518_v24 = vmul.f32 0.25, %v1374_v22  ;;  %v2627_v26 = vpop.f32.mrb[5].mxu1  ;;  %v2639_v27 = vpop.f32.mrb[1].mxu0  ;;  %v1520_v38 = vmul.f32 0.25, %v1466_v23 }
 0x440   : > { %v1377_v31 = vpop.f32.mrb[6].mxu1  ;;  %v1469_v32 = vpop.f32.mrb[2].mxu0 }
 0x441   : > { %v2628_v19 = vpop.f32.mrb[7].mxu1  ;;  %v2640_v33 = vpop.f32.mrb[3].mxu0  ;;  %v1528_v35 = vadd.f32 %v1526_v21, %v1518_v24  ;;  %v1530_v45 = vadd.f32 %v1526_v21, %v1520_v38 }
 0x443   : > { %v1533_v36 = vsel %vm1532_vm5, %v1528_v35, -inf  ;;  %v1539_v51 = vsel %vm1532_vm5, %v1530_v45, -inf }
 0x444   : > { %1534 = vmax.xlane.f32.xlu1 %v1533_v36 }
 0x446   : > { %v1420_v37 = vpop.f32.mrb[8].mxu1 }
 0x447   : > { %v1519_v39 = vmul.f32 0.25, %v1420_v37  ;;  %v2633_v40 = vpop.f32.mrb[9].mxu1 }
 0x448   : > { %v1423_v41 = vpop.f32.mrb[10].mxu1 }
 0x449   : > { %v2634_v42 = vpop.f32.mrb[11].mxu1  ;;  %v1529_v43 = vadd.f32 %v1526_v21, %v1519_v39 }
 0x44b   : > { %v1536_v44 = vsel %vm1532_vm5, %v1529_v43, -inf }
 0x44c   : > { %1537 = vmax.xlane.f32.xlu0 %v1536_v44 }
 0x44e   : > { %v1512_v46 = vpop.f32.mrb[12].mxu1 }
 0x44f   : > { %v1521_v49 = vmul.f32 0.25, %v1512_v46  ;;  %v2645_v50 = vpop.f32.mrb[13].mxu1 }
 0x450   : > { %1540 = vmax.xlane.f32.xlu0 %v1539_v51  ;;  %v1515_v53 = vpop.f32.mrb[14].mxu1 }
 0x451   : > { %v2646_v54 = vpop.f32.mrb[15].mxu1  ;;  %v1531_v55 = vadd.f32 %v1526_v21, %v1521_v49 }
 0x453   : > { %v1542_v56 = vsel %vm1532_vm5, %v1531_v55, -inf }
 0x454   : > { %1543 = vmax.xlane.f32.xlu1 %v1542_v56 }
 0x465   : > { %1180 = vrot.lane.b32.xlu1 %v878_v59, %s2953_s26 }
 0x4d1   : > { %v1535_v60 = vpop.xlane.xlu1 %1534 }
 0x4d2   : > { %v1545_v61 = vsub.f32 %v1528_v35, %v1535_v60 }
 0x4d4   : > { %v1549_v62 = vmul.f32 1.442695, %v1545_v61 }
 0x4d6   : > { %2829 = vpow2.f32 %v1549_v62 }
 0x4d9   : > { %v1538_v63 = vpop.xlane.xlu0 %1537 }
 0x4da   : > { %v1546_v0 = vsub.f32 %v1529_v43, %v1538_v63 }
 0x4dc   : > { %v1551_v1 = vmul.f32 1.442695, %v1546_v0 }
 0x4dd   : > { %v1541_v34 = vpop.xlane.xlu0 %1540 }
 0x4de   : > { %2831 = vpow2.f32 %v1551_v1  ;;  %v1547_v4 = vsub.f32 %v1530_v45, %v1541_v34 }
 0x4e0   : > { %v3312_v2 = vpop.eup %2829  ;;  %v1553_v5 = vmul.f32 1.442695, %v1547_v4 }
 0x4e1   : > { %v1557_v3 = vsel %vm1532_vm5, %v3312_v2, 0.0  ;;  %v1544_v6 = vpop.xlane.xlu1 %1543 }
 0x4e2   : > { %1558 = vadd.xlane.f32.xlu0 %v1557_v3  ;;  %2833 = vpow2.f32 %v1553_v5  ;;  %v1548_v7 = vsub.f32 %v1531_v55, %v1544_v6 }
 0x4e4   : > { %v1555_v8 = vmul.f32 1.442695, %v1548_v7 }
 0x4e5   : > { %v1181_v13 = vpop.permute.xlu1 %1180 }
 0x4e6   : > { %2835 = vpow2.f32 %v1555_v8  ;;  %v1186_v16 = vcombine.low %v878_v59, %v1181_v13  ;;  %v1187_v17 = vcombine.high %v878_v59, %v1181_v13 }
 0x4e8   : > { %v3316_v28 = vpop.eup %2831  ;;  %v1194_v23 = vrot.slane %v1186_v16, %v3231_v47  ;;  %v1201_v24 = vrot.slane %v1187_v17, %v3231_v47 }
 0x4e9   : > { %v1560_v30 = vsel %vm1532_vm5, %v3316_v28, 0.0 }
 0x4ea   : > { %1561 = vadd.xlane.f32.xlu1 %v1560_v30 }
 0x4ec   : > { %v3322_v9 = vpop.eup %2833 }
 0x4ed   : > { %v1563_v10 = vsel %vm1532_vm5, %v3322_v9, 0.0 }
 0x4f0   : > { %v3326_v11 = vpop.eup %2835 }
 0x4f1   : > { %v1566_v12 = vsel %vm1532_vm5, %v3326_v11, 0.0 }
 0x4f8   : > { %1177 = vrot.lane.b32.xlu0 %v878_v59, %s2951_s25  ;;  %s3591_s25 = scalar_lea.vmem %s3529_s8, %s3122_s21 }
 0x4fb   : > { %1183 = vrot.lane.b32.xlu1 %v878_v59, %s2950_s4 }
 0x517   : > { %1564 = vadd.xlane.f32.xlu0 %v1563_v10 }
 0x51f   : > { %1567 = vadd.xlane.f32.xlu1 %v1566_v12 }
 0x56f   : > { %v1559_v14 = vpop.xlane.xlu0 %1558 }
 0x570   : > { %2837 = vrcp.f32 %v1559_v14 }
 0x573   : > { %v1178_v18 = vpop.permute.xlu0 %1177 }
 0x577   : > { %v1562_v15 = vpop.xlane.xlu1 %1561 }
 0x578   : > { %2839 = vrcp.f32 %v1562_v15 }
 0x57a   : > { %v2838_v54 = vpop.eup %2837 }
 0x57b   : > { %v1184_v20 = vpop.permute.xlu1 %1183  ;;  %v1573_v0 = vmul.f32 %v2838_v54, %v3312_v2 }
 0x57c   : > { %v1202_v21 = vcombine.low %v1178_v18, %v1184_v20  ;;  %v1203_v22 = vcombine.high %v1178_v18, %v1184_v20  ;;  %v2813_v20 = vld [vmem:[%s3589_s29] sm:$0xff]  }
 0x57d   : > { %v1577_v7 = vpack.c.bf16 %v1573_v0, %v1573_v0 }
 0x57e   : > { %v1210_v26 = vrot.slane %v1202_v21, %v3231_v47  ;;  %v1217_v27 = vrot.slane %v1203_v22, %v3231_v47  ;;  %v2814_v21 = vld [vmem:[%s3589_s29 + $0x8] sm:$0xff]  }
 0x580   : > { %v1218_v31 = vcombine.low %v1194_v23, %v1210_v26  ;;  %v1219_v32 = vcombine.high %v1194_v23, %v1210_v26  ;;  %v1234_v19 = vcombine.low %v1201_v24, %v1217_v27  ;;  %v1235_v33 = vcombine.high %v1201_v24, %v1217_v27 }
 0x582   : > { %v1226_v35 = vrot.slane %v1218_v31, %v3236_v52  ;;  %v1233_v36 = vrot.slane %v1219_v32, %v3236_v52  ;;  %v1242_v37 = vrot.slane %v1234_v19, %v3236_v52  ;;  %v1249_v38 = vrot.slane %v1235_v33, %v3236_v52  ;;  %v2840_v59 = vpop.eup %2839 }
 0x583   : > { %v1574_v1 = vmul.f32 %v2840_v59, %v3316_v28 }
 0x584   : > { %v1254_v39 = vcombine.low %v1226_v35, %v1233_v36  ;;  %v2543_v40 = vcombine.high %v1226_v35, %v1233_v36  ;;  %v1270_v41 = vcombine.low %v1242_v37, %v1249_v38  ;;  %v2544_v42 = vcombine.high %v1242_v37, %v1249_v38 }
 0x585   : > { %v1578_v8 = vpack.c.bf16 %v1574_v1, %v1574_v1 }
 0x586   : > { %v1261_v43 = vrot.slane %v1254_v39, %v3231_v47  ;;  %v1269_v44 = vrot.slane %v2543_v40, %v3231_v47  ;;  %v1277_v45 = vrot.slane %v1270_v41, %v3231_v47  ;;  %v1285_v46 = vrot.slane %v2544_v42, %v3231_v47 }
 0x588   : > { %v1286_v49 = vcombine.low %v1261_v43, %v1269_v44  ;;  %v1302_v50 = vcombine.low %v1277_v45, %v1285_v46  ;;  %v1287_v51 = vcombine.high %v1261_v43, %v1269_v44  ;;  %v1303_v53 = vcombine.high %v1277_v45, %v1285_v46 }
 0x58a   : > { %v1294_v55 = vrot.slane %v1286_v49, %v3236_v52  ;;  %v1310_v56 = vrot.slane %v1302_v50, %v3236_v52  ;;  %v1301_v57 = vrot.slane %v1287_v51, %v3236_v52  ;;  %v1317_v58 = vrot.slane %v1303_v53, %v3236_v52  ;;  %v2815_v50 = vld [vmem:[%s3589_s29 + $0x10] sm:$0xff]  }
 0x58c   : > { %v1318_v60 = vcombine.low %v1294_v55, %v1310_v56  ;;  %v1319_v61 = vcombine.high %v1294_v55, %v1310_v56  ;;  %v1320_v62 = vcombine.low %v1301_v57, %v1317_v58  ;;  %v1321_v63 = vcombine.high %v1301_v57, %v1317_v58 }
 0x58e   : > { %v1581_v3 = vpack.c.bf16 %v1318_v60, %v1318_v60  ;;  %v1582_v30 = vpack.c.bf16 %v1319_v61, %v1319_v61  ;;  %v1583_v5 = vpack.c.bf16 %v1320_v62, %v1320_v62  ;;  %v1584_v6 = vpack.c.bf16 %v1321_v63, %v1321_v63  ;;  %v2816_v60 = vld [vmem:[%s3589_s29 + $0x18] sm:$0xff]  }
 0x590   : > { %v1590_v34 = vsel %vm1588_vm6, %v1581_v3, 0  ;;  %v1636_v4 = vsel %vm1588_vm6, %v1582_v30, 0  ;;  %v1682_v2 = vsel %vm1588_vm6, %v1583_v5, 0  ;;  %v1728_v28 = vsel %vm1588_vm6, %v1584_v6, 0 }
 0x591   : > { %2648 = vmatpush3.bf16.msra.mxu0 %v1590_v34  ;;  %2654 = vmatpush3.bf16.msra.mxu1 %v1636_v4 }
 0x592   : > { %2659 = vmatprep.subr.bf16.mxu0 %v2956_v48  ;;  %2665 = vmatprep.subr.bf16.mxu1 %v2956_v48 }
 0x594   : > { %2650 = vmatmul.mubr.msk.bf16.vlgmr.msra.gmra.mrb[4].mxu0 %vm1532_vm5, %v1577_v7  ;;  %2656 = vmatmul.mubr.msk.bf16.vlgmr.msra.gmra.mrb[16].mxu1 %vm1532_vm5, %v1578_v8 }
 0x595   : > { %2660 = vmatpush3.bf16.msra.mxu0 %v1682_v2  ;;  %2666 = vmatpush3.bf16.msra.mxu1 %v1728_v28 }
 0x596   : > { %2661 = vmatprep.mubr.msk.bf16.mxu0 %vm2957_vm2, %v2956_v48  ;;  %2667 = vmatprep.mubr.msk.bf16.mxu1 %vm2957_vm2, %v2956_v48 }
 0x597   : > { %2671 = vmatprep.subr.bf16.mxu0 %v2956_v48  ;;  %2683 = vmatprep.subr.bf16.mxu1 %v2956_v48 }
 0x5a4   : > { %v1565_v10 = vpop.xlane.xlu0 %1564 }
 0x5a5   : > { %2841 = vrcp.f32 %v1565_v10 }
 0x5ac   : > { %v1568_v12 = vpop.xlane.xlu1 %1567 }
 0x5ad   : > { %2843 = vrcp.f32 %v1568_v12 }
 0x5af   : > { %v2842_v13 = vpop.eup %2841 }
 0x5b0   : > { %v1575_v14 = vmul.f32 %v2842_v13, %v3322_v9 }
 0x5b2   : > { %v1579_v15 = vpack.c.bf16 %v1575_v14, %v1575_v14 }
 0x5b4   : > { %2662 = vmatmul.mubr.msk.bf16.vlgmr.msra.gmra.mrb[8].mxu0 %vm1532_vm5, %v1579_v15 }
 0x5b5   : > { %2679 = vmatprep.mubr.msk.bf16.mxu0 %vm2957_vm2, %v2956_v48  ;;  %2672 = vmatpush3.bf16.msra.mxu0 %v2813_v20 }
 0x5b6   : > { %2673 = vmatprep.subr.bf16.mxu0 %v2956_v48 }
 0x5b7   : > { %v2844_v16 = vpop.eup %2843 }
 0x5b8   : > { %v1576_v17 = vmul.f32 %v2844_v16, %v3326_v11 }
 0x5b9   : > { %2674 = vmatpush3.bf16.msra.mxu0 %v2814_v21 }
 0x5ba   : > { %v1580_v18 = vpack.c.bf16 %v1576_v17, %v1576_v17  ;;  %2675 = vmatprep.subr.bf16.mxu0 %v2956_v48 }
 0x5bc   : > { %2668 = vmatmul.mubr.msk.bf16.vlgmr.msra.gmra.mrb[20].mxu1 %vm1532_vm5, %v1580_v18 }
 0x5bd   : > { %2691 = vmatprep.mubr.msk.bf16.mxu1 %vm2957_vm2, %v2956_v48  ;;  %2676 = vmatpush3.bf16.msra.mxu0 %v2815_v50 }
 0x5be   : > { %2677 = vmatprep.subr.bf16.mxu0 %v2956_v48 }
 0x5c1   : > { %2678 = vmatpush3.bf16.msra.mxu0 %v2816_v60  ;;  %v2828_v60 = vld [vmem:[%s3174_s30 + $0x38] sm:$0xff]  }
 0x5c2   : > { %2695 = vmatprep.subr.bf16.mxu0 %v2956_v48 }
 0x667   : > { %v1626_v9 = vpop.f32.mrb[4].mxu0  ;;  %v1672_v22 = vpop.f32.mrb[16].mxu1 }
 0x668   : > { %v2651_v23 = vpop.f32.mrb[5].mxu0  ;;  %v2657_v24 = vpop.f32.mrb[17].mxu1 }
 0x669   : > { %v1629_v26 = vpop.f32.mrb[6].mxu0  ;;  %v1675_v11 = vpop.f32.mrb[18].mxu1 }
 0x66a   : > { %v2652_v27 = vpop.f32.mrb[7].mxu0  ;;  %v2658_v31 = vpop.f32.mrb[19].mxu1 }
 0x687   : > { %v1718_v32 = vpop.f32.mrb[8].mxu0 }
 0x688   : > { %v1770_v19 = vcombine.low %v1626_v9, %v1718_v32  ;;  %v1771_v33 = vcombine.high %v1626_v9, %v1718_v32  ;;  %v2663_v35 = vpop.f32.mrb[9].mxu0  ;;  %v2555_v9 = vld [vmem:[%s3590_s27] ss:$0 sm:$0xff] }
 0x689   : > { %v1721_v36 = vpop.f32.mrb[10].mxu0 }
 0x68a   : > { %v2664_v37 = vpop.f32.mrb[11].mxu0  ;;  %v1778_v43 = vrot.slane %v1770_v19, %v3231_v47  ;;  %v1785_v44 = vrot.slane %v1771_v33, %v3231_v47 }
 0x68b   : > { %v2817_v37 = vld [vmem:[%s3165_s5] sm:$0xff]  }
 0x68c   : > { %2684 = vmatpush3.bf16.msra.mxu1 %v2817_v37 }
 0x68d   : > { %2685 = vmatprep.subr.bf16.mxu1 %v2956_v48 }
 0x68f   : > { %v1764_v38 = vpop.f32.mrb[20].mxu1 }
 0x690   : > { %v1786_v39 = vcombine.low %v1672_v22, %v1764_v38  ;;  %v1787_v40 = vcombine.high %v1672_v22, %v1764_v38  ;;  %v2669_v41 = vpop.f32.mrb[21].mxu1  ;;  %v2818_v38 = vld [vmem:[%s3165_s5 + $0x8] sm:$0xff]  }
 0x691   : > { %v1767_v42 = vpop.f32.mrb[22].mxu1  ;;  %2686 = vmatpush3.bf16.msra.mxu1 %v2818_v38 }
 0x692   : > { %v1794_v45 = vrot.slane %v1786_v39, %v3231_v47  ;;  %v1801_v46 = vrot.slane %v1787_v40, %v3231_v47  ;;  %v2670_v49 = vpop.f32.mrb[23].mxu1  ;;  %2687 = vmatprep.subr.bf16.mxu1 %v2956_v48  ;;  %v2820_v39 = vld [vmem:[%s3165_s5 + $0x18] sm:$0xff]  }
 0x694   : > { %v1802_v51 = vcombine.low %v1778_v43, %v1794_v45  ;;  %v1803_v53 = vcombine.high %v1778_v43, %v1794_v45  ;;  %v1818_v54 = vcombine.low %v1785_v44, %v1801_v46  ;;  %v1819_v55 = vcombine.high %v1785_v44, %v1801_v46  ;;  %v2561_v44 = vld [vmem:[%s3591_s25] ss:$0 sm:$0xff] }
 0x695   : > { %v2562_v46 = vld [vmem:[%s3592_s17] ss:$0 sm:$0xff] }
 0x696   : > { %v1810_v56 = vrot.slane %v1802_v51, %v3236_v52  ;;  %v1817_v57 = vrot.slane %v1803_v53, %v3236_v52  ;;  %v1826_v58 = vrot.slane %v1818_v54, %v3236_v52  ;;  %v1833_v59 = vrot.slane %v1819_v55, %v3236_v52  ;;  %v2821_v53 = vld [vmem:[%s3174_s30] sm:$0xff]   ;;  %v2822_v54 = vld [vmem:[%s3174_s30 + $0x8] sm:$0xff]   ;;  %v2823_v55 = vld [vmem:[%s3174_s30 + $0x10] sm:$0xff]  }
 0x698   : > { %v1838_v61 = vcombine.low %v1810_v56, %v1817_v57  ;;  %v2553_v62 = vcombine.high %v1810_v56, %v1817_v57  ;;  %v1854_v63 = vcombine.low %v1826_v58, %v1833_v59  ;;  %v2554_v0 = vcombine.high %v1826_v58, %v1833_v59  ;;  %v2824_v56 = vld [vmem:[%s3174_s30 + $0x18] sm:$0xff]   ;;  %v2825_v57 = vld [vmem:[%s3174_s30 + $0x20] sm:$0xff]   ;;  %v2826_v58 = vld [vmem:[%s3174_s30 + $0x28] sm:$0xff]  }
 0x699   : > { %v2827_v59 = vld [vmem:[%s3174_s30 + $0x30] sm:$0xff]  }
 0x69a   : > { %v1845_v1 = vrot.slane %v1838_v61, %v3231_v47  ;;  %v1853_v3 = vrot.slane %v2553_v62, %v3231_v47  ;;  %v1861_v30 = vrot.slane %v1854_v63, %v3231_v47  ;;  %v1869_v34 = vrot.slane %v2554_v0, %v3231_v47  ;;  %v2563_v61 = vld [vmem:[%s722_s6] ss:$0 sm:$0xff] }
 0x69c   : > { %v1871_v4 = vcombine.high %v1845_v1, %v1853_v3  ;;  %v1887_v5 = vcombine.high %v1861_v30, %v1869_v34  ;;  %v1870_v6 = vcombine.low %v1845_v1, %v1853_v3  ;;  %v1886_v7 = vcombine.low %v1861_v30, %v1869_v34 }
 0x69e   : > { %v1885_v8 = vrot.slane %v1871_v4, %v3236_v52  ;;  %v1901_v2 = vrot.slane %v1887_v5, %v3236_v52  ;;  %v1878_v28 = vrot.slane %v1870_v6, %v3236_v52  ;;  %v1894_v10 = vrot.slane %v1886_v7, %v3236_v52 }
 0x6a0   : > { %v1904_v12 = vcombine.low %v1885_v8, %v1901_v2  ;;  %v1903_v13 = vcombine.high %v1878_v28, %v1894_v10  ;;  %v1905_v14 = vcombine.high %v1885_v8, %v1901_v2  ;;  %v1902_v15 = vcombine.low %v1878_v28, %v1894_v10  ;;  %v2569_v10 = vld [vmem:[%s730_s18] ss:$0 sm:$0xff] }
 0x6a2   : > { %1911 = vrot.lane.b32.xlu1 %v1904_v12, %s2959_s28  ;;  %1907 = vrot.lane.b32.xlu0 %v1903_v13, %s2960_s0 }
 0x6a6   : > { %1915 = vrot.lane.b32.xlu0 %v1905_v14, %s2961_s20 }
 0x714   : > { %v1908_v47 = vpop.permute.xlu0 %1907  ;;  %v1912_v16 = vpop.permute.xlu1 %1911 }
 0x715   : > { %v1918_v17 = vsel %vm1333_vm3, %v1902_v15, %v1908_v47 }
 0x716   : > { %v1920_v20 = vsel %vm1919_vm7, %v1918_v17, %v1912_v16 }
 0x718   : > { %v1916_v18 = vpop.permute.xlu0 %1915 }
 0x719   : > { %v1922_v52 = vsel %vm1921_vm8, %v1920_v20, %v1916_v18 }
 0x71a   : > { %v1923_v21 = vpack.c.bf16 %v1922_v52, %v1922_v52 }
 0x71c   : > { %2680 = vmatmul.mubr.msk.bf16.vlgmr.msra.gmra.mrb[12].mxu0 %vm837_vm1, %v1923_v21 }
 0x71d   : > { %2711 = vmatprep.mubr.msk.bf16.mxu0 %vm2957_vm2, %v2956_v48  ;;  %2696 = vmatpush3.bf16.msra.mxu0 %v2821_v53 }
 0x71e   : > { %2697 = vmatprep.subr.bf16.mxu0 %v2956_v48 }
 0x721   : > { %2698 = vmatpush3.bf16.msra.mxu0 %v2822_v54 }
 0x722   : > { %2699 = vmatprep.subr.bf16.mxu0 %v2956_v48 }
 0x725   : > { %2700 = vmatpush3.bf16.msra.mxu0 %v2823_v55 }
 0x726   : > { %2701 = vmatprep.subr.bf16.mxu0 %v2956_v48 }
 0x729   : > { %2702 = vmatpush3.bf16.msra.mxu0 %v2824_v56 }
 0x72a   : > { %2703 = vmatprep.subr.bf16.mxu0 %v2956_v48 }
 0x72d   : > { %2704 = vmatpush3.bf16.msra.mxu0 %v2825_v57 }
 0x72e   : > { %2705 = vmatprep.subr.bf16.mxu0 %v2956_v48 }
 0x731   : > { %2706 = vmatpush3.bf16.msra.mxu0 %v2826_v58 }
 0x732   : > { %2707 = vmatprep.subr.bf16.mxu0 %v2956_v48 }
 0x735   : > { %2708 = vmatpush3.bf16.msra.mxu0 %v2827_v59 }
 0x736   : > { %2709 = vmatprep.subr.bf16.mxu0 %v2956_v48 }
 0x739   : > { %2710 = vmatpush3.bf16.msra.mxu0 %v2828_v60 }
 0x7ef   : > { %v2000_v22 = vpop.f32.mrb[12].mxu0 }
 0x7f0   : > { %v2001_v23 = vadd.f32 %v2555_v9, %v2000_v22  ;;  %v2681_v24 = vpop.f32.mrb[13].mxu0 }
 0x7f1   : > { %v2003_v26 = vpop.f32.mrb[14].mxu0 }
 0x7f2   : > { %v2682_v11 = vpop.f32.mrb[15].mxu0  ;;  %v2006_v27 = vadd.f32 %v2001_v23, %v3210_v25  ;;  %v2819_v25 = vld [vmem:[%s3165_s5 + $0x10] sm:$0xff]  }
 0x7f3   : > { %2688 = vmatpush3.bf16.msra.mxu1 %v2819_v25  ;;  %v2578_v11 = vld [vmem:[%s733_s2] ss:$0 sm:$0xff] }
 0x7f4   : > { %v2009_v31 = vsel %vm837_vm1, %v2006_v27, 0.0  ;;  %2689 = vmatprep.subr.bf16.mxu1 %v2956_v48 }
 0x7f5   : > { %2010 = vadd.xlane.f32.xlu1 %v2009_v31  ;;  %v2579_v31 = vld [vmem:[%s736_s24] ss:$0 sm:$0xff] }
 0x7f7   : > { %2690 = vmatpush3.bf16.msra.mxu1 %v2820_v39 }
 0x882   : > { %v2011_v32 = vpop.xlane.xlu1 %2010 }
 0x883   : > { %v2013_v19 = vmul.f32 0.015625, %v2011_v32 }
 0x885   : > { %v2014_v33 = vsub.f32 %v2006_v27, %v2013_v19 }
 0x887   : > { %v2015_v35 = vmul.f32 %v2014_v33, %v2014_v33 }
 0x889   : > { %v2016_v36 = vsel %vm837_vm1, %v2015_v35, 0.0 }
 0x88a   : > { %2017 = vadd.xlane.f32.xlu0 %v2016_v36 }
 0x917   : > { %v2018_v40 = vpop.xlane.xlu0 %2017 }
 0x918   : > { %v2019_v41 = vmul.f32 0.015625, %v2018_v40 }
 0x91a   : > { %v2020_v42 = vadd.f32 1e-12, %v2019_v41 }
 0x91c   : > { %2845 = vrsqrt.f32 %v2020_v42 }
 0x926   : > { %v2846_v43 = vpop.eup %2845 }
 0x927   : > { %v2022_v45 = vmul.f32 %v2846_v43, %v2014_v33  ;;  %v2276_v33 = vld [vmem:[%s3594_s23] sm:$0x1] (!%p2580_p1) }
 0x928   : > { %v2293_v35 = vsel (!%p2580_p1), %vm2292_vm9, %v2276_v33, 0.0  ;;  %v2280_v36 = vrot.slane (!%p2580_p1), %v2276_v33, %v3218_v29 }
 0x929   : > { %v2029_v49 = vmul.f32 %v2561_v44, %v2022_v45 }
 0x92b   : > { %v2036_v50 = vadd.f32 %v2562_v46, %v2029_v49 }
 0x92d   : > { %v2037_v51 = vpack.c.bf16 %v2036_v50, %v2036_v50 }
 0x92f   : > { %2692 = vmatmul.mubr.msk.bf16.vlgmr.msra.gmra.mrb[24].mxu1 %vm837_vm1, %v2037_v51 }
 0xa02   : > { %v2114_v62 = vpop.f32.mrb[24].mxu1 }
 0xa03   : > { %v2115_v63 = vadd.f32 %v2563_v61, %v2114_v62  ;;  %v2693_v0 = vpop.f32.mrb[25].mxu1 }
 0xa04   : > { %v2117_v1 = vpop.f32.mrb[26].mxu1 }
 0xa05   : > { %v2120_v3 = vmul.f32 %v2115_v63, %v2115_v63  ;;  %v2694_v30 = vpop.f32.mrb[27].mxu1 }
 0xa07   : > { %v2121_v34 = vmul.f32 %v2120_v3, %v2115_v63 }
 0xa09   : > { %v2122_v4 = vmul.f32 0.044715, %v2121_v34 }
 0xa0b   : > { %v2123_v5 = vadd.f32 %v2122_v4, %v2115_v63 }
 0xa0d   : > { %v2124_v6 = vmul.f32 0.7978846, %v2123_v5 }
 0xa0f   : > { %2847 = vtanh.f32 %v2124_v6 }
 0xa19   : > { %v2848_v7 = vpop.eup %2847 }
 0xa1a   : > { %v2126_v48 = vadd.f32 1.0, %v2848_v7 }
 0xa1c   : > { %v2127_v8 = vmul.f32 0.5, %v2126_v48 }
 0xa1e   : > { %v2128_v2 = vmul.f32 %v2127_v8, %v2115_v63 }
 0xa20   : > { %v2129_v28 = vpack.c.bf16 %v2128_v2, %v2128_v2 }
 0xa22   : > { %2712 = vmatmul.mubr.bf16.vlgmr.msra.gmra.mrb[16].mxu0 %v2129_v28 }
 0xaf5   : > { %v2235_v12 = vpop.f32.mrb[16].mxu0 }
 0xaf6   : > { %v2236_v13 = vadd.f32 %v2569_v10, %v2235_v12  ;;  %v2713_v14 = vpop.f32.mrb[17].mxu0 }
 0xaf7   : > { %v2238_v15 = vpop.f32.mrb[18].mxu0 }
 0xaf8   : > { %v2714_v47 = vpop.f32.mrb[19].mxu0  ;;  %v2241_v16 = vadd.f32 %v2236_v13, %v2036_v50 }
 0xafa   : > { %v2244_v17 = vsel %vm837_vm1, %v2241_v16, 0.0 }
 0xafb   : > { %2245 = vadd.xlane.f32.xlu0 %v2244_v17 }
 0xaff   : > { %2294 = vadd.xlane.f32.xlu0 (!%p2580_p1), %v2293_v35 }
 0xb15   : > { %2282 = vbcast.lane.b32.xlu0 (!%p2580_p1), %v2280_v36, 256 }
 0xb88   : > { %v2246_v18 = vpop.xlane.xlu0 %2245 }
 0xb89   : > { %v2247_v20 = vmul.f32 0.015625, %v2246_v18 }
 0xb8b   : > { %v2248_v52 = vsub.f32 %v2241_v16, %v2247_v20 }
 0xb8c   : > { %v2295_v37 = vpop.xlane.xlu0 (!%p2580_p1), %2294 }
 0xb8d   : > { %v2249_v21 = vmul.f32 %v2248_v52, %v2248_v52  ;;  %v2296_v25 = vmax.f32 (!%p2580_p1), %v2295_v37, 1e-09 }
 0xb8f   : > { %v2250_v9 = vsel %vm837_vm1, %v2249_v21, 0.0 }
 0xb90   : > { %2251 = vadd.xlane.f32.xlu1 %v2250_v9  ;;  %v2283_v38 = vpop.permute.xlu0 (!%p2580_p1), %2282 }
 0xc1d   : > { %v2252_v22 = vpop.xlane.xlu1 %2251 }
 0xc1e   : > { %v2253_v23 = vmul.f32 0.015625, %v2252_v22 }
 0xc20   : > { %v2254_v24 = vadd.f32 1e-12, %v2253_v23 }
 0xc22   : > { %2849 = vrsqrt.f32 %v2254_v24 }
 0xc23   : > { %2851 = vrcp.f32 (!%p2580_p1), %v2296_v25 }
 0xc2c   : > { %v2850_v26 = vpop.eup %2849 }
 0xc2d   : > { %v2256_v27 = vmul.f32 %v2850_v26, %v2248_v52  ;;  %2275 = sbr.rel (%p2580_p1) target bundleno = 3141 (0xc45), region = 92  ;;  %v2852_v49 = vpop.eup (!%p2580_p1), %2851 }
 0xc2f   : > { %v2263_v32 = vmul.f32 %v2578_v11, %v2256_v27 }
 0xc31   : > { %v2270_v19 = vadd.f32 %v2579_v31, %v2263_v32 }
 0xc33   : > { %2271 = vst.msk [vmem:[#allocation2] sm:$0xff] %vm837_vm1, %v2270_v19  ;;  %v2284_v39 = vmul.f32 (!%p2580_p1), %v2283_v38, %v2270_v19 }
 0xc35   : > { %v2285_v40 = vsel %vm837_vm1, %v2284_v39, 0.0 }
 0xc36   : > { %v2286_v41 = vrot.slane %v2285_v40, 4 }
 0xc38   : > { %v2287_v42 = vadd.f32 %v2286_v41, %v2285_v40 }
 0xc3a   : > { %v2288_v43 = vrot.slane %v2287_v42, 2 }
 0xc3c   : > { %v2289_v44 = vadd.f32 %v2288_v43, %v2287_v42 }
 0xc3e   : > { %v2290_v45 = vrot.slane %v2289_v44, 1 }
 0xc40   : > { %v2291_v46 = vadd.f32 %v2290_v45, %v2289_v44 }
 0xc42   : > { %v2298_v50 = vmul.f32 %v2852_v49, %v2291_v46 }
 0xc44   : > { %2300 = vst.msk [vmem:[%s3190_s1] sm:$0x1] %vm2299_vm10, %v2298_v50 }
 0xc45 PF: > { %s3595_s21 = sld [smem:[#allocation9_spill]]  ;;  %s3597_s4 = sld [smem:[#allocation28_spill]] }
 0xc46   : > { %s2314_s3 = sshll.u32 %s3190_s1, 4  ;;  %s3598_s26 = sand.u32 1, %s2923_s22   ;;  %s2315_s3 = int_to_ptr.vmem [resolvable:$true] %s2314_s3 }
 0xc47   : > { %s2302_s17 = scalar_lea.sflag [#allocation4], %s3598_s26  ;;  %s2853_s5 = scalar_lea.vmem %s2315_s3, 16 }
 0xc48   : > { %p2854_p2 = scmp.ne.s32.totalorder %s2315_s3, %s2853_s5  ;;  %s2962_s29 = smov [#allocation3]  }
 0xc49   : > { %s2857_s30 = sshll.u32 %s2962_s29, 4  ;;  %s2858_s30 = int_to_ptr.vmem [resolvable:$false] %s2857_s30 }
 0xc4a   : > { %p2855_p4 = pnand %p2854_p2, %p3097_p3  ;;  %s2859_s6 = scalar_lea.vmem %s2858_s30, 32 }
 0xc4b   : > { %s2581_s24 = sshll.u32 %s3595_s21, 4  ;;  %p2860_p6 = scmp.lt.s32.totalorder %s2315_s3, %s2858_s30 }
 0xc4c   : > { %s3471_s25 = scalar_lea.hbm %s3597_s4, %s2581_s24  ;;  %p2856_p5 = pneg %p2855_p4 }
 0xc4d   : > { %p2861_p7 = scmp.lt.s32.totalorder %s2859_s6, %s2853_s5 }
 0xc4f   : > { %p2862_p8 = por %p2861_p7, %p2860_p6 }
 0xc51   : > { %p2863_p10 = pnand %p2862_p8, %p2856_p5 }
 0xc53   : > { %2866 = shalt.err (!%p2863_p10)
}
 0xc54   : > { %s2867_s1 = scalar_lea.hbm %s3471_s25, 16  ;;  %s2871_s0 = scalar_lea.hbm %s3597_s4, 32 }
 0xc55   : > { %p2868_p11 = scmp.ne.s32.totalorder %s3471_s25, %s2867_s1  ;;  %p2872_p0 = scmp.lt.u32.totalorder %s3471_s25, %s3597_s4 }
 0xc56   : > { %p2873_p1 = scmp.lt.u32.totalorder %s2871_s0, %s2867_s1  ;;  %p2875_p4 = scmp.lt.u32.totalorder %s2867_s1, %s3471_s25 }
 0xc57   : > { %p2869_p12 = pnand %p2868_p11, %p3097_p3 }
 0xc58   : > { %p2874_p2 = por %p2873_p1, %p2872_p0 }
 0xc59   : > { %p2870_p13 = pneg %p2869_p12 }
 0xc5a   : > { %p2876_p5 = por %p2875_p4, %p2874_p2 }
 0xc5c   : > { %p2877_p6 = pnand %p2876_p5, %p2870_p13 }
 0xc5e   : > { %2880 = shalt.err (!%p2877_p6)
}
 0xc5f   : > { %2715 = dma.vmem_to_hbm [thread:$0]  (%p3097_p3), %s2315_s3, 16, %s3471_s25, %s2302_s17  }
 0xc60 PF: > { %s3599_s23 = sld [smem:[#allocation12_spill]]  ;;  %s3600_s21 = sld [smem:[#allocation6_spill]] }
 0xc66   : > { %p2721_p7 = scmp.ge.s32.totalorder %s3599_s23, 2  ;;  %s2326_s27 = sand.u32 1, %s3600_s21  }
 0xc67   : > { %s2327_s16 = scalar_lea.sflag [#allocation4], %s2326_s27 }
 0xc68   : > { %p2718_p8 = pnand %p2721_p7, %p3107_p9 }
 0xc6a   : > { %2914 = dma.done.wait (!%p2718_p8), %s2327_s16, 16  }
 0xc6b   : > { %2916 = vsyncadd (!%p2718_p8), %s2327_s16, 4294967280  ;;  %s29_s28 = sadd.s32 1, %s3599_s23   ;;  %s3602_s26 = sld [smem:[#allocation7_spill]] }
 0xc6c   : > { %p26_p10 = scmp.ge.s32.totalorder %s29_s28, 6   ;;  %s3603_s23 = sld [smem:[#allocation17_spill]] }
 0xc6d   : > { %s3604_s24 = sld [smem:[#allocation10_spill]]  ;;  %s3605_s25 = sld [smem:[#allocation11_spill]] }
 0xc6e   : > { %s3606_s2 = sld [smem:[#allocation13_spill]]  ;;  %s3607_s27 = sld [smem:[#allocation15_spill]] }
 0xc6f   : > { %s3608_s21 = smov %s2923_s22  ;;  %28 = sbr.rel (!%p26_p10) target bundleno = 14 (0xe), region = 166 }
 0xc71   : > { %s3609_s22 = smov %s3602_s26 }
 0xc74   : > { %s3610_s26 = smov %s3606_s2 }
 0xc76   :  { %2331 = vsyncpa [#allocation4], 1 }
 0xc77   :  { %2333 = vsyncpa [#allocation4 + $0x1], 1 }

</bundles_post_ra>
